<compile_context>
chip_gen: v6e
topology: v6e:2x2x1
jax: 0.10.0
libtpu: 0.0.40
codegen_flags: <defaults>
</compile_context>

<pallas_src>
import jax
import jax.numpy as jnp
from jax.experimental import pallas as pl
from jax.experimental.pallas import tpu as pltpu


def residual_block_kernel(x_ref, w1_ref, b1_ref, w2_ref, b2_ref, alpha_ref,
                          o_ref, xpad_sc):
    # x_ref / o_ref : (NB, H, W*C)            lane-dense (W*C is a 128-multiple)
    # w*_ref        : (3, (W+4)*C, W*C)       banded/Toeplitz weights, one band per dy
    # b*_ref        : (1, W*C)                bias tiled per output column
    # alpha_ref     : SMEM f32[2]             PReLU alphas
    # xpad_sc       : VMEM (NB, H+2, (W+4)*C) zero-halo padded tile (reused for x and y)
    NB, H, WC = x_ref.shape
    WPC = xpad_sc.shape[2]                    # (W + 4) * C
    C = (WPC - WC) // 4
    pad = 2 * C                               # 128-lane-aligned interior offset
    M = NB * H

    # --- halo-only zeroing (cheap; done every step since scratch is per-core) -----
    zrow = jnp.zeros((NB, 1, WPC), jnp.float32)
    xpad_sc[:, 0:1, :] = zrow                                   # top halo row
    xpad_sc[:, H + 1:H + 2, :] = zrow                           # bottom halo row
    xpad_sc[:, 1:H + 1, 0:pad] = jnp.zeros((NB, H, pad), jnp.float32)        # left
    xpad_sc[:, 1:H + 1, pad + WC:WPC] = jnp.zeros((NB, H, WPC - pad - WC),
                                                  jnp.float32)               # right

    # --- load x and write the (aligned) interior ----------------------------------
    x_flat = x_ref[...]                                          # (NB, H, W*C)
    xpad_sc[:, 1:H + 1, pad:pad + WC] = x_flat                   # unmasked lane store

    a1 = alpha_ref[0]
    a2 = alpha_ref[1]

    def conv(w_ref):
        # 3 MXU matmuls (one per dy); LHS reshape only folds leading dims (free).
        acc = jnp.zeros((M, WC), jnp.float32)
        for dy in range(3):
            lhs = xpad_sc[:, dy:dy + H, :].reshape(M, WPC)       # (NB*H, (W+4)*C)
            acc = acc + jnp.dot(lhs, w_ref[dy],
                                preferred_element_type=jnp.float32)
        return acc

    # --- conv1 + PReLU (intermediate stays in VMEM) --------------------------------
    acc1 = conv(w1_ref) + b1_ref[...]
    y = jnp.where(acc1 > 0, acc1, acc1 * a1)                     # (NB*H, W*C)
    # reuse the padded scratch for conv2's input: halo is already zero,
    # interior is fully overwritten (x has already been consumed as a value).
    xpad_sc[:, 1:H + 1, pad:pad + WC] = y.reshape(NB, H, WC)

    # --- conv2 + residual add + final PReLU ----------------------------------------
    acc2 = conv(w2_ref) + b2_ref[...]
    acc2 = acc2 + x_flat.reshape(M, WC)                          # shortcut
    out = jnp.where(acc2 > 0, acc2, acc2 * a2)
    o_ref[...] = out.reshape(NB, H, WC)                          # lane-dense store


def _pack_banded_weight(w, W):
    """torch (Cout, Cin, 3, 3) -> banded (3, (W+4)*C, W*C).

    t[dy, (col+dx+1)*C + cin, col*C + cout] = w[cout, cin, dy, dx]; matches a padded
    scratch whose interior starts at lane offset 2*C (dx slabs at offsets C, 2C, 3C).
    """
    C = w.shape[0]
    wk = jnp.transpose(w, (2, 3, 1, 0)).reshape(3, 3 * C, C).astype(jnp.float32)
    t = jnp.zeros((3, (W + 4) * C, W * C), jnp.float32)
    for dy in range(3):
        for col in range(W):
            t = t.at[dy, (col + 1) * C:(col + 4) * C,
                     col * C:(col + 1) * C].set(wk[dy])
    return t


def _pick_batch_block(N, H, W, max_m=4096):
    """Largest divisor NB of N with NB*H*W <= max_m, keeping >= 2 grid steps when
    N >= 2 so both v7x TensorCores get work (no effect on v5e/v6e)."""
    min_steps = min(2, N)
    best = 1
    for nb in range(1, N + 1):
        if N % nb:
            continue
        if nb * H * W > max_m:
            continue
        if N // nb < min_steps:
            continue
        best = nb
    return best


def residual_block_forward(x_nchw, params):
    """Fused Pallas forward. x_nchw: (N, 64, H, W) f32. Returns (N, 64, H, W) f32."""
    w1, b1, a1, w2, b2, a2 = params
    N, C, H, W = x_nchw.shape
    WC = W * C
    WPC = (W + 4) * C

    # NCHW -> channels-last, lane-flattened (N, H, W*C).
    x = jnp.transpose(x_nchw, (0, 2, 3, 1)).astype(jnp.float32).reshape(N, H, WC)

    w1t = _pack_banded_weight(w1, W)
    w2t = _pack_banded_weight(w2, W)
    b1t = jnp.tile(b1.astype(jnp.float32).reshape(1, C), (1, W))   # (1, W*C)
    b2t = jnp.tile(b2.astype(jnp.float32).reshape(1, C), (1, W))
    alphas = jnp.stack([a1.reshape(()), a2.reshape(())]).astype(jnp.float32)  # (2,)

    NB = _pick_batch_block(N, H, W)
    grid = (N // NB,)

    # VMEM budget: banded weights (double-buffered) + scratch + I/O blocks + headroom.
    weight_bytes = 2 * 3 * WPC * WC * 4
    vmem_limit = int(2 * weight_bytes + (8 << 20))

    out_flat = pl.pallas_call(
        residual_block_kernel,
        out_shape=jax.ShapeDtypeStruct((N, H, WC), jnp.float32),
        grid=grid,
        in_specs=[
            pl.BlockSpec((NB, H, WC), lambda n: (n, 0, 0)),           # x
            pl.BlockSpec((3, WPC, WC), lambda n: (0, 0, 0)),          # w1 (banded)
            pl.BlockSpec((1, WC), lambda n: (0, 0)),                  # b1 (tiled)
            pl.BlockSpec((3, WPC, WC), lambda n: (0, 0, 0)),          # w2 (banded)
            pl.BlockSpec((1, WC), lambda n: (0, 0)),                  # b2 (tiled)
            pl.BlockSpec(memory_space=pltpu.MemorySpace.SMEM),        # PReLU alphas
        ],
        out_specs=pl.BlockSpec((NB, H, WC), lambda n: (n, 0, 0)),
        scratch_shapes=[
            pltpu.VMEM((NB, H + 2, WPC), jnp.float32),                # padded x/y tile
        ],
        compiler_params=pltpu.CompilerParams(
            dimension_semantics=("parallel",),
            vmem_limit_bytes=vmem_limit),
    )(x, w1t, b1t, w2t, b2t, alphas)

    out = out_flat.reshape(N, H, W, C)
    return jnp.transpose(out, (0, 3, 1, 2))                           # back to NCHW


def residual_block_ref(x, params):
    """Pure-JAX reference matching the PyTorch module semantics."""
    w1, b1, a1, w2, b2, a2 = params

    def conv(x, w, b):
        y = jax.lax.conv_general_dilated(
            x, w, window_strides=(1, 1), padding=((1, 1), (1, 1)),
            dimension_numbers=("NCHW", "OIHW", "NCHW"))
        return y + b[None, :, None, None]

    def prelu(x, a):
        return jnp.where(x > 0, x, a[0] * x)

    out = prelu(conv(x, w1, b1), a1)
    out = conv(out, w2, b2) + x
    return prelu(out, a2)


def init_params(key, C=64):
    k1, k2, k3, k4 = jax.random.split(key, 4)
    scale = 1.0 / jnp.sqrt(C * 9.0)  # kaiming-uniform-ish bound, deterministic
    w1 = jax.random.uniform(k1, (C, C, 3, 3), jnp.float32, -scale, scale)
    b1 = jax.random.uniform(k2, (C,), jnp.float32, -scale, scale)
    w2 = jax.random.uniform(k3, (C, C, 3, 3), jnp.float32, -scale, scale)
    b2 = jax.random.uniform(k4, (C,), jnp.float32, -scale, scale)
    a1 = jnp.full((1,), 0.25, jnp.float32)  # nn.PReLU() default: 1 param, init 0.25
    a2 = jnp.full((1,), 0.25, jnp.float32)
    return (w1, b1, a1, w2, b2, a2)


if __name__ == "__main__":
    key = jax.random.PRNGKey(0)
    kx, kp = jax.random.split(key)
    N, C, H, W = 2, 64, 8, 8          # module hard-codes 64 channels
    x = jax.random.normal(kx, (N, C, H, W), jnp.float32)
    params = init_params(kp, C)

    out = jax.jit(residual_block_forward)(x, params)
    out = jax.block_until_ready(out)

    ref = residual_block_ref(x, params)
    assert out.shape == (N, C, H, W)
    err = float(jnp.max(jnp.abs(out - ref)))
    assert jnp.allclose(out, ref, atol=2e-4, rtol=2e-4), err
    print("KERNEL_OK")
</pallas_src>

<mosaic_0001>
module attributes {stable_mosaic.version = 11 : i64} {
  func.func @residual_block_kernel(%arg0: i32, %arg1: memref<1x8x512xf32, #tpu.memory_space<vmem>>, %arg2: memref<3x768x512xf32, #tpu.memory_space<vmem>>, %arg3: memref<1x512xf32, #tpu.memory_space<vmem>>, %arg4: memref<3x768x512xf32, #tpu.memory_space<vmem>>, %arg5: memref<1x512xf32, #tpu.memory_space<vmem>>, %arg6: memref<2xf32, #tpu.memory_space<smem>>, %arg7: memref<1x8x512xf32, #tpu.memory_space<vmem>>, %arg8: memref<1x10x768xf32, #tpu.memory_space<vmem>>) attributes {dimension_semantics = [#tpu.dimension_semantics<parallel>], iteration_bounds = array<i64: 2>, scalar_prefetch = 0 : i64, scratch_operands = 1 : i64, tpu.core_type = #tpu.core_type<tc>, window_params = [{transform_indices = @transform_0, window_bounds = array<i64: 1, 8, 512>}, {pipeline_mode = #tpu.pipeline_mode<synchronous>, transform_indices = @transform_1, window_bounds = array<i64: 3, 768, 512>}, {pipeline_mode = #tpu.pipeline_mode<synchronous>, transform_indices = @transform_2, window_bounds = array<i64: 1, 512>}, {pipeline_mode = #tpu.pipeline_mode<synchronous>, transform_indices = @transform_3, window_bounds = array<i64: 3, 768, 512>}, {pipeline_mode = #tpu.pipeline_mode<synchronous>, transform_indices = @transform_4, window_bounds = array<i64: 1, 512>}, {transform_indices = @transform_5, window_bounds = array<i64: 2>}, {transform_indices = @transform_6, window_bounds = array<i64: 1, 8, 512>}]} {
    %cst = arith.constant 0.000000e+00 : f32
    %0 = vector.broadcast %cst : f32 to vector<1x1x768xf32>
    %c0 = arith.constant 0 : index
    %c0_0 = arith.constant 0 : index
    %c0_1 = arith.constant 0 : index
    %1 = vector.load %arg8[%c0, %c0_0, %c0_1] : memref<1x10x768xf32, #tpu.memory_space<vmem>>, vector<1x1x768xf32>
    tpu.vector_store %arg8[%c0, %c0_0, %c0_1], %0 {strides = array<i32>} : memref<1x10x768xf32, #tpu.memory_space<vmem>>, vector<1x1x768xf32>,
    %c0_2 = arith.constant 0 : index
    %c9 = arith.constant 9 : index
    %c0_3 = arith.constant 0 : index
    %2 = vector.load %arg8[%c0_2, %c9, %c0_3] : memref<1x10x768xf32, #tpu.memory_space<vmem>>, vector<1x1x768xf32>
    tpu.vector_store %arg8[%c0_2, %c9, %c0_3], %0 {strides = array<i32>} : memref<1x10x768xf32, #tpu.memory_space<vmem>>, vector<1x1x768xf32>,
    %cst_4 = arith.constant 0.000000e+00 : f32
    %3 = vector.broadcast %cst_4 : f32 to vector<1x8x128xf32>
    %c0_5 = arith.constant 0 : index
    %c1 = arith.constant 1 : index
    %c0_6 = arith.constant 0 : index
    %4 = vector.load %arg8[%c0_5, %c1, %c0_6] : memref<1x10x768xf32, #tpu.memory_space<vmem>>, vector<1x8x128xf32>
    tpu.vector_store %arg8[%c0_5, %c1, %c0_6], %3 {strides = array<i32>} : memref<1x10x768xf32, #tpu.memory_space<vmem>>, vector<1x8x128xf32>,
    %cst_7 = arith.constant 0.000000e+00 : f32
    %5 = vector.broadcast %cst_7 : f32 to vector<1x8x128xf32>
    %c0_8 = arith.constant 0 : index
    %c1_9 = arith.constant 1 : index
    %c640 = arith.constant 640 : index
    %6 = vector.load %arg8[%c0_8, %c1_9, %c640] : memref<1x10x768xf32, #tpu.memory_space<vmem>>, vector<1x8x128xf32>
    tpu.vector_store %arg8[%c0_8, %c1_9, %c640], %5 {strides = array<i32>} : memref<1x10x768xf32, #tpu.memory_space<vmem>>, vector<1x8x128xf32>,
    %c0_10 = arith.constant 0 : index
    %c0_11 = arith.constant 0 : index
    %c0_12 = arith.constant 0 : index
    %7 = vector.load %arg1[%c0_10, %c0_11, %c0_12] : memref<1x8x512xf32, #tpu.memory_space<vmem>>, vector<1x8x512xf32>
    %c0_13 = arith.constant 0 : index
    %c1_14 = arith.constant 1 : index
    %c128 = arith.constant 128 : index
    %8 = vector.load %arg8[%c0_13, %c1_14, %c128] : memref<1x10x768xf32, #tpu.memory_space<vmem>>, vector<1x8x512xf32>
    tpu.vector_store %arg8[%c0_13, %c1_14, %c128], %7 {strides = array<i32>} : memref<1x10x768xf32, #tpu.memory_space<vmem>>, vector<1x8x512xf32>,
    %c0_15 = arith.constant 0 : index
    %9 = memref.load %arg6[%c0_15] : memref<2xf32, #tpu.memory_space<smem>>
    %c1_16 = arith.constant 1 : index
    %10 = memref.load %arg6[%c1_16] : memref<2xf32, #tpu.memory_space<smem>>
    %cst_17 = arith.constant 0.000000e+00 : f32
    %11 = vector.broadcast %cst_17 : f32 to vector<8x512xf32>
    %c0_18 = arith.constant 0 : index
    %c0_19 = arith.constant 0 : index
    %c0_20 = arith.constant 0 : index
    %12 = vector.load %arg8[%c0_18, %c0_19, %c0_20] : memref<1x10x768xf32, #tpu.memory_space<vmem>>, vector<1x8x768xf32>
    %13 = vector.shape_cast %12 : vector<1x8x768xf32> to vector<8x768xf32>
    %c0_21 = arith.constant 0 : index
    %c0_22 = arith.constant 0 : index
    %c0_23 = arith.constant 0 : index
    %14 = vector.load %arg2[%c0_21, %c0_22, %c0_23] : memref<3x768x512xf32, #tpu.memory_space<vmem>>, vector<1x768x512xf32>
    %15 = vector.shape_cast %14 : vector<1x768x512xf32> to vector<768x512xf32>
    %cst_24 = arith.constant dense<0.000000e+00> : vector<8x512xf32>
    %16 = tpu.matmul %13, %15, %cst_24 {dimension_numbers = #tpu.dot_dimension_numbers<[1], [0], [0], [1], [0, 0, 1, 1], [], []>} : vector<8x768xf32>, vector<768x512xf32>, vector<8x512xf32> -> vector<8x512xf32>
    %17 = arith.addf %11, %16 : vector<8x512xf32>
    %c0_25 = arith.constant 0 : index
    %c1_26 = arith.constant 1 : index
    %c0_27 = arith.constant 0 : index
    %18 = vector.load %arg8[%c0_25, %c1_26, %c0_27] : memref<1x10x768xf32, #tpu.memory_space<vmem>>, vector<1x8x768xf32>
    %19 = vector.shape_cast %18 : vector<1x8x768xf32> to vector<8x768xf32>
    %c1_28 = arith.constant 1 : index
    %c0_29 = arith.constant 0 : index
    %c0_30 = arith.constant 0 : index
    %20 = vector.load %arg2[%c1_28, %c0_29, %c0_30] : memref<3x768x512xf32, #tpu.memory_space<vmem>>, vector<1x768x512xf32>
    %21 = vector.shape_cast %20 : vector<1x768x512xf32> to vector<768x512xf32>
    %cst_31 = arith.constant dense<0.000000e+00> : vector<8x512xf32>
    %22 = tpu.matmul %19, %21, %cst_31 {dimension_numbers = #tpu.dot_dimension_numbers<[1], [0], [0], [1], [0, 0, 1, 1], [], []>} : vector<8x768xf32>, vector<768x512xf32>, vector<8x512xf32> -> vector<8x512xf32>
    %23 = arith.addf %17, %22 : vector<8x512xf32>
    %c0_32 = arith.constant 0 : index
    %c2 = arith.constant 2 : index
    %c0_33 = arith.constant 0 : index
    %24 = vector.load %arg8[%c0_32, %c2, %c0_33] : memref<1x10x768xf32, #tpu.memory_space<vmem>>, vector<1x8x768xf32>
    %25 = vector.shape_cast %24 : vector<1x8x768xf32> to vector<8x768xf32>
    %c2_34 = arith.constant 2 : index
    %c0_35 = arith.constant 0 : index
    %c0_36 = arith.constant 0 : index
    %26 = vector.load %arg2[%c2_34, %c0_35, %c0_36] : memref<3x768x512xf32, #tpu.memory_space<vmem>>, vector<1x768x512xf32>
    %27 = vector.shape_cast %26 : vector<1x768x512xf32> to vector<768x512xf32>
    %cst_37 = arith.constant dense<0.000000e+00> : vector<8x512xf32>
    %28 = tpu.matmul %25, %27, %cst_37 {dimension_numbers = #tpu.dot_dimension_numbers<[1], [0], [0], [1], [0, 0, 1, 1], [], []>} : vector<8x768xf32>, vector<768x512xf32>, vector<8x512xf32> -> vector<8x512xf32>
    %29 = arith.addf %23, %28 : vector<8x512xf32>
    %c0_38 = arith.constant 0 : index
    %c0_39 = arith.constant 0 : index
    %30 = vector.load %arg3[%c0_38, %c0_39] : memref<1x512xf32, #tpu.memory_space<vmem>>, vector<1x512xf32>
    %31 = vector.broadcast %30 : vector<1x512xf32> to vector<8x512xf32>
    %32 = arith.addf %29, %31 : vector<8x512xf32>
    %cst_40 = arith.constant 0.000000e+00 : f32
    %33 = vector.broadcast %cst_40 : f32 to vector<8x512xf32>
    %34 = arith.cmpf ogt, %32, %33 : vector<8x512xf32>
    %35 = vector.broadcast %9 : f32 to vector<8x512xf32>
    %36 = arith.mulf %32, %35 : vector<8x512xf32>
    %37 = arith.select %34, %32, %36 : vector<8x512xi1>, vector<8x512xf32>
    %38 = vector.shape_cast %37 : vector<8x512xf32> to vector<1x8x512xf32>
    %c0_41 = arith.constant 0 : index
    %c1_42 = arith.constant 1 : index
    %c128_43 = arith.constant 128 : index
    %39 = vector.load %arg8[%c0_41, %c1_42, %c128_43] : memref<1x10x768xf32, #tpu.memory_space<vmem>>, vector<1x8x512xf32>
    tpu.vector_store %arg8[%c0_41, %c1_42, %c128_43], %38 {strides = array<i32>} : memref<1x10x768xf32, #tpu.memory_space<vmem>>, vector<1x8x512xf32>,
    %cst_44 = arith.constant 0.000000e+00 : f32
    %40 = vector.broadcast %cst_44 : f32 to vector<8x512xf32>
    %c0_45 = arith.constant 0 : index
    %c0_46 = arith.constant 0 : index
    %c0_47 = arith.constant 0 : index
    %41 = vector.load %arg8[%c0_45, %c0_46, %c0_47] : memref<1x10x768xf32, #tpu.memory_space<vmem>>, vector<1x8x768xf32>
    %42 = vector.shape_cast %41 : vector<1x8x768xf32> to vector<8x768xf32>
    %c0_48 = arith.constant 0 : index
    %c0_49 = arith.constant 0 : index
    %c0_50 = arith.constant 0 : index
    %43 = vector.load %arg4[%c0_48, %c0_49, %c0_50] : memref<3x768x512xf32, #tpu.memory_space<vmem>>, vector<1x768x512xf32>
    %44 = vector.shape_cast %43 : vector<1x768x512xf32> to vector<768x512xf32>
    %cst_51 = arith.constant dense<0.000000e+00> : vector<8x512xf32>
    %45 = tpu.matmul %42, %44, %cst_51 {dimension_numbers = #tpu.dot_dimension_numbers<[1], [0], [0], [1], [0, 0, 1, 1], [], []>} : vector<8x768xf32>, vector<768x512xf32>, vector<8x512xf32> -> vector<8x512xf32>
    %46 = arith.addf %40, %45 : vector<8x512xf32>
    %c0_52 = arith.constant 0 : index
    %c1_53 = arith.constant 1 : index
    %c0_54 = arith.constant 0 : index
    %47 = vector.load %arg8[%c0_52, %c1_53, %c0_54] : memref<1x10x768xf32, #tpu.memory_space<vmem>>, vector<1x8x768xf32>
    %48 = vector.shape_cast %47 : vector<1x8x768xf32> to vector<8x768xf32>
    %c1_55 = arith.constant 1 : index
    %c0_56 = arith.constant 0 : index
    %c0_57 = arith.constant 0 : index
    %49 = vector.load %arg4[%c1_55, %c0_56, %c0_57] : memref<3x768x512xf32, #tpu.memory_space<vmem>>, vector<1x768x512xf32>
    %50 = vector.shape_cast %49 : vector<1x768x512xf32> to vector<768x512xf32>
    %cst_58 = arith.constant dense<0.000000e+00> : vector<8x512xf32>
    %51 = tpu.matmul %48, %50, %cst_58 {dimension_numbers = #tpu.dot_dimension_numbers<[1], [0], [0], [1], [0, 0, 1, 1], [], []>} : vector<8x768xf32>, vector<768x512xf32>, vector<8x512xf32> -> vector<8x512xf32>
    %52 = arith.addf %46, %51 : vector<8x512xf32>
    %c0_59 = arith.constant 0 : index
    %c2_60 = arith.constant 2 : index
    %c0_61 = arith.constant 0 : index
    %53 = vector.load %arg8[%c0_59, %c2_60, %c0_61] : memref<1x10x768xf32, #tpu.memory_space<vmem>>, vector<1x8x768xf32>
    %54 = vector.shape_cast %53 : vector<1x8x768xf32> to vector<8x768xf32>
    %c2_62 = arith.constant 2 : index
    %c0_63 = arith.constant 0 : index
    %c0_64 = arith.constant 0 : index
    %55 = vector.load %arg4[%c2_62, %c0_63, %c0_64] : memref<3x768x512xf32, #tpu.memory_space<vmem>>, vector<1x768x512xf32>
    %56 = vector.shape_cast %55 : vector<1x768x512xf32> to vector<768x512xf32>
    %cst_65 = arith.constant dense<0.000000e+00> : vector<8x512xf32>
    %57 = tpu.matmul %54, %56, %cst_65 {dimension_numbers = #tpu.dot_dimension_numbers<[1], [0], [0], [1], [0, 0, 1, 1], [], []>} : vector<8x768xf32>, vector<768x512xf32>, vector<8x512xf32> -> vector<8x512xf32>
    %58 = arith.addf %52, %57 : vector<8x512xf32>
    %c0_66 = arith.constant 0 : index
    %c0_67 = arith.constant 0 : index
    %59 = vector.load %arg5[%c0_66, %c0_67] : memref<1x512xf32, #tpu.memory_space<vmem>>, vector<1x512xf32>
    %60 = vector.broadcast %59 : vector<1x512xf32> to vector<8x512xf32>
    %61 = arith.addf %58, %60 : vector<8x512xf32>
    %62 = vector.shape_cast %7 : vector<1x8x512xf32> to vector<8x512xf32>
    %63 = arith.addf %61, %62 : vector<8x512xf32>
    %cst_68 = arith.constant 0.000000e+00 : f32
    %64 = vector.broadcast %cst_68 : f32 to vector<8x512xf32>
    %65 = arith.cmpf ogt, %63, %64 : vector<8x512xf32>
    %66 = vector.broadcast %10 : f32 to vector<8x512xf32>
    %67 = arith.mulf %63, %66 : vector<8x512xf32>
    %68 = arith.select %65, %63, %67 : vector<8x512xi1>, vector<8x512xf32>
    %69 = vector.shape_cast %68 : vector<8x512xf32> to vector<1x8x512xf32>
    %c0_69 = arith.constant 0 : index
    %c0_70 = arith.constant 0 : index
    %c0_71 = arith.constant 0 : index
    %70 = vector.load %arg7[%c0_69, %c0_70, %c0_71] : memref<1x8x512xf32, #tpu.memory_space<vmem>>, vector<1x8x512xf32>
    tpu.vector_store %arg7[%c0_69, %c0_70, %c0_71], %69 {strides = array<i32>} : memref<1x8x512xf32, #tpu.memory_space<vmem>>, vector<1x8x512xf32>,
    return
  }
  func.func @transform_0(%arg0: i32) -> (i32, i32, i32) {
    %c0_i32 = arith.constant 0 : i32
    %c0_i32_0 = arith.constant 0 : i32
    %c0_i32_1 = arith.constant 0 : i32
    return %arg0, %c0_i32, %c0_i32_0 : i32, i32, i32
  }
  func.func @transform_1(%arg0: i32) -> (i32, i32, i32) {
    %c0_i32 = arith.constant 0 : i32
    %c0_i32_0 = arith.constant 0 : i32
    %c0_i32_1 = arith.constant 0 : i32
    %c0_i32_2 = arith.constant 0 : i32
    return %c0_i32, %c0_i32_0, %c0_i32_1 : i32, i32, i32
  }
  func.func @transform_2(%arg0: i32) -> (i32, i32) {
    %c0_i32 = arith.constant 0 : i32
    %c0_i32_0 = arith.constant 0 : i32
    %c0_i32_1 = arith.constant 0 : i32
    return %c0_i32, %c0_i32_0 : i32, i32
  }
  func.func @transform_3(%arg0: i32) -> (i32, i32, i32) {
    %c0_i32 = arith.constant 0 : i32
    %c0_i32_0 = arith.constant 0 : i32
    %c0_i32_1 = arith.constant 0 : i32
    %c0_i32_2 = arith.constant 0 : i32
    return %c0_i32, %c0_i32_0, %c0_i32_1 : i32, i32, i32
  }
  func.func @transform_4(%arg0: i32) -> (i32, i32) {
    %c0_i32 = arith.constant 0 : i32
    %c0_i32_0 = arith.constant 0 : i32
    %c0_i32_1 = arith.constant 0 : i32
    return %c0_i32, %c0_i32_0 : i32, i32
  }
  func.func @transform_5(%arg0: i32) -> i32 {
    %c0_i32 = arith.constant 0 : i32
    %c0_i32_0 = arith.constant 0 : i32
    return %c0_i32 : i32
  }
  func.func @transform_6(%arg0: i32) -> (i32, i32, i32) {
    %c0_i32 = arith.constant 0 : i32
    %c0_i32_0 = arith.constant 0 : i32
    %c0_i32_1 = arith.constant 0 : i32
    return %arg0, %c0_i32, %c0_i32_0 : i32, i32, i32
  }
}

</mosaic_0001>

<bundles_post_ra>
// kernel: residual_block_forward.1
= control target key start
LH: loop header
LB: loop body
LE: loop exit
PB: predicated region body
PF: predicated region fallthrough
CT: control target
= control target key end

     0   :  { %11 = vsyncpa [#allocation4], 0  ;;  %s7202_s21 = smov 0   ;;  %s14476_s0 = inlined_call_operand.vmem [shape: f32[2,8,512], index: 0, kind: input, shape index: {}]   ;;  %s14477_s1 = inlined_call_operand.vmem [shape: f32[3,768,512], index: 1, kind: input, shape index: {}]   ;;  %s14478_s2 = inlined_call_operand.vmem [shape: f32[1,512], index: 2, kind: input, shape index: {}]   ;;  %s14479_s3 = inlined_call_operand.vmem [shape: f32[3,768,512], index: 3, kind: input, shape index: {}]   ;;  %s14480_s4 = inlined_call_operand.vmem [shape: f32[1,512], index: 4, kind: input, shape index: {}]   ;;  %s14481_s5 = inlined_call_operand.vmem [shape: f32[2], index: 5, kind: input, shape index: {}]   ;;  %s14482_s6 = inlined_call_operand.vmem [shape: f32[2,8,512], index: 6, kind: output, shape index: {}]  }
   0x1 LB: > { %s7208_s22 = sadd.s32 4294967295, %s7163_s21   ;;  %p5558_p0 = scmp.ge.s32.totalorder %s7163_s21, 1  ;;  %s7163_s21 = sphi %s7202_s21, %s17_s21  }
   0x2   : > { %p179_p1 = scmp.lt.s32.totalorder %s7163_s21, 3  ;;  %s204_s25 = sshll.u32 %s14481_s5, 4  ;;  %s205_s25 = int_to_ptr.vmem [resolvable:$true] %s204_s25 }
   0x3   : > { %p7116_p3 = scmp.eq.s32.totalorder %s7208_s22, 0  ;;  %s7138_s27 = scalar_lea.vmem %s205_s25, 16 }
   0x4   : > { %p7215_p2 = pnand %p5558_p0, %p179_p1  ;;  %p7139_p6 = scmp.ne.s32.totalorder %s205_s25, %s7138_s27 }
   0x5   : > { %p7146_p10 = scmp.lt.s32.totalorder %s205_s25, %s205_s25  ;;  %p7147_p11 = scmp.lt.s32.totalorder %s7138_s27, %s7138_s27 }
   0x6   : > { %p7112_p4 = pneg %p7215_p2 }
   0x7   : > { %p7148_p12 = por %p7147_p11, %p7146_p10 }
   0x8   : > { %p7113_p5 = pnand %p7116_p3, %p7112_p4 }
   0xa   : > { %p7140_p7 = pneg %p7113_p5 }
   0xc   : > { %p7141_p8 = pnand %p7140_p7, %p7139_p6 }
   0xe   : > { %p7142_p9 = pneg %p7141_p8 }
  0x10   : > { %p7149_p13 = pnand %p7148_p12, %p7142_p9 }
  0x12   : > { %7152 = shalt.err (!%p7149_p13)
}
  0x13   : > { %s7165_s28 = smov [#allocation3]   ;;  %225 = sbr.rel (%p7215_p2) target bundleno = 1574 (0x626), region = 44 }
  0x14   : > { %7115 = dma.vmem_to_smem (!%p7113_p5), %s205_s25, 16, %s7165_s28, [#allocation4]  }
  0x18   : > { %7158 = dma.done.wait (%p7116_p3), [#allocation4], 16  }
  0x19   : > { %7160 = vsyncadd (%p7116_p3), [#allocation4], 4294967280 }
  0x1a   : > { %231 = sfence }
  0x1b   : > { %v5629_v0 = vld [vmem:[%s14477_s1 + $0xde8] sm:$0xff]  ;;  %v5628_v2 = vld [vmem:[%s14477_s1 + $0xde0] sm:$0xff]  ;;  %v7166_v6 = vmov 0.0   ;;  %p256_p0 = scmp.lt.s32.totalorder %s7208_s22, 1  ;;  %vm1104_vm0 = vcmask 1046528   ;;  %vm2390_vm2 = vcmask 1045504  }
  0x1c   : > { %v5757_v1 = vld [vmem:[%s14477_s1 + $0x11e8] sm:$0xff]  ;;  %1129 = vmatprep.subr.mxu0 %v5629_v0  ;;  %v5756_v3 = vld [vmem:[%s14477_s1 + $0x11e0] sm:$0xff]  ;;  %275 = vst [vmem:[#allocation2] sm:$0xfe] %v7166_v6  ;;  %276 = vst [vmem:[#allocation2 + $0x30] sm:$0x1] %v7166_v6 }
  0x1d   : > { %1200 = vmatprep.subr.mxu1 %v5757_v1  ;;  %v5625_v4 = vld [vmem:[%s14477_s1 + $0xdc8] sm:$0xff]  ;;  %277 = vst [vmem:[#allocation2 + $0x28] sm:$0xfe] %v7166_v6  ;;  %278 = vst [vmem:[#allocation2 + $0x58] sm:$0x1] %v7166_v6  ;;  %1130 = vmatpush1.msra.mxu0 %v5628_v2  ;;  %v5624_v7 = vld [vmem:[%s14477_s1 + $0xdc0] sm:$0xff] }
  0x1e   : > { %v5753_v5 = vld [vmem:[%s14477_s1 + $0x11c8] sm:$0xff]  ;;  %1201 = vmatpush1.msra.mxu1 %v5756_v3  ;;  %v5752_v8 = vld [vmem:[%s14477_s1 + $0x11c0] sm:$0xff]  ;;  %1131 = vmatprep.subr.mxu0 %v5625_v4  ;;  %s14485_s22 = smov (!%p256_p0, %s7208_s22), 1  ;;  %s303_s18 = sld [smem:[#allocation3]] }
  0x1f   : > { %v5621_v9 = vld [vmem:[%s14477_s1 + $0xda8] sm:$0xff]  ;;  %1202 = vmatprep.subr.mxu1 %v5753_v5  ;;  %v5620_v11 = vld [vmem:[%s14477_s1 + $0xda0] sm:$0xff]  ;;  %1132 = vmatpush1.msra.mxu0 %v5624_v7  ;;  %s7106_s7 = sshll.u32 %s14485_s22, 5  ;;  %s5567_s28 = sld [smem:[#allocation3 + $0x1]] }
  0x20   : > { %v5749_v10 = vld [vmem:[%s14477_s1 + $0x11a8] sm:$0xff]  ;;  %v5748_v12 = vld [vmem:[%s14477_s1 + $0x11a0] sm:$0xff]  ;;  %1203 = vmatpush1.msra.mxu1 %v5752_v8  ;;  %1133 = vmatprep.subr.mxu0 %v5621_v9  ;;  %s7498_s24 = scalar_lea.vmem %s14476_s0, %s7106_s7  ;;  %s14460_s10 = scalar_lea.vmem %s14482_s6, %s7106_s7 }
  0x21   : > { %v5617_v13 = vld [vmem:[%s14477_s1 + $0xd88] sm:$0xff]  ;;  %1204 = vmatprep.subr.mxu1 %v5749_v10  ;;  %v5616_v15 = vld [vmem:[%s14477_s1 + $0xd80] sm:$0xff]  ;;  %1134 = vmatpush1.msra.mxu0 %v5620_v11 }
  0x22   : > { %v5745_v14 = vld [vmem:[%s14477_s1 + $0x1188] sm:$0xff]  ;;  %v5744_v16 = vld [vmem:[%s14477_s1 + $0x1180] sm:$0xff]  ;;  %1205 = vmatpush1.msra.mxu1 %v5748_v12  ;;  %1135 = vmatprep.subr.mxu0 %v5617_v13 }
  0x23   : > { %v5613_v17 = vld [vmem:[%s14477_s1 + $0xd68] sm:$0xff]  ;;  %1206 = vmatprep.subr.mxu1 %v5745_v14  ;;  %v5612_v19 = vld [vmem:[%s14477_s1 + $0xd60] sm:$0xff]  ;;  %1136 = vmatpush1.msra.mxu0 %v5616_v15 }
  0x24   : > { %v5741_v18 = vld [vmem:[%s14477_s1 + $0x1168] sm:$0xff]  ;;  %v5740_v20 = vld [vmem:[%s14477_s1 + $0x1160] sm:$0xff]  ;;  %1207 = vmatpush1.msra.mxu1 %v5744_v16  ;;  %1137 = vmatprep.subr.mxu0 %v5613_v17 }
  0x25   : > { %v5609_v21 = vld [vmem:[%s14477_s1 + $0xd48] sm:$0xff]  ;;  %1208 = vmatprep.subr.mxu1 %v5741_v18  ;;  %v5608_v23 = vld [vmem:[%s14477_s1 + $0xd40] sm:$0xff]  ;;  %1138 = vmatpush1.msra.mxu0 %v5612_v19 }
  0x26   : > { %v5737_v22 = vld [vmem:[%s14477_s1 + $0x1148] sm:$0xff]  ;;  %v5736_v24 = vld [vmem:[%s14477_s1 + $0x1140] sm:$0xff]  ;;  %1209 = vmatpush1.msra.mxu1 %v5740_v20  ;;  %1139 = vmatprep.subr.mxu0 %v5609_v21 }
  0x27   : > { %v5605_v25 = vld [vmem:[%s14477_s1 + $0xd28] sm:$0xff]  ;;  %1210 = vmatprep.subr.mxu1 %v5737_v22  ;;  %v5604_v27 = vld [vmem:[%s14477_s1 + $0xd20] sm:$0xff]  ;;  %1140 = vmatpush1.msra.mxu0 %v5608_v23 }
  0x28   : > { %v5733_v26 = vld [vmem:[%s14477_s1 + $0x1128] sm:$0xff]  ;;  %v5732_v28 = vld [vmem:[%s14477_s1 + $0x1120] sm:$0xff]  ;;  %1211 = vmatpush1.msra.mxu1 %v5736_v24  ;;  %1141 = vmatprep.subr.mxu0 %v5605_v25 }
  0x29   : > { %v5601_v29 = vld [vmem:[%s14477_s1 + $0xd08] sm:$0xff]  ;;  %1212 = vmatprep.subr.mxu1 %v5733_v26  ;;  %v5600_v31 = vld [vmem:[%s14477_s1 + $0xd00] sm:$0xff]  ;;  %1142 = vmatpush1.msra.mxu0 %v5604_v27 }
  0x2a   : > { %v5729_v30 = vld [vmem:[%s14477_s1 + $0x1108] sm:$0xff]  ;;  %v5728_v32 = vld [vmem:[%s14477_s1 + $0x1100] sm:$0xff]  ;;  %1213 = vmatpush1.msra.mxu1 %v5732_v28  ;;  %1143 = vmatprep.subr.mxu0 %v5601_v29 }
  0x2b   : > { %v5597_v33 = vld [vmem:[%s14477_s1 + $0xce8] sm:$0xff]  ;;  %1214 = vmatprep.subr.mxu1 %v5729_v30  ;;  %v5596_v35 = vld [vmem:[%s14477_s1 + $0xce0] sm:$0xff]  ;;  %1144 = vmatpush1.msra.mxu0 %v5600_v31 }
  0x2c   : > { %v5725_v34 = vld [vmem:[%s14477_s1 + $0x10e8] sm:$0xff]  ;;  %v5724_v36 = vld [vmem:[%s14477_s1 + $0x10e0] sm:$0xff]  ;;  %1215 = vmatpush1.msra.mxu1 %v5728_v32  ;;  %1145 = vmatprep.subr.mxu0 %v5597_v33  ;;  %v281_v32 = vld [vmem:[%s7498_s24 + $0x10] sm:$0xff] }
  0x2d   : > { %v5593_v37 = vld [vmem:[%s14477_s1 + $0xcc8] sm:$0xff]  ;;  %1216 = vmatprep.subr.mxu1 %v5725_v34  ;;  %v5592_v39 = vld [vmem:[%s14477_s1 + $0xcc0] sm:$0xff]  ;;  %1146 = vmatpush1.msra.mxu0 %v5596_v35  ;;  %v289_v35 = vrot.slane %v281_v32, 7  ;;  %v5630_v32 = vld [vmem:[%s14477_s1 + $0xdf0] sm:$0xff] }
  0x2e   : > { %v5721_v38 = vld [vmem:[%s14477_s1 + $0x10c8] sm:$0xff]  ;;  %v5720_v40 = vld [vmem:[%s14477_s1 + $0x10c0] sm:$0xff]  ;;  %1217 = vmatpush1.msra.mxu1 %v5724_v36  ;;  %1147 = vmatprep.subr.mxu0 %v5593_v37 }
  0x2f   : > { %v5589_v41 = vld [vmem:[%s14477_s1 + $0xca8] sm:$0xff]  ;;  %1218 = vmatprep.subr.mxu1 %v5721_v38  ;;  %v5588_v43 = vld [vmem:[%s14477_s1 + $0xca0] sm:$0xff]  ;;  %1148 = vmatpush1.msra.mxu0 %v5592_v39  ;;  %297 = vst [vmem:[#allocation2 + $0x18] sm:$0xfe] %v289_v35  ;;  %301 = vst [vmem:[#allocation2 + $0x48] sm:$0x1] %v289_v35 }
  0x30   : > { %v5717_v42 = vld [vmem:[%s14477_s1 + $0x10a8] sm:$0xff]  ;;  %v5716_v44 = vld [vmem:[%s14477_s1 + $0x10a0] sm:$0xff]  ;;  %1219 = vmatpush1.msra.mxu1 %v5720_v40  ;;  %1149 = vmatprep.subr.mxu0 %v5589_v41 }
  0x31   : > { %v5585_v45 = vld [vmem:[%s14477_s1 + $0xc88] sm:$0xff]  ;;  %1220 = vmatprep.subr.mxu1 %v5717_v42  ;;  %v5584_v47 = vld [vmem:[%s14477_s1 + $0xc80] sm:$0xff]  ;;  %1150 = vmatpush1.msra.mxu0 %v5588_v43 }
  0x32   : > { %v5713_v46 = vld [vmem:[%s14477_s1 + $0x1088] sm:$0xff]  ;;  %v5712_v48 = vld [vmem:[%s14477_s1 + $0x1080] sm:$0xff]  ;;  %1221 = vmatpush1.msra.mxu1 %v5716_v44  ;;  %1151 = vmatprep.subr.mxu0 %v5585_v45 }
  0x33   : > { %v5581_v49 = vld [vmem:[%s14477_s1 + $0xc68] sm:$0xff]  ;;  %1222 = vmatprep.subr.mxu1 %v5713_v46  ;;  %v5580_v51 = vld [vmem:[%s14477_s1 + $0xc60] sm:$0xff]  ;;  %1152 = vmatpush1.msra.mxu0 %v5584_v47 }
  0x34   : > { %v5709_v50 = vld [vmem:[%s14477_s1 + $0x1068] sm:$0xff]  ;;  %v5708_v52 = vld [vmem:[%s14477_s1 + $0x1060] sm:$0xff]  ;;  %1223 = vmatpush1.msra.mxu1 %v5712_v48  ;;  %1153 = vmatprep.subr.mxu0 %v5581_v49 }
  0x35   : > { %v5577_v53 = vld [vmem:[%s14477_s1 + $0xc48] sm:$0xff]  ;;  %1224 = vmatprep.subr.mxu1 %v5709_v50  ;;  %v5576_v55 = vld [vmem:[%s14477_s1 + $0xc40] sm:$0xff]  ;;  %1154 = vmatpush1.msra.mxu0 %v5580_v51 }
  0x36   : > { %v5705_v54 = vld [vmem:[%s14477_s1 + $0x1048] sm:$0xff]  ;;  %v5704_v56 = vld [vmem:[%s14477_s1 + $0x1040] sm:$0xff]  ;;  %1225 = vmatpush1.msra.mxu1 %v5708_v52  ;;  %1155 = vmatprep.subr.mxu0 %v5577_v53 }
  0x37   : > { %v5573_v57 = vld [vmem:[%s14477_s1 + $0xc28] sm:$0xff]  ;;  %1226 = vmatprep.subr.mxu1 %v5705_v54  ;;  %v5572_v59 = vld [vmem:[%s14477_s1 + $0xc20] sm:$0xff]  ;;  %1156 = vmatpush1.msra.mxu0 %v5576_v55 }
  0x38   : > { %v5701_v58 = vld [vmem:[%s14477_s1 + $0x1028] sm:$0xff]  ;;  %v5700_v60 = vld [vmem:[%s14477_s1 + $0x1020] sm:$0xff]  ;;  %1227 = vmatpush1.msra.mxu1 %v5704_v56  ;;  %1157 = vmatprep.subr.mxu0 %v5573_v57 }
  0x39   : > { %v5569_v61 = vld [vmem:[%s14477_s1 + $0xc08] sm:$0xff]  ;;  %1228 = vmatprep.subr.mxu1 %v5701_v58  ;;  %v5568_v63 = vld [vmem:[%s14477_s1 + $0xc00] sm:$0xff]  ;;  %1158 = vmatpush1.msra.mxu0 %v5572_v59 }
  0x3a   : > { %v5697_v62 = vld [vmem:[%s14477_s1 + $0x1008] sm:$0xff]  ;;  %v5696_v0 = vld [vmem:[%s14477_s1 + $0x1000] sm:$0xff]  ;;  %1229 = vmatpush1.msra.mxu1 %v5700_v60  ;;  %1159 = vmatprep.subr.mxu0 %v5569_v61 }
  0x3b   : > { %v5693_v1 = vld [vmem:[%s14477_s1 + $0xfe8] sm:$0xff]  ;;  %1230 = vmatprep.subr.mxu1 %v5697_v62  ;;  %v5692_v3 = vld [vmem:[%s14477_s1 + $0xfe0] sm:$0xff]  ;;  %1160 = vmatpush1.msra.mxu0 %v5568_v63 }
  0x3c   : > { %v5821_v2 = vld [vmem:[%s14477_s1 + $0x13e8] sm:$0xff]  ;;  %v5820_v4 = vld [vmem:[%s14477_s1 + $0x13e0] sm:$0xff]  ;;  %1231 = vmatpush1.msra.mxu1 %v5696_v0  ;;  %1161 = vmatprep.subr.mxu0 %v5693_v1  ;;  %v698_v0 = vld [vmem:[#allocation2 + $0x18] sm:$0xfe] }
  0x3d   : > { %v5689_v5 = vld [vmem:[%s14477_s1 + $0xfc8] sm:$0xff]  ;;  %1232 = vmatprep.subr.mxu1 %v5821_v2  ;;  %v5688_v8 = vld [vmem:[%s14477_s1 + $0xfc0] sm:$0xff]  ;;  %1162 = vmatpush2.msra.mxu0 %v5692_v3  ;;  %v701_v3 = vld [vmem:[#allocation2 + $0x30] sm:$0x1] }
  0x3e   : > { %v5817_v7 = vld [vmem:[%s14477_s1 + $0x13c8] sm:$0xff]  ;;  %v5816_v9 = vld [vmem:[%s14477_s1 + $0x13c0] sm:$0xff]  ;;  %1233 = vmatpush2.msra.mxu1 %v5820_v4  ;;  %1163 = vmatprep.subr.mxu0 %v5689_v5 }
  0x3f   : > { %v5685_v10 = vld [vmem:[%s14477_s1 + $0xfa8] sm:$0xff]  ;;  %1234 = vmatprep.subr.mxu1 %v5817_v7  ;;  %v5684_v12 = vld [vmem:[%s14477_s1 + $0xfa0] sm:$0xff]  ;;  %1164 = vmatpush2.msra.mxu0 %v5688_v8 }
  0x40   : > { %v5813_v11 = vld [vmem:[%s14477_s1 + $0x13a8] sm:$0xff]  ;;  %v5812_v13 = vld [vmem:[%s14477_s1 + $0x13a0] sm:$0xff]  ;;  %1235 = vmatpush2.msra.mxu1 %v5816_v9  ;;  %1165 = vmatprep.subr.mxu0 %v5685_v10 }
  0x41   : > { %v5681_v14 = vld [vmem:[%s14477_s1 + $0xf88] sm:$0xff]  ;;  %1236 = vmatprep.subr.mxu1 %v5813_v11  ;;  %v5680_v16 = vld [vmem:[%s14477_s1 + $0xf80] sm:$0xff]  ;;  %1166 = vmatpush2.msra.mxu0 %v5684_v12 }
  0x42   : > { %v5809_v15 = vld [vmem:[%s14477_s1 + $0x1388] sm:$0xff]  ;;  %v5808_v17 = vld [vmem:[%s14477_s1 + $0x1380] sm:$0xff]  ;;  %1237 = vmatpush2.msra.mxu1 %v5812_v13  ;;  %1167 = vmatprep.subr.mxu0 %v5681_v14  ;;  %v1114_v13 = vrot.slane %v698_v0, 1  ;;  %v5598_v0 = vld [vmem:[%s14477_s1 + $0xcf0] sm:$0xff] }
  0x43   : > { %v5677_v18 = vld [vmem:[%s14477_s1 + $0xf68] sm:$0xff]  ;;  %1238 = vmatprep.subr.mxu1 %v5809_v15  ;;  %v5676_v20 = vld [vmem:[%s14477_s1 + $0xf60] sm:$0xff]  ;;  %1168 = vmatpush2.msra.mxu0 %v5680_v16 }
  0x44   : > { %v5805_v19 = vld [vmem:[%s14477_s1 + $0x1368] sm:$0xff]  ;;  %v5804_v21 = vld [vmem:[%s14477_s1 + $0x1360] sm:$0xff]  ;;  %1239 = vmatpush2.msra.mxu1 %v5808_v17  ;;  %1169 = vmatprep.subr.mxu0 %v5677_v18  ;;  %v1106_v18 = vrot.slane %v701_v3, 1 }
  0x45   : > { %v5673_v22 = vld [vmem:[%s14477_s1 + $0xf48] sm:$0xff]  ;;  %1240 = vmatprep.subr.mxu1 %v5805_v19  ;;  %v5672_v24 = vld [vmem:[%s14477_s1 + $0xf40] sm:$0xff]  ;;  %1170 = vmatpush2.msra.mxu0 %v5676_v20 }
  0x46   : > { %v5801_v23 = vld [vmem:[%s14477_s1 + $0x1348] sm:$0xff]  ;;  %v5800_v25 = vld [vmem:[%s14477_s1 + $0x1340] sm:$0xff]  ;;  %1241 = vmatpush2.msra.mxu1 %v5804_v21  ;;  %1171 = vmatprep.subr.mxu0 %v5673_v22 }
  0x47   : > { %v5669_v26 = vld [vmem:[%s14477_s1 + $0xf28] sm:$0xff]  ;;  %v279_v28 = vld [vmem:[%s7498_s24] sm:$0xff]  ;;  %1242 = vmatprep.subr.mxu1 %v5801_v23  ;;  %1172 = vmatpush2.msra.mxu0 %v5672_v24 }
  0x48   : > { %v5797_v27 = vld [vmem:[%s14477_s1 + $0x1328] sm:$0xff]  ;;  %v5668_v29 = vld [vmem:[%s14477_s1 + $0xf20] sm:$0xff]  ;;  %v287_v31 = vrot.slane %v279_v28, 7  ;;  %1243 = vmatpush2.msra.mxu1 %v5800_v25  ;;  %1173 = vmatprep.subr.mxu0 %v5669_v26 }
  0x49   : > { %v5796_v30 = vld [vmem:[%s14477_s1 + $0x1320] sm:$0xff]  ;;  %v5665_v33 = vld [vmem:[%s14477_s1 + $0xf08] sm:$0xff]  ;;  %1244 = vmatprep.subr.mxu1 %v5797_v27  ;;  %1174 = vmatpush2.msra.mxu0 %v5668_v29 }
  0x4a   : > { %v5793_v34 = vld [vmem:[%s14477_s1 + $0x1308] sm:$0xff]  ;;  %v5664_v37 = vld [vmem:[%s14477_s1 + $0xf00] sm:$0xff]  ;;  %295 = vst [vmem:[#allocation2 + $0x8] sm:$0xfe] %v287_v31  ;;  %299 = vst [vmem:[#allocation2 + $0x38] sm:$0x1] %v287_v31  ;;  %1245 = vmatpush2.msra.mxu1 %v5796_v30  ;;  %1175 = vmatprep.subr.mxu0 %v5665_v33 }
  0x4b   : > { %v280_v36 = vld [vmem:[%s7498_s24 + $0x8] sm:$0xff]  ;;  %v5792_v38 = vld [vmem:[%s14477_s1 + $0x1300] sm:$0xff]  ;;  %1246 = vmatprep.subr.mxu1 %v5793_v34  ;;  %1176 = vmatpush2.msra.mxu0 %v5664_v37  ;;  %v5631_v30 = vld [vmem:[%s14477_s1 + $0xdf8] sm:$0xff] }
  0x4c   : > { %v288_v39 = vrot.slane %v280_v36, 7  ;;  %v5661_v40 = vld [vmem:[%s14477_s1 + $0xee8] sm:$0xff]  ;;  %v5660_v42 = vld [vmem:[%s14477_s1 + $0xee0] sm:$0xff]  ;;  %1247 = vmatpush2.msra.mxu1 %v5792_v38  ;;  %v5627_v34 = vld [vmem:[%s14477_s1 + $0xdd8] sm:$0xff] }
  0x4d   : > { %v5789_v41 = vld [vmem:[%s14477_s1 + $0x12e8] sm:$0xff]  ;;  %v5788_v43 = vld [vmem:[%s14477_s1 + $0x12e0] sm:$0xff]  ;;  %1177 = vmatprep.subr.mxu0 %v5661_v40  ;;  %v5626_v36 = vld [vmem:[%s14477_s1 + $0xdd0] sm:$0xff] }
  0x4e   : > { %296 = vst [vmem:[#allocation2 + $0x10] sm:$0xfe] %v288_v39  ;;  %300 = vst [vmem:[#allocation2 + $0x40] sm:$0x1] %v288_v39  ;;  %v5657_v44 = vld [vmem:[%s14477_s1 + $0xec8] sm:$0xff]  ;;  %1248 = vmatprep.subr.mxu1 %v5789_v41  ;;  %v5656_v46 = vld [vmem:[%s14477_s1 + $0xec0] sm:$0xff]  ;;  %1178 = vmatpush2.msra.mxu0 %v5660_v42 }
  0x4f   : > { %v5785_v45 = vld [vmem:[%s14477_s1 + $0x12c8] sm:$0xff]  ;;  %v5784_v47 = vld [vmem:[%s14477_s1 + $0x12c0] sm:$0xff]  ;;  %1249 = vmatpush2.msra.mxu1 %v5788_v43  ;;  %1179 = vmatprep.subr.mxu0 %v5657_v44  ;;  %v5623_v38 = vld [vmem:[%s14477_s1 + $0xdb8] sm:$0xff] }
  0x50   : > { %v5653_v48 = vld [vmem:[%s14477_s1 + $0xea8] sm:$0xff]  ;;  %v5652_v50 = vld [vmem:[%s14477_s1 + $0xea0] sm:$0xff]  ;;  %1250 = vmatprep.subr.mxu1 %v5785_v45  ;;  %1180 = vmatpush2.msra.mxu0 %v5656_v46  ;;  %v5622_v40 = vld [vmem:[%s14477_s1 + $0xdb0] sm:$0xff] }
  0x51   : > { %v5781_v49 = vld [vmem:[%s14477_s1 + $0x12a8] sm:$0xff]  ;;  %v5780_v51 = vld [vmem:[%s14477_s1 + $0x12a0] sm:$0xff]  ;;  %1251 = vmatpush2.msra.mxu1 %v5784_v47  ;;  %1181 = vmatprep.subr.mxu0 %v5653_v48  ;;  %v702_v63 = vld [vmem:[#allocation2 + $0x38] sm:$0x1] }
  0x52   : > { %v5649_v52 = vld [vmem:[%s14477_s1 + $0xe88] sm:$0xff]  ;;  %v5648_v54 = vld [vmem:[%s14477_s1 + $0xe80] sm:$0xff]  ;;  %1252 = vmatprep.subr.mxu1 %v5781_v49  ;;  %1182 = vmatpush2.msra.mxu0 %v5652_v50  ;;  %v1109_v10 = vrot.slane %v702_v63, 1  ;;  %v5619_v42 = vld [vmem:[%s14477_s1 + $0xd98] sm:$0xff] }
  0x53   : > { %v5777_v53 = vld [vmem:[%s14477_s1 + $0x1288] sm:$0xff]  ;;  %v5776_v55 = vld [vmem:[%s14477_s1 + $0x1280] sm:$0xff]  ;;  %1253 = vmatpush2.msra.mxu1 %v5780_v51  ;;  %1183 = vmatprep.subr.mxu0 %v5649_v52  ;;  %v5618_v44 = vld [vmem:[%s14477_s1 + $0xd90] sm:$0xff] }
  0x54   : > { %v5645_v56 = vld [vmem:[%s14477_s1 + $0xe68] sm:$0xff]  ;;  %v5644_v58 = vld [vmem:[%s14477_s1 + $0xe60] sm:$0xff]  ;;  %1254 = vmatprep.subr.mxu1 %v5777_v53  ;;  %1184 = vmatpush2.msra.mxu0 %v5648_v54  ;;  %v5615_v46 = vld [vmem:[%s14477_s1 + $0xd78] sm:$0xff] }
  0x55   : > { %v5773_v57 = vld [vmem:[%s14477_s1 + $0x1268] sm:$0xff]  ;;  %v5772_v59 = vld [vmem:[%s14477_s1 + $0x1260] sm:$0xff]  ;;  %1255 = vmatpush2.msra.mxu1 %v5776_v55  ;;  %v697_v4 = vld [vmem:[#allocation2 + $0x10] sm:$0xfe]  ;;  %1185 = vmatprep.subr.mxu0 %v5645_v56 }
  0x56   : > { %v5641_v60 = vld [vmem:[%s14477_s1 + $0xe48] sm:$0xff]  ;;  %v695_v2 = vld [vmem:[#allocation2] sm:$0xfe]  ;;  %v703_v5 = vld [vmem:[#allocation2 + $0x40] sm:$0x1]  ;;  %1256 = vmatprep.subr.mxu1 %v5773_v57  ;;  %1186 = vmatpush2.msra.mxu0 %v5644_v58  ;;  %v1111_v19 = vrot.slane %v697_v4, 1 }
  0x57   : > { %v5769_v61 = vld [vmem:[%s14477_s1 + $0x1248] sm:$0xff]  ;;  %v5640_v7 = vld [vmem:[%s14477_s1 + $0xe40] sm:$0xff]  ;;  %1257 = vmatpush2.msra.mxu1 %v5772_v59  ;;  %1187 = vmatprep.subr.mxu0 %v5641_v60  ;;  %v1105_v17 = vrot.slane %v695_v2, 1  ;;  %v1112_v20 = vrot.slane %v703_v5, 1  ;;  %v5614_v48 = vld [vmem:[%s14477_s1 + $0xd70] sm:$0xff] }
  0x58   : > { %v696_v62 = vld [vmem:[#allocation2 + $0x8] sm:$0xfe]  ;;  %v704_v1 = vld [vmem:[#allocation2 + $0x48] sm:$0x1]  ;;  %v5768_v8 = vld [vmem:[%s14477_s1 + $0x1240] sm:$0xff]  ;;  %1258 = vmatprep.subr.mxu1 %v5769_v61  ;;  %1188 = vmatpush2.msra.mxu0 %v5640_v7 }
  0x59   : > { %v1108_v9 = vrot.slane %v696_v62, 1  ;;  %v5637_v11 = vld [vmem:[%s14477_s1 + $0xe28] sm:$0xff]  ;;  %v1115_v14 = vrot.slane %v704_v1, 1  ;;  %v5636_v15 = vld [vmem:[%s14477_s1 + $0xe20] sm:$0xff]  ;;  %1259 = vmatpush2.msra.mxu1 %v5768_v8  ;;  %v7642_v27 = vsel %vm1104_vm0, %v1105_v17, %v1106_v18  ;;  %v7645_v28 = vsel %vm1104_vm0, %v1111_v19, %v1112_v20  ;;  %v5611_v50 = vld [vmem:[%s14477_s1 + $0xd58] sm:$0xff] }
  0x5a   : > { %v5765_v12 = vld [vmem:[%s14477_s1 + $0x1228] sm:$0xff]  ;;  %v5764_v16 = vld [vmem:[%s14477_s1 + $0x1220] sm:$0xff]  ;;  %1189 = vmatprep.subr.mxu0 %v5637_v11  ;;  %v5610_v52 = vld [vmem:[%s14477_s1 + $0xd50] sm:$0xff] }
  0x5b   : > { %v5633_v21 = vld [vmem:[%s14477_s1 + $0xe08] sm:$0xff]  ;;  %1260 = vmatprep.subr.mxu1 %v5765_v12  ;;  %v5632_v23 = vld [vmem:[%s14477_s1 + $0xe00] sm:$0xff]  ;;  %v7633_v24 = vsel %vm1104_vm0, %v1108_v9, %v1109_v10  ;;  %1190 = vmatpush2.msra.mxu0 %v5636_v15  ;;  %v7639_v26 = vsel %vm1104_vm0, %v1114_v13, %v1115_v14  ;;  %v5607_v54 = vld [vmem:[%s14477_s1 + $0xd38] sm:$0xff] }
  0x5c   : > { %v5761_v22 = vld [vmem:[%s14477_s1 + $0x1208] sm:$0xff]  ;;  %1261 = vmatpush2.msra.mxu1 %v5764_v16  ;;  %v5760_v25 = vld [vmem:[%s14477_s1 + $0x1200] sm:$0xff]  ;;  %1191 = vmatprep.subr.mxu0 %v5633_v21  ;;  %v5606_v56 = vld [vmem:[%s14477_s1 + $0xd30] sm:$0xff] }
  0x5d   : > { %1262 = vmatprep.subr.mxu1 %v5761_v22  ;;  %1192 = vmatpush2.msra.mxu0 %v5632_v23  ;;  %v5885_v29 = vld [vmem:[%s14477_s1 + $0x15e8] sm:$0xff]  ;;  %v5884_v31 = vld [vmem:[%s14477_s1 + $0x15e0] sm:$0xff]  ;;  %v5603_v58 = vld [vmem:[%s14477_s1 + $0xd18] sm:$0xff] }
  0x5e   : > { %1193 = vmatprep.mubr.f32.mxu0 %v7633_v24  ;;  %1263 = vmatpush2.msra.mxu1 %v5760_v25  ;;  %v5881_v33 = vld [vmem:[%s14477_s1 + $0x15c8] sm:$0xff]  ;;  %v5880_v35 = vld [vmem:[%s14477_s1 + $0x15c0] sm:$0xff]  ;;  %v5602_v60 = vld [vmem:[%s14477_s1 + $0xd10] sm:$0xff] }
  0x5f   : > { %1264 = vmatprep.mubr.f32.mxu1 %v7639_v26  ;;  %1194 = vmatmul.mubr.f32.vlgmr.msra.gmra.mxu0 %v7642_v27  ;;  %v5877_v37 = vld [vmem:[%s14477_s1 + $0x15a8] sm:$0xff]  ;;  %v5876_v39 = vld [vmem:[%s14477_s1 + $0x15a0] sm:$0xff]  ;;  %v5599_v62 = vld [vmem:[%s14477_s1 + $0xcf8] sm:$0xff] }
  0x60   : > { %1265 = vmatmul.mubr.f32.vlgmr.msra.gmra.mxu1 %v7645_v28  ;;  %1271 = vmatprep.subr.mxu0 %v5885_v29  ;;  %v5873_v41 = vld [vmem:[%s14477_s1 + $0x1588] sm:$0xff]  ;;  %v5872_v43 = vld [vmem:[%s14477_s1 + $0x1580] sm:$0xff]  ;;  %v5595_v2 = vld [vmem:[%s14477_s1 + $0xcd8] sm:$0xff] }
  0x61   : > { %1342 = vmatprep.subr.mxu1 %v5631_v30  ;;  %1272 = vmatpush1.msra.mxu0 %v5884_v31  ;;  %v5869_v45 = vld [vmem:[%s14477_s1 + $0x1568] sm:$0xff]  ;;  %v5868_v47 = vld [vmem:[%s14477_s1 + $0x1560] sm:$0xff]  ;;  %v5594_v4 = vld [vmem:[%s14477_s1 + $0xcd0] sm:$0xff] }
  0x62   : > { %1343 = vmatpush1.msra.mxu1 %v5630_v32  ;;  %1273 = vmatprep.subr.mxu0 %v5881_v33  ;;  %v5865_v49 = vld [vmem:[%s14477_s1 + $0x1548] sm:$0xff]  ;;  %v5864_v51 = vld [vmem:[%s14477_s1 + $0x1540] sm:$0xff]  ;;  %v5591_v7 = vld [vmem:[%s14477_s1 + $0xcb8] sm:$0xff] }
  0x63   : > { %1344 = vmatprep.subr.mxu1 %v5627_v34  ;;  %1274 = vmatpush1.msra.mxu0 %v5880_v35  ;;  %v5861_v53 = vld [vmem:[%s14477_s1 + $0x1528] sm:$0xff]  ;;  %v5860_v55 = vld [vmem:[%s14477_s1 + $0x1520] sm:$0xff]  ;;  %v5590_v9 = vld [vmem:[%s14477_s1 + $0xcb0] sm:$0xff] }
  0x64   : > { %1345 = vmatpush1.msra.mxu1 %v5626_v36  ;;  %1275 = vmatprep.subr.mxu0 %v5877_v37  ;;  %v5857_v57 = vld [vmem:[%s14477_s1 + $0x1508] sm:$0xff]  ;;  %v5856_v59 = vld [vmem:[%s14477_s1 + $0x1500] sm:$0xff]  ;;  %v5587_v11 = vld [vmem:[%s14477_s1 + $0xc98] sm:$0xff] }
  0x65   : > { %1346 = vmatprep.subr.mxu1 %v5623_v38  ;;  %1276 = vmatpush1.msra.mxu0 %v5876_v39  ;;  %v5853_v61 = vld [vmem:[%s14477_s1 + $0x14e8] sm:$0xff]  ;;  %v5852_v63 = vld [vmem:[%s14477_s1 + $0x14e0] sm:$0xff]  ;;  %v5586_v13 = vld [vmem:[%s14477_s1 + $0xc90] sm:$0xff] }
  0x66   : > { %1347 = vmatpush1.msra.mxu1 %v5622_v40  ;;  %1277 = vmatprep.subr.mxu0 %v5873_v41  ;;  %v5849_v1 = vld [vmem:[%s14477_s1 + $0x14c8] sm:$0xff]  ;;  %v5848_v3 = vld [vmem:[%s14477_s1 + $0x14c0] sm:$0xff]  ;;  %v5583_v15 = vld [vmem:[%s14477_s1 + $0xc78] sm:$0xff] }
  0x67   : > { %1348 = vmatprep.subr.mxu1 %v5619_v42  ;;  %1278 = vmatpush1.msra.mxu0 %v5872_v43  ;;  %v5845_v5 = vld [vmem:[%s14477_s1 + $0x14a8] sm:$0xff]  ;;  %v5844_v8 = vld [vmem:[%s14477_s1 + $0x14a0] sm:$0xff]  ;;  %v5582_v17 = vld [vmem:[%s14477_s1 + $0xc70] sm:$0xff] }
  0x68   : > { %1349 = vmatpush1.msra.mxu1 %v5618_v44  ;;  %1279 = vmatprep.subr.mxu0 %v5869_v45  ;;  %v5841_v10 = vld [vmem:[%s14477_s1 + $0x1488] sm:$0xff]  ;;  %v5840_v12 = vld [vmem:[%s14477_s1 + $0x1480] sm:$0xff]  ;;  %v5579_v19 = vld [vmem:[%s14477_s1 + $0xc58] sm:$0xff] }
  0x69   : > { %1350 = vmatprep.subr.mxu1 %v5615_v46  ;;  %1280 = vmatpush1.msra.mxu0 %v5868_v47  ;;  %v5837_v14 = vld [vmem:[%s14477_s1 + $0x1468] sm:$0xff]  ;;  %v5836_v16 = vld [vmem:[%s14477_s1 + $0x1460] sm:$0xff]  ;;  %v282_v20 = vld [vmem:[%s7498_s24 + $0x18] sm:$0xff] }
  0x6a   : > { %1351 = vmatpush1.msra.mxu1 %v5614_v48  ;;  %1281 = vmatprep.subr.mxu0 %v5865_v49  ;;  %v5833_v18 = vld [vmem:[%s14477_s1 + $0x1448] sm:$0xff]  ;;  %v5832_v21 = vld [vmem:[%s14477_s1 + $0x1440] sm:$0xff]  ;;  %v5578_v22 = vld [vmem:[%s14477_s1 + $0xc50] sm:$0xff]  ;;  %v290_v23 = vrot.slane %v282_v20, 7 }
  0x6b   : > { %1352 = vmatprep.subr.mxu1 %v5611_v50  ;;  %1282 = vmatpush1.msra.mxu0 %v5864_v51  ;;  %v5829_v25 = vld [vmem:[%s14477_s1 + $0x1428] sm:$0xff]  ;;  %v5575_v29 = vld [vmem:[%s14477_s1 + $0xc38] sm:$0xff]  ;;  %v5828_v30 = vld [vmem:[%s14477_s1 + $0x1420] sm:$0xff] }
  0x6c   : > { %1353 = vmatpush1.msra.mxu1 %v5610_v52  ;;  %1283 = vmatprep.subr.mxu0 %v5861_v53  ;;  %v5574_v31 = vld [vmem:[%s14477_s1 + $0xc30] sm:$0xff]  ;;  %298 = vst [vmem:[#allocation2 + $0x20] sm:$0xfe] %v290_v23  ;;  %302 = vst [vmem:[#allocation2 + $0x50] sm:$0x1] %v290_v23  ;;  %v5825_v32 = vld [vmem:[%s14477_s1 + $0x1408] sm:$0xff] }
  0x6d   : > { %1354 = vmatprep.subr.mxu1 %v5607_v54  ;;  %1284 = vmatpush1.msra.mxu0 %v5860_v55  ;;  %v5571_v33 = vld [vmem:[%s14477_s1 + $0xc18] sm:$0xff]  ;;  %v5824_v34 = vld [vmem:[%s14477_s1 + $0x1400] sm:$0xff]  ;;  %v5570_v35 = vld [vmem:[%s14477_s1 + $0xc10] sm:$0xff] }
  0x6e   : > { %1355 = vmatpush1.msra.mxu1 %v5606_v56  ;;  %1285 = vmatprep.subr.mxu0 %v5857_v57  ;;  %v5949_v36 = vld [vmem:[%s14477_s1 + $0x17e8] sm:$0xff]  ;;  %v5695_v37 = vld [vmem:[%s14477_s1 + $0xff8] sm:$0xff]  ;;  %v5948_v38 = vld [vmem:[%s14477_s1 + $0x17e0] sm:$0xff] }
  0x6f   : > { %1356 = vmatprep.subr.mxu1 %v5603_v58  ;;  %1286 = vmatpush1.msra.mxu0 %v5856_v59  ;;  %v5694_v39 = vld [vmem:[%s14477_s1 + $0xff0] sm:$0xff]  ;;  %v5945_v40 = vld [vmem:[%s14477_s1 + $0x17c8] sm:$0xff]  ;;  %v5691_v41 = vld [vmem:[%s14477_s1 + $0xfd8] sm:$0xff] }
  0x70   : > { %1357 = vmatpush1.msra.mxu1 %v5602_v60  ;;  %1287 = vmatprep.subr.mxu0 %v5853_v61  ;;  %v5944_v42 = vld [vmem:[%s14477_s1 + $0x17c0] sm:$0xff]  ;;  %v5690_v43 = vld [vmem:[%s14477_s1 + $0xfd0] sm:$0xff]  ;;  %v5941_v44 = vld [vmem:[%s14477_s1 + $0x17a8] sm:$0xff] }
  0x71   : > { %1358 = vmatprep.subr.mxu1 %v5599_v62  ;;  %1288 = vmatpush1.msra.mxu0 %v5852_v63  ;;  %v5687_v45 = vld [vmem:[%s14477_s1 + $0xfb8] sm:$0xff]  ;;  %v5940_v46 = vld [vmem:[%s14477_s1 + $0x17a0] sm:$0xff]  ;;  %v5686_v47 = vld [vmem:[%s14477_s1 + $0xfb0] sm:$0xff] }
  0x72   : > { %1359 = vmatpush1.msra.mxu1 %v5598_v0  ;;  %1289 = vmatprep.subr.mxu0 %v5849_v1  ;;  %v5937_v48 = vld [vmem:[%s14477_s1 + $0x1788] sm:$0xff]  ;;  %v5683_v49 = vld [vmem:[%s14477_s1 + $0xf98] sm:$0xff]  ;;  %v5936_v50 = vld [vmem:[%s14477_s1 + $0x1780] sm:$0xff] }
  0x73   : > { %1360 = vmatprep.subr.mxu1 %v5595_v2  ;;  %1290 = vmatpush1.msra.mxu0 %v5848_v3  ;;  %v5682_v51 = vld [vmem:[%s14477_s1 + $0xf90] sm:$0xff]  ;;  %v5933_v52 = vld [vmem:[%s14477_s1 + $0x1768] sm:$0xff]  ;;  %v5679_v53 = vld [vmem:[%s14477_s1 + $0xf78] sm:$0xff] }
  0x74   : > { %1361 = vmatpush1.msra.mxu1 %v5594_v4  ;;  %1291 = vmatprep.subr.mxu0 %v5845_v5  ;;  %v5932_v54 = vld [vmem:[%s14477_s1 + $0x1760] sm:$0xff]  ;;  %v5678_v55 = vld [vmem:[%s14477_s1 + $0xf70] sm:$0xff]  ;;  %v5929_v56 = vld [vmem:[%s14477_s1 + $0x1748] sm:$0xff] }
  0x75   : > { %1362 = vmatprep.subr.mxu1 %v5591_v7  ;;  %1292 = vmatpush1.msra.mxu0 %v5844_v8  ;;  %v5675_v57 = vld [vmem:[%s14477_s1 + $0xf58] sm:$0xff]  ;;  %v5928_v58 = vld [vmem:[%s14477_s1 + $0x1740] sm:$0xff]  ;;  %v5674_v59 = vld [vmem:[%s14477_s1 + $0xf50] sm:$0xff] }
  0x76   : > { %1363 = vmatpush1.msra.mxu1 %v5590_v9  ;;  %1293 = vmatprep.subr.mxu0 %v5841_v10  ;;  %v5925_v60 = vld [vmem:[%s14477_s1 + $0x1728] sm:$0xff]  ;;  %v5671_v61 = vld [vmem:[%s14477_s1 + $0xf38] sm:$0xff]  ;;  %v5924_v62 = vld [vmem:[%s14477_s1 + $0x1720] sm:$0xff] }
  0x77   : > { %1364 = vmatprep.subr.mxu1 %v5587_v11  ;;  %1294 = vmatpush1.msra.mxu0 %v5840_v12  ;;  %v5670_v63 = vld [vmem:[%s14477_s1 + $0xf30] sm:$0xff]  ;;  %v5921_v0 = vld [vmem:[%s14477_s1 + $0x1708] sm:$0xff]  ;;  %v5667_v1 = vld [vmem:[%s14477_s1 + $0xf18] sm:$0xff] }
  0x78   : > { %1365 = vmatpush1.msra.mxu1 %v5586_v13  ;;  %1295 = vmatprep.subr.mxu0 %v5837_v14  ;;  %v5920_v2 = vld [vmem:[%s14477_s1 + $0x1700] sm:$0xff]  ;;  %v5666_v3 = vld [vmem:[%s14477_s1 + $0xf10] sm:$0xff]  ;;  %v5917_v4 = vld [vmem:[%s14477_s1 + $0x16e8] sm:$0xff] }
  0x79   : > { %1366 = vmatprep.subr.mxu1 %v5583_v15  ;;  %1296 = vmatpush1.msra.mxu0 %v5836_v16  ;;  %v5663_v5 = vld [vmem:[%s14477_s1 + $0xef8] sm:$0xff]  ;;  %v5916_v7 = vld [vmem:[%s14477_s1 + $0x16e0] sm:$0xff]  ;;  %v5662_v8 = vld [vmem:[%s14477_s1 + $0xef0] sm:$0xff] }
  0x7a   : > { %1367 = vmatpush1.msra.mxu1 %v5582_v17  ;;  %1297 = vmatprep.subr.mxu0 %v5833_v18  ;;  %v5913_v9 = vld [vmem:[%s14477_s1 + $0x16c8] sm:$0xff]  ;;  %v5659_v10 = vld [vmem:[%s14477_s1 + $0xed8] sm:$0xff]  ;;  %v5912_v11 = vld [vmem:[%s14477_s1 + $0x16c0] sm:$0xff] }
  0x7b   : > { %1368 = vmatprep.subr.mxu1 %v5579_v19  ;;  %1298 = vmatpush1.msra.mxu0 %v5832_v21  ;;  %v5658_v12 = vld [vmem:[%s14477_s1 + $0xed0] sm:$0xff]  ;;  %v5909_v13 = vld [vmem:[%s14477_s1 + $0x16a8] sm:$0xff]  ;;  %v5655_v14 = vld [vmem:[%s14477_s1 + $0xeb8] sm:$0xff] }
  0x7c   : > { %1369 = vmatpush1.msra.mxu1 %v5578_v22  ;;  %1299 = vmatprep.subr.mxu0 %v5829_v25  ;;  %v5908_v15 = vld [vmem:[%s14477_s1 + $0x16a0] sm:$0xff]  ;;  %v5654_v16 = vld [vmem:[%s14477_s1 + $0xeb0] sm:$0xff]  ;;  %v5905_v17 = vld [vmem:[%s14477_s1 + $0x1688] sm:$0xff] }
  0x7d   : > { %1370 = vmatprep.subr.mxu1 %v5575_v29  ;;  %1300 = vmatpush1.msra.mxu0 %v5828_v30  ;;  %v5651_v18 = vld [vmem:[%s14477_s1 + $0xe98] sm:$0xff]  ;;  %v5904_v19 = vld [vmem:[%s14477_s1 + $0x1680] sm:$0xff]  ;;  %v5650_v20 = vld [vmem:[%s14477_s1 + $0xe90] sm:$0xff] }
  0x7e   : > { %1371 = vmatpush1.msra.mxu1 %v5574_v31  ;;  %1301 = vmatprep.subr.mxu0 %v5825_v32  ;;  %v5901_v21 = vld [vmem:[%s14477_s1 + $0x1668] sm:$0xff]  ;;  %v5647_v22 = vld [vmem:[%s14477_s1 + $0xe78] sm:$0xff]  ;;  %v5900_v23 = vld [vmem:[%s14477_s1 + $0x1660] sm:$0xff] }
  0x7f   : > { %1372 = vmatprep.subr.mxu1 %v5571_v33  ;;  %1302 = vmatpush1.msra.mxu0 %v5824_v34  ;;  %v700_v25 = vld [vmem:[#allocation2 + $0x28] sm:$0xfe]  ;;  %v706_v29 = vld [vmem:[#allocation2 + $0x58] sm:$0x1]  ;;  %v5646_v30 = vld [vmem:[%s14477_s1 + $0xe70] sm:$0xff] }
  0x80   : > { %1373 = vmatpush1.msra.mxu1 %v5570_v35  ;;  %1303 = vmatprep.subr.mxu0 %v5949_v36  ;;  %v699_v31 = vld [vmem:[#allocation2 + $0x20] sm:$0xfe]  ;;  %v705_v32 = vld [vmem:[#allocation2 + $0x50] sm:$0x1]  ;;  %v5897_v33 = vld [vmem:[%s14477_s1 + $0x1648] sm:$0xff] }
  0x81   : > { %1374 = vmatprep.subr.mxu1 %v5695_v37  ;;  %1304 = vmatpush2.msra.mxu0 %v5948_v38  ;;  %v5643_v34 = vld [vmem:[%s14477_s1 + $0xe58] sm:$0xff]  ;;  %v5896_v35 = vld [vmem:[%s14477_s1 + $0x1640] sm:$0xff]  ;;  %v5642_v36 = vld [vmem:[%s14477_s1 + $0xe50] sm:$0xff]  ;;  %v1120_v37 = vrot.slane %v700_v25, 1  ;;  %v1121_v38 = vrot.slane %v706_v29, 1 }
  0x82   : > { %1375 = vmatpush2.msra.mxu1 %v5694_v39  ;;  %1305 = vmatprep.subr.mxu0 %v5945_v40  ;;  %v266_v39 = vlaneseq  ;;  %v5893_v40 = vld [vmem:[%s14477_s1 + $0x1628] sm:$0xff]  ;;  %v5722_v25 = vld [vmem:[%s14477_s1 + $0x10d0] sm:$0xff] }
  0x83   : > { %1376 = vmatprep.subr.mxu1 %v5691_v41  ;;  %1306 = vmatpush2.msra.mxu0 %v5944_v42  ;;  %v5639_v41 = vld [vmem:[%s14477_s1 + $0xe38] sm:$0xff]  ;;  %v1117_v42 = vrot.slane %v699_v31, 1  ;;  %v5850_v29 = vld [vmem:[%s14477_s1 + $0x14d0] sm:$0xff] }
  0x84   : > { %1377 = vmatpush2.msra.mxu1 %v5690_v43  ;;  %1307 = vmatprep.subr.mxu0 %v5941_v44  ;;  %v1118_v43 = vrot.slane %v705_v32, 1  ;;  %v5892_v44 = vld [vmem:[%s14477_s1 + $0x1620] sm:$0xff]  ;;  %vm268_vm1 = vcmp.lt.s32.totalorder %v266_v39, 768  ;;  %v5847_v31 = vld [vmem:[%s14477_s1 + $0x14b8] sm:$0xff]  ;;  %v5718_v32 = vld [vmem:[%s14477_s1 + $0x10b0] sm:$0xff] }
  0x85   : > { %1378 = vmatprep.subr.mxu1 %v5687_v45  ;;  %1308 = vmatpush2.msra.mxu0 %v5940_v46  ;;  %v5638_v45 = vld [vmem:[%s14477_s1 + $0xe30] sm:$0xff]  ;;  %v5889_v46 = vld [vmem:[%s14477_s1 + $0x1608] sm:$0xff]  ;;  %270 = vst.msk [vmem:[#allocation2] ss:$8 sm:$0xf] %vm268_vm1, %v7166_v6 }
  0x86   : > { %1379 = vmatpush2.msra.mxu1 %v5686_v47  ;;  %1309 = vmatprep.subr.mxu0 %v5937_v48  ;;  %v5635_v47 = vld [vmem:[%s14477_s1 + $0xe18] sm:$0xff]  ;;  %271 = vst.msk [vmem:[#allocation2] ss:$8 sm:$0x30] %vm268_vm1, %v7166_v6  ;;  %v5888_v48 = vld [vmem:[%s14477_s1 + $0x1600] sm:$0xff] }
  0x87   : > { %1380 = vmatprep.subr.mxu1 %v5683_v49  ;;  %1310 = vmatpush2.msra.mxu0 %v5936_v50  ;;  %273 = vst.msk [vmem:[#allocation2 + $0x31] ss:$8 sm:$0xf] %vm268_vm1, %v7166_v6  ;;  %274 = vst.msk [vmem:[#allocation2 + $0x31] ss:$8 sm:$0x30] %vm268_vm1, %v7166_v6  ;;  %v8039_v49 = vsel %vm1104_vm0, %v1120_v37, %v1121_v38 }
  0x88   : > { %1381 = vmatpush2.msra.mxu1 %v5682_v51  ;;  %1311 = vmatprep.subr.mxu0 %v5933_v52  ;;  %v5634_v50 = vld [vmem:[%s14477_s1 + $0xe10] sm:$0xff]  ;;  %v8045_v51 = vsel %vm1104_vm0, %v1117_v42, %v1118_v43  ;;  %v5759_v6 = vld [vmem:[%s14477_s1 + $0x11f8] sm:$0xff] }
  0x89   : > { %1382 = vmatprep.subr.mxu1 %v5679_v53  ;;  %1312 = vmatpush2.msra.mxu0 %v5932_v54  ;;  %v5887_v52 = vld [vmem:[%s14477_s1 + $0x15f8] sm:$0xff]  ;;  %v5758_v53 = vld [vmem:[%s14477_s1 + $0x11f0] sm:$0xff] }
  0x8a   : > { %1383 = vmatpush2.msra.mxu1 %v5678_v55  ;;  %1313 = vmatprep.subr.mxu0 %v5929_v56  ;;  %v5886_v54 = vld [vmem:[%s14477_s1 + $0x15f0] sm:$0xff]  ;;  %v5755_v55 = vld [vmem:[%s14477_s1 + $0x11d8] sm:$0xff] }
  0x8b   : > { %1384 = vmatprep.subr.mxu1 %v5675_v57  ;;  %1314 = vmatpush2.msra.mxu0 %v5928_v58  ;;  %v5883_v56 = vld [vmem:[%s14477_s1 + $0x15d8] sm:$0xff]  ;;  %v5754_v57 = vld [vmem:[%s14477_s1 + $0x11d0] sm:$0xff] }
  0x8c   : > { %1385 = vmatpush2.msra.mxu1 %v5674_v59  ;;  %1315 = vmatprep.subr.mxu0 %v5925_v60  ;;  %v5751_v58 = vld [vmem:[%s14477_s1 + $0x11b8] sm:$0xff]  ;;  %v5878_v60 = vld [vmem:[%s14477_s1 + $0x15b0] sm:$0xff] }
  0x8d   : > { %1386 = vmatprep.subr.mxu1 %v5671_v61  ;;  %1316 = vmatpush2.msra.mxu0 %v5924_v62  ;;  %v5879_v59 = vld [vmem:[%s14477_s1 + $0x15b8] sm:$0xff]  ;;  %v5842_v37 = vld [vmem:[%s14477_s1 + $0x1490] sm:$0xff] }
  0x8e   : > { %1387 = vmatpush2.msra.mxu1 %v5670_v63  ;;  %1317 = vmatprep.subr.mxu0 %v5921_v0  ;;  %v5747_v61 = vld [vmem:[%s14477_s1 + $0x1198] sm:$0xff]  ;;  %v5746_v63 = vld [vmem:[%s14477_s1 + $0x1190] sm:$0xff] }
  0x8f   : > { %1388 = vmatprep.subr.mxu1 %v5667_v1  ;;  %1318 = vmatpush2.msra.mxu0 %v5920_v2  ;;  %v5875_v62 = vld [vmem:[%s14477_s1 + $0x1598] sm:$0xff]  ;;  %v5874_v0 = vld [vmem:[%s14477_s1 + $0x1590] sm:$0xff] }
  0x90   : > { %1389 = vmatpush2.msra.mxu1 %v5666_v3  ;;  %1319 = vmatprep.subr.mxu0 %v5917_v4  ;;  %v5743_v1 = vld [vmem:[%s14477_s1 + $0x1178] sm:$0xff]  ;;  %v5742_v3 = vld [vmem:[%s14477_s1 + $0x1170] sm:$0xff] }
  0x91   : > { %1390 = vmatprep.subr.mxu1 %v5663_v5  ;;  %1320 = vmatpush2.msra.mxu0 %v5916_v7  ;;  %v5871_v2 = vld [vmem:[%s14477_s1 + $0x1578] sm:$0xff]  ;;  %v5870_v4 = vld [vmem:[%s14477_s1 + $0x1570] sm:$0xff] }
  0x92   : > { %1391 = vmatpush2.msra.mxu1 %v5662_v8  ;;  %1321 = vmatprep.subr.mxu0 %v5913_v9  ;;  %v5739_v5 = vld [vmem:[%s14477_s1 + $0x1158] sm:$0xff]  ;;  %v5738_v8 = vld [vmem:[%s14477_s1 + $0x1150] sm:$0xff] }
  0x93   : > { %1392 = vmatprep.subr.mxu1 %v5659_v10  ;;  %1322 = vmatpush2.msra.mxu0 %v5912_v11  ;;  %v5867_v7 = vld [vmem:[%s14477_s1 + $0x1558] sm:$0xff]  ;;  %v5866_v9 = vld [vmem:[%s14477_s1 + $0x1550] sm:$0xff] }
  0x94   : > { %1393 = vmatpush2.msra.mxu1 %v5658_v12  ;;  %1323 = vmatprep.subr.mxu0 %v5909_v13  ;;  %v5735_v10 = vld [vmem:[%s14477_s1 + $0x1138] sm:$0xff]  ;;  %v5734_v12 = vld [vmem:[%s14477_s1 + $0x1130] sm:$0xff] }
  0x95   : > { %1394 = vmatprep.subr.mxu1 %v5655_v14  ;;  %1324 = vmatpush2.msra.mxu0 %v5908_v15  ;;  %v5863_v11 = vld [vmem:[%s14477_s1 + $0x1538] sm:$0xff]  ;;  %v5862_v13 = vld [vmem:[%s14477_s1 + $0x1530] sm:$0xff] }
  0x96   : > { %1395 = vmatpush2.msra.mxu1 %v5654_v16  ;;  %1325 = vmatprep.subr.mxu0 %v5905_v17  ;;  %v5731_v14 = vld [vmem:[%s14477_s1 + $0x1118] sm:$0xff]  ;;  %v5730_v16 = vld [vmem:[%s14477_s1 + $0x1110] sm:$0xff] }
  0x97   : > { %1396 = vmatprep.subr.mxu1 %v5651_v18  ;;  %1326 = vmatpush2.msra.mxu0 %v5904_v19  ;;  %v5859_v15 = vld [vmem:[%s14477_s1 + $0x1518] sm:$0xff]  ;;  %v5858_v17 = vld [vmem:[%s14477_s1 + $0x1510] sm:$0xff] }
  0x98   : > { %1397 = vmatpush2.msra.mxu1 %v5650_v20  ;;  %1327 = vmatprep.subr.mxu0 %v5901_v21  ;;  %v5727_v18 = vld [vmem:[%s14477_s1 + $0x10f8] sm:$0xff]  ;;  %v5726_v20 = vld [vmem:[%s14477_s1 + $0x10f0] sm:$0xff] }
  0x99   : > { %1398 = vmatprep.subr.mxu1 %v5647_v22  ;;  %1328 = vmatpush2.msra.mxu0 %v5900_v23  ;;  %v5855_v19 = vld [vmem:[%s14477_s1 + $0x14f8] sm:$0xff]  ;;  %v5854_v21 = vld [vmem:[%s14477_s1 + $0x14f0] sm:$0xff] }
  0x9a   : > { %1399 = vmatpush2.msra.mxu1 %v5646_v30  ;;  %1329 = vmatprep.subr.mxu0 %v5897_v33  ;;  %v5723_v22 = vld [vmem:[%s14477_s1 + $0x10d8] sm:$0xff]  ;;  %v5846_v33 = vld [vmem:[%s14477_s1 + $0x14b0] sm:$0xff] }
  0x9b   : > { %1400 = vmatprep.subr.mxu1 %v5643_v34  ;;  %1330 = vmatpush2.msra.mxu0 %v5896_v35  ;;  %v5851_v23 = vld [vmem:[%s14477_s1 + $0x14d8] sm:$0xff]  ;;  %v5838_v42 = vld [vmem:[%s14477_s1 + $0x1470] sm:$0xff] }
  0x9c   : > { %1401 = vmatpush2.msra.mxu1 %v5642_v36  ;;  %1331 = vmatprep.subr.mxu0 %v5893_v40  ;;  %v5719_v30 = vld [vmem:[%s14477_s1 + $0x10b8] sm:$0xff]  ;;  %v5714_v36 = vld [vmem:[%s14477_s1 + $0x1090] sm:$0xff] }
  0x9d   : > { %1402 = vmatprep.subr.mxu1 %v5639_v41  ;;  %1332 = vmatpush2.msra.mxu0 %v5892_v44  ;;  %v5715_v34 = vld [vmem:[%s14477_s1 + $0x1098] sm:$0xff]  ;;  %v5710_v41 = vld [vmem:[%s14477_s1 + $0x1070] sm:$0xff] }
  0x9e   : > { %1403 = vmatpush2.msra.mxu1 %v5638_v45  ;;  %1333 = vmatprep.subr.mxu0 %v5889_v46  ;;  %v5843_v35 = vld [vmem:[%s14477_s1 + $0x1498] sm:$0xff]  ;;  %v5706_v45 = vld [vmem:[%s14477_s1 + $0x1050] sm:$0xff] }
  0x9f   : > { %1404 = vmatprep.subr.mxu1 %v5635_v47  ;;  %1334 = vmatpush2.msra.mxu0 %v5888_v48  ;;  %v5711_v38 = vld [vmem:[%s14477_s1 + $0x1078] sm:$0xff]  ;;  %v5834_v46 = vld [vmem:[%s14477_s1 + $0x1450] sm:$0xff] }
  0xa0   : > { %1335 = vmatprep.mubr.f32.mxu0 %v8039_v49  ;;  %1405 = vmatpush2.msra.mxu1 %v5634_v50  ;;  %v5839_v40 = vld [vmem:[%s14477_s1 + $0x1478] sm:$0xff]  ;;  %v5702_v50 = vld [vmem:[%s14477_s1 + $0x1030] sm:$0xff] }
  0xa1   : > { %1336 = vmatmul.mubr.f32.vlgmr.msra.gmra.mxu0 %v8045_v51  ;;  %1406 = vmatprep.mubr.f32.mxu1 %v7633_v24  ;;  %v5882_v24 = vld [vmem:[%s14477_s1 + $0x15d0] sm:$0xff]  ;;  %v5707_v43 = vld [vmem:[%s14477_s1 + $0x1058] sm:$0xff] }
  0xa2   : > { %1413 = vmatprep.subr.mxu0 %v5759_v6  ;;  %1484 = vmatprep.subr.mxu1 %v5887_v52  ;;  %v5835_v44 = vld [vmem:[%s14477_s1 + $0x1458] sm:$0xff]  ;;  %v5830_v6 = vld [vmem:[%s14477_s1 + $0x1430] sm:$0xff] }
  0xa3   : > { %1407 = vmatmul.mubr.f32.vlgmr.msra.gmra.mxu1 %v7642_v27  ;;  %1414 = vmatpush1.msra.mxu0 %v5758_v53  ;;  %v5750_v27 = vld [vmem:[%s14477_s1 + $0x11b0] sm:$0xff]  ;;  %v5703_v47 = vld [vmem:[%s14477_s1 + $0x1038] sm:$0xff] }
  0xa4   : > { %1485 = vmatpush1.msra.mxu1 %v5886_v54  ;;  %1415 = vmatprep.subr.mxu0 %v5755_v55  ;;  %v5831_v48 = vld [vmem:[%s14477_s1 + $0x1438] sm:$0xff]  ;;  %v5698_v54 = vld [vmem:[%s14477_s1 + $0x1010] sm:$0xff] }
  0xa5   : > { %1486 = vmatprep.subr.mxu1 %v5883_v56  ;;  %1416 = vmatpush1.msra.mxu0 %v5754_v57  ;;  %v5699_v52 = vld [vmem:[%s14477_s1 + $0x1018] sm:$0xff]  ;;  %v5826_v55 = vld [vmem:[%s14477_s1 + $0x1410] sm:$0xff] }
  0xa6   : > { %1487 = vmatpush1.msra.mxu1 %v5882_v24  ;;  %1417 = vmatprep.subr.mxu0 %v5751_v58  ;;  %v5827_v53 = vld [vmem:[%s14477_s1 + $0x1418] sm:$0xff]  ;;  %v5822_v24 = vld [vmem:[%s14477_s1 + $0x13f0] sm:$0xff] }
  0xa7   : > { %1488 = vmatprep.subr.mxu1 %v5879_v59  ;;  %1418 = vmatpush1.msra.mxu0 %v5750_v27  ;;  %v5823_v56 = vld [vmem:[%s14477_s1 + $0x13f8] sm:$0xff]  ;;  %v5950_v58 = vld [vmem:[%s14477_s1 + $0x17f0] sm:$0xff] }
  0xa8   : > { %1489 = vmatpush1.msra.mxu1 %v5878_v60  ;;  %1419 = vmatprep.subr.mxu0 %v5747_v61  ;;  %v5951_v57 = vld [vmem:[%s14477_s1 + $0x17f8] sm:$0xff]  ;;  %v5818_v60 = vld [vmem:[%s14477_s1 + $0x13d0] sm:$0xff] }
  0xa9   : > { %1490 = vmatprep.subr.mxu1 %v5875_v62  ;;  %1420 = vmatpush1.msra.mxu0 %v5746_v63  ;;  %v5819_v59 = vld [vmem:[%s14477_s1 + $0x13d8] sm:$0xff]  ;;  %v5946_v61 = vld [vmem:[%s14477_s1 + $0x17d0] sm:$0xff] }
  0xaa   : > { %1491 = vmatpush1.msra.mxu1 %v5874_v0  ;;  %1421 = vmatprep.subr.mxu0 %v5743_v1  ;;  %v5947_v27 = vld [vmem:[%s14477_s1 + $0x17d8] sm:$0xff]  ;;  %v5814_v0 = vld [vmem:[%s14477_s1 + $0x13b0] sm:$0xff] }
  0xab   : > { %1492 = vmatprep.subr.mxu1 %v5871_v2  ;;  %1422 = vmatpush1.msra.mxu0 %v5742_v3  ;;  %v5815_v62 = vld [vmem:[%s14477_s1 + $0x13b8] sm:$0xff]  ;;  %v5942_v1 = vld [vmem:[%s14477_s1 + $0x17b0] sm:$0xff] }
  0xac   : > { %1493 = vmatpush1.msra.mxu1 %v5870_v4  ;;  %1423 = vmatprep.subr.mxu0 %v5739_v5  ;;  %v5943_v63 = vld [vmem:[%s14477_s1 + $0x17b8] sm:$0xff]  ;;  %v5810_v4 = vld [vmem:[%s14477_s1 + $0x1390] sm:$0xff] }
  0xad   : > { %1494 = vmatprep.subr.mxu1 %v5867_v7  ;;  %1424 = vmatpush1.msra.mxu0 %v5738_v8  ;;  %v5811_v2 = vld [vmem:[%s14477_s1 + $0x1398] sm:$0xff]  ;;  %v5938_v5 = vld [vmem:[%s14477_s1 + $0x1790] sm:$0xff] }
  0xae   : > { %1495 = vmatpush1.msra.mxu1 %v5866_v9  ;;  %1425 = vmatprep.subr.mxu0 %v5735_v10  ;;  %v5939_v3 = vld [vmem:[%s14477_s1 + $0x1798] sm:$0xff]  ;;  %v5806_v9 = vld [vmem:[%s14477_s1 + $0x1370] sm:$0xff] }
  0xaf   : > { %1496 = vmatprep.subr.mxu1 %v5863_v11  ;;  %1426 = vmatpush1.msra.mxu0 %v5734_v12  ;;  %v5807_v7 = vld [vmem:[%s14477_s1 + $0x1378] sm:$0xff]  ;;  %v5934_v10 = vld [vmem:[%s14477_s1 + $0x1770] sm:$0xff] }
  0xb0   : > { %1497 = vmatpush1.msra.mxu1 %v5862_v13  ;;  %1427 = vmatprep.subr.mxu0 %v5731_v14  ;;  %v5935_v8 = vld [vmem:[%s14477_s1 + $0x1778] sm:$0xff]  ;;  %v5802_v13 = vld [vmem:[%s14477_s1 + $0x1350] sm:$0xff] }
  0xb1   : > { %1498 = vmatprep.subr.mxu1 %v5859_v15  ;;  %1428 = vmatpush1.msra.mxu0 %v5730_v16  ;;  %v5803_v11 = vld [vmem:[%s14477_s1 + $0x1358] sm:$0xff]  ;;  %v5930_v14 = vld [vmem:[%s14477_s1 + $0x1750] sm:$0xff] }
  0xb2   : > { %1499 = vmatpush1.msra.mxu1 %v5858_v17  ;;  %1429 = vmatprep.subr.mxu0 %v5727_v18  ;;  %v5931_v12 = vld [vmem:[%s14477_s1 + $0x1758] sm:$0xff]  ;;  %v5798_v17 = vld [vmem:[%s14477_s1 + $0x1330] sm:$0xff] }
  0xb3   : > { %1500 = vmatprep.subr.mxu1 %v5855_v19  ;;  %1430 = vmatpush1.msra.mxu0 %v5726_v20  ;;  %v5799_v15 = vld [vmem:[%s14477_s1 + $0x1338] sm:$0xff]  ;;  %v5926_v18 = vld [vmem:[%s14477_s1 + $0x1730] sm:$0xff] }
  0xb4   : > { %1501 = vmatpush1.msra.mxu1 %v5854_v21  ;;  %1431 = vmatprep.subr.mxu0 %v5723_v22  ;;  %v5927_v16 = vld [vmem:[%s14477_s1 + $0x1738] sm:$0xff]  ;;  %v5794_v21 = vld [vmem:[%s14477_s1 + $0x1310] sm:$0xff] }
  0xb5   : > { %1502 = vmatprep.subr.mxu1 %v5851_v23  ;;  %1432 = vmatpush1.msra.mxu0 %v5722_v25  ;;  %v5795_v19 = vld [vmem:[%s14477_s1 + $0x1318] sm:$0xff]  ;;  %v5922_v22 = vld [vmem:[%s14477_s1 + $0x1710] sm:$0xff] }
  0xb6   : > { %1503 = vmatpush1.msra.mxu1 %v5850_v29  ;;  %1433 = vmatprep.subr.mxu0 %v5719_v30  ;;  %v5923_v20 = vld [vmem:[%s14477_s1 + $0x1718] sm:$0xff]  ;;  %v5790_v29 = vld [vmem:[%s14477_s1 + $0x12f0] sm:$0xff] }
  0xb7   : > { %1504 = vmatprep.subr.mxu1 %v5847_v31  ;;  %1434 = vmatpush1.msra.mxu0 %v5718_v32  ;;  %v5791_v23 = vld [vmem:[%s14477_s1 + $0x12f8] sm:$0xff]  ;;  %v5918_v30 = vld [vmem:[%s14477_s1 + $0x16f0] sm:$0xff] }
  0xb8   : > { %1505 = vmatpush1.msra.mxu1 %v5846_v33  ;;  %1435 = vmatprep.subr.mxu0 %v5715_v34  ;;  %v5919_v25 = vld [vmem:[%s14477_s1 + $0x16f8] sm:$0xff]  ;;  %v5786_v33 = vld [vmem:[%s14477_s1 + $0x12d0] sm:$0xff] }
  0xb9   : > { %1506 = vmatprep.subr.mxu1 %v5843_v35  ;;  %1436 = vmatpush1.msra.mxu0 %v5714_v36  ;;  %v5787_v31 = vld [vmem:[%s14477_s1 + $0x12d8] sm:$0xff]  ;;  %v5914_v34 = vld [vmem:[%s14477_s1 + $0x16d0] sm:$0xff] }
  0xba   : > { %1507 = vmatpush1.msra.mxu1 %v5842_v37  ;;  %1437 = vmatprep.subr.mxu0 %v5711_v38  ;;  %v5915_v32 = vld [vmem:[%s14477_s1 + $0x16d8] sm:$0xff]  ;;  %v5782_v37 = vld [vmem:[%s14477_s1 + $0x12b0] sm:$0xff] }
  0xbb   : > { %1508 = vmatprep.subr.mxu1 %v5839_v40  ;;  %1438 = vmatpush1.msra.mxu0 %v5710_v41  ;;  %v5783_v35 = vld [vmem:[%s14477_s1 + $0x12b8] sm:$0xff]  ;;  %v5910_v38 = vld [vmem:[%s14477_s1 + $0x16b0] sm:$0xff] }
  0xbc   : > { %1509 = vmatpush1.msra.mxu1 %v5838_v42  ;;  %1439 = vmatprep.subr.mxu0 %v5707_v43  ;;  %v5911_v36 = vld [vmem:[%s14477_s1 + $0x16b8] sm:$0xff]  ;;  %v5778_v42 = vld [vmem:[%s14477_s1 + $0x1290] sm:$0xff] }
  0xbd   : > { %1510 = vmatprep.subr.mxu1 %v5835_v44  ;;  %1440 = vmatpush1.msra.mxu0 %v5706_v45  ;;  %v5779_v40 = vld [vmem:[%s14477_s1 + $0x1298] sm:$0xff]  ;;  %v5906_v43 = vld [vmem:[%s14477_s1 + $0x1690] sm:$0xff] }
  0xbe   : > { %1511 = vmatpush1.msra.mxu1 %v5834_v46  ;;  %1441 = vmatprep.subr.mxu0 %v5703_v47  ;;  %v5907_v41 = vld [vmem:[%s14477_s1 + $0x1698] sm:$0xff]  ;;  %v5774_v46 = vld [vmem:[%s14477_s1 + $0x1270] sm:$0xff] }
  0xbf   : > { %1512 = vmatprep.subr.mxu1 %v5831_v48  ;;  %1442 = vmatpush1.msra.mxu0 %v5702_v50  ;;  %v5775_v44 = vld [vmem:[%s14477_s1 + $0x1278] sm:$0xff]  ;;  %v5902_v47 = vld [vmem:[%s14477_s1 + $0x1670] sm:$0xff] }
  0xc0   : > { %1513 = vmatpush1.msra.mxu1 %v5830_v6  ;;  %1443 = vmatprep.subr.mxu0 %v5699_v52  ;;  %v5903_v45 = vld [vmem:[%s14477_s1 + $0x1678] sm:$0xff]  ;;  %v5770_v6 = vld [vmem:[%s14477_s1 + $0x1250] sm:$0xff] }
  0xc1   : > { %1514 = vmatprep.subr.mxu1 %v5827_v53  ;;  %1444 = vmatpush1.msra.mxu0 %v5698_v54  ;;  %v5771_v48 = vld [vmem:[%s14477_s1 + $0x1258] sm:$0xff]  ;;  %v5898_v52 = vld [vmem:[%s14477_s1 + $0x1650] sm:$0xff] }
  0xc2   : > { %1515 = vmatpush1.msra.mxu1 %v5826_v55  ;;  %1445 = vmatprep.subr.mxu0 %v5823_v56  ;;  %v5899_v50 = vld [vmem:[%s14477_s1 + $0x1658] sm:$0xff]  ;;  %v5766_v55 = vld [vmem:[%s14477_s1 + $0x1230] sm:$0xff] }
  0xc3   : > { %1516 = vmatprep.subr.mxu1 %v5951_v57  ;;  %1446 = vmatpush2.msra.mxu0 %v5822_v24  ;;  %v5767_v53 = vld [vmem:[%s14477_s1 + $0x1238] sm:$0xff]  ;;  %v5894_v56 = vld [vmem:[%s14477_s1 + $0x1630] sm:$0xff] }
  0xc4   : > { %1517 = vmatpush2.msra.mxu1 %v5950_v58  ;;  %1447 = vmatprep.subr.mxu0 %v5819_v59  ;;  %v5895_v54 = vld [vmem:[%s14477_s1 + $0x1638] sm:$0xff]  ;;  %v5762_v58 = vld [vmem:[%s14477_s1 + $0x1210] sm:$0xff] }
  0xc5   : > { %1518 = vmatprep.subr.mxu1 %v5947_v27  ;;  %1448 = vmatpush2.msra.mxu0 %v5818_v60  ;;  %v5763_v57 = vld [vmem:[%s14477_s1 + $0x1218] sm:$0xff]  ;;  %v5890_v59 = vld [vmem:[%s14477_s1 + $0x1610] sm:$0xff]  ;;  %v372_v27 = vld [vmem:[%s14477_s1 + $0x1e8] sm:$0xff] }
  0xc6   : > { %1519 = vmatpush2.msra.mxu1 %v5946_v61  ;;  %1449 = vmatprep.subr.mxu0 %v5815_v62  ;;  %v5891_v24 = vld [vmem:[%s14477_s1 + $0x1618] sm:$0xff]  ;;  %v500_v60 = vld [vmem:[%s14477_s1 + $0x5e8] sm:$0xff]  ;;  %v371_v61 = vld [vmem:[%s14477_s1 + $0x1e0] sm:$0xff] }
  0xc7   : > { %1520 = vmatprep.subr.mxu1 %v5943_v63  ;;  %1450 = vmatpush2.msra.mxu0 %v5814_v0  ;;  %v499_v62 = vld [vmem:[%s14477_s1 + $0x5e0] sm:$0xff]  ;;  %v496_v63 = vld [vmem:[%s14477_s1 + $0x5c8] sm:$0xff] }
  0xc8   : > { %1521 = vmatpush2.msra.mxu1 %v5942_v1  ;;  %1451 = vmatprep.subr.mxu0 %v5811_v2  ;;  %v364_v0 = vld [vmem:[%s14477_s1 + $0x1a8] sm:$0xff]  ;;  %v491_v2 = vld [vmem:[%s14477_s1 + $0x5a0] sm:$0xff] }
  0xc9   : > { %1522 = vmatprep.subr.mxu1 %v5939_v3  ;;  %1452 = vmatpush2.msra.mxu0 %v5810_v4  ;;  %v492_v1 = vld [vmem:[%s14477_s1 + $0x5a8] sm:$0xff] }
  0xca   : > { %1523 = vmatpush2.msra.mxu1 %v5938_v5  ;;  %1453 = vmatprep.subr.mxu0 %v5807_v7  ;;  %v360_v3 = vld [vmem:[%s14477_s1 + $0x188] sm:$0xff]  ;;  %v359_v5 = vld [vmem:[%s14477_s1 + $0x180] sm:$0xff] }
  0xcb   : > { %1524 = vmatprep.subr.mxu1 %v5935_v8  ;;  %1454 = vmatpush2.msra.mxu0 %v5806_v9  ;;  %v488_v4 = vld [vmem:[%s14477_s1 + $0x588] sm:$0xff]  ;;  %v487_v7 = vld [vmem:[%s14477_s1 + $0x580] sm:$0xff] }
  0xcc   : > { %1525 = vmatpush2.msra.mxu1 %v5934_v10  ;;  %1455 = vmatprep.subr.mxu0 %v5803_v11  ;;  %v356_v8 = vld [vmem:[%s14477_s1 + $0x168] sm:$0xff]  ;;  %v355_v10 = vld [vmem:[%s14477_s1 + $0x160] sm:$0xff] }
  0xcd   : > { %1526 = vmatprep.subr.mxu1 %v5931_v12  ;;  %1456 = vmatpush2.msra.mxu0 %v5802_v13  ;;  %v484_v9 = vld [vmem:[%s14477_s1 + $0x568] sm:$0xff]  ;;  %v483_v11 = vld [vmem:[%s14477_s1 + $0x560] sm:$0xff] }
  0xce   : > { %1527 = vmatpush2.msra.mxu1 %v5930_v14  ;;  %1457 = vmatprep.subr.mxu0 %v5799_v15  ;;  %v352_v12 = vld [vmem:[%s14477_s1 + $0x148] sm:$0xff]  ;;  %v351_v14 = vld [vmem:[%s14477_s1 + $0x140] sm:$0xff] }
  0xcf   : > { %1528 = vmatprep.subr.mxu1 %v5927_v16  ;;  %1458 = vmatpush2.msra.mxu0 %v5798_v17  ;;  %v480_v13 = vld [vmem:[%s14477_s1 + $0x548] sm:$0xff]  ;;  %v479_v15 = vld [vmem:[%s14477_s1 + $0x540] sm:$0xff] }
  0xd0   : > { %1529 = vmatpush2.msra.mxu1 %v5926_v18  ;;  %1459 = vmatprep.subr.mxu0 %v5795_v19  ;;  %v348_v16 = vld [vmem:[%s14477_s1 + $0x128] sm:$0xff]  ;;  %v347_v18 = vld [vmem:[%s14477_s1 + $0x120] sm:$0xff] }
  0xd1   : > { %1530 = vmatprep.subr.mxu1 %v5923_v20  ;;  %1460 = vmatpush2.msra.mxu0 %v5794_v21  ;;  %v476_v17 = vld [vmem:[%s14477_s1 + $0x528] sm:$0xff]  ;;  %v475_v19 = vld [vmem:[%s14477_s1 + $0x520] sm:$0xff] }
  0xd2   : > { %1531 = vmatpush2.msra.mxu1 %v5922_v22  ;;  %1461 = vmatprep.subr.mxu0 %v5791_v23  ;;  %v344_v20 = vld [vmem:[%s14477_s1 + $0x108] sm:$0xff]  ;;  %v343_v22 = vld [vmem:[%s14477_s1 + $0x100] sm:$0xff] }
  0xd3   : > { %1532 = vmatprep.subr.mxu1 %v5919_v25  ;;  %1462 = vmatpush2.msra.mxu0 %v5790_v29  ;;  %v472_v21 = vld [vmem:[%s14477_s1 + $0x508] sm:$0xff]  ;;  %v471_v23 = vld [vmem:[%s14477_s1 + $0x500] sm:$0xff] }
  0xd4   : > { %1533 = vmatpush2.msra.mxu1 %v5918_v30  ;;  %1463 = vmatprep.subr.mxu0 %v5787_v31  ;;  %v340_v25 = vld [vmem:[%s14477_s1 + $0xe8] sm:$0xff]  ;;  %v339_v30 = vld [vmem:[%s14477_s1 + $0xe0] sm:$0xff] }
  0xd5   : > { %1534 = vmatprep.subr.mxu1 %v5915_v32  ;;  %1464 = vmatpush2.msra.mxu0 %v5786_v33  ;;  %v468_v29 = vld [vmem:[%s14477_s1 + $0x4e8] sm:$0xff]  ;;  %v467_v31 = vld [vmem:[%s14477_s1 + $0x4e0] sm:$0xff] }
  0xd6   : > { %1535 = vmatpush2.msra.mxu1 %v5914_v34  ;;  %1465 = vmatprep.subr.mxu0 %v5783_v35  ;;  %v336_v32 = vld [vmem:[%s14477_s1 + $0xc8] sm:$0xff]  ;;  %v335_v34 = vld [vmem:[%s14477_s1 + $0xc0] sm:$0xff] }
  0xd7   : > { %1536 = vmatprep.subr.mxu1 %v5911_v36  ;;  %1466 = vmatpush2.msra.mxu0 %v5782_v37  ;;  %v464_v33 = vld [vmem:[%s14477_s1 + $0x4c8] sm:$0xff]  ;;  %v463_v35 = vld [vmem:[%s14477_s1 + $0x4c0] sm:$0xff] }
  0xd8   : > { %1537 = vmatpush2.msra.mxu1 %v5910_v38  ;;  %1467 = vmatprep.subr.mxu0 %v5779_v40  ;;  %v332_v36 = vld [vmem:[%s14477_s1 + $0xa8] sm:$0xff]  ;;  %v331_v38 = vld [vmem:[%s14477_s1 + $0xa0] sm:$0xff] }
  0xd9   : > { %1538 = vmatprep.subr.mxu1 %v5907_v41  ;;  %1468 = vmatpush2.msra.mxu0 %v5778_v42  ;;  %v460_v37 = vld [vmem:[%s14477_s1 + $0x4a8] sm:$0xff]  ;;  %v459_v40 = vld [vmem:[%s14477_s1 + $0x4a0] sm:$0xff] }
  0xda   : > { %1539 = vmatpush2.msra.mxu1 %v5906_v43  ;;  %1469 = vmatprep.subr.mxu0 %v5775_v44  ;;  %v328_v41 = vld [vmem:[%s14477_s1 + $0x88] sm:$0xff]  ;;  %v327_v43 = vld [vmem:[%s14477_s1 + $0x80] sm:$0xff] }
  0xdb   : > { %1540 = vmatprep.subr.mxu1 %v5903_v45  ;;  %1470 = vmatpush2.msra.mxu0 %v5774_v46  ;;  %v456_v42 = vld [vmem:[%s14477_s1 + $0x488] sm:$0xff]  ;;  %v455_v44 = vld [vmem:[%s14477_s1 + $0x480] sm:$0xff] }
  0xdc   : > { %1541 = vmatpush2.msra.mxu1 %v5902_v47  ;;  %1471 = vmatprep.subr.mxu0 %v5771_v48  ;;  %v324_v45 = vld [vmem:[%s14477_s1 + $0x68] sm:$0xff]  ;;  %v323_v47 = vld [vmem:[%s14477_s1 + $0x60] sm:$0xff] }
  0xdd   : > { %1542 = vmatprep.subr.mxu1 %v5899_v50  ;;  %1472 = vmatpush2.msra.mxu0 %v5770_v6  ;;  %v452_v46 = vld [vmem:[%s14477_s1 + $0x468] sm:$0xff]  ;;  %v451_v48 = vld [vmem:[%s14477_s1 + $0x460] sm:$0xff] }
  0xde   : > { %1543 = vmatpush2.msra.mxu1 %v5898_v52  ;;  %1473 = vmatprep.subr.mxu0 %v5767_v53  ;;  %v320_v50 = vld [vmem:[%s14477_s1 + $0x48] sm:$0xff]  ;;  %v319_v52 = vld [vmem:[%s14477_s1 + $0x40] sm:$0xff] }
  0xdf   : > { %1544 = vmatprep.subr.mxu1 %v5895_v54  ;;  %1474 = vmatpush2.msra.mxu0 %v5766_v55  ;;  %v448_v6 = vld [vmem:[%s14477_s1 + $0x448] sm:$0xff]  ;;  %v447_v53 = vld [vmem:[%s14477_s1 + $0x440] sm:$0xff] }
  0xe0   : > { %1545 = vmatpush2.msra.mxu1 %v5894_v56  ;;  %1475 = vmatprep.subr.mxu0 %v5763_v57  ;;  %v316_v54 = vld [vmem:[%s14477_s1 + $0x28] sm:$0xff]  ;;  %v315_v56 = vld [vmem:[%s14477_s1 + $0x20] sm:$0xff] }
  0xe1   : > { %1546 = vmatprep.subr.mxu1 %v5891_v24  ;;  %1476 = vmatpush2.msra.mxu0 %v5762_v58  ;;  %v444_v55 = vld [vmem:[%s14477_s1 + $0x428] sm:$0xff]  ;;  %v443_v57 = vld [vmem:[%s14477_s1 + $0x420] sm:$0xff] }
  0xe2   : > { %1477 = vmatprep.mubr.f32.mxu0 %v7639_v26  ;;  %1547 = vmatpush2.msra.mxu1 %v5890_v59  ;;  %v368_v26 = vld [vmem:[%s14477_s1 + $0x1c8] sm:$0xff]  ;;  %v311_v59 = vld [vmem:[%s14477_s1] sm:$0xff] }
  0xe3   : > { %1478 = vmatmul.mubr.f32.vlgmr.msra.gmra.mxu0 %v7645_v28  ;;  %1548 = vmatprep.mubr.f32.mxu1 %v8039_v49  ;;  %v367_v28 = vld [vmem:[%s14477_s1 + $0x1c0] sm:$0xff]  ;;  %v312_v24 = vld [vmem:[%s14477_s1 + $0x8] sm:$0xff] }
  0xe4   : > { %1555 = vmatprep.subr.mxu0 %v372_v27  ;;  %1626 = vmatprep.subr.mxu1 %v500_v60  ;;  %v495_v49 = vld [vmem:[%s14477_s1 + $0x5c0] sm:$0xff]  ;;  %v440_v58 = vld [vmem:[%s14477_s1 + $0x408] sm:$0xff] }
  0xe5   : > { %1549 = vmatmul.mubr.f32.vlgmr.msra.gmra.mxu1 %v8045_v51  ;;  %1556 = vmatpush1.msra.mxu0 %v371_v61  ;;  %v363_v51 = vld [vmem:[%s14477_s1 + $0x1a0] sm:$0xff]  ;;  %v436_v60 = vld [vmem:[%s14477_s1 + $0x3e8] sm:$0xff] }
  0xe6   : > { %1627 = vmatpush1.msra.mxu1 %v499_v62  ;;  %1557 = vmatprep.subr.mxu0 %v368_v26  ;;  %v439_v27 = vld [vmem:[%s14477_s1 + $0x400] sm:$0xff]  ;;  %v564_v61 = vld [vmem:[%s14477_s1 + $0x7e8] sm:$0xff] }
  0xe7   : > { %1628 = vmatprep.subr.mxu1 %v496_v63  ;;  %1558 = vmatpush1.msra.mxu0 %v367_v28  ;;  %v435_v62 = vld [vmem:[%s14477_s1 + $0x3e0] sm:$0xff]  ;;  %v432_v63 = vld [vmem:[%s14477_s1 + $0x3c8] sm:$0xff] }
  0xe8   : > { %1629 = vmatpush1.msra.mxu1 %v495_v49  ;;  %1559 = vmatprep.subr.mxu0 %v364_v0  ;;  %v563_v26 = vld [vmem:[%s14477_s1 + $0x7e0] sm:$0xff]  ;;  %v560_v28 = vld [vmem:[%s14477_s1 + $0x7c8] sm:$0xff] }
  0xe9   : > { %1630 = vmatprep.subr.mxu1 %v492_v1  ;;  %1560 = vmatpush1.msra.mxu0 %v363_v51  ;;  %v431_v49 = vld [vmem:[%s14477_s1 + $0x3c0] sm:$0xff]  ;;  %v428_v1 = vld [vmem:[%s14477_s1 + $0x3a8] sm:$0xff] }
  0xea   : > { %1631 = vmatpush1.msra.mxu1 %v491_v2  ;;  %1561 = vmatprep.subr.mxu0 %v360_v3  ;;  %v559_v0 = vld [vmem:[%s14477_s1 + $0x7c0] sm:$0xff]  ;;  %v556_v51 = vld [vmem:[%s14477_s1 + $0x7a8] sm:$0xff] }
  0xeb   : > { %1632 = vmatprep.subr.mxu1 %v488_v4  ;;  %1562 = vmatpush1.msra.mxu0 %v359_v5  ;;  %v427_v2 = vld [vmem:[%s14477_s1 + $0x3a0] sm:$0xff]  ;;  %v424_v4 = vld [vmem:[%s14477_s1 + $0x388] sm:$0xff] }
  0xec   : > { %1633 = vmatpush1.msra.mxu1 %v487_v7  ;;  %1563 = vmatprep.subr.mxu0 %v356_v8  ;;  %v555_v3 = vld [vmem:[%s14477_s1 + $0x7a0] sm:$0xff]  ;;  %v552_v5 = vld [vmem:[%s14477_s1 + $0x788] sm:$0xff] }
  0xed   : > { %1634 = vmatprep.subr.mxu1 %v484_v9  ;;  %1564 = vmatpush1.msra.mxu0 %v355_v10  ;;  %v423_v7 = vld [vmem:[%s14477_s1 + $0x380] sm:$0xff]  ;;  %v420_v9 = vld [vmem:[%s14477_s1 + $0x368] sm:$0xff] }
  0xee   : > { %1635 = vmatpush1.msra.mxu1 %v483_v11  ;;  %1565 = vmatprep.subr.mxu0 %v352_v12  ;;  %v551_v8 = vld [vmem:[%s14477_s1 + $0x780] sm:$0xff]  ;;  %v548_v10 = vld [vmem:[%s14477_s1 + $0x768] sm:$0xff] }
  0xef   : > { %1636 = vmatprep.subr.mxu1 %v480_v13  ;;  %1566 = vmatpush1.msra.mxu0 %v351_v14  ;;  %v419_v11 = vld [vmem:[%s14477_s1 + $0x360] sm:$0xff]  ;;  %v416_v13 = vld [vmem:[%s14477_s1 + $0x348] sm:$0xff] }
  0xf0   : > { %1637 = vmatpush1.msra.mxu1 %v479_v15  ;;  %1567 = vmatprep.subr.mxu0 %v348_v16  ;;  %v547_v12 = vld [vmem:[%s14477_s1 + $0x760] sm:$0xff]  ;;  %v544_v14 = vld [vmem:[%s14477_s1 + $0x748] sm:$0xff] }
  0xf1   : > { %1638 = vmatprep.subr.mxu1 %v476_v17  ;;  %1568 = vmatpush1.msra.mxu0 %v347_v18  ;;  %v415_v15 = vld [vmem:[%s14477_s1 + $0x340] sm:$0xff]  ;;  %v412_v17 = vld [vmem:[%s14477_s1 + $0x328] sm:$0xff] }
  0xf2   : > { %1639 = vmatpush1.msra.mxu1 %v475_v19  ;;  %1569 = vmatprep.subr.mxu0 %v344_v20  ;;  %v543_v16 = vld [vmem:[%s14477_s1 + $0x740] sm:$0xff]  ;;  %v540_v18 = vld [vmem:[%s14477_s1 + $0x728] sm:$0xff] }
  0xf3   : > { %1640 = vmatprep.subr.mxu1 %v472_v21  ;;  %1570 = vmatpush1.msra.mxu0 %v343_v22  ;;  %v411_v19 = vld [vmem:[%s14477_s1 + $0x320] sm:$0xff]  ;;  %v408_v21 = vld [vmem:[%s14477_s1 + $0x308] sm:$0xff] }
  0xf4   : > { %1641 = vmatpush1.msra.mxu1 %v471_v23  ;;  %1571 = vmatprep.subr.mxu0 %v340_v25  ;;  %v539_v20 = vld [vmem:[%s14477_s1 + $0x720] sm:$0xff]  ;;  %v536_v22 = vld [vmem:[%s14477_s1 + $0x708] sm:$0xff] }
  0xf5   : > { %1642 = vmatprep.subr.mxu1 %v468_v29  ;;  %1572 = vmatpush1.msra.mxu0 %v339_v30  ;;  %v407_v23 = vld [vmem:[%s14477_s1 + $0x300] sm:$0xff]  ;;  %v404_v29 = vld [vmem:[%s14477_s1 + $0x2e8] sm:$0xff] }
  0xf6   : > { %1643 = vmatpush1.msra.mxu1 %v467_v31  ;;  %1573 = vmatprep.subr.mxu0 %v336_v32  ;;  %v535_v25 = vld [vmem:[%s14477_s1 + $0x700] sm:$0xff]  ;;  %v532_v30 = vld [vmem:[%s14477_s1 + $0x6e8] sm:$0xff] }
  0xf7   : > { %1644 = vmatprep.subr.mxu1 %v464_v33  ;;  %1574 = vmatpush1.msra.mxu0 %v335_v34  ;;  %v403_v31 = vld [vmem:[%s14477_s1 + $0x2e0] sm:$0xff]  ;;  %v400_v33 = vld [vmem:[%s14477_s1 + $0x2c8] sm:$0xff] }
  0xf8   : > { %1645 = vmatpush1.msra.mxu1 %v463_v35  ;;  %1575 = vmatprep.subr.mxu0 %v332_v36  ;;  %v531_v32 = vld [vmem:[%s14477_s1 + $0x6e0] sm:$0xff]  ;;  %v528_v34 = vld [vmem:[%s14477_s1 + $0x6c8] sm:$0xff] }
  0xf9   : > { %1646 = vmatprep.subr.mxu1 %v460_v37  ;;  %1576 = vmatpush1.msra.mxu0 %v331_v38  ;;  %v399_v35 = vld [vmem:[%s14477_s1 + $0x2c0] sm:$0xff]  ;;  %v396_v37 = vld [vmem:[%s14477_s1 + $0x2a8] sm:$0xff] }
  0xfa   : > { %1647 = vmatpush1.msra.mxu1 %v459_v40  ;;  %1577 = vmatprep.subr.mxu0 %v328_v41  ;;  %v527_v36 = vld [vmem:[%s14477_s1 + $0x6c0] sm:$0xff]  ;;  %v524_v38 = vld [vmem:[%s14477_s1 + $0x6a8] sm:$0xff] }
  0xfb   : > { %1648 = vmatprep.subr.mxu1 %v456_v42  ;;  %1578 = vmatpush1.msra.mxu0 %v327_v43  ;;  %v395_v40 = vld [vmem:[%s14477_s1 + $0x2a0] sm:$0xff]  ;;  %v392_v42 = vld [vmem:[%s14477_s1 + $0x288] sm:$0xff] }
  0xfc   : > { %1649 = vmatpush1.msra.mxu1 %v455_v44  ;;  %1579 = vmatprep.subr.mxu0 %v324_v45  ;;  %v523_v41 = vld [vmem:[%s14477_s1 + $0x6a0] sm:$0xff]  ;;  %v520_v43 = vld [vmem:[%s14477_s1 + $0x688] sm:$0xff] }
  0xfd   : > { %1650 = vmatprep.subr.mxu1 %v452_v46  ;;  %1580 = vmatpush1.msra.mxu0 %v323_v47  ;;  %v391_v44 = vld [vmem:[%s14477_s1 + $0x280] sm:$0xff]  ;;  %v388_v46 = vld [vmem:[%s14477_s1 + $0x268] sm:$0xff] }
  0xfe   : > { %1651 = vmatpush1.msra.mxu1 %v451_v48  ;;  %1581 = vmatprep.subr.mxu0 %v320_v50  ;;  %v519_v45 = vld [vmem:[%s14477_s1 + $0x680] sm:$0xff]  ;;  %v516_v47 = vld [vmem:[%s14477_s1 + $0x668] sm:$0xff] }
  0xff   : > { %1652 = vmatprep.subr.mxu1 %v448_v6  ;;  %1582 = vmatpush1.msra.mxu0 %v319_v52  ;;  %v387_v48 = vld [vmem:[%s14477_s1 + $0x260] sm:$0xff]  ;;  %v384_v6 = vld [vmem:[%s14477_s1 + $0x248] sm:$0xff] }
 0x100   : > { %1653 = vmatpush1.msra.mxu1 %v447_v53  ;;  %1583 = vmatprep.subr.mxu0 %v316_v54  ;;  %v515_v50 = vld [vmem:[%s14477_s1 + $0x660] sm:$0xff]  ;;  %v512_v52 = vld [vmem:[%s14477_s1 + $0x648] sm:$0xff] }
 0x101   : > { %1654 = vmatprep.subr.mxu1 %v444_v55  ;;  %1584 = vmatpush1.msra.mxu0 %v315_v56  ;;  %v383_v53 = vld [vmem:[%s14477_s1 + $0x240] sm:$0xff]  ;;  %v380_v55 = vld [vmem:[%s14477_s1 + $0x228] sm:$0xff] }
 0x102   : > { %1655 = vmatpush1.msra.mxu1 %v443_v57  ;;  %1585 = vmatprep.subr.mxu0 %v312_v24  ;;  %v511_v54 = vld [vmem:[%s14477_s1 + $0x640] sm:$0xff]  ;;  %v508_v56 = vld [vmem:[%s14477_s1 + $0x628] sm:$0xff] }
 0x103   : > { %1656 = vmatprep.subr.mxu1 %v440_v58  ;;  %1586 = vmatpush1.msra.mxu0 %v311_v59  ;;  %v379_v57 = vld [vmem:[%s14477_s1 + $0x220] sm:$0xff]  ;;  %v376_v58 = vld [vmem:[%s14477_s1 + $0x208] sm:$0xff] }
 0x104   : > { %1657 = vmatpush1.msra.mxu1 %v439_v27  ;;  %1587 = vmatprep.subr.mxu0 %v436_v60  ;;  %v507_v24 = vld [vmem:[%s14477_s1 + $0x620] sm:$0xff]  ;;  %v504_v59 = vld [vmem:[%s14477_s1 + $0x608] sm:$0xff] }
 0x105   : > { %1658 = vmatprep.subr.mxu1 %v564_v61  ;;  %1588 = vmatpush2.msra.mxu0 %v435_v62  ;;  %v375_v27 = vld [vmem:[%s14477_s1 + $0x200] sm:$0xff]  ;;  %v8820_v60 = vld [vmem:[#allocation2 + $0x8] sm:$0xff] }
 0x106   : > { %1659 = vmatpush2.msra.mxu1 %v563_v26  ;;  %1589 = vmatprep.subr.mxu0 %v432_v63  ;;  %v503_v61 = vld [vmem:[%s14477_s1 + $0x600] sm:$0xff]  ;;  %v308_v26 = vld [vmem:[#allocation2 + $0x18] sm:$0xff]  ;;  %v628_v63 = vld [vmem:[%s14477_s1 + $0x9e8] sm:$0xff] }
 0x107   : > { %1660 = vmatprep.subr.mxu1 %v560_v28  ;;  %1590 = vmatpush2.msra.mxu0 %v431_v49  ;;  %v8825_v62 = vld [vmem:[#allocation2] sm:$0xff]  ;;  %v374_v28 = vld [vmem:[%s14477_s1 + $0x1f8] sm:$0xff]  ;;  %v307_v49 = vld [vmem:[#allocation2 + $0x10] sm:$0xff] }
 0x108   : > { %1661 = vmatpush2.msra.mxu1 %v559_v0  ;;  %1591 = vmatprep.subr.mxu0 %v428_v1  ;;  %v627_v0 = vld [vmem:[%s14477_s1 + $0x9e0] sm:$0xff]  ;;  %v373_v1 = vld [vmem:[%s14477_s1 + $0x1f0] sm:$0xff] }
 0x109   : > { %1662 = vmatprep.subr.mxu1 %v556_v51  ;;  %1592 = vmatpush2.msra.mxu0 %v427_v2  ;;  %v624_v51 = vld [vmem:[%s14477_s1 + $0x9c8] sm:$0xff]  ;;  %v370_v2 = vld [vmem:[%s14477_s1 + $0x1d8] sm:$0xff] }
 0x10a   : > { %1663 = vmatpush2.msra.mxu1 %v555_v3  ;;  %1593 = vmatprep.subr.mxu0 %v424_v4  ;;  %v623_v3 = vld [vmem:[%s14477_s1 + $0x9c0] sm:$0xff]  ;;  %v369_v4 = vld [vmem:[%s14477_s1 + $0x1d0] sm:$0xff] }
 0x10b   : > { %1664 = vmatprep.subr.mxu1 %v552_v5  ;;  %1594 = vmatpush2.msra.mxu0 %v423_v7  ;;  %v620_v5 = vld [vmem:[%s14477_s1 + $0x9a8] sm:$0xff]  ;;  %v366_v7 = vld [vmem:[%s14477_s1 + $0x1b8] sm:$0xff] }
 0x10c   : > { %1665 = vmatpush2.msra.mxu1 %v551_v8  ;;  %1595 = vmatprep.subr.mxu0 %v420_v9  ;;  %v619_v8 = vld [vmem:[%s14477_s1 + $0x9a0] sm:$0xff]  ;;  %v365_v9 = vld [vmem:[%s14477_s1 + $0x1b0] sm:$0xff] }
 0x10d   : > { %1666 = vmatprep.subr.mxu1 %v548_v10  ;;  %1596 = vmatpush2.msra.mxu0 %v419_v11  ;;  %v616_v10 = vld [vmem:[%s14477_s1 + $0x988] sm:$0xff]  ;;  %v362_v11 = vld [vmem:[%s14477_s1 + $0x198] sm:$0xff] }
 0x10e   : > { %1667 = vmatpush2.msra.mxu1 %v547_v12  ;;  %1597 = vmatprep.subr.mxu0 %v416_v13  ;;  %v615_v12 = vld [vmem:[%s14477_s1 + $0x980] sm:$0xff]  ;;  %v361_v13 = vld [vmem:[%s14477_s1 + $0x190] sm:$0xff] }
 0x10f   : > { %1668 = vmatprep.subr.mxu1 %v544_v14  ;;  %1598 = vmatpush2.msra.mxu0 %v415_v15  ;;  %v612_v14 = vld [vmem:[%s14477_s1 + $0x968] sm:$0xff]  ;;  %v358_v15 = vld [vmem:[%s14477_s1 + $0x178] sm:$0xff] }
 0x110   : > { %1669 = vmatpush2.msra.mxu1 %v543_v16  ;;  %1599 = vmatprep.subr.mxu0 %v412_v17  ;;  %v611_v16 = vld [vmem:[%s14477_s1 + $0x960] sm:$0xff]  ;;  %v357_v17 = vld [vmem:[%s14477_s1 + $0x170] sm:$0xff] }
 0x111   : > { %1670 = vmatprep.subr.mxu1 %v540_v18  ;;  %1600 = vmatpush2.msra.mxu0 %v411_v19  ;;  %v608_v18 = vld [vmem:[%s14477_s1 + $0x948] sm:$0xff]  ;;  %v354_v19 = vld [vmem:[%s14477_s1 + $0x158] sm:$0xff] }
 0x112   : > { %1671 = vmatpush2.msra.mxu1 %v539_v20  ;;  %1601 = vmatprep.subr.mxu0 %v408_v21  ;;  %v607_v20 = vld [vmem:[%s14477_s1 + $0x940] sm:$0xff]  ;;  %v353_v21 = vld [vmem:[%s14477_s1 + $0x150] sm:$0xff] }
 0x113   : > { %1672 = vmatprep.subr.mxu1 %v536_v22  ;;  %1602 = vmatpush2.msra.mxu0 %v407_v23  ;;  %v604_v22 = vld [vmem:[%s14477_s1 + $0x928] sm:$0xff]  ;;  %v350_v23 = vld [vmem:[%s14477_s1 + $0x138] sm:$0xff] }
 0x114   : > { %1673 = vmatpush2.msra.mxu1 %v535_v25  ;;  %1603 = vmatprep.subr.mxu0 %v404_v29  ;;  %v603_v25 = vld [vmem:[%s14477_s1 + $0x920] sm:$0xff]  ;;  %v349_v29 = vld [vmem:[%s14477_s1 + $0x130] sm:$0xff] }
 0x115   : > { %1674 = vmatprep.subr.mxu1 %v532_v30  ;;  %1604 = vmatpush2.msra.mxu0 %v403_v31  ;;  %v600_v30 = vld [vmem:[%s14477_s1 + $0x908] sm:$0xff]  ;;  %v346_v31 = vld [vmem:[%s14477_s1 + $0x118] sm:$0xff] }
 0x116   : > { %1675 = vmatpush2.msra.mxu1 %v531_v32  ;;  %1605 = vmatprep.subr.mxu0 %v400_v33  ;;  %v599_v32 = vld [vmem:[%s14477_s1 + $0x900] sm:$0xff]  ;;  %v345_v33 = vld [vmem:[%s14477_s1 + $0x110] sm:$0xff] }
 0x117   : > { %1676 = vmatprep.subr.mxu1 %v528_v34  ;;  %1606 = vmatpush2.msra.mxu0 %v399_v35  ;;  %v596_v34 = vld [vmem:[%s14477_s1 + $0x8e8] sm:$0xff]  ;;  %v342_v35 = vld [vmem:[%s14477_s1 + $0xf8] sm:$0xff] }
 0x118   : > { %1677 = vmatpush2.msra.mxu1 %v527_v36  ;;  %1607 = vmatprep.subr.mxu0 %v396_v37  ;;  %v595_v36 = vld [vmem:[%s14477_s1 + $0x8e0] sm:$0xff]  ;;  %v341_v37 = vld [vmem:[%s14477_s1 + $0xf0] sm:$0xff] }
 0x119   : > { %1678 = vmatprep.subr.mxu1 %v524_v38  ;;  %1608 = vmatpush2.msra.mxu0 %v395_v40  ;;  %v592_v38 = vld [vmem:[%s14477_s1 + $0x8c8] sm:$0xff]  ;;  %v338_v40 = vld [vmem:[%s14477_s1 + $0xd8] sm:$0xff] }
 0x11a   : > { %1679 = vmatpush2.msra.mxu1 %v523_v41  ;;  %1609 = vmatprep.subr.mxu0 %v392_v42  ;;  %v591_v41 = vld [vmem:[%s14477_s1 + $0x8c0] sm:$0xff]  ;;  %v337_v42 = vld [vmem:[%s14477_s1 + $0xd0] sm:$0xff] }
 0x11b   : > { %1680 = vmatprep.subr.mxu1 %v520_v43  ;;  %1610 = vmatpush2.msra.mxu0 %v391_v44  ;;  %v588_v43 = vld [vmem:[%s14477_s1 + $0x8a8] sm:$0xff]  ;;  %v334_v44 = vld [vmem:[%s14477_s1 + $0xb8] sm:$0xff] }
 0x11c   : > { %1681 = vmatpush2.msra.mxu1 %v519_v45  ;;  %1611 = vmatprep.subr.mxu0 %v388_v46  ;;  %v587_v45 = vld [vmem:[%s14477_s1 + $0x8a0] sm:$0xff]  ;;  %v333_v46 = vld [vmem:[%s14477_s1 + $0xb0] sm:$0xff] }
 0x11d   : > { %1682 = vmatprep.subr.mxu1 %v516_v47  ;;  %1612 = vmatpush2.msra.mxu0 %v387_v48  ;;  %v584_v47 = vld [vmem:[%s14477_s1 + $0x888] sm:$0xff]  ;;  %v330_v48 = vld [vmem:[%s14477_s1 + $0x98] sm:$0xff] }
 0x11e   : > { %1683 = vmatpush2.msra.mxu1 %v515_v50  ;;  %1613 = vmatprep.subr.mxu0 %v384_v6  ;;  %v583_v50 = vld [vmem:[%s14477_s1 + $0x880] sm:$0xff]  ;;  %v329_v6 = vld [vmem:[%s14477_s1 + $0x90] sm:$0xff] }
 0x11f   : > { %1684 = vmatprep.subr.mxu1 %v512_v52  ;;  %1614 = vmatpush2.msra.mxu0 %v383_v53  ;;  %v580_v52 = vld [vmem:[%s14477_s1 + $0x868] sm:$0xff]  ;;  %v326_v53 = vld [vmem:[%s14477_s1 + $0x78] sm:$0xff] }
 0x120   : > { %1685 = vmatpush2.msra.mxu1 %v511_v54  ;;  %1615 = vmatprep.subr.mxu0 %v380_v55  ;;  %v579_v54 = vld [vmem:[%s14477_s1 + $0x860] sm:$0xff]  ;;  %v325_v55 = vld [vmem:[%s14477_s1 + $0x70] sm:$0xff] }
 0x121   : > { %1686 = vmatprep.subr.mxu1 %v508_v56  ;;  %1616 = vmatpush2.msra.mxu0 %v379_v57  ;;  %v576_v56 = vld [vmem:[%s14477_s1 + $0x848] sm:$0xff]  ;;  %v322_v57 = vld [vmem:[%s14477_s1 + $0x58] sm:$0xff] }
 0x122   : > { %1687 = vmatpush2.msra.mxu1 %v507_v24  ;;  %1617 = vmatprep.subr.mxu0 %v376_v58  ;;  %v575_v24 = vld [vmem:[%s14477_s1 + $0x840] sm:$0xff]  ;;  %v321_v58 = vld [vmem:[%s14477_s1 + $0x50] sm:$0xff] }
 0x123   : > { %1688 = vmatprep.subr.mxu1 %v504_v59  ;;  %1618 = vmatpush2.msra.mxu0 %v375_v27  ;;  %v572_v59 = vld [vmem:[%s14477_s1 + $0x828] sm:$0xff]  ;;  %v318_v27 = vld [vmem:[%s14477_s1 + $0x38] sm:$0xff] }
 0x124   : > { %1619 = vmatprep.mubr.f32.mxu0 %v8820_v60  ;;  %1689 = vmatpush2.msra.mxu1 %v503_v61  ;;  %v571_v61 = vld [vmem:[%s14477_s1 + $0x820] sm:$0xff] }
 0x125   : > { %1620 = vmatmul.mubr.f32.vlgmr.msra.gmra.mxu0 %v8825_v62  ;;  %1690 = vmatprep.mubr.f32.mxu1 %v308_v26  ;;  %v317_v26 = vld [vmem:[%s14477_s1 + $0x30] sm:$0xff] }
 0x126   : > { %1697 = vmatprep.subr.mxu0 %v628_v63  ;;  %1768 = vmatprep.subr.mxu1 %v374_v28  ;;  %v568_v63 = vld [vmem:[%s14477_s1 + $0x808] sm:$0xff]  ;;  %v314_v28 = vld [vmem:[%s14477_s1 + $0x18] sm:$0xff] }
 0x127   : > { %1691 = vmatmul.mubr.f32.vlgmr.msra.gmra.mxu1 %v307_v49  ;;  %1698 = vmatpush1.msra.mxu0 %v627_v0  ;;  %v567_v49 = vld [vmem:[%s14477_s1 + $0x800] sm:$0xff]  ;;  %v313_v0 = vld [vmem:[%s14477_s1 + $0x10] sm:$0xff] }
 0x128   : > { %1769 = vmatpush1.msra.mxu1 %v373_v1  ;;  %1699 = vmatprep.subr.mxu0 %v624_v51  ;;  %v692_v1 = vld [vmem:[%s14477_s1 + $0xbe8] sm:$0xff]  ;;  %v438_v51 = vld [vmem:[%s14477_s1 + $0x3f8] sm:$0xff] }
 0x129   : > { %1770 = vmatprep.subr.mxu1 %v370_v2  ;;  %1700 = vmatpush1.msra.mxu0 %v623_v3  ;;  %v691_v2 = vld [vmem:[%s14477_s1 + $0xbe0] sm:$0xff]  ;;  %v437_v3 = vld [vmem:[%s14477_s1 + $0x3f0] sm:$0xff] }
 0x12a   : > { %1771 = vmatpush1.msra.mxu1 %v369_v4  ;;  %1701 = vmatprep.subr.mxu0 %v620_v5  ;;  %v688_v4 = vld [vmem:[%s14477_s1 + $0xbc8] sm:$0xff]  ;;  %v434_v5 = vld [vmem:[%s14477_s1 + $0x3d8] sm:$0xff] }
 0x12b   : > { %1772 = vmatprep.subr.mxu1 %v366_v7  ;;  %1702 = vmatpush1.msra.mxu0 %v619_v8  ;;  %v687_v7 = vld [vmem:[%s14477_s1 + $0xbc0] sm:$0xff]  ;;  %v433_v8 = vld [vmem:[%s14477_s1 + $0x3d0] sm:$0xff] }
 0x12c   : > { %1773 = vmatpush1.msra.mxu1 %v365_v9  ;;  %1703 = vmatprep.subr.mxu0 %v616_v10  ;;  %v684_v9 = vld [vmem:[%s14477_s1 + $0xba8] sm:$0xff]  ;;  %v430_v10 = vld [vmem:[%s14477_s1 + $0x3b8] sm:$0xff] }
 0x12d   : > { %1774 = vmatprep.subr.mxu1 %v362_v11  ;;  %1704 = vmatpush1.msra.mxu0 %v615_v12  ;;  %v683_v11 = vld [vmem:[%s14477_s1 + $0xba0] sm:$0xff]  ;;  %v429_v12 = vld [vmem:[%s14477_s1 + $0x3b0] sm:$0xff] }
 0x12e   : > { %1775 = vmatpush1.msra.mxu1 %v361_v13  ;;  %1705 = vmatprep.subr.mxu0 %v612_v14  ;;  %v680_v13 = vld [vmem:[%s14477_s1 + $0xb88] sm:$0xff]  ;;  %v426_v14 = vld [vmem:[%s14477_s1 + $0x398] sm:$0xff] }
 0x12f   : > { %1776 = vmatprep.subr.mxu1 %v358_v15  ;;  %1706 = vmatpush1.msra.mxu0 %v611_v16  ;;  %v679_v15 = vld [vmem:[%s14477_s1 + $0xb80] sm:$0xff]  ;;  %v425_v16 = vld [vmem:[%s14477_s1 + $0x390] sm:$0xff] }
 0x130   : > { %1777 = vmatpush1.msra.mxu1 %v357_v17  ;;  %1707 = vmatprep.subr.mxu0 %v608_v18  ;;  %v676_v17 = vld [vmem:[%s14477_s1 + $0xb68] sm:$0xff]  ;;  %v422_v18 = vld [vmem:[%s14477_s1 + $0x378] sm:$0xff] }
 0x131   : > { %1778 = vmatprep.subr.mxu1 %v354_v19  ;;  %1708 = vmatpush1.msra.mxu0 %v607_v20  ;;  %v675_v19 = vld [vmem:[%s14477_s1 + $0xb60] sm:$0xff]  ;;  %v421_v20 = vld [vmem:[%s14477_s1 + $0x370] sm:$0xff] }
 0x132   : > { %1779 = vmatpush1.msra.mxu1 %v353_v21  ;;  %1709 = vmatprep.subr.mxu0 %v604_v22  ;;  %v672_v21 = vld [vmem:[%s14477_s1 + $0xb48] sm:$0xff]  ;;  %v418_v22 = vld [vmem:[%s14477_s1 + $0x358] sm:$0xff] }
 0x133   : > { %1780 = vmatprep.subr.mxu1 %v350_v23  ;;  %1710 = vmatpush1.msra.mxu0 %v603_v25  ;;  %v671_v23 = vld [vmem:[%s14477_s1 + $0xb40] sm:$0xff]  ;;  %v417_v25 = vld [vmem:[%s14477_s1 + $0x350] sm:$0xff] }
 0x134   : > { %1781 = vmatpush1.msra.mxu1 %v349_v29  ;;  %1711 = vmatprep.subr.mxu0 %v600_v30  ;;  %v668_v29 = vld [vmem:[%s14477_s1 + $0xb28] sm:$0xff]  ;;  %v414_v30 = vld [vmem:[%s14477_s1 + $0x338] sm:$0xff] }
 0x135   : > { %1782 = vmatprep.subr.mxu1 %v346_v31  ;;  %1712 = vmatpush1.msra.mxu0 %v599_v32  ;;  %v667_v31 = vld [vmem:[%s14477_s1 + $0xb20] sm:$0xff]  ;;  %v413_v32 = vld [vmem:[%s14477_s1 + $0x330] sm:$0xff] }
 0x136   : > { %1783 = vmatpush1.msra.mxu1 %v345_v33  ;;  %1713 = vmatprep.subr.mxu0 %v596_v34  ;;  %v664_v33 = vld [vmem:[%s14477_s1 + $0xb08] sm:$0xff]  ;;  %v410_v34 = vld [vmem:[%s14477_s1 + $0x318] sm:$0xff] }
 0x137   : > { %1784 = vmatprep.subr.mxu1 %v342_v35  ;;  %1714 = vmatpush1.msra.mxu0 %v595_v36  ;;  %v663_v35 = vld [vmem:[%s14477_s1 + $0xb00] sm:$0xff]  ;;  %v409_v36 = vld [vmem:[%s14477_s1 + $0x310] sm:$0xff] }
 0x138   : > { %1785 = vmatpush1.msra.mxu1 %v341_v37  ;;  %1715 = vmatprep.subr.mxu0 %v592_v38  ;;  %v660_v37 = vld [vmem:[%s14477_s1 + $0xae8] sm:$0xff]  ;;  %v406_v38 = vld [vmem:[%s14477_s1 + $0x2f8] sm:$0xff] }
 0x139   : > { %1786 = vmatprep.subr.mxu1 %v338_v40  ;;  %1716 = vmatpush1.msra.mxu0 %v591_v41  ;;  %v659_v40 = vld [vmem:[%s14477_s1 + $0xae0] sm:$0xff]  ;;  %v405_v41 = vld [vmem:[%s14477_s1 + $0x2f0] sm:$0xff] }
 0x13a   : > { %1787 = vmatpush1.msra.mxu1 %v337_v42  ;;  %1717 = vmatprep.subr.mxu0 %v588_v43  ;;  %v656_v42 = vld [vmem:[%s14477_s1 + $0xac8] sm:$0xff]  ;;  %v402_v43 = vld [vmem:[%s14477_s1 + $0x2d8] sm:$0xff] }
 0x13b   : > { %1788 = vmatprep.subr.mxu1 %v334_v44  ;;  %1718 = vmatpush1.msra.mxu0 %v587_v45  ;;  %v655_v44 = vld [vmem:[%s14477_s1 + $0xac0] sm:$0xff]  ;;  %v401_v45 = vld [vmem:[%s14477_s1 + $0x2d0] sm:$0xff] }
 0x13c   : > { %1789 = vmatpush1.msra.mxu1 %v333_v46  ;;  %1719 = vmatprep.subr.mxu0 %v584_v47  ;;  %v652_v46 = vld [vmem:[%s14477_s1 + $0xaa8] sm:$0xff]  ;;  %v398_v47 = vld [vmem:[%s14477_s1 + $0x2b8] sm:$0xff] }
 0x13d   : > { %1790 = vmatprep.subr.mxu1 %v330_v48  ;;  %1720 = vmatpush1.msra.mxu0 %v583_v50  ;;  %v651_v48 = vld [vmem:[%s14477_s1 + $0xaa0] sm:$0xff]  ;;  %v397_v50 = vld [vmem:[%s14477_s1 + $0x2b0] sm:$0xff] }
 0x13e   : > { %1791 = vmatpush1.msra.mxu1 %v329_v6  ;;  %1721 = vmatprep.subr.mxu0 %v580_v52  ;;  %v648_v6 = vld [vmem:[%s14477_s1 + $0xa88] sm:$0xff]  ;;  %v394_v52 = vld [vmem:[%s14477_s1 + $0x298] sm:$0xff] }
 0x13f   : > { %1792 = vmatprep.subr.mxu1 %v326_v53  ;;  %1722 = vmatpush1.msra.mxu0 %v579_v54  ;;  %v647_v53 = vld [vmem:[%s14477_s1 + $0xa80] sm:$0xff]  ;;  %v393_v54 = vld [vmem:[%s14477_s1 + $0x290] sm:$0xff] }
 0x140   : > { %1793 = vmatpush1.msra.mxu1 %v325_v55  ;;  %1723 = vmatprep.subr.mxu0 %v576_v56  ;;  %v644_v55 = vld [vmem:[%s14477_s1 + $0xa68] sm:$0xff]  ;;  %v390_v56 = vld [vmem:[%s14477_s1 + $0x278] sm:$0xff] }
 0x141   : > { %1794 = vmatprep.subr.mxu1 %v322_v57  ;;  %1724 = vmatpush1.msra.mxu0 %v575_v24  ;;  %v643_v57 = vld [vmem:[%s14477_s1 + $0xa60] sm:$0xff]  ;;  %v389_v24 = vld [vmem:[%s14477_s1 + $0x270] sm:$0xff] }
 0x142   : > { %1795 = vmatpush1.msra.mxu1 %v321_v58  ;;  %1725 = vmatprep.subr.mxu0 %v572_v59  ;;  %v640_v58 = vld [vmem:[%s14477_s1 + $0xa48] sm:$0xff]  ;;  %v386_v59 = vld [vmem:[%s14477_s1 + $0x258] sm:$0xff] }
 0x143   : > { %1796 = vmatprep.subr.mxu1 %v318_v27  ;;  %1726 = vmatpush1.msra.mxu0 %v571_v61  ;;  %v639_v27 = vld [vmem:[%s14477_s1 + $0xa40] sm:$0xff]  ;;  %v385_v61 = vld [vmem:[%s14477_s1 + $0x250] sm:$0xff] }
 0x144   : > { %1797 = vmatpush1.msra.mxu1 %v317_v26  ;;  %1727 = vmatprep.subr.mxu0 %v568_v63  ;;  %v636_v26 = vld [vmem:[%s14477_s1 + $0xa28] sm:$0xff]  ;;  %v382_v63 = vld [vmem:[%s14477_s1 + $0x238] sm:$0xff] }
 0x145   : > { %1798 = vmatprep.subr.mxu1 %v314_v28  ;;  %1728 = vmatpush1.msra.mxu0 %v567_v49  ;;  %v635_v28 = vld [vmem:[%s14477_s1 + $0xa20] sm:$0xff]  ;;  %v381_v49 = vld [vmem:[%s14477_s1 + $0x230] sm:$0xff] }
 0x146   : > { %1799 = vmatpush1.msra.mxu1 %v313_v0  ;;  %1729 = vmatprep.subr.mxu0 %v692_v1  ;;  %v632_v0 = vld [vmem:[%s14477_s1 + $0xa08] sm:$0xff]  ;;  %v378_v1 = vld [vmem:[%s14477_s1 + $0x218] sm:$0xff] }
 0x147   : > { %1800 = vmatprep.subr.mxu1 %v438_v51  ;;  %1730 = vmatpush2.msra.mxu0 %v691_v2  ;;  %v631_v51 = vld [vmem:[%s14477_s1 + $0xa00] sm:$0xff]  ;;  %v9210_v2 = vld [vmem:[#allocation2 + $0x28] sm:$0xff] }
 0x148   : > { %1801 = vmatpush2.msra.mxu1 %v437_v3  ;;  %1731 = vmatprep.subr.mxu0 %v688_v4  ;;  %v377_v3 = vld [vmem:[%s14477_s1 + $0x210] sm:$0xff]  ;;  %v9215_v4 = vld [vmem:[#allocation2 + $0x20] sm:$0xff] }
 0x149   : > { %1802 = vmatprep.subr.mxu1 %v434_v5  ;;  %1732 = vmatpush2.msra.mxu0 %v687_v7  ;;  %v502_v5 = vld [vmem:[%s14477_s1 + $0x5f8] sm:$0xff] }
 0x14a   : > { %1803 = vmatpush2.msra.mxu1 %v433_v8  ;;  %1733 = vmatprep.subr.mxu0 %v684_v9  ;;  %v630_v7 = vld [vmem:[%s14477_s1 + $0x9f8] sm:$0xff]  ;;  %v501_v8 = vld [vmem:[%s14477_s1 + $0x5f0] sm:$0xff] }
 0x14b   : > { %1804 = vmatprep.subr.mxu1 %v430_v10  ;;  %1734 = vmatpush2.msra.mxu0 %v683_v11  ;;  %v629_v9 = vld [vmem:[%s14477_s1 + $0x9f0] sm:$0xff]  ;;  %v498_v10 = vld [vmem:[%s14477_s1 + $0x5d8] sm:$0xff] }
 0x14c   : > { %1805 = vmatpush2.msra.mxu1 %v429_v12  ;;  %1735 = vmatprep.subr.mxu0 %v680_v13  ;;  %v497_v11 = vld [vmem:[%s14477_s1 + $0x5d0] sm:$0xff]  ;;  %v622_v13 = vld [vmem:[%s14477_s1 + $0x9b8] sm:$0xff] }
 0x14d   : > { %1806 = vmatprep.subr.mxu1 %v426_v14  ;;  %1736 = vmatpush2.msra.mxu0 %v679_v15  ;;  %v625_v12 = vld [vmem:[%s14477_s1 + $0x9d0] sm:$0xff] }
 0x14e   : > { %1807 = vmatpush2.msra.mxu1 %v425_v16  ;;  %1737 = vmatprep.subr.mxu0 %v676_v17  ;;  %v493_v14 = vld [vmem:[%s14477_s1 + $0x5b0] sm:$0xff]  ;;  %v490_v16 = vld [vmem:[%s14477_s1 + $0x598] sm:$0xff] }
 0x14f   : > { %1808 = vmatprep.subr.mxu1 %v422_v18  ;;  %1738 = vmatpush2.msra.mxu0 %v675_v19  ;;  %v621_v15 = vld [vmem:[%s14477_s1 + $0x9b0] sm:$0xff]  ;;  %v618_v17 = vld [vmem:[%s14477_s1 + $0x998] sm:$0xff] }
 0x150   : > { %1809 = vmatpush2.msra.mxu1 %v421_v20  ;;  %1739 = vmatprep.subr.mxu0 %v672_v21  ;;  %v489_v18 = vld [vmem:[%s14477_s1 + $0x590] sm:$0xff]  ;;  %v486_v20 = vld [vmem:[%s14477_s1 + $0x578] sm:$0xff] }
 0x151   : > { %1810 = vmatprep.subr.mxu1 %v418_v22  ;;  %1740 = vmatpush2.msra.mxu0 %v671_v23  ;;  %v617_v19 = vld [vmem:[%s14477_s1 + $0x990] sm:$0xff]  ;;  %v614_v21 = vld [vmem:[%s14477_s1 + $0x978] sm:$0xff] }
 0x152   : > { %1811 = vmatpush2.msra.mxu1 %v417_v25  ;;  %1741 = vmatprep.subr.mxu0 %v668_v29  ;;  %v485_v22 = vld [vmem:[%s14477_s1 + $0x570] sm:$0xff]  ;;  %v482_v25 = vld [vmem:[%s14477_s1 + $0x558] sm:$0xff] }
 0x153   : > { %1812 = vmatprep.subr.mxu1 %v414_v30  ;;  %1742 = vmatpush2.msra.mxu0 %v667_v31  ;;  %v613_v23 = vld [vmem:[%s14477_s1 + $0x970] sm:$0xff]  ;;  %v610_v29 = vld [vmem:[%s14477_s1 + $0x958] sm:$0xff] }
 0x154   : > { %1813 = vmatpush2.msra.mxu1 %v413_v32  ;;  %1743 = vmatprep.subr.mxu0 %v664_v33  ;;  %v481_v30 = vld [vmem:[%s14477_s1 + $0x550] sm:$0xff]  ;;  %v478_v32 = vld [vmem:[%s14477_s1 + $0x538] sm:$0xff] }
 0x155   : > { %1814 = vmatprep.subr.mxu1 %v410_v34  ;;  %1744 = vmatpush2.msra.mxu0 %v663_v35  ;;  %v609_v31 = vld [vmem:[%s14477_s1 + $0x950] sm:$0xff]  ;;  %v606_v33 = vld [vmem:[%s14477_s1 + $0x938] sm:$0xff] }
 0x156   : > { %1815 = vmatpush2.msra.mxu1 %v409_v36  ;;  %1745 = vmatprep.subr.mxu0 %v660_v37  ;;  %v477_v34 = vld [vmem:[%s14477_s1 + $0x530] sm:$0xff]  ;;  %v474_v36 = vld [vmem:[%s14477_s1 + $0x518] sm:$0xff] }
 0x157   : > { %1816 = vmatprep.subr.mxu1 %v406_v38  ;;  %1746 = vmatpush2.msra.mxu0 %v659_v40  ;;  %v605_v35 = vld [vmem:[%s14477_s1 + $0x930] sm:$0xff]  ;;  %v602_v37 = vld [vmem:[%s14477_s1 + $0x918] sm:$0xff] }
 0x158   : > { %1817 = vmatpush2.msra.mxu1 %v405_v41  ;;  %1747 = vmatprep.subr.mxu0 %v656_v42  ;;  %v473_v38 = vld [vmem:[%s14477_s1 + $0x510] sm:$0xff]  ;;  %v470_v41 = vld [vmem:[%s14477_s1 + $0x4f8] sm:$0xff] }
 0x159   : > { %1818 = vmatprep.subr.mxu1 %v402_v43  ;;  %1748 = vmatpush2.msra.mxu0 %v655_v44  ;;  %v601_v40 = vld [vmem:[%s14477_s1 + $0x910] sm:$0xff]  ;;  %v598_v42 = vld [vmem:[%s14477_s1 + $0x8f8] sm:$0xff] }
 0x15a   : > { %1819 = vmatpush2.msra.mxu1 %v401_v45  ;;  %1749 = vmatprep.subr.mxu0 %v652_v46  ;;  %v469_v43 = vld [vmem:[%s14477_s1 + $0x4f0] sm:$0xff]  ;;  %v466_v45 = vld [vmem:[%s14477_s1 + $0x4d8] sm:$0xff] }
 0x15b   : > { %1820 = vmatprep.subr.mxu1 %v398_v47  ;;  %1750 = vmatpush2.msra.mxu0 %v651_v48  ;;  %v597_v44 = vld [vmem:[%s14477_s1 + $0x8f0] sm:$0xff]  ;;  %v594_v46 = vld [vmem:[%s14477_s1 + $0x8d8] sm:$0xff] }
 0x15c   : > { %1821 = vmatpush2.msra.mxu1 %v397_v50  ;;  %1751 = vmatprep.subr.mxu0 %v648_v6  ;;  %v465_v47 = vld [vmem:[%s14477_s1 + $0x4d0] sm:$0xff]  ;;  %v462_v50 = vld [vmem:[%s14477_s1 + $0x4b8] sm:$0xff] }
 0x15d   : > { %1822 = vmatprep.subr.mxu1 %v394_v52  ;;  %1752 = vmatpush2.msra.mxu0 %v647_v53  ;;  %v593_v48 = vld [vmem:[%s14477_s1 + $0x8d0] sm:$0xff]  ;;  %v590_v6 = vld [vmem:[%s14477_s1 + $0x8b8] sm:$0xff] }
 0x15e   : > { %1823 = vmatpush2.msra.mxu1 %v393_v54  ;;  %1753 = vmatprep.subr.mxu0 %v644_v55  ;;  %v461_v52 = vld [vmem:[%s14477_s1 + $0x4b0] sm:$0xff]  ;;  %v458_v54 = vld [vmem:[%s14477_s1 + $0x498] sm:$0xff] }
 0x15f   : > { %1824 = vmatprep.subr.mxu1 %v390_v56  ;;  %1754 = vmatpush2.msra.mxu0 %v643_v57  ;;  %v589_v53 = vld [vmem:[%s14477_s1 + $0x8b0] sm:$0xff]  ;;  %v586_v55 = vld [vmem:[%s14477_s1 + $0x898] sm:$0xff] }
 0x160   : > { %1825 = vmatpush2.msra.mxu1 %v389_v24  ;;  %1755 = vmatprep.subr.mxu0 %v640_v58  ;;  %v457_v56 = vld [vmem:[%s14477_s1 + $0x490] sm:$0xff]  ;;  %v454_v24 = vld [vmem:[%s14477_s1 + $0x478] sm:$0xff] }
 0x161   : > { %1826 = vmatprep.subr.mxu1 %v386_v59  ;;  %1756 = vmatpush2.msra.mxu0 %v639_v27  ;;  %v585_v57 = vld [vmem:[%s14477_s1 + $0x890] sm:$0xff]  ;;  %v582_v58 = vld [vmem:[%s14477_s1 + $0x878] sm:$0xff] }
 0x162   : > { %1827 = vmatpush2.msra.mxu1 %v385_v61  ;;  %1757 = vmatprep.subr.mxu0 %v636_v26  ;;  %v453_v59 = vld [vmem:[%s14477_s1 + $0x470] sm:$0xff]  ;;  %v450_v61 = vld [vmem:[%s14477_s1 + $0x458] sm:$0xff] }
 0x163   : > { %1828 = vmatprep.subr.mxu1 %v382_v63  ;;  %1758 = vmatpush2.msra.mxu0 %v635_v28  ;;  %v581_v27 = vld [vmem:[%s14477_s1 + $0x870] sm:$0xff]  ;;  %v578_v26 = vld [vmem:[%s14477_s1 + $0x858] sm:$0xff] }
 0x164   : > { %1829 = vmatpush2.msra.mxu1 %v381_v49  ;;  %1759 = vmatprep.subr.mxu0 %v632_v0  ;;  %v449_v63 = vld [vmem:[%s14477_s1 + $0x450] sm:$0xff]  ;;  %v446_v49 = vld [vmem:[%s14477_s1 + $0x438] sm:$0xff] }
 0x165   : > { %1830 = vmatprep.subr.mxu1 %v378_v1  ;;  %1760 = vmatpush2.msra.mxu0 %v631_v51  ;;  %v577_v28 = vld [vmem:[%s14477_s1 + $0x850] sm:$0xff]  ;;  %v574_v0 = vld [vmem:[%s14477_s1 + $0x838] sm:$0xff] }
 0x166   : > { %1761 = vmatprep.mubr.f32.mxu0 %v9210_v2  ;;  %1831 = vmatpush2.msra.mxu1 %v377_v3  ;;  %v445_v1 = vld [vmem:[%s14477_s1 + $0x430] sm:$0xff]  ;;  %v442_v3 = vld [vmem:[%s14477_s1 + $0x418] sm:$0xff] }
 0x167   : > { %1832 = vmatprep.mubr.f32.mxu1 %v8820_v60  ;;  %1762 = vmatmul.mubr.f32.vlgmr.msra.gmra.mxu0 %v9215_v4  ;;  %v626_v60 = vld [vmem:[%s14477_s1 + $0x9d8] sm:$0xff]  ;;  %v573_v51 = vld [vmem:[%s14477_s1 + $0x830] sm:$0xff] }
 0x168   : > { %1833 = vmatmul.mubr.f32.vlgmr.msra.gmra.mxu1 %v8825_v62  ;;  %1839 = vmatprep.subr.mxu0 %v502_v5  ;;  %v494_v62 = vld [vmem:[%s14477_s1 + $0x5b8] sm:$0xff] }
 0x169   : > { %1910 = vmatprep.subr.mxu1 %v630_v7  ;;  %1840 = vmatpush1.msra.mxu0 %v501_v8  ;;  %v570_v5 = vld [vmem:[%s14477_s1 + $0x818] sm:$0xff]  ;;  %v441_v7 = vld [vmem:[%s14477_s1 + $0x410] sm:$0xff] }
 0x16a   : > { %1911 = vmatpush1.msra.mxu1 %v629_v9  ;;  %1841 = vmatprep.subr.mxu0 %v498_v10  ;;  %v569_v8 = vld [vmem:[%s14477_s1 + $0x810] sm:$0xff]  ;;  %v566_v9 = vld [vmem:[%s14477_s1 + $0x7f8] sm:$0xff] }
 0x16b   : > { %1912 = vmatprep.subr.mxu1 %v626_v60  ;;  %1842 = vmatpush1.msra.mxu0 %v497_v11  ;;  %v694_v10 = vld [vmem:[%s14477_s1 + $0xbf8] sm:$0xff]  ;;  %v565_v60 = vld [vmem:[%s14477_s1 + $0x7f0] sm:$0xff] }
 0x16c   : > { %1913 = vmatpush1.msra.mxu1 %v625_v12  ;;  %1843 = vmatprep.subr.mxu0 %v494_v62  ;;  %v693_v11 = vld [vmem:[%s14477_s1 + $0xbf0] sm:$0xff]  ;;  %v562_v12 = vld [vmem:[%s14477_s1 + $0x7d8] sm:$0xff] }
 0x16d   : > { %1914 = vmatprep.subr.mxu1 %v622_v13  ;;  %1844 = vmatpush1.msra.mxu0 %v493_v14  ;;  %v690_v62 = vld [vmem:[%s14477_s1 + $0xbd8] sm:$0xff]  ;;  %v561_v13 = vld [vmem:[%s14477_s1 + $0x7d0] sm:$0xff] }
 0x16e   : > { %1915 = vmatpush1.msra.mxu1 %v621_v15  ;;  %1845 = vmatprep.subr.mxu0 %v490_v16  ;;  %v689_v14 = vld [vmem:[%s14477_s1 + $0xbd0] sm:$0xff]  ;;  %v558_v15 = vld [vmem:[%s14477_s1 + $0x7b8] sm:$0xff] }
 0x16f   : > { %1916 = vmatprep.subr.mxu1 %v618_v17  ;;  %1846 = vmatpush1.msra.mxu0 %v489_v18  ;;  %v686_v16 = vld [vmem:[%s14477_s1 + $0xbb8] sm:$0xff]  ;;  %v557_v17 = vld [vmem:[%s14477_s1 + $0x7b0] sm:$0xff] }
 0x170   : > { %1917 = vmatpush1.msra.mxu1 %v617_v19  ;;  %1847 = vmatprep.subr.mxu0 %v486_v20  ;;  %v685_v18 = vld [vmem:[%s14477_s1 + $0xbb0] sm:$0xff]  ;;  %v554_v19 = vld [vmem:[%s14477_s1 + $0x798] sm:$0xff] }
 0x171   : > { %1918 = vmatprep.subr.mxu1 %v614_v21  ;;  %1848 = vmatpush1.msra.mxu0 %v485_v22  ;;  %v682_v20 = vld [vmem:[%s14477_s1 + $0xb98] sm:$0xff]  ;;  %v553_v21 = vld [vmem:[%s14477_s1 + $0x790] sm:$0xff] }
 0x172   : > { %1919 = vmatpush1.msra.mxu1 %v613_v23  ;;  %1849 = vmatprep.subr.mxu0 %v482_v25  ;;  %v681_v22 = vld [vmem:[%s14477_s1 + $0xb90] sm:$0xff]  ;;  %v550_v23 = vld [vmem:[%s14477_s1 + $0x778] sm:$0xff] }
 0x173   : > { %1920 = vmatprep.subr.mxu1 %v610_v29  ;;  %1850 = vmatpush1.msra.mxu0 %v481_v30  ;;  %v678_v25 = vld [vmem:[%s14477_s1 + $0xb78] sm:$0xff]  ;;  %v549_v29 = vld [vmem:[%s14477_s1 + $0x770] sm:$0xff] }
 0x174   : > { %1921 = vmatpush1.msra.mxu1 %v609_v31  ;;  %1851 = vmatprep.subr.mxu0 %v478_v32  ;;  %v677_v30 = vld [vmem:[%s14477_s1 + $0xb70] sm:$0xff]  ;;  %v546_v31 = vld [vmem:[%s14477_s1 + $0x758] sm:$0xff] }
 0x175   : > { %1922 = vmatprep.subr.mxu1 %v606_v33  ;;  %1852 = vmatpush1.msra.mxu0 %v477_v34  ;;  %v674_v32 = vld [vmem:[%s14477_s1 + $0xb58] sm:$0xff]  ;;  %v545_v33 = vld [vmem:[%s14477_s1 + $0x750] sm:$0xff] }
 0x176   : > { %1923 = vmatpush1.msra.mxu1 %v605_v35  ;;  %1853 = vmatprep.subr.mxu0 %v474_v36  ;;  %v673_v34 = vld [vmem:[%s14477_s1 + $0xb50] sm:$0xff]  ;;  %v542_v35 = vld [vmem:[%s14477_s1 + $0x738] sm:$0xff] }
 0x177   : > { %1924 = vmatprep.subr.mxu1 %v602_v37  ;;  %1854 = vmatpush1.msra.mxu0 %v473_v38  ;;  %v670_v36 = vld [vmem:[%s14477_s1 + $0xb38] sm:$0xff]  ;;  %v541_v37 = vld [vmem:[%s14477_s1 + $0x730] sm:$0xff] }
 0x178   : > { %1925 = vmatpush1.msra.mxu1 %v601_v40  ;;  %1855 = vmatprep.subr.mxu0 %v470_v41  ;;  %v669_v38 = vld [vmem:[%s14477_s1 + $0xb30] sm:$0xff]  ;;  %v538_v40 = vld [vmem:[%s14477_s1 + $0x718] sm:$0xff] }
 0x179   : > { %1926 = vmatprep.subr.mxu1 %v598_v42  ;;  %1856 = vmatpush1.msra.mxu0 %v469_v43  ;;  %v666_v41 = vld [vmem:[%s14477_s1 + $0xb18] sm:$0xff]  ;;  %v537_v42 = vld [vmem:[%s14477_s1 + $0x710] sm:$0xff] }
 0x17a   : > { %1927 = vmatpush1.msra.mxu1 %v597_v44  ;;  %1857 = vmatprep.subr.mxu0 %v466_v45  ;;  %v665_v43 = vld [vmem:[%s14477_s1 + $0xb10] sm:$0xff]  ;;  %v534_v44 = vld [vmem:[%s14477_s1 + $0x6f8] sm:$0xff] }
 0x17b   : > { %1928 = vmatprep.subr.mxu1 %v594_v46  ;;  %1858 = vmatpush1.msra.mxu0 %v465_v47  ;;  %v662_v45 = vld [vmem:[%s14477_s1 + $0xaf8] sm:$0xff]  ;;  %v9515_v46 = vpop.f32.mrf.mxu0  ;;  %v533_v47 = vld [vmem:[%s14477_s1 + $0x6f0] sm:$0xff] }
 0x17c   : > { %1929 = vmatpush1.msra.mxu1 %v593_v48  ;;  %1859 = vmatprep.subr.mxu0 %v462_v50  ;;  %v661_v48 = vld [vmem:[%s14477_s1 + $0xaf0] sm:$0xff]  ;;  %v530_v50 = vld [vmem:[%s14477_s1 + $0x6d8] sm:$0xff] }
 0x17d   : > { %1930 = vmatprep.subr.mxu1 %v590_v6  ;;  %1860 = vmatpush1.msra.mxu0 %v461_v52  ;;  %v658_v6 = vld [vmem:[%s14477_s1 + $0xad8] sm:$0xff]  ;;  %v9529_v52 = vpop.f32.mrf.mxu1 }
 0x17e   : > { %1931 = vmatpush1.msra.mxu1 %v589_v53  ;;  %1861 = vmatprep.subr.mxu0 %v458_v54  ;;  %v529_v53 = vld [vmem:[%s14477_s1 + $0x6d0] sm:$0xff] }
 0x17f   : > { %1932 = vmatprep.subr.mxu1 %v586_v55  ;;  %1862 = vmatpush1.msra.mxu0 %v457_v56  ;;  %v657_v54 = vld [vmem:[%s14477_s1 + $0xad0] sm:$0xff]  ;;  %v526_v55 = vld [vmem:[%s14477_s1 + $0x6b8] sm:$0xff] }
 0x180   : > { %1933 = vmatpush1.msra.mxu1 %v585_v57  ;;  %1863 = vmatprep.subr.mxu0 %v454_v24  ;;  %v654_v56 = vld [vmem:[%s14477_s1 + $0xab8] sm:$0xff]  ;;  %v9543_v57 = vpop.f32.mrf.mxu0  ;;  %v525_v24 = vld [vmem:[%s14477_s1 + $0x6b0] sm:$0xff] }
 0x181   : > { %1934 = vmatprep.subr.mxu1 %v582_v58  ;;  %1864 = vmatpush1.msra.mxu0 %v453_v59  ;;  %v653_v58 = vld [vmem:[%s14477_s1 + $0xab0] sm:$0xff]  ;;  %v522_v59 = vld [vmem:[%s14477_s1 + $0x698] sm:$0xff] }
 0x182   : > { %1935 = vmatpush1.msra.mxu1 %v581_v27  ;;  %1865 = vmatprep.subr.mxu0 %v450_v61  ;;  %v650_v27 = vld [vmem:[%s14477_s1 + $0xa98] sm:$0xff]  ;;  %v9557_v61 = vpop.f32.mrf.mxu1 }
 0x183   : > { %1936 = vmatprep.subr.mxu1 %v578_v26  ;;  %1866 = vmatpush1.msra.mxu0 %v449_v63  ;;  %v9559_v26 = vpop.f32.mrf.mxu0  ;;  %v521_v63 = vld [vmem:[%s14477_s1 + $0x690] sm:$0xff] }
 0x184   : > { %1937 = vmatpush1.msra.mxu1 %v577_v28  ;;  %1867 = vmatprep.subr.mxu0 %v446_v49  ;;  %v649_v28 = vld [vmem:[%s14477_s1 + $0xa90] sm:$0xff]  ;;  %v518_v49 = vld [vmem:[%s14477_s1 + $0x678] sm:$0xff] }
 0x185   : > { %1938 = vmatprep.subr.mxu1 %v574_v0  ;;  %1868 = vmatpush1.msra.mxu0 %v445_v1  ;;  %v646_v0 = vld [vmem:[%s14477_s1 + $0xa78] sm:$0xff]  ;;  %v1408_v1 = vpop.f32.mrf.mxu1 }
 0x186   : > { %1939 = vmatpush1.msra.mxu1 %v573_v51  ;;  %1869 = vmatprep.subr.mxu0 %v442_v3  ;;  %v517_v51 = vld [vmem:[%s14477_s1 + $0x670] sm:$0xff] }
 0x187   : > { %1940 = vmatprep.subr.mxu1 %v570_v5  ;;  %1870 = vmatpush1.msra.mxu0 %v441_v7  ;;  %v645_v3 = vld [vmem:[%s14477_s1 + $0xa70] sm:$0xff]  ;;  %v514_v5 = vld [vmem:[%s14477_s1 + $0x658] sm:$0xff] }
 0x188   : > { %1941 = vmatpush1.msra.mxu1 %v569_v8  ;;  %1871 = vmatprep.subr.mxu0 %v566_v9  ;;  %v642_v7 = vld [vmem:[%s14477_s1 + $0xa58] sm:$0xff]  ;;  %v9585_v8 = vpop.f32.mrf.mxu0  ;;  %v513_v9 = vld [vmem:[%s14477_s1 + $0x650] sm:$0xff] }
 0x189   : > { %1942 = vmatprep.subr.mxu1 %v694_v10  ;;  %1872 = vmatpush2.msra.mxu0 %v565_v60  ;;  %v641_v10 = vld [vmem:[%s14477_s1 + $0xa50] sm:$0xff]  ;;  %v510_v60 = vld [vmem:[%s14477_s1 + $0x638] sm:$0xff] }
 0x18a   : > { %1943 = vmatpush2.msra.mxu1 %v693_v11  ;;  %1873 = vmatprep.subr.mxu0 %v562_v12  ;;  %v638_v11 = vld [vmem:[%s14477_s1 + $0xa38] sm:$0xff]  ;;  %v1410_v12 = vpop.f32.mrf.mxu1 }
 0x18b   : > { %1944 = vmatprep.subr.mxu1 %v690_v62  ;;  %1874 = vmatpush2.msra.mxu0 %v561_v13  ;;  %v509_v62 = vld [vmem:[%s14477_s1 + $0x630] sm:$0xff] }
 0x18c   : > { %1945 = vmatpush2.msra.mxu1 %v689_v14  ;;  %1875 = vmatprep.subr.mxu0 %v558_v15  ;;  %v637_v13 = vld [vmem:[%s14477_s1 + $0xa30] sm:$0xff]  ;;  %v506_v15 = vld [vmem:[%s14477_s1 + $0x618] sm:$0xff] }
 0x18d   : > { %1946 = vmatprep.subr.mxu1 %v686_v16  ;;  %1876 = vmatpush2.msra.mxu0 %v557_v17  ;;  %v634_v16 = vld [vmem:[%s14477_s1 + $0xa18] sm:$0xff] }
 0x18e   : > { %1947 = vmatpush2.msra.mxu1 %v685_v18  ;;  %1877 = vmatprep.subr.mxu0 %v554_v19  ;;  %v505_v18 = vld [vmem:[%s14477_s1 + $0x610] sm:$0xff] }
 0x18f   : > { %1948 = vmatprep.subr.mxu1 %v682_v20  ;;  %1878 = vmatpush2.msra.mxu0 %v553_v21  ;;  %v633_v21 = vld [vmem:[%s14477_s1 + $0xa10] sm:$0xff] }
 0x190   : > { %1949 = vmatpush2.msra.mxu1 %v681_v22  ;;  %1879 = vmatprep.subr.mxu0 %v550_v23 }
 0x191   : > { %1950 = vmatprep.subr.mxu1 %v678_v25  ;;  %1880 = vmatpush2.msra.mxu0 %v549_v29  ;;  %v6013_v25 = vld [vmem:[%s14477_s1 + $0x19e8] sm:$0xff] }
 0x192   : > { %1951 = vmatpush2.msra.mxu1 %v677_v30  ;;  %1881 = vmatprep.subr.mxu0 %v546_v31  ;;  %v7128_v30 = vld [vmem:[#allocation2 + $0x18] sm:$0xff]  ;;  %v6141_v31 = vld [vmem:[%s14477_s1 + $0x1de8] sm:$0xff] }
 0x193   : > { %1952 = vmatprep.subr.mxu1 %v674_v32  ;;  %1882 = vmatpush2.msra.mxu0 %v545_v33  ;;  %v7129_v33 = vld [vmem:[#allocation2 + $0x10] sm:$0xff] }
 0x194   : > { %1953 = vmatpush2.msra.mxu1 %v673_v34  ;;  %1883 = vmatprep.subr.mxu0 %v542_v35  ;;  %v6012_v34 = vld [vmem:[%s14477_s1 + $0x19e0] sm:$0xff] }
 0x195   : > { %1954 = vmatprep.subr.mxu1 %v670_v36  ;;  %1884 = vmatpush2.msra.mxu0 %v541_v37  ;;  %v6140_v35 = vld [vmem:[%s14477_s1 + $0x1de0] sm:$0xff]  ;;  %v6009_v36 = vld [vmem:[%s14477_s1 + $0x19c8] sm:$0xff] }
 0x196   : > { %1955 = vmatpush2.msra.mxu1 %v669_v38  ;;  %1885 = vmatprep.subr.mxu0 %v538_v40  ;;  %v6137_v37 = vld [vmem:[%s14477_s1 + $0x1dc8] sm:$0xff]  ;;  %v6008_v38 = vld [vmem:[%s14477_s1 + $0x19c0] sm:$0xff] }
 0x197   : > { %1956 = vmatprep.subr.mxu1 %v666_v41  ;;  %1886 = vmatpush2.msra.mxu0 %v537_v42  ;;  %v6005_v40 = vld [vmem:[%s14477_s1 + $0x19a8] sm:$0xff]  ;;  %v6132_v42 = vld [vmem:[%s14477_s1 + $0x1da0] sm:$0xff] }
 0x198   : > { %1957 = vmatpush2.msra.mxu1 %v665_v43  ;;  %1887 = vmatprep.subr.mxu0 %v534_v44  ;;  %v6133_v41 = vld [vmem:[%s14477_s1 + $0x1da8] sm:$0xff] }
 0x199   : > { %1958 = vmatprep.subr.mxu1 %v662_v45  ;;  %1888 = vmatpush2.msra.mxu0 %v533_v47  ;;  %v6001_v43 = vld [vmem:[%s14477_s1 + $0x1988] sm:$0xff]  ;;  %v6000_v45 = vld [vmem:[%s14477_s1 + $0x1980] sm:$0xff] }
 0x19a   : > { %1959 = vmatpush2.msra.mxu1 %v661_v48  ;;  %1889 = vmatprep.subr.mxu0 %v530_v50  ;;  %v6129_v44 = vld [vmem:[%s14477_s1 + $0x1d88] sm:$0xff]  ;;  %v6128_v47 = vld [vmem:[%s14477_s1 + $0x1d80] sm:$0xff] }
 0x19b   : > { %1960 = vmatprep.subr.mxu1 %v658_v6  ;;  %1890 = vmatpush2.msra.mxu0 %v529_v53  ;;  %v5997_v48 = vld [vmem:[%s14477_s1 + $0x1968] sm:$0xff]  ;;  %v5996_v6 = vld [vmem:[%s14477_s1 + $0x1960] sm:$0xff] }
 0x19c   : > { %1961 = vmatpush2.msra.mxu1 %v657_v54  ;;  %1891 = vmatprep.subr.mxu0 %v526_v55  ;;  %v6125_v50 = vld [vmem:[%s14477_s1 + $0x1d68] sm:$0xff]  ;;  %v6124_v53 = vld [vmem:[%s14477_s1 + $0x1d60] sm:$0xff] }
 0x19d   : > { %1962 = vmatprep.subr.mxu1 %v654_v56  ;;  %1892 = vmatpush2.msra.mxu0 %v525_v24  ;;  %v5993_v54 = vld [vmem:[%s14477_s1 + $0x1948] sm:$0xff]  ;;  %v5992_v56 = vld [vmem:[%s14477_s1 + $0x1940] sm:$0xff] }
 0x19e   : > { %1963 = vmatpush2.msra.mxu1 %v653_v58  ;;  %1893 = vmatprep.subr.mxu0 %v522_v59  ;;  %v6121_v55 = vld [vmem:[%s14477_s1 + $0x1d48] sm:$0xff]  ;;  %v6120_v24 = vld [vmem:[%s14477_s1 + $0x1d40] sm:$0xff] }
 0x19f   : > { %1964 = vmatprep.subr.mxu1 %v650_v27  ;;  %1894 = vmatpush2.msra.mxu0 %v521_v63  ;;  %v5989_v58 = vld [vmem:[%s14477_s1 + $0x1928] sm:$0xff]  ;;  %v5988_v27 = vld [vmem:[%s14477_s1 + $0x1920] sm:$0xff] }
 0x1a0   : > { %1965 = vmatpush2.msra.mxu1 %v649_v28  ;;  %1895 = vmatprep.subr.mxu0 %v518_v49  ;;  %v6117_v59 = vld [vmem:[%s14477_s1 + $0x1d28] sm:$0xff]  ;;  %v6116_v63 = vld [vmem:[%s14477_s1 + $0x1d20] sm:$0xff] }
 0x1a1   : > { %1966 = vmatprep.subr.mxu1 %v646_v0  ;;  %1896 = vmatpush2.msra.mxu0 %v517_v51  ;;  %v5985_v28 = vld [vmem:[%s14477_s1 + $0x1908] sm:$0xff]  ;;  %v5984_v0 = vld [vmem:[%s14477_s1 + $0x1900] sm:$0xff] }
 0x1a2   : > { %1967 = vmatpush2.msra.mxu1 %v645_v3  ;;  %1897 = vmatprep.subr.mxu0 %v514_v5  ;;  %v6113_v49 = vld [vmem:[%s14477_s1 + $0x1d08] sm:$0xff]  ;;  %v5980_v5 = vld [vmem:[%s14477_s1 + $0x18e0] sm:$0xff] }
 0x1a3   : > { %1968 = vmatprep.subr.mxu1 %v642_v7  ;;  %v1479_v14 = vpop.f32.mrf.mxu0  ;;  %1898 = vmatpush2.msra.mxu0 %v513_v9  ;;  %v5981_v51 = vld [vmem:[%s14477_s1 + $0x18e8] sm:$0xff]  ;;  %v6108_v7 = vld [vmem:[%s14477_s1 + $0x1ce0] sm:$0xff] }
 0x1a4   : > { %1969 = vmatpush2.msra.mxu1 %v641_v10  ;;  %v1480_v17 = vadd.f32 %v1479_v14, %v1408_v1  ;;  %1899 = vmatprep.subr.mxu0 %v510_v60  ;;  %v6112_v1 = vld [vmem:[%s14477_s1 + $0x1d00] sm:$0xff]  ;;  %v6109_v3 = vld [vmem:[%s14477_s1 + $0x1ce8] sm:$0xff] }
 0x1a5   : > { %1970 = vmatprep.subr.mxu1 %v638_v11  ;;  %v1550_v19 = vpop.f32.mrf.mxu1  ;;  %v1481_v20 = vpop.f32.mrf.mxu0  ;;  %1900 = vmatpush2.msra.mxu0 %v509_v62  ;;  %v5977_v9 = vld [vmem:[%s14477_s1 + $0x18c8] sm:$0xff]  ;;  %v5976_v60 = vld [vmem:[%s14477_s1 + $0x18c0] sm:$0xff] }
 0x1a6   : > { %1971 = vmatpush2.msra.mxu1 %v637_v13  ;;  %v9617_v22 = vadd.f32 %v1550_v19, %v1480_v17  ;;  %v1482_v23 = vadd.f32 %v1481_v20, %v1410_v12  ;;  %1901 = vmatprep.subr.mxu0 %v506_v15  ;;  %v6105_v10 = vld [vmem:[%s14477_s1 + $0x1cc8] sm:$0xff]  ;;  %v6104_v11 = vld [vmem:[%s14477_s1 + $0x1cc0] sm:$0xff] }
 0x1a7   : > { %1972 = vmatprep.subr.mxu1 %v634_v16  ;;  %v1552_v29 = vpop.f32.mrf.mxu1  ;;  %1902 = vmatpush2.msra.mxu0 %v505_v18  ;;  %v5973_v12 = vld [vmem:[%s14477_s1 + $0x18a8] sm:$0xff]  ;;  %v5972_v13 = vld [vmem:[%s14477_s1 + $0x18a0] sm:$0xff] }
 0x1a8   : > { %1903 = vmatprep.mubr.f32.mxu0 %v7128_v30  ;;  %v9625_v32 = vadd.f32 %v1552_v29, %v1482_v23  ;;  %1973 = vmatpush2.msra.mxu1 %v633_v21  ;;  %v6101_v62 = vld [vmem:[%s14477_s1 + $0x1ca8] sm:$0xff]  ;;  %v6100_v14 = vld [vmem:[%s14477_s1 + $0x1ca0] sm:$0xff] }
 0x1a9   : > { %1904 = vmatmul.mubr.f32.vlgmr.msra.gmra.mxu0 %v7129_v33  ;;  %1974 = vmatprep.mubr.f32.mxu1 %v9210_v2  ;;  %v6136_v2 = vld [vmem:[%s14477_s1 + $0x1dc0] sm:$0xff]  ;;  %v5969_v15 = vld [vmem:[%s14477_s1 + $0x1888] sm:$0xff] }
 0x1aa   : > { %2415 = vmatprep.subr.mxu0 %v6013_v25  ;;  %2486 = vmatprep.subr.mxu1 %v6141_v31  ;;  %v6097_v16 = vld [vmem:[%s14477_s1 + $0x1c88] sm:$0xff]  ;;  %v5968_v17 = vld [vmem:[%s14477_s1 + $0x1880] sm:$0xff] }
 0x1ab   : > { %1975 = vmatmul.mubr.f32.vlgmr.msra.gmra.mxu1 %v9215_v4  ;;  %2416 = vmatpush1.msra.mxu0 %v6012_v34  ;;  %v6004_v4 = vld [vmem:[%s14477_s1 + $0x19a0] sm:$0xff]  ;;  %v5965_v19 = vld [vmem:[%s14477_s1 + $0x1868] sm:$0xff] }
 0x1ac   : > { %2487 = vmatpush1.msra.mxu1 %v6140_v35  ;;  %2417 = vmatprep.subr.mxu0 %v6009_v36  ;;  %v6096_v18 = vld [vmem:[%s14477_s1 + $0x1c80] sm:$0xff]  ;;  %v6093_v20 = vld [vmem:[%s14477_s1 + $0x1c68] sm:$0xff] }
 0x1ad   : > { %2488 = vmatprep.subr.mxu1 %v6137_v37  ;;  %2418 = vmatpush1.msra.mxu0 %v6008_v38  ;;  %v5964_v21 = vld [vmem:[%s14477_s1 + $0x1860] sm:$0xff]  ;;  %v5961_v25 = vld [vmem:[%s14477_s1 + $0x1848] sm:$0xff] }
 0x1ae   : > { %2489 = vmatpush1.msra.mxu1 %v6136_v2  ;;  %2419 = vmatprep.subr.mxu0 %v6005_v40  ;;  %v6092_v23 = vld [vmem:[%s14477_s1 + $0x1c60] sm:$0xff]  ;;  %v6089_v29 = vld [vmem:[%s14477_s1 + $0x1c48] sm:$0xff] }
 0x1af   : > { %2490 = vmatprep.subr.mxu1 %v6133_v41  ;;  %2420 = vmatpush1.msra.mxu0 %v6004_v4  ;;  %v5960_v30 = vld [vmem:[%s14477_s1 + $0x1840] sm:$0xff]  ;;  %v5957_v33 = vld [vmem:[%s14477_s1 + $0x1828] sm:$0xff] }
 0x1b0   : > { %2491 = vmatpush1.msra.mxu1 %v6132_v42  ;;  %2421 = vmatprep.subr.mxu0 %v6001_v43  ;;  %v6088_v31 = vld [vmem:[%s14477_s1 + $0x1c40] sm:$0xff]  ;;  %v6085_v34 = vld [vmem:[%s14477_s1 + $0x1c28] sm:$0xff] }
 0x1b1   : > { %2492 = vmatprep.subr.mxu1 %v6129_v44  ;;  %2422 = vmatpush1.msra.mxu0 %v6000_v45  ;;  %v5956_v35 = vld [vmem:[%s14477_s1 + $0x1820] sm:$0xff]  ;;  %v5953_v37 = vld [vmem:[%s14477_s1 + $0x1808] sm:$0xff] }
 0x1b2   : > { %2493 = vmatpush1.msra.mxu1 %v6128_v47  ;;  %2423 = vmatprep.subr.mxu0 %v5997_v48  ;;  %v6084_v36 = vld [vmem:[%s14477_s1 + $0x1c20] sm:$0xff]  ;;  %v6081_v38 = vld [vmem:[%s14477_s1 + $0x1c08] sm:$0xff] }
 0x1b3   : > { %2494 = vmatprep.subr.mxu1 %v6125_v50  ;;  %2424 = vmatpush1.msra.mxu0 %v5996_v6  ;;  %v5952_v2 = vld [vmem:[%s14477_s1 + $0x1800] sm:$0xff]  ;;  %v6077_v41 = vld [vmem:[%s14477_s1 + $0x1be8] sm:$0xff] }
 0x1b4   : > { %2495 = vmatpush1.msra.mxu1 %v6124_v53  ;;  %2425 = vmatprep.subr.mxu0 %v5993_v54  ;;  %v6080_v40 = vld [vmem:[%s14477_s1 + $0x1c00] sm:$0xff]  ;;  %v6205_v4 = vld [vmem:[%s14477_s1 + $0x1fe8] sm:$0xff] }
 0x1b5   : > { %2496 = vmatprep.subr.mxu1 %v6121_v55  ;;  %2426 = vmatpush1.msra.mxu0 %v5992_v56  ;;  %v6076_v42 = vld [vmem:[%s14477_s1 + $0x1be0] sm:$0xff]  ;;  %v6073_v44 = vld [vmem:[%s14477_s1 + $0x1bc8] sm:$0xff] }
 0x1b6   : > { %2497 = vmatpush1.msra.mxu1 %v6120_v24  ;;  %2427 = vmatprep.subr.mxu0 %v5989_v58  ;;  %v6204_v43 = vld [vmem:[%s14477_s1 + $0x1fe0] sm:$0xff]  ;;  %v6201_v45 = vld [vmem:[%s14477_s1 + $0x1fc8] sm:$0xff] }
 0x1b7   : > { %2498 = vmatprep.subr.mxu1 %v6117_v59  ;;  %2428 = vmatpush1.msra.mxu0 %v5988_v27  ;;  %v6072_v47 = vld [vmem:[%s14477_s1 + $0x1bc0] sm:$0xff]  ;;  %v6069_v50 = vld [vmem:[%s14477_s1 + $0x1ba8] sm:$0xff] }
 0x1b8   : > { %2499 = vmatpush1.msra.mxu1 %v6116_v63  ;;  %2429 = vmatprep.subr.mxu0 %v5985_v28  ;;  %v6200_v48 = vld [vmem:[%s14477_s1 + $0x1fc0] sm:$0xff]  ;;  %v6197_v6 = vld [vmem:[%s14477_s1 + $0x1fa8] sm:$0xff] }
 0x1b9   : > { %2500 = vmatprep.subr.mxu1 %v6113_v49  ;;  %2430 = vmatpush1.msra.mxu0 %v5984_v0  ;;  %v6068_v53 = vld [vmem:[%s14477_s1 + $0x1ba0] sm:$0xff]  ;;  %v6065_v55 = vld [vmem:[%s14477_s1 + $0x1b88] sm:$0xff] }
 0x1ba   : > { %2501 = vmatpush1.msra.mxu1 %v6112_v1  ;;  %2431 = vmatprep.subr.mxu0 %v5981_v51  ;;  %v6196_v54 = vld [vmem:[%s14477_s1 + $0x1fa0] sm:$0xff]  ;;  %v6193_v56 = vld [vmem:[%s14477_s1 + $0x1f88] sm:$0xff] }
 0x1bb   : > { %2502 = vmatprep.subr.mxu1 %v6109_v3  ;;  %2432 = vmatpush1.msra.mxu0 %v5980_v5  ;;  %v6064_v24 = vld [vmem:[%s14477_s1 + $0x1b80] sm:$0xff]  ;;  %v6061_v59 = vld [vmem:[%s14477_s1 + $0x1b68] sm:$0xff] }
 0x1bc   : > { %2503 = vmatpush1.msra.mxu1 %v6108_v7  ;;  %2433 = vmatprep.subr.mxu0 %v5977_v9  ;;  %v6192_v58 = vld [vmem:[%s14477_s1 + $0x1f80] sm:$0xff]  ;;  %v6189_v27 = vld [vmem:[%s14477_s1 + $0x1f68] sm:$0xff] }
 0x1bd   : > { %2504 = vmatprep.subr.mxu1 %v6105_v10  ;;  %2434 = vmatpush1.msra.mxu0 %v5976_v60  ;;  %v6060_v63 = vld [vmem:[%s14477_s1 + $0x1b60] sm:$0xff]  ;;  %v6057_v49 = vld [vmem:[%s14477_s1 + $0x1b48] sm:$0xff] }
 0x1be   : > { %2505 = vmatpush1.msra.mxu1 %v6104_v11  ;;  %2435 = vmatprep.subr.mxu0 %v5973_v12  ;;  %v6188_v28 = vld [vmem:[%s14477_s1 + $0x1f60] sm:$0xff]  ;;  %v6185_v0 = vld [vmem:[%s14477_s1 + $0x1f48] sm:$0xff] }
 0x1bf   : > { %2506 = vmatprep.subr.mxu1 %v6101_v62  ;;  %2436 = vmatpush1.msra.mxu0 %v5972_v13  ;;  %v6056_v1 = vld [vmem:[%s14477_s1 + $0x1b40] sm:$0xff]  ;;  %v6053_v3 = vld [vmem:[%s14477_s1 + $0x1b28] sm:$0xff] }
 0x1c0   : > { %2507 = vmatpush1.msra.mxu1 %v6100_v14  ;;  %2437 = vmatprep.subr.mxu0 %v5969_v15  ;;  %v6184_v51 = vld [vmem:[%s14477_s1 + $0x1f40] sm:$0xff]  ;;  %v6181_v5 = vld [vmem:[%s14477_s1 + $0x1f28] sm:$0xff] }
 0x1c1   : > { %2508 = vmatprep.subr.mxu1 %v6097_v16  ;;  %2438 = vmatpush1.msra.mxu0 %v5968_v17  ;;  %v6052_v7 = vld [vmem:[%s14477_s1 + $0x1b20] sm:$0xff]  ;;  %v6049_v10 = vld [vmem:[%s14477_s1 + $0x1b08] sm:$0xff] }
 0x1c2   : > { %2509 = vmatpush1.msra.mxu1 %v6096_v18  ;;  %2439 = vmatprep.subr.mxu0 %v5965_v19  ;;  %v6180_v9 = vld [vmem:[%s14477_s1 + $0x1f20] sm:$0xff]  ;;  %v6177_v60 = vld [vmem:[%s14477_s1 + $0x1f08] sm:$0xff] }
 0x1c3   : > { %2510 = vmatprep.subr.mxu1 %v6093_v20  ;;  %2440 = vmatpush1.msra.mxu0 %v5964_v21  ;;  %v6048_v11 = vld [vmem:[%s14477_s1 + $0x1b00] sm:$0xff]  ;;  %v6045_v62 = vld [vmem:[%s14477_s1 + $0x1ae8] sm:$0xff] }
 0x1c4   : > { %2511 = vmatpush1.msra.mxu1 %v6092_v23  ;;  %2441 = vmatprep.subr.mxu0 %v5961_v25  ;;  %v6176_v12 = vld [vmem:[%s14477_s1 + $0x1f00] sm:$0xff]  ;;  %v6173_v13 = vld [vmem:[%s14477_s1 + $0x1ee8] sm:$0xff] }
 0x1c5   : > { %2512 = vmatprep.subr.mxu1 %v6089_v29  ;;  %2442 = vmatpush1.msra.mxu0 %v5960_v30  ;;  %v6044_v14 = vld [vmem:[%s14477_s1 + $0x1ae0] sm:$0xff]  ;;  %v6041_v16 = vld [vmem:[%s14477_s1 + $0x1ac8] sm:$0xff] }
 0x1c6   : > { %2513 = vmatpush1.msra.mxu1 %v6088_v31  ;;  %2443 = vmatprep.subr.mxu0 %v5957_v33  ;;  %v6172_v15 = vld [vmem:[%s14477_s1 + $0x1ee0] sm:$0xff]  ;;  %v6169_v17 = vld [vmem:[%s14477_s1 + $0x1ec8] sm:$0xff] }
 0x1c7   : > { %2514 = vmatprep.subr.mxu1 %v6085_v34  ;;  %2444 = vmatpush1.msra.mxu0 %v5956_v35  ;;  %v6040_v18 = vld [vmem:[%s14477_s1 + $0x1ac0] sm:$0xff]  ;;  %v6037_v20 = vld [vmem:[%s14477_s1 + $0x1aa8] sm:$0xff] }
 0x1c8   : > { %2515 = vmatpush1.msra.mxu1 %v6084_v36  ;;  %2445 = vmatprep.subr.mxu0 %v5953_v37  ;;  %v6168_v19 = vld [vmem:[%s14477_s1 + $0x1ec0] sm:$0xff]  ;;  %v6165_v21 = vld [vmem:[%s14477_s1 + $0x1ea8] sm:$0xff] }
 0x1c9   : > { %2516 = vmatprep.subr.mxu1 %v6081_v38  ;;  %2446 = vmatpush1.msra.mxu0 %v5952_v2  ;;  %v6036_v23 = vld [vmem:[%s14477_s1 + $0x1aa0] sm:$0xff]  ;;  %v6033_v29 = vld [vmem:[%s14477_s1 + $0x1a88] sm:$0xff] }
 0x1ca   : > { %2517 = vmatpush1.msra.mxu1 %v6080_v40  ;;  %2447 = vmatprep.subr.mxu0 %v6077_v41  ;;  %v6164_v25 = vld [vmem:[%s14477_s1 + $0x1ea0] sm:$0xff]  ;;  %v6161_v30 = vld [vmem:[%s14477_s1 + $0x1e88] sm:$0xff]  ;;  %v1988_v41 = vld [vmem:[#allocation2 + $0x38] sm:$0x3] }
 0x1cb   : > { %2518 = vmatprep.subr.mxu1 %v6205_v4  ;;  %2448 = vmatpush2.msra.mxu0 %v6076_v42  ;;  %v6032_v31 = vld [vmem:[%s14477_s1 + $0x1a80] sm:$0xff]  ;;  %v6029_v34 = vld [vmem:[%s14477_s1 + $0x1a68] sm:$0xff]  ;;  %v1984_v4 = vld [vmem:[#allocation2 + $0x18] sm:$0xfc] }
 0x1cc   : > { %2519 = vmatpush2.msra.mxu1 %v6204_v43  ;;  %2449 = vmatprep.subr.mxu0 %v6073_v44  ;;  %v6160_v33 = vld [vmem:[%s14477_s1 + $0x1e80] sm:$0xff]  ;;  %v6157_v35 = vld [vmem:[%s14477_s1 + $0x1e68] sm:$0xff]  ;;  %v1987_v44 = vld [vmem:[#allocation2 + $0x30] sm:$0x3] }
 0x1cd   : > { %2520 = vmatprep.subr.mxu1 %v6201_v45  ;;  %2450 = vmatpush2.msra.mxu0 %v6072_v47  ;;  %v6028_v36 = vld [vmem:[%s14477_s1 + $0x1a60] sm:$0xff]  ;;  %v6025_v38 = vld [vmem:[%s14477_s1 + $0x1a48] sm:$0xff]  ;;  %v1983_v45 = vld [vmem:[#allocation2 + $0x10] sm:$0xfc] }
 0x1ce   : > { %2521 = vmatpush2.msra.mxu1 %v6200_v48  ;;  %2451 = vmatprep.subr.mxu0 %v6069_v50  ;;  %v6156_v37 = vld [vmem:[%s14477_s1 + $0x1e60] sm:$0xff]  ;;  %v6153_v2 = vld [vmem:[%s14477_s1 + $0x1e48] sm:$0xff] }
 0x1cf   : > { %2522 = vmatprep.subr.mxu1 %v6197_v6  ;;  %2452 = vmatpush2.msra.mxu0 %v6068_v53  ;;  %v1982_v40 = vld [vmem:[#allocation2 + $0x8] sm:$0xfc]  ;;  %v1990_v42 = vld [vmem:[#allocation2 + $0x48] sm:$0x3]  ;;  %v1981_v43 = vld [vmem:[#allocation2] sm:$0xfc] }
 0x1d0   : > { %2523 = vmatpush2.msra.mxu1 %v6196_v54  ;;  %2453 = vmatprep.subr.mxu0 %v6065_v55  ;;  %v1989_v47 = vld [vmem:[#allocation2 + $0x40] sm:$0x3]  ;;  %v2394_v6 = vrot.slane %v1982_v40, 2  ;;  %v2395_v53 = vrot.slane %v1988_v41, 2  ;;  %v6021_v54 = vld [vmem:[%s14477_s1 + $0x1a28] sm:$0xff]  ;;  %v5991_v40 = vld [vmem:[%s14477_s1 + $0x1938] sm:$0xff] }
 0x1d1   : > { %2524 = vmatprep.subr.mxu1 %v6193_v56  ;;  %2454 = vmatpush2.msra.mxu0 %v6064_v24  ;;  %v6024_v48 = vld [vmem:[%s14477_s1 + $0x1a40] sm:$0xff]  ;;  %v6149_v55 = vld [vmem:[%s14477_s1 + $0x1e28] sm:$0xff]  ;;  %v2400_v56 = vrot.slane %v1984_v4, 2  ;;  %v2401_v24 = vrot.slane %v1990_v42, 2  ;;  %v5990_v4 = vld [vmem:[%s14477_s1 + $0x1930] sm:$0xff] }
 0x1d2   : > { %2525 = vmatpush2.msra.mxu1 %v6192_v58  ;;  %2455 = vmatprep.subr.mxu0 %v6061_v59  ;;  %v6152_v50 = vld [vmem:[%s14477_s1 + $0x1e40] sm:$0xff]  ;;  %v6241_v42 = vld [vmem:[%s14477_s1 + $0x2108] sm:$0xff] }
 0x1d3   : > { %2526 = vmatprep.subr.mxu1 %v6189_v27  ;;  %2456 = vmatpush2.msra.mxu0 %v6060_v63  ;;  %v6020_v58 = vld [vmem:[%s14477_s1 + $0x1a20] sm:$0xff]  ;;  %v2391_v27 = vrot.slane %v1981_v43, 2  ;;  %v2392_v63 = vrot.slane %v1987_v44, 2  ;;  %v5987_v43 = vld [vmem:[%s14477_s1 + $0x1918] sm:$0xff] }
 0x1d4   : > { %2527 = vmatpush2.msra.mxu1 %v6188_v28  ;;  %2457 = vmatprep.subr.mxu0 %v6057_v49  ;;  %v6148_v59 = vld [vmem:[%s14477_s1 + $0x1e20] sm:$0xff]  ;;  %v2397_v28 = vrot.slane %v1983_v45, 2  ;;  %v2398_v49 = vrot.slane %v1989_v47, 2  ;;  %v5986_v45 = vld [vmem:[%s14477_s1 + $0x1910] sm:$0xff]  ;;  %v6237_v47 = vld [vmem:[%s14477_s1 + $0x20e8] sm:$0xff] }
 0x1d5   : > { %2528 = vmatprep.subr.mxu1 %v6185_v0  ;;  %2458 = vmatpush2.msra.mxu0 %v6056_v1  ;;  %v6017_v0 = vld [vmem:[%s14477_s1 + $0x1a08] sm:$0xff]  ;;  %v6244_v41 = vld [vmem:[%s14477_s1 + $0x2120] sm:$0xff] }
 0x1d6   : > { %2529 = vmatpush2.msra.mxu1 %v6184_v51  ;;  %2459 = vmatprep.subr.mxu0 %v6053_v3  ;;  %v6145_v1 = vld [vmem:[%s14477_s1 + $0x1e08] sm:$0xff]  ;;  %v6016_v51 = vld [vmem:[%s14477_s1 + $0x1a00] sm:$0xff]  ;;  %v10005_v3 = vsel %vm2390_vm2, %v2394_v6, %v2395_v53  ;;  %v5982_v6 = vld [vmem:[%s14477_s1 + $0x18f0] sm:$0xff] }
 0x1d7   : > { %2530 = vmatprep.subr.mxu1 %v6181_v5  ;;  %2460 = vmatpush2.msra.mxu0 %v6052_v7  ;;  %v6144_v5 = vld [vmem:[%s14477_s1 + $0x1e00] sm:$0xff]  ;;  %v10011_v7 = vsel %vm2390_vm2, %v2400_v56, %v2401_v24  ;;  %v6233_v53 = vld [vmem:[%s14477_s1 + $0x20c8] sm:$0xff]  ;;  %v5978_v56 = vld [vmem:[%s14477_s1 + $0x18d0] sm:$0xff] }
 0x1d8   : > { %2531 = vmatpush2.msra.mxu1 %v6180_v9  ;;  %2461 = vmatprep.subr.mxu0 %v6049_v10  ;;  %v10014_v9 = vsel %vm2390_vm2, %v2391_v27, %v2392_v63  ;;  %v10017_v10 = vsel %vm2390_vm2, %v2397_v28, %v2398_v49  ;;  %v6240_v44 = vld [vmem:[%s14477_s1 + $0x2100] sm:$0xff]  ;;  %v6229_v24 = vld [vmem:[%s14477_s1 + $0x20a8] sm:$0xff]  ;;  %v5974_v27 = vld [vmem:[%s14477_s1 + $0x18b0] sm:$0xff] }
 0x1d9   : > { %2532 = vmatprep.subr.mxu1 %v6177_v60  ;;  %2462 = vmatpush2.msra.mxu0 %v6048_v11  ;;  %v6269_v60 = vld [vmem:[%s14477_s1 + $0x21e8] sm:$0xff]  ;;  %v6015_v11 = vld [vmem:[%s14477_s1 + $0x19f8] sm:$0xff]  ;;  %v6224_v49 = vld [vmem:[%s14477_s1 + $0x2080] sm:$0xff] }
 0x1da   : > { %2533 = vmatpush2.msra.mxu1 %v6176_v12  ;;  %2463 = vmatprep.subr.mxu0 %v6045_v62  ;;  %v6268_v12 = vld [vmem:[%s14477_s1 + $0x21e0] sm:$0xff]  ;;  %v6014_v62 = vld [vmem:[%s14477_s1 + $0x19f0] sm:$0xff]  ;;  %v6225_v63 = vld [vmem:[%s14477_s1 + $0x2088] sm:$0xff] }
 0x1db   : > { %2534 = vmatprep.subr.mxu1 %v6173_v13  ;;  %2464 = vmatpush2.msra.mxu0 %v6044_v14  ;;  %v6265_v13 = vld [vmem:[%s14477_s1 + $0x21c8] sm:$0xff]  ;;  %v6011_v14 = vld [vmem:[%s14477_s1 + $0x19d8] sm:$0xff] }
 0x1dc   : > { %2535 = vmatpush2.msra.mxu1 %v6172_v15  ;;  %2465 = vmatprep.subr.mxu0 %v6041_v16  ;;  %v6264_v15 = vld [vmem:[%s14477_s1 + $0x21c0] sm:$0xff]  ;;  %v6010_v16 = vld [vmem:[%s14477_s1 + $0x19d0] sm:$0xff]  ;;  %v5971_v28 = vld [vmem:[%s14477_s1 + $0x1898] sm:$0xff] }
 0x1dd   : > { %2536 = vmatprep.subr.mxu1 %v6169_v17  ;;  %2466 = vmatpush2.msra.mxu0 %v6040_v18  ;;  %v6261_v17 = vld [vmem:[%s14477_s1 + $0x21a8] sm:$0xff]  ;;  %v6007_v18 = vld [vmem:[%s14477_s1 + $0x19b8] sm:$0xff] }
 0x1de   : > { %2537 = vmatpush2.msra.mxu1 %v6168_v19  ;;  %2467 = vmatprep.subr.mxu0 %v6037_v20  ;;  %v6260_v19 = vld [vmem:[%s14477_s1 + $0x21a0] sm:$0xff]  ;;  %v6006_v20 = vld [vmem:[%s14477_s1 + $0x19b0] sm:$0xff] }
 0x1df   : > { %2538 = vmatprep.subr.mxu1 %v6165_v21  ;;  %2468 = vmatpush2.msra.mxu0 %v6036_v23  ;;  %v6257_v21 = vld [vmem:[%s14477_s1 + $0x2188] sm:$0xff]  ;;  %v6003_v23 = vld [vmem:[%s14477_s1 + $0x1998] sm:$0xff] }
 0x1e0   : > { %2539 = vmatpush2.msra.mxu1 %v6164_v25  ;;  %2469 = vmatprep.subr.mxu0 %v6033_v29  ;;  %v6256_v25 = vld [vmem:[%s14477_s1 + $0x2180] sm:$0xff]  ;;  %v6002_v29 = vld [vmem:[%s14477_s1 + $0x1990] sm:$0xff] }
 0x1e1   : > { %2540 = vmatprep.subr.mxu1 %v6161_v30  ;;  %2470 = vmatpush2.msra.mxu0 %v6032_v31  ;;  %v6253_v30 = vld [vmem:[%s14477_s1 + $0x2168] sm:$0xff]  ;;  %v5999_v31 = vld [vmem:[%s14477_s1 + $0x1978] sm:$0xff] }
 0x1e2   : > { %2541 = vmatpush2.msra.mxu1 %v6160_v33  ;;  %2471 = vmatprep.subr.mxu0 %v6029_v34  ;;  %v6252_v33 = vld [vmem:[%s14477_s1 + $0x2160] sm:$0xff]  ;;  %v5998_v34 = vld [vmem:[%s14477_s1 + $0x1970] sm:$0xff] }
 0x1e3   : > { %2542 = vmatprep.subr.mxu1 %v6157_v35  ;;  %2472 = vmatpush2.msra.mxu0 %v6028_v36  ;;  %v6249_v35 = vld [vmem:[%s14477_s1 + $0x2148] sm:$0xff]  ;;  %v5995_v36 = vld [vmem:[%s14477_s1 + $0x1958] sm:$0xff] }
 0x1e4   : > { %2543 = vmatpush2.msra.mxu1 %v6156_v37  ;;  %2473 = vmatprep.subr.mxu0 %v6025_v38  ;;  %v6248_v37 = vld [vmem:[%s14477_s1 + $0x2140] sm:$0xff]  ;;  %v5994_v38 = vld [vmem:[%s14477_s1 + $0x1950] sm:$0xff] }
 0x1e5   : > { %2544 = vmatprep.subr.mxu1 %v6153_v2  ;;  %2474 = vmatpush2.msra.mxu0 %v6024_v48  ;;  %v6245_v2 = vld [vmem:[%s14477_s1 + $0x2128] sm:$0xff]  ;;  %v5983_v48 = vld [vmem:[%s14477_s1 + $0x18f8] sm:$0xff] }
 0x1e6   : > { %2545 = vmatpush2.msra.mxu1 %v6152_v50  ;;  %2475 = vmatprep.subr.mxu0 %v6021_v54  ;;  %v6236_v50 = vld [vmem:[%s14477_s1 + $0x20e0] sm:$0xff]  ;;  %v5979_v54 = vld [vmem:[%s14477_s1 + $0x18d8] sm:$0xff] }
 0x1e7   : > { %2546 = vmatprep.subr.mxu1 %v6149_v55  ;;  %2476 = vmatpush2.msra.mxu0 %v6020_v58  ;;  %v6232_v55 = vld [vmem:[%s14477_s1 + $0x20c0] sm:$0xff]  ;;  %v5975_v58 = vld [vmem:[%s14477_s1 + $0x18b8] sm:$0xff] }
 0x1e8   : > { %2547 = vmatpush2.msra.mxu1 %v6148_v59  ;;  %2477 = vmatprep.subr.mxu0 %v6017_v0  ;;  %v6228_v59 = vld [vmem:[%s14477_s1 + $0x20a0] sm:$0xff]  ;;  %v5970_v0 = vld [vmem:[%s14477_s1 + $0x1890] sm:$0xff] }
 0x1e9   : > { %2548 = vmatprep.subr.mxu1 %v6145_v1  ;;  %2478 = vmatpush2.msra.mxu0 %v6016_v51  ;;  %v6221_v1 = vld [vmem:[%s14477_s1 + $0x2068] sm:$0xff]  ;;  %v5967_v51 = vld [vmem:[%s14477_s1 + $0x1878] sm:$0xff] }
 0x1ea   : > { %2479 = vmatprep.mubr.f32.mxu0 %v10005_v3  ;;  %2549 = vmatpush2.msra.mxu1 %v6144_v5  ;;  %v6220_v5 = vld [vmem:[%s14477_s1 + $0x2060] sm:$0xff] }
 0x1eb   : > { %2550 = vmatprep.mubr.f32.mxu1 %v10011_v7  ;;  %2480 = vmatmul.mubr.f32.vlgmr.msra.gmra.mxu0 %v10014_v9 }
 0x1ec   : > { %2551 = vmatmul.mubr.f32.vlgmr.msra.gmra.mxu1 %v10017_v10  ;;  %2557 = vmatprep.subr.mxu0 %v6269_v60  ;;  %v5966_v60 = vld [vmem:[%s14477_s1 + $0x1870] sm:$0xff] }
 0x1ed   : > { %2628 = vmatprep.subr.mxu1 %v6015_v11  ;;  %2558 = vmatpush1.msra.mxu0 %v6268_v12  ;;  %v6217_v11 = vld [vmem:[%s14477_s1 + $0x2048] sm:$0xff]  ;;  %v5963_v12 = vld [vmem:[%s14477_s1 + $0x1858] sm:$0xff] }
 0x1ee   : > { %2629 = vmatpush1.msra.mxu1 %v6014_v62  ;;  %2559 = vmatprep.subr.mxu0 %v6265_v13  ;;  %v6216_v62 = vld [vmem:[%s14477_s1 + $0x2040] sm:$0xff]  ;;  %v5962_v13 = vld [vmem:[%s14477_s1 + $0x1850] sm:$0xff] }
 0x1ef   : > { %2630 = vmatprep.subr.mxu1 %v6011_v14  ;;  %2560 = vmatpush1.msra.mxu0 %v6264_v15  ;;  %v6213_v14 = vld [vmem:[%s14477_s1 + $0x2028] sm:$0xff]  ;;  %v5959_v15 = vld [vmem:[%s14477_s1 + $0x1838] sm:$0xff] }
 0x1f0   : > { %2631 = vmatpush1.msra.mxu1 %v6010_v16  ;;  %2561 = vmatprep.subr.mxu0 %v6261_v17  ;;  %v6212_v16 = vld [vmem:[%s14477_s1 + $0x2020] sm:$0xff]  ;;  %v5958_v17 = vld [vmem:[%s14477_s1 + $0x1830] sm:$0xff] }
 0x1f1   : > { %2632 = vmatprep.subr.mxu1 %v6007_v18  ;;  %2562 = vmatpush1.msra.mxu0 %v6260_v19  ;;  %v6209_v18 = vld [vmem:[%s14477_s1 + $0x2008] sm:$0xff]  ;;  %v5955_v19 = vld [vmem:[%s14477_s1 + $0x1818] sm:$0xff] }
 0x1f2   : > { %2633 = vmatpush1.msra.mxu1 %v6006_v20  ;;  %2563 = vmatprep.subr.mxu0 %v6257_v21  ;;  %v6208_v20 = vld [vmem:[%s14477_s1 + $0x2000] sm:$0xff]  ;;  %v5954_v21 = vld [vmem:[%s14477_s1 + $0x1810] sm:$0xff] }
 0x1f3   : > { %2634 = vmatprep.subr.mxu1 %v6003_v23  ;;  %2564 = vmatpush1.msra.mxu0 %v6256_v25  ;;  %v6333_v23 = vld [vmem:[%s14477_s1 + $0x23e8] sm:$0xff]  ;;  %v6079_v25 = vld [vmem:[%s14477_s1 + $0x1bf8] sm:$0xff] }
 0x1f4   : > { %2635 = vmatpush1.msra.mxu1 %v6002_v29  ;;  %2565 = vmatprep.subr.mxu0 %v6253_v30  ;;  %v6332_v29 = vld [vmem:[%s14477_s1 + $0x23e0] sm:$0xff]  ;;  %v6078_v30 = vld [vmem:[%s14477_s1 + $0x1bf0] sm:$0xff] }
 0x1f5   : > { %2636 = vmatprep.subr.mxu1 %v5999_v31  ;;  %2566 = vmatpush1.msra.mxu0 %v6252_v33  ;;  %v6329_v31 = vld [vmem:[%s14477_s1 + $0x23c8] sm:$0xff]  ;;  %v6075_v33 = vld [vmem:[%s14477_s1 + $0x1bd8] sm:$0xff] }
 0x1f6   : > { %2637 = vmatpush1.msra.mxu1 %v5998_v34  ;;  %2567 = vmatprep.subr.mxu0 %v6249_v35  ;;  %v6328_v34 = vld [vmem:[%s14477_s1 + $0x23c0] sm:$0xff]  ;;  %v6074_v35 = vld [vmem:[%s14477_s1 + $0x1bd0] sm:$0xff] }
 0x1f7   : > { %2638 = vmatprep.subr.mxu1 %v5995_v36  ;;  %2568 = vmatpush1.msra.mxu0 %v6248_v37  ;;  %v6325_v36 = vld [vmem:[%s14477_s1 + $0x23a8] sm:$0xff]  ;;  %v6071_v37 = vld [vmem:[%s14477_s1 + $0x1bb8] sm:$0xff] }
 0x1f8   : > { %2639 = vmatpush1.msra.mxu1 %v5994_v38  ;;  %2569 = vmatprep.subr.mxu0 %v6245_v2  ;;  %v6324_v38 = vld [vmem:[%s14477_s1 + $0x23a0] sm:$0xff]  ;;  %v6070_v2 = vld [vmem:[%s14477_s1 + $0x1bb0] sm:$0xff] }
 0x1f9   : > { %2640 = vmatprep.subr.mxu1 %v5991_v40  ;;  %2570 = vmatpush1.msra.mxu0 %v6244_v41  ;;  %v6321_v40 = vld [vmem:[%s14477_s1 + $0x2388] sm:$0xff]  ;;  %v6067_v41 = vld [vmem:[%s14477_s1 + $0x1b98] sm:$0xff] }
 0x1fa   : > { %2641 = vmatpush1.msra.mxu1 %v5990_v4  ;;  %2571 = vmatprep.subr.mxu0 %v6241_v42  ;;  %v6320_v4 = vld [vmem:[%s14477_s1 + $0x2380] sm:$0xff]  ;;  %v6066_v42 = vld [vmem:[%s14477_s1 + $0x1b90] sm:$0xff] }
 0x1fb   : > { %2642 = vmatprep.subr.mxu1 %v5987_v43  ;;  %2572 = vmatpush1.msra.mxu0 %v6240_v44  ;;  %v6317_v43 = vld [vmem:[%s14477_s1 + $0x2368] sm:$0xff]  ;;  %v6063_v44 = vld [vmem:[%s14477_s1 + $0x1b78] sm:$0xff] }
 0x1fc   : > { %2643 = vmatpush1.msra.mxu1 %v5986_v45  ;;  %2573 = vmatprep.subr.mxu0 %v6237_v47  ;;  %v6316_v45 = vld [vmem:[%s14477_s1 + $0x2360] sm:$0xff]  ;;  %v6062_v47 = vld [vmem:[%s14477_s1 + $0x1b70] sm:$0xff] }
 0x1fd   : > { %2644 = vmatprep.subr.mxu1 %v5983_v48  ;;  %2574 = vmatpush1.msra.mxu0 %v6236_v50  ;;  %v6313_v48 = vld [vmem:[%s14477_s1 + $0x2348] sm:$0xff]  ;;  %v6059_v50 = vld [vmem:[%s14477_s1 + $0x1b58] sm:$0xff] }
 0x1fe   : > { %2645 = vmatpush1.msra.mxu1 %v5982_v6  ;;  %2575 = vmatprep.subr.mxu0 %v6233_v53  ;;  %v6312_v6 = vld [vmem:[%s14477_s1 + $0x2340] sm:$0xff]  ;;  %v6058_v53 = vld [vmem:[%s14477_s1 + $0x1b50] sm:$0xff] }
 0x1ff   : > { %2646 = vmatprep.subr.mxu1 %v5979_v54  ;;  %2576 = vmatpush1.msra.mxu0 %v6232_v55  ;;  %v6309_v54 = vld [vmem:[%s14477_s1 + $0x2328] sm:$0xff]  ;;  %v6055_v55 = vld [vmem:[%s14477_s1 + $0x1b38] sm:$0xff] }
 0x200   : > { %2647 = vmatpush1.msra.mxu1 %v5978_v56  ;;  %2577 = vmatprep.subr.mxu0 %v6229_v24  ;;  %v6308_v56 = vld [vmem:[%s14477_s1 + $0x2320] sm:$0xff]  ;;  %v6054_v24 = vld [vmem:[%s14477_s1 + $0x1b30] sm:$0xff] }
 0x201   : > { %2648 = vmatprep.subr.mxu1 %v5975_v58  ;;  %2578 = vmatpush1.msra.mxu0 %v6228_v59  ;;  %v6305_v58 = vld [vmem:[%s14477_s1 + $0x2308] sm:$0xff]  ;;  %v6051_v59 = vld [vmem:[%s14477_s1 + $0x1b18] sm:$0xff] }
 0x202   : > { %2649 = vmatpush1.msra.mxu1 %v5974_v27  ;;  %2579 = vmatprep.subr.mxu0 %v6225_v63  ;;  %v6304_v27 = vld [vmem:[%s14477_s1 + $0x2300] sm:$0xff]  ;;  %v6050_v63 = vld [vmem:[%s14477_s1 + $0x1b10] sm:$0xff] }
 0x203   : > { %2650 = vmatprep.subr.mxu1 %v5971_v28  ;;  %2580 = vmatpush1.msra.mxu0 %v6224_v49  ;;  %v6301_v28 = vld [vmem:[%s14477_s1 + $0x22e8] sm:$0xff]  ;;  %v6047_v49 = vld [vmem:[%s14477_s1 + $0x1af8] sm:$0xff] }
 0x204   : > { %2651 = vmatpush1.msra.mxu1 %v5970_v0  ;;  %2581 = vmatprep.subr.mxu0 %v6221_v1  ;;  %v6300_v0 = vld [vmem:[%s14477_s1 + $0x22e0] sm:$0xff]  ;;  %v6046_v1 = vld [vmem:[%s14477_s1 + $0x1af0] sm:$0xff] }
 0x205   : > { %2652 = vmatprep.subr.mxu1 %v5967_v51  ;;  %2582 = vmatpush1.msra.mxu0 %v6220_v5  ;;  %v6297_v51 = vld [vmem:[%s14477_s1 + $0x22c8] sm:$0xff]  ;;  %v6043_v5 = vld [vmem:[%s14477_s1 + $0x1ad8] sm:$0xff] }
 0x206   : > { %2653 = vmatpush1.msra.mxu1 %v5966_v60  ;;  %2583 = vmatprep.subr.mxu0 %v6217_v11  ;;  %v6296_v60 = vld [vmem:[%s14477_s1 + $0x22c0] sm:$0xff]  ;;  %v6042_v11 = vld [vmem:[%s14477_s1 + $0x1ad0] sm:$0xff] }
 0x207   : > { %2654 = vmatprep.subr.mxu1 %v5963_v12  ;;  %2584 = vmatpush1.msra.mxu0 %v6216_v62  ;;  %v6293_v12 = vld [vmem:[%s14477_s1 + $0x22a8] sm:$0xff]  ;;  %v6039_v62 = vld [vmem:[%s14477_s1 + $0x1ab8] sm:$0xff] }
 0x208   : > { %2655 = vmatpush1.msra.mxu1 %v5962_v13  ;;  %2585 = vmatprep.subr.mxu0 %v6213_v14  ;;  %v6292_v13 = vld [vmem:[%s14477_s1 + $0x22a0] sm:$0xff]  ;;  %v6038_v14 = vld [vmem:[%s14477_s1 + $0x1ab0] sm:$0xff] }
 0x209   : > { %2656 = vmatprep.subr.mxu1 %v5959_v15  ;;  %2586 = vmatpush1.msra.mxu0 %v6212_v16  ;;  %v6289_v15 = vld [vmem:[%s14477_s1 + $0x2288] sm:$0xff]  ;;  %v6035_v16 = vld [vmem:[%s14477_s1 + $0x1a98] sm:$0xff] }
 0x20a   : > { %2657 = vmatpush1.msra.mxu1 %v5958_v17  ;;  %2587 = vmatprep.subr.mxu0 %v6209_v18  ;;  %v6288_v17 = vld [vmem:[%s14477_s1 + $0x2280] sm:$0xff]  ;;  %v6034_v18 = vld [vmem:[%s14477_s1 + $0x1a90] sm:$0xff] }
 0x20b   : > { %2658 = vmatprep.subr.mxu1 %v5955_v19  ;;  %2588 = vmatpush1.msra.mxu0 %v6208_v20  ;;  %v6285_v19 = vld [vmem:[%s14477_s1 + $0x2268] sm:$0xff]  ;;  %v6031_v20 = vld [vmem:[%s14477_s1 + $0x1a78] sm:$0xff] }
 0x20c   : > { %2659 = vmatpush1.msra.mxu1 %v5954_v21  ;;  %2589 = vmatprep.subr.mxu0 %v6333_v23  ;;  %v10365_v21 = vpop.f32.mrf.mxu1  ;;  %v6284_v23 = vld [vmem:[%s14477_s1 + $0x2260] sm:$0xff] }
 0x20d   : > { %2660 = vmatprep.subr.mxu1 %v6079_v25  ;;  %2590 = vmatpush2.msra.mxu0 %v6332_v29  ;;  %v1986_v25 = vld [vmem:[#allocation2 + $0x28] sm:$0xfc]  ;;  %v1992_v29 = vld [vmem:[#allocation2 + $0x58] sm:$0x3] }
 0x20e   : > { %2661 = vmatpush2.msra.mxu1 %v6078_v30  ;;  %2591 = vmatprep.subr.mxu0 %v6329_v31  ;;  %v6030_v30 = vld [vmem:[%s14477_s1 + $0x1a70] sm:$0xff]  ;;  %v1985_v31 = vld [vmem:[#allocation2 + $0x20] sm:$0xfc] }
 0x20f   : > { %2662 = vmatprep.subr.mxu1 %v6075_v33  ;;  %2592 = vmatpush2.msra.mxu0 %v6328_v34  ;;  %v1991_v33 = vld [vmem:[#allocation2 + $0x50] sm:$0x3]  ;;  %v6281_v34 = vld [vmem:[%s14477_s1 + $0x2248] sm:$0xff] }
 0x210   : > { %2663 = vmatpush2.msra.mxu1 %v6074_v35  ;;  %2593 = vmatprep.subr.mxu0 %v6325_v36  ;;  %v6027_v35 = vld [vmem:[%s14477_s1 + $0x1a58] sm:$0xff]  ;;  %v6280_v36 = vld [vmem:[%s14477_s1 + $0x2240] sm:$0xff] }
 0x211   : > { %2664 = vmatprep.subr.mxu1 %v6071_v37  ;;  %2594 = vmatpush2.msra.mxu0 %v6324_v38  ;;  %v6026_v37 = vld [vmem:[%s14477_s1 + $0x1a50] sm:$0xff]  ;;  %v2406_v38 = vrot.slane %v1986_v25, 2 }
 0x212   : > { %2665 = vmatpush2.msra.mxu1 %v6070_v2  ;;  %2595 = vmatprep.subr.mxu0 %v6321_v40  ;;  %v2407_v2 = vrot.slane %v1992_v29, 2  ;;  %v10385_v40 = vpop.f32.mrf.mxu1  ;;  %v6118_v25 = vld [vmem:[%s14477_s1 + $0x1d30] sm:$0xff] }
 0x213   : > { %2666 = vmatprep.subr.mxu1 %v6067_v41  ;;  %2596 = vmatpush2.msra.mxu0 %v6320_v4  ;;  %v6277_v41 = vld [vmem:[%s14477_s1 + $0x2228] sm:$0xff]  ;;  %v6023_v4 = vld [vmem:[%s14477_s1 + $0x1a38] sm:$0xff]  ;;  %v6246_v29 = vld [vmem:[%s14477_s1 + $0x2130] sm:$0xff] }
 0x214   : > { %2667 = vmatpush2.msra.mxu1 %v6066_v42  ;;  %2597 = vmatprep.subr.mxu0 %v6317_v43  ;;  %v2403_v42 = vrot.slane %v1985_v31, 2  ;;  %v2404_v43 = vrot.slane %v1991_v33, 2  ;;  %v6243_v31 = vld [vmem:[%s14477_s1 + $0x2118] sm:$0xff]  ;;  %v6114_v33 = vld [vmem:[%s14477_s1 + $0x1d10] sm:$0xff] }
 0x215   : > { %2668 = vmatprep.subr.mxu1 %v6063_v44  ;;  %2598 = vmatpush2.msra.mxu0 %v6316_v45  ;;  %v6276_v44 = vld [vmem:[%s14477_s1 + $0x2220] sm:$0xff]  ;;  %v6022_v45 = vld [vmem:[%s14477_s1 + $0x1a30] sm:$0xff] }
 0x216   : > { %2669 = vmatpush2.msra.mxu1 %v6062_v47  ;;  %2599 = vmatprep.subr.mxu0 %v6313_v48  ;;  %v6273_v47 = vld [vmem:[%s14477_s1 + $0x2208] sm:$0xff]  ;;  %v6019_v48 = vld [vmem:[%s14477_s1 + $0x1a18] sm:$0xff] }
 0x217   : > { %2670 = vmatprep.subr.mxu1 %v6059_v50  ;;  %2600 = vmatpush2.msra.mxu0 %v6312_v6  ;;  %v6272_v6 = vld [vmem:[%s14477_s1 + $0x2200] sm:$0xff] }
 0x218   : > { %2671 = vmatpush2.msra.mxu1 %v6058_v53  ;;  %2601 = vmatprep.subr.mxu0 %v6309_v54  ;;  %v10409_v53 = vsel %vm2390_vm2, %v2406_v38, %v2407_v2  ;;  %v6238_v38 = vld [vmem:[%s14477_s1 + $0x20f0] sm:$0xff]  ;;  %v6107_v2 = vld [vmem:[%s14477_s1 + $0x1cd8] sm:$0xff] }
 0x219   : > { %2672 = vmatprep.subr.mxu1 %v6055_v55  ;;  %2602 = vmatpush2.msra.mxu0 %v6308_v56  ;;  %v6018_v55 = vld [vmem:[%s14477_s1 + $0x1a10] sm:$0xff]  ;;  %v10418_v56 = vsel %vm2390_vm2, %v2403_v42, %v2404_v43  ;;  %v6103_v43 = vld [vmem:[%s14477_s1 + $0x1cb8] sm:$0xff] }
 0x21a   : > { %2673 = vmatpush2.msra.mxu1 %v6054_v24  ;;  %2603 = vmatprep.subr.mxu0 %v6305_v58  ;;  %v6143_v58 = vld [vmem:[%s14477_s1 + $0x1df8] sm:$0xff]  ;;  %v6234_v42 = vld [vmem:[%s14477_s1 + $0x20d0] sm:$0xff] }
 0x21b   : > { %2674 = vmatprep.subr.mxu1 %v6051_v59  ;;  %2604 = vmatpush2.msra.mxu0 %v6304_v27  ;;  %v6142_v27 = vld [vmem:[%s14477_s1 + $0x1df0] sm:$0xff] }
 0x21c   : > { %2675 = vmatpush2.msra.mxu1 %v6050_v63  ;;  %2605 = vmatprep.subr.mxu0 %v6301_v28  ;;  %v6270_v63 = vld [vmem:[%s14477_s1 + $0x21f0] sm:$0xff]  ;;  %v6267_v28 = vld [vmem:[%s14477_s1 + $0x21d8] sm:$0xff] }
 0x21d   : > { %2676 = vmatprep.subr.mxu1 %v6047_v49  ;;  %2606 = vmatpush2.msra.mxu0 %v6300_v0  ;;  %v6138_v49 = vld [vmem:[%s14477_s1 + $0x1dd0] sm:$0xff]  ;;  %v6135_v0 = vld [vmem:[%s14477_s1 + $0x1db8] sm:$0xff] }
 0x21e   : > { %2677 = vmatpush2.msra.mxu1 %v6046_v1  ;;  %2607 = vmatprep.subr.mxu0 %v6297_v51  ;;  %v6263_v1 = vld [vmem:[%s14477_s1 + $0x21b8] sm:$0xff]  ;;  %v6262_v51 = vld [vmem:[%s14477_s1 + $0x21b0] sm:$0xff] }
 0x21f   : > { %2678 = vmatprep.subr.mxu1 %v6043_v5  ;;  %2608 = vmatpush2.msra.mxu0 %v6296_v60  ;;  %v6131_v5 = vld [vmem:[%s14477_s1 + $0x1d98] sm:$0xff] }
 0x220   : > { %2679 = vmatpush2.msra.mxu1 %v6042_v11  ;;  %2609 = vmatprep.subr.mxu0 %v6293_v12  ;;  %v6259_v60 = vld [vmem:[%s14477_s1 + $0x2198] sm:$0xff]  ;;  %v6130_v11 = vld [vmem:[%s14477_s1 + $0x1d90] sm:$0xff] }
 0x221   : > { %2680 = vmatprep.subr.mxu1 %v6039_v62  ;;  %2610 = vmatpush2.msra.mxu0 %v6292_v13  ;;  %v6258_v12 = vld [vmem:[%s14477_s1 + $0x2190] sm:$0xff]  ;;  %v6127_v62 = vld [vmem:[%s14477_s1 + $0x1d78] sm:$0xff] }
 0x222   : > { %2681 = vmatpush2.msra.mxu1 %v6038_v14  ;;  %2611 = vmatprep.subr.mxu0 %v6289_v15  ;;  %v6255_v13 = vld [vmem:[%s14477_s1 + $0x2178] sm:$0xff]  ;;  %v6126_v14 = vld [vmem:[%s14477_s1 + $0x1d70] sm:$0xff] }
 0x223   : > { %2682 = vmatprep.subr.mxu1 %v6035_v16  ;;  %2612 = vmatpush2.msra.mxu0 %v6288_v17  ;;  %v6254_v15 = vld [vmem:[%s14477_s1 + $0x2170] sm:$0xff]  ;;  %v6123_v16 = vld [vmem:[%s14477_s1 + $0x1d58] sm:$0xff] }
 0x224   : > { %2683 = vmatpush2.msra.mxu1 %v6034_v18  ;;  %2613 = vmatprep.subr.mxu0 %v6285_v19  ;;  %v6251_v17 = vld [vmem:[%s14477_s1 + $0x2158] sm:$0xff]  ;;  %v6122_v18 = vld [vmem:[%s14477_s1 + $0x1d50] sm:$0xff] }
 0x225   : > { %2684 = vmatprep.subr.mxu1 %v6031_v20  ;;  %2614 = vmatpush2.msra.mxu0 %v6284_v23  ;;  %v6250_v19 = vld [vmem:[%s14477_s1 + $0x2150] sm:$0xff]  ;;  %v6119_v20 = vld [vmem:[%s14477_s1 + $0x1d38] sm:$0xff] }
 0x226   : > { %2685 = vmatpush2.msra.mxu1 %v6030_v30  ;;  %2615 = vmatprep.subr.mxu0 %v6281_v34  ;;  %v6247_v23 = vld [vmem:[%s14477_s1 + $0x2138] sm:$0xff]  ;;  %v6242_v34 = vld [vmem:[%s14477_s1 + $0x2110] sm:$0xff] }
 0x227   : > { %2686 = vmatprep.subr.mxu1 %v6027_v35  ;;  %2616 = vmatpush2.msra.mxu0 %v6280_v36  ;;  %v6115_v30 = vld [vmem:[%s14477_s1 + $0x1d18] sm:$0xff] }
 0x228   : > { %2687 = vmatpush2.msra.mxu1 %v6026_v37  ;;  %v1834_v50 = vpop.f32.mrf.mxu1  ;;  %2617 = vmatprep.subr.mxu0 %v6277_v41  ;;  %v6111_v35 = vld [vmem:[%s14477_s1 + $0x1cf8] sm:$0xff]  ;;  %v6110_v37 = vld [vmem:[%s14477_s1 + $0x1cf0] sm:$0xff] }
 0x229   : > { %2688 = vmatprep.subr.mxu1 %v6023_v4  ;;  %v10412_v54 = vadd.f32 %v1834_v50, %v9617_v22  ;;  %2618 = vmatpush2.msra.mxu0 %v6276_v44  ;;  %v6271_v22 = vld [vmem:[%s14477_s1 + $0x21f8] sm:$0xff]  ;;  %v6106_v4 = vld [vmem:[%s14477_s1 + $0x1cd0] sm:$0xff] }
 0x22a   : > { %2689 = vmatpush2.msra.mxu1 %v6022_v45  ;;  %v1836_v24 = vpop.f32.mrf.mxu1  ;;  %2619 = vmatprep.subr.mxu0 %v6273_v47  ;;  %v6239_v36 = vld [vmem:[%s14477_s1 + $0x20f8] sm:$0xff]  ;;  %v6102_v45 = vld [vmem:[%s14477_s1 + $0x1cb0] sm:$0xff] }
 0x22b   : > { %2690 = vmatprep.subr.mxu1 %v6019_v48  ;;  %v10424_v59 = vadd.f32 %v1836_v24, %v9625_v32  ;;  %2620 = vmatpush2.msra.mxu0 %v6272_v6  ;;  %v6139_v32 = vld [vmem:[%s14477_s1 + $0x1dd8] sm:$0xff]  ;;  %v6230_v47 = vld [vmem:[%s14477_s1 + $0x20b0] sm:$0xff] }
 0x22c   : > { %2621 = vmatprep.mubr.f32.mxu0 %v10409_v53  ;;  %2691 = vmatpush2.msra.mxu1 %v6018_v55  ;;  %v6235_v41 = vld [vmem:[%s14477_s1 + $0x20d8] sm:$0xff]  ;;  %v6098_v6 = vld [vmem:[%s14477_s1 + $0x1c90] sm:$0xff] }
 0x22d   : > { %2622 = vmatmul.mubr.f32.vlgmr.msra.gmra.mxu0 %v10418_v56  ;;  %2692 = vmatprep.mubr.f32.mxu1 %v10005_v3  ;;  %v6266_v3 = vld [vmem:[%s14477_s1 + $0x21d0] sm:$0xff]  ;;  %v6231_v44 = vld [vmem:[%s14477_s1 + $0x20b8] sm:$0xff] }
 0x22e   : > { %2699 = vmatprep.subr.mxu0 %v6143_v58  ;;  %2770 = vmatprep.subr.mxu1 %v6271_v22  ;;  %v6099_v48 = vld [vmem:[%s14477_s1 + $0x1c98] sm:$0xff]  ;;  %v6226_v55 = vld [vmem:[%s14477_s1 + $0x2090] sm:$0xff] }
 0x22f   : > { %2693 = vmatmul.mubr.f32.vlgmr.msra.gmra.mxu1 %v10014_v9  ;;  %2700 = vmatpush1.msra.mxu0 %v6142_v27  ;;  %v6134_v9 = vld [vmem:[%s14477_s1 + $0x1db0] sm:$0xff]  ;;  %v6227_v50 = vld [vmem:[%s14477_s1 + $0x2098] sm:$0xff] }
 0x230   : > { %2771 = vmatpush1.msra.mxu1 %v6270_v63  ;;  %2701 = vmatprep.subr.mxu0 %v6139_v32  ;;  %v6095_v24 = vld [vmem:[%s14477_s1 + $0x1c78] sm:$0xff]  ;;  %v6094_v22 = vld [vmem:[%s14477_s1 + $0x1c70] sm:$0xff] }
 0x231   : > { %2772 = vmatprep.subr.mxu1 %v6267_v28  ;;  %2702 = vmatpush1.msra.mxu0 %v6138_v49  ;;  %v6223_v58 = vld [vmem:[%s14477_s1 + $0x2078] sm:$0xff]  ;;  %v6222_v27 = vld [vmem:[%s14477_s1 + $0x2070] sm:$0xff] }
 0x232   : > { %2773 = vmatpush1.msra.mxu1 %v6266_v3  ;;  %2703 = vmatprep.subr.mxu0 %v6135_v0  ;;  %v6091_v63 = vld [vmem:[%s14477_s1 + $0x1c58] sm:$0xff]  ;;  %v6090_v28 = vld [vmem:[%s14477_s1 + $0x1c50] sm:$0xff] }
 0x233   : > { %2774 = vmatprep.subr.mxu1 %v6263_v1  ;;  %2704 = vmatpush1.msra.mxu0 %v6134_v9  ;;  %v6219_v32 = vld [vmem:[%s14477_s1 + $0x2058] sm:$0xff]  ;;  %v6218_v49 = vld [vmem:[%s14477_s1 + $0x2050] sm:$0xff] }
 0x234   : > { %2775 = vmatpush1.msra.mxu1 %v6262_v51  ;;  %2705 = vmatprep.subr.mxu0 %v6131_v5  ;;  %v6087_v3 = vld [vmem:[%s14477_s1 + $0x1c38] sm:$0xff]  ;;  %v6086_v1 = vld [vmem:[%s14477_s1 + $0x1c30] sm:$0xff] }
 0x235   : > { %2776 = vmatprep.subr.mxu1 %v6259_v60  ;;  %2706 = vmatpush1.msra.mxu0 %v6130_v11  ;;  %v6215_v0 = vld [vmem:[%s14477_s1 + $0x2038] sm:$0xff]  ;;  %v6214_v9 = vld [vmem:[%s14477_s1 + $0x2030] sm:$0xff] }
 0x236   : > { %2777 = vmatpush1.msra.mxu1 %v6258_v12  ;;  %2707 = vmatprep.subr.mxu0 %v6127_v62  ;;  %v6083_v51 = vld [vmem:[%s14477_s1 + $0x1c18] sm:$0xff]  ;;  %v6082_v60 = vld [vmem:[%s14477_s1 + $0x1c10] sm:$0xff] }
 0x237   : > { %2778 = vmatprep.subr.mxu1 %v6255_v13  ;;  %2708 = vmatpush1.msra.mxu0 %v6126_v14  ;;  %v6211_v5 = vld [vmem:[%s14477_s1 + $0x2018] sm:$0xff]  ;;  %v6210_v11 = vld [vmem:[%s14477_s1 + $0x2010] sm:$0xff] }
 0x238   : > { %2779 = vmatpush1.msra.mxu1 %v6254_v15  ;;  %2709 = vmatprep.subr.mxu0 %v6123_v16  ;;  %v6207_v12 = vld [vmem:[%s14477_s1 + $0x1ff8] sm:$0xff]  ;;  %v6206_v13 = vld [vmem:[%s14477_s1 + $0x1ff0] sm:$0xff] }
 0x239   : > { %2780 = vmatprep.subr.mxu1 %v6251_v17  ;;  %2710 = vmatpush1.msra.mxu0 %v6122_v18  ;;  %v6335_v62 = vld [vmem:[%s14477_s1 + $0x23f8] sm:$0xff]  ;;  %v6334_v14 = vld [vmem:[%s14477_s1 + $0x23f0] sm:$0xff] }
 0x23a   : > { %2781 = vmatpush1.msra.mxu1 %v6250_v19  ;;  %2711 = vmatprep.subr.mxu0 %v6119_v20  ;;  %v6203_v15 = vld [vmem:[%s14477_s1 + $0x1fd8] sm:$0xff]  ;;  %v6202_v17 = vld [vmem:[%s14477_s1 + $0x1fd0] sm:$0xff] }
 0x23b   : > { %2782 = vmatprep.subr.mxu1 %v6247_v23  ;;  %2712 = vmatpush1.msra.mxu0 %v6118_v25  ;;  %v6331_v16 = vld [vmem:[%s14477_s1 + $0x23d8] sm:$0xff]  ;;  %v6330_v18 = vld [vmem:[%s14477_s1 + $0x23d0] sm:$0xff] }
 0x23c   : > { %2783 = vmatpush1.msra.mxu1 %v6246_v29  ;;  %2713 = vmatprep.subr.mxu0 %v6115_v30  ;;  %v6199_v19 = vld [vmem:[%s14477_s1 + $0x1fb8] sm:$0xff]  ;;  %v6198_v23 = vld [vmem:[%s14477_s1 + $0x1fb0] sm:$0xff] }
 0x23d   : > { %2784 = vmatprep.subr.mxu1 %v6243_v31  ;;  %2714 = vmatpush1.msra.mxu0 %v6114_v33  ;;  %v6327_v20 = vld [vmem:[%s14477_s1 + $0x23b8] sm:$0xff]  ;;  %v6326_v25 = vld [vmem:[%s14477_s1 + $0x23b0] sm:$0xff] }
 0x23e   : > { %2785 = vmatpush1.msra.mxu1 %v6242_v34  ;;  %2715 = vmatprep.subr.mxu0 %v6111_v35  ;;  %v6195_v29 = vld [vmem:[%s14477_s1 + $0x1f98] sm:$0xff]  ;;  %v6194_v31 = vld [vmem:[%s14477_s1 + $0x1f90] sm:$0xff] }
 0x23f   : > { %2786 = vmatprep.subr.mxu1 %v6239_v36  ;;  %2716 = vmatpush1.msra.mxu0 %v6110_v37  ;;  %v6323_v30 = vld [vmem:[%s14477_s1 + $0x2398] sm:$0xff]  ;;  %v6322_v33 = vld [vmem:[%s14477_s1 + $0x2390] sm:$0xff] }
 0x240   : > { %2787 = vmatpush1.msra.mxu1 %v6238_v38  ;;  %2717 = vmatprep.subr.mxu0 %v6107_v2  ;;  %v6191_v34 = vld [vmem:[%s14477_s1 + $0x1f78] sm:$0xff]  ;;  %v6190_v36 = vld [vmem:[%s14477_s1 + $0x1f70] sm:$0xff] }
 0x241   : > { %2788 = vmatprep.subr.mxu1 %v6235_v41  ;;  %2718 = vmatpush1.msra.mxu0 %v6106_v4  ;;  %v6319_v35 = vld [vmem:[%s14477_s1 + $0x2378] sm:$0xff]  ;;  %v6318_v37 = vld [vmem:[%s14477_s1 + $0x2370] sm:$0xff] }
 0x242   : > { %2789 = vmatpush1.msra.mxu1 %v6234_v42  ;;  %2719 = vmatprep.subr.mxu0 %v6103_v43  ;;  %v6187_v38 = vld [vmem:[%s14477_s1 + $0x1f58] sm:$0xff]  ;;  %v6186_v41 = vld [vmem:[%s14477_s1 + $0x1f50] sm:$0xff] }
 0x243   : > { %2790 = vmatprep.subr.mxu1 %v6231_v44  ;;  %2720 = vmatpush1.msra.mxu0 %v6102_v45  ;;  %v6315_v2 = vld [vmem:[%s14477_s1 + $0x2358] sm:$0xff]  ;;  %v6314_v4 = vld [vmem:[%s14477_s1 + $0x2350] sm:$0xff] }
 0x244   : > { %2791 = vmatpush1.msra.mxu1 %v6230_v47  ;;  %2721 = vmatprep.subr.mxu0 %v6099_v48  ;;  %v6183_v42 = vld [vmem:[%s14477_s1 + $0x1f38] sm:$0xff]  ;;  %v6182_v44 = vld [vmem:[%s14477_s1 + $0x1f30] sm:$0xff] }
 0x245   : > { %2792 = vmatprep.subr.mxu1 %v6227_v50  ;;  %2722 = vmatpush1.msra.mxu0 %v6098_v6  ;;  %v6311_v43 = vld [vmem:[%s14477_s1 + $0x2338] sm:$0xff]  ;;  %v6310_v45 = vld [vmem:[%s14477_s1 + $0x2330] sm:$0xff] }
 0x246   : > { %2793 = vmatpush1.msra.mxu1 %v6226_v55  ;;  %2723 = vmatprep.subr.mxu0 %v6095_v24  ;;  %v6179_v47 = vld [vmem:[%s14477_s1 + $0x1f18] sm:$0xff]  ;;  %v6178_v50 = vld [vmem:[%s14477_s1 + $0x1f10] sm:$0xff] }
 0x247   : > { %2794 = vmatprep.subr.mxu1 %v6223_v58  ;;  %2724 = vmatpush1.msra.mxu0 %v6094_v22  ;;  %v6307_v48 = vld [vmem:[%s14477_s1 + $0x2318] sm:$0xff]  ;;  %v6306_v6 = vld [vmem:[%s14477_s1 + $0x2310] sm:$0xff]  ;;  %v10721_v58 = vpop.f32.mrf.mxu0 }
 0x248   : > { %2795 = vmatpush1.msra.mxu1 %v6222_v27  ;;  %2725 = vmatprep.subr.mxu0 %v6091_v63  ;;  %v6175_v55 = vld [vmem:[%s14477_s1 + $0x1ef8] sm:$0xff]  ;;  %v6174_v22 = vld [vmem:[%s14477_s1 + $0x1ef0] sm:$0xff] }
 0x249   : > { %2796 = vmatprep.subr.mxu1 %v6219_v32  ;;  %2726 = vmatpush1.msra.mxu0 %v6090_v28  ;;  %v6303_v24 = vld [vmem:[%s14477_s1 + $0x22f8] sm:$0xff]  ;;  %v6302_v27 = vld [vmem:[%s14477_s1 + $0x22f0] sm:$0xff] }
 0x24a   : > { %2797 = vmatpush1.msra.mxu1 %v6218_v49  ;;  %2727 = vmatprep.subr.mxu0 %v6087_v3  ;;  %v6171_v63 = vld [vmem:[%s14477_s1 + $0x1ed8] sm:$0xff]  ;;  %v6170_v28 = vld [vmem:[%s14477_s1 + $0x1ed0] sm:$0xff] }
 0x24b   : > { %2798 = vmatprep.subr.mxu1 %v6215_v0  ;;  %2728 = vmatpush1.msra.mxu0 %v6086_v1  ;;  %v6299_v32 = vld [vmem:[%s14477_s1 + $0x22d8] sm:$0xff]  ;;  %v6298_v49 = vld [vmem:[%s14477_s1 + $0x22d0] sm:$0xff]  ;;  %v10747_v1 = vpop.f32.mrf.mxu0 }
 0x24c   : > { %2799 = vmatpush1.msra.mxu1 %v6214_v9  ;;  %2729 = vmatprep.subr.mxu0 %v6083_v51  ;;  %v6167_v3 = vld [vmem:[%s14477_s1 + $0x1eb8] sm:$0xff]  ;;  %v6166_v9 = vld [vmem:[%s14477_s1 + $0x1eb0] sm:$0xff] }
 0x24d   : > { %2800 = vmatprep.subr.mxu1 %v6211_v5  ;;  %2730 = vmatpush1.msra.mxu0 %v6082_v60  ;;  %v6295_v0 = vld [vmem:[%s14477_s1 + $0x22b8] sm:$0xff]  ;;  %v6294_v51 = vld [vmem:[%s14477_s1 + $0x22b0] sm:$0xff] }
 0x24e   : > { %2801 = vmatpush1.msra.mxu1 %v6210_v11  ;;  %2731 = vmatprep.subr.mxu0 %v6207_v12  ;;  %v6163_v5 = vld [vmem:[%s14477_s1 + $0x1e98] sm:$0xff]  ;;  %v10761_v11 = vpop.f32.mrf.mxu0  ;;  %v6162_v12 = vld [vmem:[%s14477_s1 + $0x1e90] sm:$0xff] }
 0x24f   : > { %2802 = vmatprep.subr.mxu1 %v6335_v62  ;;  %2732 = vmatpush2.msra.mxu0 %v6206_v13  ;;  %v6291_v60 = vld [vmem:[%s14477_s1 + $0x2298] sm:$0xff]  ;;  %v6290_v62 = vld [vmem:[%s14477_s1 + $0x2290] sm:$0xff] }
 0x250   : > { %2803 = vmatpush2.msra.mxu1 %v6334_v14  ;;  %2733 = vmatprep.subr.mxu0 %v6203_v15  ;;  %v6159_v13 = vld [vmem:[%s14477_s1 + $0x1e78] sm:$0xff]  ;;  %v6158_v15 = vld [vmem:[%s14477_s1 + $0x1e70] sm:$0xff] }
 0x251   : > { %2804 = vmatprep.subr.mxu1 %v6331_v16  ;;  %2734 = vmatpush2.msra.mxu0 %v6202_v17  ;;  %v6287_v14 = vld [vmem:[%s14477_s1 + $0x2278] sm:$0xff]  ;;  %v6286_v16 = vld [vmem:[%s14477_s1 + $0x2270] sm:$0xff] }
 0x252   : > { %2805 = vmatpush2.msra.mxu1 %v6330_v18  ;;  %2735 = vmatprep.subr.mxu0 %v6199_v19  ;;  %v6155_v17 = vld [vmem:[%s14477_s1 + $0x1e58] sm:$0xff]  ;;  %v10787_v19 = vpop.f32.mrf.mxu0 }
 0x253   : > { %2806 = vmatprep.subr.mxu1 %v6327_v20  ;;  %2736 = vmatpush2.msra.mxu0 %v6198_v23  ;;  %v6283_v18 = vld [vmem:[%s14477_s1 + $0x2258] sm:$0xff]  ;;  %v6154_v20 = vld [vmem:[%s14477_s1 + $0x1e50] sm:$0xff] }
 0x254   : > { %2807 = vmatpush2.msra.mxu1 %v6326_v25  ;;  %2737 = vmatprep.subr.mxu0 %v6195_v29  ;;  %v6282_v23 = vld [vmem:[%s14477_s1 + $0x2250] sm:$0xff]  ;;  %v6151_v25 = vld [vmem:[%s14477_s1 + $0x1e38] sm:$0xff] }
 0x255   : > { %2808 = vmatprep.subr.mxu1 %v6323_v30  ;;  %2738 = vmatpush2.msra.mxu0 %v6194_v31  ;;  %v6279_v29 = vld [vmem:[%s14477_s1 + $0x2238] sm:$0xff]  ;;  %v6150_v30 = vld [vmem:[%s14477_s1 + $0x1e30] sm:$0xff] }
 0x256   : > { %2809 = vmatpush2.msra.mxu1 %v6322_v33  ;;  %2739 = vmatprep.subr.mxu0 %v6191_v34  ;;  %v6278_v31 = vld [vmem:[%s14477_s1 + $0x2230] sm:$0xff]  ;;  %v6147_v34 = vld [vmem:[%s14477_s1 + $0x1e18] sm:$0xff] }
 0x257   : > { %2810 = vmatprep.subr.mxu1 %v6319_v35  ;;  %2740 = vmatpush2.msra.mxu0 %v6190_v36  ;;  %v6275_v35 = vld [vmem:[%s14477_s1 + $0x2218] sm:$0xff] }
 0x258   : > { %2811 = vmatpush2.msra.mxu1 %v6318_v37  ;;  %2741 = vmatprep.subr.mxu0 %v6187_v38  ;;  %v6146_v37 = vld [vmem:[%s14477_s1 + $0x1e10] sm:$0xff] }
 0x259   : > { %2812 = vmatprep.subr.mxu1 %v6315_v2  ;;  %2742 = vmatpush2.msra.mxu0 %v6186_v41  ;;  %v6274_v41 = vld [vmem:[%s14477_s1 + $0x2210] sm:$0xff] }
 0x25a   : > { %2813 = vmatpush2.msra.mxu1 %v6314_v4  ;;  %2743 = vmatprep.subr.mxu0 %v6183_v42 }
 0x25b   : > { %2814 = vmatprep.subr.mxu1 %v6311_v43  ;;  %2744 = vmatpush2.msra.mxu0 %v6182_v44  ;;  %v6397_v44 = vld [vmem:[%s14479_s3 + $0xde8] sm:$0xff] }
 0x25c   : > { %2815 = vmatpush2.msra.mxu1 %v6310_v45  ;;  %2745 = vmatprep.subr.mxu0 %v6179_v47  ;;  %v6396_v45 = vld [vmem:[%s14479_s3 + $0xde0] sm:$0xff] }
 0x25d   : > { %2816 = vmatprep.subr.mxu1 %v6307_v48  ;;  %2746 = vmatpush2.msra.mxu0 %v6178_v50  ;;  %v6384_v47 = vld [vmem:[%s14479_s3 + $0xd80] sm:$0xff]  ;;  %v6381_v48 = vld [vmem:[%s14479_s3 + $0xd68] sm:$0xff] }
 0x25e   : > { %2817 = vmatpush2.msra.mxu1 %v6306_v6  ;;  %2747 = vmatprep.subr.mxu0 %v6175_v55  ;;  %v6380_v50 = vld [vmem:[%s14479_s3 + $0xd60] sm:$0xff]  ;;  %v6377_v6 = vld [vmem:[%s14479_s3 + $0xd48] sm:$0xff] }
 0x25f   : > { %2818 = vmatprep.subr.mxu1 %v6303_v24  ;;  %2748 = vmatpush2.msra.mxu0 %v6174_v22  ;;  %v6376_v55 = vld [vmem:[%s14479_s3 + $0xd40] sm:$0xff]  ;;  %v6373_v24 = vld [vmem:[%s14479_s3 + $0xd28] sm:$0xff] }
 0x260   : > { %2819 = vmatpush2.msra.mxu1 %v6302_v27  ;;  %2749 = vmatprep.subr.mxu0 %v6171_v63  ;;  %v6372_v22 = vld [vmem:[%s14479_s3 + $0xd20] sm:$0xff]  ;;  %v6369_v27 = vld [vmem:[%s14479_s3 + $0xd08] sm:$0xff] }
 0x261   : > { %2820 = vmatprep.subr.mxu1 %v6299_v32  ;;  %2750 = vmatpush2.msra.mxu0 %v6170_v28  ;;  %v6368_v63 = vld [vmem:[%s14479_s3 + $0xd00] sm:$0xff]  ;;  %v6365_v32 = vld [vmem:[%s14479_s3 + $0xce8] sm:$0xff] }
 0x262   : > { %2821 = vmatpush2.msra.mxu1 %v6298_v49  ;;  %2751 = vmatprep.subr.mxu0 %v6167_v3  ;;  %v6364_v28 = vld [vmem:[%s14479_s3 + $0xce0] sm:$0xff]  ;;  %v6361_v49 = vld [vmem:[%s14479_s3 + $0xcc8] sm:$0xff] }
 0x263   : > { %2822 = vmatprep.subr.mxu1 %v6295_v0  ;;  %2752 = vmatpush2.msra.mxu0 %v6166_v9  ;;  %v6360_v3 = vld [vmem:[%s14479_s3 + $0xcc0] sm:$0xff]  ;;  %v6357_v0 = vld [vmem:[%s14479_s3 + $0xca8] sm:$0xff] }
 0x264   : > { %2823 = vmatpush2.msra.mxu1 %v6294_v51  ;;  %2753 = vmatprep.subr.mxu0 %v6163_v5  ;;  %v6356_v9 = vld [vmem:[%s14479_s3 + $0xca0] sm:$0xff]  ;;  %v6353_v51 = vld [vmem:[%s14479_s3 + $0xc88] sm:$0xff] }
 0x265   : > { %2824 = vmatprep.subr.mxu1 %v6291_v60  ;;  %2754 = vmatpush2.msra.mxu0 %v6162_v12  ;;  %v6525_v5 = vld [vmem:[%s14479_s3 + $0x11e8] sm:$0xff]  ;;  %v6352_v60 = vld [vmem:[%s14479_s3 + $0xc80] sm:$0xff] }
 0x266   : > { %2825 = vmatpush2.msra.mxu1 %v6290_v62  ;;  %2755 = vmatprep.subr.mxu0 %v6159_v13  ;;  %v6524_v12 = vld [vmem:[%s14479_s3 + $0x11e0] sm:$0xff]  ;;  %v6349_v62 = vld [vmem:[%s14479_s3 + $0xc68] sm:$0xff] }
 0x267   : > { %2826 = vmatprep.subr.mxu1 %v6287_v14  ;;  %2756 = vmatpush2.msra.mxu0 %v6158_v15  ;;  %v6521_v13 = vld [vmem:[%s14479_s3 + $0x11c8] sm:$0xff]  ;;  %v6348_v14 = vld [vmem:[%s14479_s3 + $0xc60] sm:$0xff] }
 0x268   : > { %2827 = vmatpush2.msra.mxu1 %v6286_v16  ;;  %2757 = vmatprep.subr.mxu0 %v6155_v17  ;;  %v6520_v15 = vld [vmem:[%s14479_s3 + $0x11c0] sm:$0xff]  ;;  %v6517_v16 = vld [vmem:[%s14479_s3 + $0x11a8] sm:$0xff] }
 0x269   : > { %2828 = vmatprep.subr.mxu1 %v6283_v18  ;;  %v1905_v33 = vpop.f32.mrf.mxu0  ;;  %2758 = vmatpush2.msra.mxu0 %v6154_v20  ;;  %v6345_v17 = vld [vmem:[%s14479_s3 + $0xc48] sm:$0xff]  ;;  %v6516_v18 = vld [vmem:[%s14479_s3 + $0x11a0] sm:$0xff] }
 0x26a   : > { %2829 = vmatpush2.msra.mxu1 %v6282_v23  ;;  %v1906_v36 = vadd.f32 %v1905_v33, %v10412_v54  ;;  %2759 = vmatprep.subr.mxu0 %v6151_v25  ;;  %v6344_v20 = vld [vmem:[%s14479_s3 + $0xc40] sm:$0xff]  ;;  %v6513_v23 = vld [vmem:[%s14479_s3 + $0x1188] sm:$0xff] }
 0x26b   : > { %2830 = vmatprep.subr.mxu1 %v6279_v29  ;;  %v1976_v38 = vpop.f32.mrf.mxu1  ;;  %v1907_v2 = vpop.f32.mrf.mxu0  ;;  %2760 = vmatpush2.msra.mxu0 %v6150_v30  ;;  %v6341_v25 = vld [vmem:[%s14479_s3 + $0xc28] sm:$0xff]  ;;  %v6512_v29 = vld [vmem:[%s14479_s3 + $0x1180] sm:$0xff] }
 0x26c   : > { %2831 = vmatpush2.msra.mxu1 %v6278_v31  ;;  %v10820_v4 = vadd.f32 %v1976_v38, %v1906_v36  ;;  %v1908_v42 = vadd.f32 %v1907_v2, %v10424_v59  ;;  %2761 = vmatprep.subr.mxu0 %v6147_v34  ;;  %v6392_v59 = vld [vmem:[%s14479_s3 + $0xdc0] sm:$0xff]  ;;  %v6509_v31 = vld [vmem:[%s14479_s3 + $0x1168] sm:$0xff] }
 0x26d   : > { %2832 = vmatprep.subr.mxu1 %v6275_v35  ;;  %v1978_v54 = vpop.f32.mrf.mxu1  ;;  %2762 = vmatpush2.msra.mxu0 %v6146_v37  ;;  %v6340_v30 = vld [vmem:[%s14479_s3 + $0xc20] sm:$0xff]  ;;  %v6337_v33 = vld [vmem:[%s14479_s3 + $0xc08] sm:$0xff] }
 0x26e   : > { %2763 = vmatprep.mubr.f32.mxu0 %v10011_v7  ;;  %v10824_v43 = vadd.f32 %v1978_v54, %v1908_v42  ;;  %2833 = vmatpush2.msra.mxu1 %v6274_v41  ;;  %v6393_v7 = vld [vmem:[%s14479_s3 + $0xdc8] sm:$0xff]  ;;  %v6508_v34 = vld [vmem:[%s14479_s3 + $0x1160] sm:$0xff] }
 0x26f   : > { %2834 = vmatprep.mubr.f32.mxu1 %v10409_v53  ;;  %2764 = vmatmul.mubr.f32.vlgmr.msra.gmra.mxu0 %v10017_v10  ;;  %v6389_v53 = vld [vmem:[%s14479_s3 + $0xda8] sm:$0xff]  ;;  %v6388_v10 = vld [vmem:[%s14479_s3 + $0xda0] sm:$0xff] }
 0x270   : > { %2835 = vmatmul.mubr.f32.vlgmr.msra.gmra.mxu1 %v10418_v56  ;;  %3727 = vmatprep.subr.mxu0 %v6397_v44  ;;  %v6385_v56 = vld [vmem:[%s14479_s3 + $0xd88] sm:$0xff]  ;;  %v6336_v35 = vld [vmem:[%s14479_s3 + $0xc00] sm:$0xff] }
 0x271   : > { %3728 = vmatpush1.msra.mxu0 %v6396_v45  ;;  %3798 = vmatprep.subr.mxu1 %v6525_v5  ;;  %v6505_v36 = vld [vmem:[%s14479_s3 + $0x1148] sm:$0xff]  ;;  %v6504_v38 = vld [vmem:[%s14479_s3 + $0x1140] sm:$0xff] }
 0x272   : > { %3729 = vmatprep.subr.mxu0 %v6393_v7  ;;  %3799 = vmatpush1.msra.mxu1 %v6524_v12  ;;  %v6461_v37 = vld [vmem:[%s14479_s3 + $0xfe8] sm:$0xff]  ;;  %v6460_v2 = vld [vmem:[%s14479_s3 + $0xfe0] sm:$0xff] }
 0x273   : > { %3730 = vmatpush1.msra.mxu0 %v6392_v59  ;;  %3800 = vmatprep.subr.mxu1 %v6521_v13  ;;  %v6501_v41 = vld [vmem:[%s14479_s3 + $0x1128] sm:$0xff]  ;;  %v6500_v54 = vld [vmem:[%s14479_s3 + $0x1120] sm:$0xff] }
 0x274   : > { %3731 = vmatprep.subr.mxu0 %v6389_v53  ;;  %3801 = vmatpush1.msra.mxu1 %v6520_v15  ;;  %v6457_v42 = vld [vmem:[%s14479_s3 + $0xfc8] sm:$0xff]  ;;  %v6456_v44 = vld [vmem:[%s14479_s3 + $0xfc0] sm:$0xff] }
 0x275   : > { %3732 = vmatpush1.msra.mxu0 %v6388_v10  ;;  %3802 = vmatprep.subr.mxu1 %v6517_v16  ;;  %v6497_v45 = vld [vmem:[%s14479_s3 + $0x1108] sm:$0xff]  ;;  %v6496_v59 = vld [vmem:[%s14479_s3 + $0x1100] sm:$0xff] }
 0x276   : > { %3733 = vmatprep.subr.mxu0 %v6385_v56  ;;  %3803 = vmatpush1.msra.mxu1 %v6516_v18  ;;  %v6453_v7 = vld [vmem:[%s14479_s3 + $0xfa8] sm:$0xff]  ;;  %v6452_v53 = vld [vmem:[%s14479_s3 + $0xfa0] sm:$0xff] }
 0x277   : > { %3734 = vmatpush1.msra.mxu0 %v6384_v47  ;;  %3804 = vmatprep.subr.mxu1 %v6513_v23  ;;  %v6493_v10 = vld [vmem:[%s14479_s3 + $0x10e8] sm:$0xff]  ;;  %v6492_v47 = vld [vmem:[%s14479_s3 + $0x10e0] sm:$0xff] }
 0x278   : > { %3735 = vmatprep.subr.mxu0 %v6381_v48  ;;  %3805 = vmatpush1.msra.mxu1 %v6512_v29  ;;  %v6449_v56 = vld [vmem:[%s14479_s3 + $0xf88] sm:$0xff]  ;;  %v6448_v48 = vld [vmem:[%s14479_s3 + $0xf80] sm:$0xff] }
 0x279   : > { %3736 = vmatpush1.msra.mxu0 %v6380_v50  ;;  %3806 = vmatprep.subr.mxu1 %v6509_v31  ;;  %v6489_v50 = vld [vmem:[%s14479_s3 + $0x10c8] sm:$0xff]  ;;  %v6476_v5 = vld [vmem:[%s14479_s3 + $0x1060] sm:$0xff] }
 0x27a   : > { %3737 = vmatprep.subr.mxu0 %v6377_v6  ;;  %3807 = vmatpush1.msra.mxu1 %v6508_v34  ;;  %v6445_v6 = vld [vmem:[%s14479_s3 + $0xf68] sm:$0xff]  ;;  %v6472_v13 = vld [vmem:[%s14479_s3 + $0x1040] sm:$0xff] }
 0x27b   : > { %3738 = vmatpush1.msra.mxu0 %v6376_v55  ;;  %3808 = vmatprep.subr.mxu1 %v6505_v36  ;;  %v6488_v55 = vld [vmem:[%s14479_s3 + $0x10c0] sm:$0xff]  ;;  %v6473_v12 = vld [vmem:[%s14479_s3 + $0x1048] sm:$0xff] }
 0x27c   : > { %3739 = vmatprep.subr.mxu0 %v6373_v24  ;;  %3809 = vmatpush1.msra.mxu1 %v6504_v38  ;;  %v6444_v24 = vld [vmem:[%s14479_s3 + $0xf60] sm:$0xff]  ;;  %v6469_v15 = vld [vmem:[%s14479_s3 + $0x1028] sm:$0xff] }
 0x27d   : > { %3740 = vmatpush1.msra.mxu0 %v6372_v22  ;;  %3810 = vmatprep.subr.mxu1 %v6501_v41  ;;  %v6485_v22 = vld [vmem:[%s14479_s3 + $0x10a8] sm:$0xff]  ;;  %v6424_v18 = vld [vmem:[%s14479_s3 + $0xec0] sm:$0xff] }
 0x27e   : > { %3741 = vmatprep.subr.mxu0 %v6369_v27  ;;  %3811 = vmatpush1.msra.mxu1 %v6500_v54  ;;  %v6441_v27 = vld [vmem:[%s14479_s3 + $0xf48] sm:$0xff]  ;;  %v6420_v29 = vld [vmem:[%s14479_s3 + $0xea0] sm:$0xff] }
 0x27f   : > { %3742 = vmatpush1.msra.mxu0 %v6368_v63  ;;  %3812 = vmatprep.subr.mxu1 %v6497_v45  ;;  %v6484_v63 = vld [vmem:[%s14479_s3 + $0x10a0] sm:$0xff]  ;;  %v6425_v16 = vld [vmem:[%s14479_s3 + $0xec8] sm:$0xff] }
 0x280   : > { %3743 = vmatprep.subr.mxu0 %v6365_v32  ;;  %3813 = vmatpush1.msra.mxu1 %v6496_v59  ;;  %v6440_v32 = vld [vmem:[%s14479_s3 + $0xf40] sm:$0xff]  ;;  %v6421_v23 = vld [vmem:[%s14479_s3 + $0xea8] sm:$0xff] }
 0x281   : > { %3744 = vmatpush1.msra.mxu0 %v6364_v28  ;;  %3814 = vmatprep.subr.mxu1 %v6493_v10  ;;  %v6481_v28 = vld [vmem:[%s14479_s3 + $0x1088] sm:$0xff]  ;;  %v6416_v34 = vld [vmem:[%s14479_s3 + $0xe80] sm:$0xff] }
 0x282   : > { %3745 = vmatprep.subr.mxu0 %v6361_v49  ;;  %3815 = vmatpush1.msra.mxu1 %v6492_v47  ;;  %v6437_v49 = vld [vmem:[%s14479_s3 + $0xf28] sm:$0xff]  ;;  %v6412_v38 = vld [vmem:[%s14479_s3 + $0xe60] sm:$0xff] }
 0x283   : > { %3746 = vmatpush1.msra.mxu0 %v6360_v3  ;;  %3816 = vmatprep.subr.mxu1 %v6489_v50  ;;  %v6480_v3 = vld [vmem:[%s14479_s3 + $0x1080] sm:$0xff]  ;;  %v6417_v31 = vld [vmem:[%s14479_s3 + $0xe88] sm:$0xff] }
 0x284   : > { %3747 = vmatprep.subr.mxu0 %v6357_v0  ;;  %3817 = vmatpush1.msra.mxu1 %v6488_v55  ;;  %v6436_v0 = vld [vmem:[%s14479_s3 + $0xf20] sm:$0xff]  ;;  %v6413_v36 = vld [vmem:[%s14479_s3 + $0xe68] sm:$0xff] }
 0x285   : > { %3748 = vmatpush1.msra.mxu0 %v6356_v9  ;;  %3818 = vmatprep.subr.mxu1 %v6485_v22  ;;  %v6477_v9 = vld [vmem:[%s14479_s3 + $0x1068] sm:$0xff]  ;;  %v6408_v54 = vld [vmem:[%s14479_s3 + $0xe40] sm:$0xff] }
 0x286   : > { %3749 = vmatprep.subr.mxu0 %v6353_v51  ;;  %3819 = vmatpush1.msra.mxu1 %v6484_v63  ;;  %v6433_v51 = vld [vmem:[%s14479_s3 + $0xf08] sm:$0xff] }
 0x287   : > { %3750 = vmatpush1.msra.mxu0 %v6352_v60  ;;  %3820 = vmatprep.subr.mxu1 %v6481_v28  ;;  %v6432_v60 = vld [vmem:[%s14479_s3 + $0xf00] sm:$0xff]  ;;  %v6409_v41 = vld [vmem:[%s14479_s3 + $0xe48] sm:$0xff] }
 0x288   : > { %3751 = vmatprep.subr.mxu0 %v6349_v62  ;;  %3821 = vmatpush1.msra.mxu1 %v6480_v3  ;;  %v6429_v62 = vld [vmem:[%s14479_s3 + $0xee8] sm:$0xff] }
 0x289   : > { %3752 = vmatpush1.msra.mxu0 %v6348_v14  ;;  %3822 = vmatprep.subr.mxu1 %v6477_v9  ;;  %v6428_v14 = vld [vmem:[%s14479_s3 + $0xee0] sm:$0xff]  ;;  %v6405_v45 = vld [vmem:[%s14479_s3 + $0xe28] sm:$0xff] }
 0x28a   : > { %3753 = vmatprep.subr.mxu0 %v6345_v17  ;;  %3823 = vmatpush1.msra.mxu1 %v6476_v5  ;;  %v6468_v17 = vld [vmem:[%s14479_s3 + $0x1020] sm:$0xff]  ;;  %v6401_v59 = vld [vmem:[%s14479_s3 + $0xe08] sm:$0xff] }
 0x28b   : > { %3754 = vmatpush1.msra.mxu0 %v6344_v20  ;;  %3824 = vmatprep.subr.mxu1 %v6473_v12  ;;  %v6465_v20 = vld [vmem:[%s14479_s3 + $0x1008] sm:$0xff] }
 0x28c   : > { %3755 = vmatprep.subr.mxu0 %v6341_v25  ;;  %3825 = vmatpush1.msra.mxu1 %v6472_v13  ;;  %v6464_v25 = vld [vmem:[%s14479_s3 + $0x1000] sm:$0xff]  ;;  %v6653_v10 = vld [vmem:[%s14479_s3 + $0x15e8] sm:$0xff] }
 0x28d   : > { %3756 = vmatpush1.msra.mxu0 %v6340_v30  ;;  %3826 = vmatprep.subr.mxu1 %v6469_v15  ;;  %v6589_v30 = vld [vmem:[%s14479_s3 + $0x13e8] sm:$0xff] }
 0x28e   : > { %3757 = vmatprep.subr.mxu0 %v6337_v33  ;;  %3827 = vmatpush1.msra.mxu1 %v6468_v17  ;;  %v6588_v33 = vld [vmem:[%s14479_s3 + $0x13e0] sm:$0xff]  ;;  %v6573_v47 = vld [vmem:[%s14479_s3 + $0x1368] sm:$0xff]  ;;  %v6399_v17 = vld [vmem:[%s14479_s3 + $0xdf8] sm:$0xff] }
 0x28f   : > { %3758 = vmatpush1.msra.mxu0 %v6336_v35  ;;  %3828 = vmatprep.subr.mxu1 %v6465_v20  ;;  %v6585_v35 = vld [vmem:[%s14479_s3 + $0x13c8] sm:$0xff]  ;;  %v1269_v20 = vadd.f32 %v9557_v61, %v9543_v57  ;;  %v11234_v57 = vld [vmem:[%s14478_s2] sm:$0xf] }
 0x290   : > { %3759 = vmatprep.subr.mxu0 %v6461_v37  ;;  %3829 = vmatpush1.msra.mxu1 %v6464_v25  ;;  %v6584_v37 = vld [vmem:[%s14479_s3 + $0x13c0] sm:$0xff]  ;;  %v6569_v50 = vld [vmem:[%s14479_s3 + $0x1348] sm:$0xff]  ;;  %v11225_v25 = vshrl.u32 %v266_v39, 7 }
 0x291   : > { %3760 = vmatpush2.msra.mxu0 %v6460_v2  ;;  %3830 = vmatprep.subr.mxu1 %v6589_v30  ;;  %v6581_v2 = vld [vmem:[%s14479_s3 + $0x13a8] sm:$0xff] }
 0x292   : > { %3761 = vmatprep.subr.mxu0 %v6457_v42  ;;  %3831 = vmatpush2.msra.mxu1 %v6588_v33  ;;  %v6580_v42 = vld [vmem:[%s14479_s3 + $0x13a0] sm:$0xff]  ;;  %v6565_v55 = vld [vmem:[%s14479_s3 + $0x1328] sm:$0xff] }
 0x293   : > { %3762 = vmatpush2.msra.mxu0 %v6456_v44  ;;  %3832 = vmatprep.subr.mxu1 %v6585_v35  ;;  %v6577_v44 = vld [vmem:[%s14479_s3 + $0x1388] sm:$0xff]  ;;  %v2849_v35 = vsub.s32 0, %v11225_v25 }
 0x294   : > { %3763 = vmatprep.subr.mxu0 %v6453_v7  ;;  %3833 = vmatpush2.msra.mxu1 %v6584_v37  ;;  %v6404_v7 = vld [vmem:[%s14479_s3 + $0xe20] sm:$0xff]  ;;  %v6561_v22 = vld [vmem:[%s14479_s3 + $0x1308] sm:$0xff] }
 0x295   : > { %3764 = vmatpush2.msra.mxu0 %v6452_v53  ;;  %3834 = vmatprep.subr.mxu1 %v6581_v2  ;;  %v6400_v53 = vld [vmem:[%s14479_s3 + $0xe00] sm:$0xff]  ;;  %v6557_v63 = vld [vmem:[%s14479_s3 + $0x12e8] sm:$0xff] }
 0x296   : > { %3765 = vmatprep.subr.mxu0 %v6449_v56  ;;  %3835 = vmatpush2.msra.mxu1 %v6580_v42  ;;  %v6576_v56 = vld [vmem:[%s14479_s3 + $0x1380] sm:$0xff]  ;;  %v6553_v28 = vld [vmem:[%s14479_s3 + $0x12c8] sm:$0xff] }
 0x297   : > { %3766 = vmatpush2.msra.mxu0 %v6448_v48  ;;  %3836 = vmatprep.subr.mxu1 %v6577_v44  ;;  %v6572_v48 = vld [vmem:[%s14479_s3 + $0x1360] sm:$0xff]  ;;  %v6549_v3 = vld [vmem:[%s14479_s3 + $0x12a8] sm:$0xff]  ;;  %v11247_v44 = vstv %s303_s18 }
 0x298   : > { %3767 = vmatprep.subr.mxu0 %v6445_v6  ;;  %3837 = vmatpush2.msra.mxu1 %v6576_v56  ;;  %v6568_v6 = vld [vmem:[%s14479_s3 + $0x1340] sm:$0xff]  ;;  %v6545_v9 = vld [vmem:[%s14479_s3 + $0x1288] sm:$0xff] }
 0x299   : > { %3768 = vmatpush2.msra.mxu0 %v6444_v24  ;;  %3838 = vmatprep.subr.mxu1 %v6573_v47  ;;  %v6564_v24 = vld [vmem:[%s14479_s3 + $0x1320] sm:$0xff]  ;;  %v6541_v5 = vld [vmem:[%s14479_s3 + $0x1268] sm:$0xff] }
 0x29a   : > { %3769 = vmatprep.subr.mxu0 %v6441_v27  ;;  %3839 = vmatpush2.msra.mxu1 %v6572_v48  ;;  %v6560_v27 = vld [vmem:[%s14479_s3 + $0x1300] sm:$0xff]  ;;  %v6537_v12 = vld [vmem:[%s14479_s3 + $0x1248] sm:$0xff]  ;;  %v3300_v48 = vld [vmem:[#allocation2 + $0x30] sm:$0x1] }
 0x29b   : > { %3770 = vmatpush2.msra.mxu0 %v6440_v32  ;;  %3840 = vmatprep.subr.mxu1 %v6569_v50  ;;  %v6556_v32 = vld [vmem:[%s14479_s3 + $0x12e0] sm:$0xff]  ;;  %v6533_v13 = vld [vmem:[%s14479_s3 + $0x1228] sm:$0xff] }
 0x29c   : > { %3771 = vmatprep.subr.mxu0 %v6437_v49  ;;  %3841 = vmatpush2.msra.mxu1 %v6568_v6  ;;  %v6552_v49 = vld [vmem:[%s14479_s3 + $0x12c0] sm:$0xff]  ;;  %v6529_v15 = vld [vmem:[%s14479_s3 + $0x1208] sm:$0xff]  ;;  %v3305_v6 = vld [vmem:[#allocation2 + $0x58] sm:$0x1] }
 0x29d   : > { %3772 = vmatpush2.msra.mxu0 %v6436_v0  ;;  %3842 = vmatprep.subr.mxu1 %v6565_v55  ;;  %v6548_v0 = vld [vmem:[%s14479_s3 + $0x12a0] sm:$0xff]  ;;  %v3299_v50 = vld [vmem:[#allocation2 + $0x28] sm:$0xfe] }
 0x29e   : > { %3773 = vmatprep.subr.mxu0 %v6433_v51  ;;  %3843 = vmatpush2.msra.mxu1 %v6564_v24  ;;  %v6544_v51 = vld [vmem:[%s14479_s3 + $0x1280] sm:$0xff]  ;;  %v3704_v24 = vrot.slane %v3300_v48, 1 }
 0x29f   : > { %3774 = vmatpush2.msra.mxu0 %v6432_v60  ;;  %3844 = vmatprep.subr.mxu1 %v6561_v22  ;;  %v6540_v60 = vld [vmem:[%s14479_s3 + $0x1260] sm:$0xff]  ;;  %v3718_v22 = vrot.slane %v3299_v50, 1 }
 0x2a0   : > { %3775 = vmatprep.subr.mxu0 %v6429_v62  ;;  %3845 = vmatpush2.msra.mxu1 %v6560_v27  ;;  %v6536_v62 = vld [vmem:[%s14479_s3 + $0x1240] sm:$0xff]  ;;  %v3719_v27 = vrot.slane %v3305_v6, 1  ;;  %v6693_v6 = vld [vmem:[%s14479_s3 + $0x1728] sm:$0xff] }
 0x2a1   : > { %3776 = vmatpush2.msra.mxu0 %v6428_v14  ;;  %3846 = vmatprep.subr.mxu1 %v6557_v63  ;;  %v6532_v14 = vld [vmem:[%s14479_s3 + $0x1220] sm:$0xff] }
 0x2a2   : > { %3777 = vmatprep.subr.mxu0 %v6425_v16  ;;  %3847 = vmatpush2.msra.mxu1 %v6556_v32  ;;  %v6528_v16 = vld [vmem:[%s14479_s3 + $0x1200] sm:$0xff] }
 0x2a3   : > { %3778 = vmatpush2.msra.mxu0 %v6424_v18  ;;  %3848 = vmatprep.subr.mxu1 %v6553_v28  ;;  %v1267_v18 = vadd.f32 %v9529_v52, %v9515_v46  ;;  %v3294_v47 = vld [vmem:[#allocation2] sm:$0xfe] }
 0x2a4   : > { %3779 = vmatprep.subr.mxu0 %v6421_v23  ;;  %3849 = vmatpush2.msra.mxu1 %v6552_v49  ;;  %v3703_v55 = vrot.slane %v3294_v47, 1  ;;  %v6697_v47 = vld [vmem:[%s14479_s3 + $0x1748] sm:$0xff]  ;;  %v6696_v48 = vld [vmem:[%s14479_s3 + $0x1740] sm:$0xff] }
 0x2a5   : > { %3780 = vmatpush2.msra.mxu0 %v6420_v29  ;;  %3850 = vmatprep.subr.mxu1 %v6549_v3  ;;  %v1338_v23 = vadd.f32 %v9559_v26, %v1267_v18  ;;  %v1340_v29 = vadd.f32 %v9585_v8, %v1269_v20  ;;  %v2853_v26 = vsub.s32 1, %v11225_v25  ;;  %v6632_v18 = vld [vmem:[%s14479_s3 + $0x1540] sm:$0xff]  ;;  %v6629_v20 = vld [vmem:[%s14479_s3 + $0x1528] sm:$0xff] }
 0x2a6   : > { %3781 = vmatprep.subr.mxu0 %v6417_v31  ;;  %3851 = vmatpush2.msra.mxu1 %v6548_v0  ;;  %v11252_v3 = vsel %vm1104_vm0, %v3703_v55, %v3704_v24  ;;  %v2857_v55 = vsub.s32 2, %v11225_v25  ;;  %v6692_v24 = vld [vmem:[%s14479_s3 + $0x1720] sm:$0xff] }
 0x2a7   : > { %3782 = vmatpush2.msra.mxu0 %v6416_v34  ;;  %3852 = vmatprep.subr.mxu1 %v6545_v9  ;;  %v1622_v33 = vadd.f32 %v10721_v58, %v1338_v23  ;;  %v1624_v34 = vadd.f32 %v10747_v1, %v1340_v29  ;;  %v6652_v9 = vld [vmem:[%s14479_s3 + $0x15e0] sm:$0xff]  ;;  %v6625_v29 = vld [vmem:[%s14479_s3 + $0x1508] sm:$0xff] }
 0x2a8   : > { %3783 = vmatprep.subr.mxu0 %v6413_v36  ;;  %3853 = vmatpush2.msra.mxu1 %v6544_v51  ;;  %v11261_v51 = vsel %vm1104_vm0, %v3718_v22, %v3719_v27  ;;  %v6628_v23 = vld [vmem:[%s14479_s3 + $0x1520] sm:$0xff] }
 0x2a9   : > { %3784 = vmatpush2.msra.mxu0 %v6412_v38  ;;  %3854 = vmatprep.subr.mxu1 %v6541_v5  ;;  %v1693_v39 = vadd.f32 %v10365_v21, %v1622_v33  ;;  %v1695_v8 = vadd.f32 %v10385_v40, %v1624_v34  ;;  %v2850_v38 = vrot.slane %v11234_v57, %v2849_v35  ;;  %v6649_v5 = vld [vmem:[%s14479_s3 + $0x15c8] sm:$0xff]  ;;  %v6620_v33 = vld [vmem:[%s14479_s3 + $0x14e0] sm:$0xff] }
 0x2aa   : > { %3785 = vmatprep.subr.mxu0 %v6409_v41  ;;  %3855 = vmatpush2.msra.mxu1 %v6540_v60  ;;  %v2854_v21 = vrot.slane %v11234_v57, %v2853_v26  ;;  %v6648_v60 = vld [vmem:[%s14479_s3 + $0x15c0] sm:$0xff]  ;;  %v6617_v34 = vld [vmem:[%s14479_s3 + $0x14c8] sm:$0xff] }
 0x2ab   : > { %3786 = vmatpush2.msra.mxu0 %v6408_v54  ;;  %3856 = vmatprep.subr.mxu1 %v6537_v12  ;;  %v2481_v30 = vpop.f32.mrf.mxu0  ;;  %v1764_v1 = vadd.f32 %v10761_v11, %v1693_v39  ;;  %v1766_v41 = vadd.f32 %v10787_v19, %v1695_v8  ;;  %v6645_v12 = vld [vmem:[%s14479_s3 + $0x15a8] sm:$0xff]  ;;  %v6612_v39 = vld [vmem:[%s14479_s3 + $0x14a0] sm:$0xff] }
 0x2ac   : > { %3787 = vmatprep.subr.mxu0 %v6405_v45  ;;  %3857 = vmatpush2.msra.mxu1 %v6536_v62  ;;  %v2552_v31 = vpop.f32.mrf.mxu1  ;;  %v6644_v62 = vld [vmem:[%s14479_s3 + $0x15a0] sm:$0xff] }
 0x2ad   : > { %3788 = vmatpush2.msra.mxu0 %v6404_v7  ;;  %3858 = vmatprep.subr.mxu1 %v6533_v13  ;;  %v2483_v46 = vpop.f32.mrf.mxu0  ;;  %v2553_v61 = vadd.f32 %v2552_v31, %v2481_v30  ;;  %v6641_v13 = vld [vmem:[%s14479_s3 + $0x1588] sm:$0xff]  ;;  %v6624_v30 = vld [vmem:[%s14479_s3 + $0x1500] sm:$0xff] }
 0x2ae   : > { %3789 = vmatprep.subr.mxu0 %v6401_v59  ;;  %3859 = vmatpush2.msra.mxu1 %v6532_v14  ;;  %v2554_v52 = vpop.f32.mrf.mxu1  ;;  %v6640_v14 = vld [vmem:[%s14479_s3 + $0x1580] sm:$0xff]  ;;  %v6621_v31 = vld [vmem:[%s14479_s3 + $0x14e8] sm:$0xff] }
 0x2af   : > { %3790 = vmatpush2.msra.mxu0 %v6400_v53  ;;  %3860 = vmatprep.subr.mxu1 %v6529_v15  ;;  %v2555_v36 = vadd.f32 %v2554_v52, %v2483_v46  ;;  %v6637_v15 = vld [vmem:[%s14479_s3 + $0x1568] sm:$0xff]  ;;  %v6616_v46 = vld [vmem:[%s14479_s3 + $0x14c0] sm:$0xff] }
 0x2b0   : > { %3869 = vmatprep.subr.mxu0 %v6653_v10  ;;  %3861 = vmatpush2.msra.mxu1 %v6528_v16  ;;  %v6636_v16 = vld [vmem:[%s14479_s3 + $0x1560] sm:$0xff]  ;;  %v6613_v52 = vld [vmem:[%s14479_s3 + $0x14a8] sm:$0xff] }
 0x2b1   : > { %3940 = vmatprep.subr.mxu1 %v6399_v17  ;;  %v6633_v17 = vld [vmem:[%s14479_s3 + $0x1548] sm:$0xff]  ;;  %v6608_v8 = vld [vmem:[%s14479_s3 + $0x1480] sm:$0xff] }
 0x2ed   : > { %v2623_v58 = vpop.f32.mrf.mxu0 }
 0x2ee   : > { %v2624_v37 = vadd.f32 %v2623_v58, %v2553_v61  ;;  %v6609_v61 = vld [vmem:[%s14479_s3 + $0x1488] sm:$0xff] }
 0x2ef   : > { %v2625_v2 = vpop.f32.mrf.mxu0  ;;  %v6605_v58 = vld [vmem:[%s14479_s3 + $0x1468] sm:$0xff] }
 0x2f0   : > { %v2841_v42 = vadd.f32 %v2624_v37, %v1764_v1  ;;  %v2626_v54 = vadd.f32 %v2625_v2, %v2555_v36  ;;  %v6604_v1 = vld [vmem:[%s14479_s3 + $0x1460] sm:$0xff]  ;;  %v6601_v36 = vld [vmem:[%s14479_s3 + $0x1448] sm:$0xff] }
 0x2f1   : > { %v6600_v37 = vld [vmem:[%s14479_s3 + $0x1440] sm:$0xff] }
 0x2f2   : > { %v2867_v40 = vadd.f32 %v2850_v38, %v2841_v42  ;;  %v2842_v45 = vadd.f32 %v2626_v54, %v1766_v41  ;;  %v6597_v38 = vld [vmem:[%s14479_s3 + $0x1428] sm:$0xff]  ;;  %v6596_v2 = vld [vmem:[%s14479_s3 + $0x1420] sm:$0xff] }
 0x2f3   : > { %v6593_v41 = vld [vmem:[%s14479_s3 + $0x1408] sm:$0xff]  ;;  %v6592_v42 = vld [vmem:[%s14479_s3 + $0x1400] sm:$0xff] }
 0x2f4   : > { %vm2871_vm3 = vcmp.gt.f32.partialorder %v2867_v40, 0.0  ;;  %v2876_v11 = vmul.f32 %v11247_v44, %v2867_v40  ;;  %v2868_v7 = vadd.f32 %v2854_v21, %v2842_v45  ;;  %v6717_v54 = vld [vmem:[%s14479_s3 + $0x17e8] sm:$0xff]  ;;  %v6716_v21 = vld [vmem:[%s14479_s3 + $0x17e0] sm:$0xff] }
 0x2f5   : > { %v6712_v45 = vld [vmem:[%s14479_s3 + $0x17c0] sm:$0xff] }
 0x2f6   : > { %v2880_v59 = vsel %vm2871_vm3, %v2867_v40, %v2876_v11  ;;  %vm2872_vm4 = vcmp.gt.f32.partialorder %v2868_v7, 0.0  ;;  %v2877_v53 = vmul.f32 %v11247_v44, %v2868_v7  ;;  %v6713_v40 = vld [vmem:[%s14479_s3 + $0x17c8] sm:$0xff] }
 0x2f7   : > { %v2888_v10 = vrot.slane %v2880_v59, 7  ;;  %v6709_v11 = vld [vmem:[%s14479_s3 + $0x17a8] sm:$0xff] }
 0x2f8   : > { %v2881_v19 = vsel %vm2872_vm4, %v2868_v7, %v2877_v53  ;;  %v6708_v7 = vld [vmem:[%s14479_s3 + $0x17a0] sm:$0xff]  ;;  %v6705_v59 = vld [vmem:[%s14479_s3 + $0x1788] sm:$0xff] }
 0x2f9   : > { %2896 = vst [vmem:[#allocation2 + $0x8] sm:$0xfe] %v2888_v10  ;;  %2900 = vst [vmem:[#allocation2 + $0x38] sm:$0x1] %v2888_v10  ;;  %v2889_v56 = vrot.slane %v2881_v19, 7  ;;  %v6704_v53 = vld [vmem:[%s14479_s3 + $0x1780] sm:$0xff]  ;;  %v2694_v10 = vpop.f32.mrf.mxu1 }
 0x2fa   : > { %v6701_v19 = vld [vmem:[%s14479_s3 + $0x1768] sm:$0xff] }
 0x2fb   : > { %2897 = vst [vmem:[#allocation2 + $0x10] sm:$0xfe] %v2889_v56  ;;  %2901 = vst [vmem:[#allocation2 + $0x40] sm:$0x1] %v2889_v56  ;;  %v6700_v56 = vld [vmem:[%s14479_s3 + $0x1760] sm:$0xff]  ;;  %v2696_v50 = vpop.f32.mrf.mxu1 }
 0x300   : > { %v3295_v63 = vld [vmem:[#allocation2 + $0x8] sm:$0xfe]  ;;  %v3301_v32 = vld [vmem:[#allocation2 + $0x38] sm:$0x1] }
 0x301   : > { %v3706_v28 = vrot.slane %v3295_v63, 1  ;;  %v3707_v49 = vrot.slane %v3301_v32, 1  ;;  %v6689_v63 = vld [vmem:[%s14479_s3 + $0x1708] sm:$0xff] }
 0x303   : > { %v11255_v0 = vsel %vm1104_vm0, %v3706_v28, %v3707_v49  ;;  %v2861_v28 = vsub.s32 3, %v11225_v25  ;;  %v6688_v49 = vld [vmem:[%s14479_s3 + $0x1700] sm:$0xff] }
 0x304   : > { %3791 = vmatprep.mubr.f32.mxu0 %v11255_v0 }
 0x305   : > { %3792 = vmatmul.mubr.f32.vlgmr.msra.gmra.mxu0 %v11252_v3 }
 0x306   : > { %3870 = vmatpush1.msra.mxu0 %v6652_v9  ;;  %3933 = vmatprep.mubr.f32.mxu0 %v11261_v51 }
 0x307   : > { %3871 = vmatprep.subr.mxu0 %v6649_v5  ;;  %v6685_v5 = vld [vmem:[%s14479_s3 + $0x16e8] sm:$0xff] }
 0x308   : > { %3872 = vmatpush1.msra.mxu0 %v6648_v60 }
 0x309   : > { %3873 = vmatprep.subr.mxu0 %v6645_v12  ;;  %v2858_v12 = vrot.slane %v11234_v57, %v2857_v55 }
 0x30a   : > { %3874 = vmatpush1.msra.mxu0 %v6644_v62 }
 0x30b   : > { %3875 = vmatprep.subr.mxu0 %v6641_v13  ;;  %v6684_v13 = vld [vmem:[%s14479_s3 + $0x16e0] sm:$0xff] }
 0x30c   : > { %3876 = vmatpush1.msra.mxu0 %v6640_v14 }
 0x30d   : > { %3877 = vmatprep.subr.mxu0 %v6637_v15  ;;  %v6681_v15 = vld [vmem:[%s14479_s3 + $0x16c8] sm:$0xff] }
 0x30e   : > { %3878 = vmatpush1.msra.mxu0 %v6636_v16 }
 0x30f   : > { %3879 = vmatprep.subr.mxu0 %v6633_v17 }
 0x310   : > { %3880 = vmatpush1.msra.mxu0 %v6632_v18  ;;  %v2862_v18 = vrot.slane %v11234_v57, %v2861_v28  ;;  %v6673_v57 = vld [vmem:[%s14479_s3 + $0x1688] sm:$0xff] }
 0x311   : > { %3881 = vmatprep.subr.mxu0 %v6629_v20  ;;  %v6680_v20 = vld [vmem:[%s14479_s3 + $0x16c0] sm:$0xff] }
 0x312   : > { %3882 = vmatpush1.msra.mxu0 %v6628_v23  ;;  %v6677_v23 = vld [vmem:[%s14479_s3 + $0x16a8] sm:$0xff] }
 0x313   : > { %3883 = vmatprep.subr.mxu0 %v6625_v29 }
 0x314   : > { %3884 = vmatpush1.msra.mxu0 %v6624_v30 }
 0x315   : > { %3885 = vmatprep.subr.mxu0 %v6621_v31 }
 0x316   : > { %3886 = vmatpush1.msra.mxu0 %v6620_v33 }
 0x317   : > { %3887 = vmatprep.subr.mxu0 %v6617_v34  ;;  %v6672_v34 = vld [vmem:[%s14479_s3 + $0x1680] sm:$0xff] }
 0x318   : > { %3888 = vmatpush1.msra.mxu0 %v6616_v46 }
 0x319   : > { %3889 = vmatprep.subr.mxu0 %v6613_v52 }
 0x31a   : > { %3890 = vmatpush1.msra.mxu0 %v6612_v39  ;;  %v6668_v39 = vld [vmem:[%s14479_s3 + $0x1660] sm:$0xff] }
 0x31b   : > { %3891 = vmatprep.subr.mxu0 %v6609_v61 }
 0x31c   : > { %3892 = vmatpush1.msra.mxu0 %v6608_v8  ;;  %v6665_v8 = vld [vmem:[%s14479_s3 + $0x1648] sm:$0xff] }
 0x31d   : > { %3893 = vmatprep.subr.mxu0 %v6605_v58 }
 0x31e   : > { %3894 = vmatpush1.msra.mxu0 %v6604_v1  ;;  %v6664_v1 = vld [vmem:[%s14479_s3 + $0x1640] sm:$0xff] }
 0x31f   : > { %3895 = vmatprep.subr.mxu0 %v6601_v36  ;;  %v6661_v36 = vld [vmem:[%s14479_s3 + $0x1628] sm:$0xff] }
 0x320   : > { %3896 = vmatpush1.msra.mxu0 %v6600_v37  ;;  %v6660_v37 = vld [vmem:[%s14479_s3 + $0x1620] sm:$0xff] }
 0x321   : > { %3897 = vmatprep.subr.mxu0 %v6597_v38  ;;  %v6657_v38 = vld [vmem:[%s14479_s3 + $0x1608] sm:$0xff] }
 0x322   : > { %3898 = vmatpush1.msra.mxu0 %v6596_v2  ;;  %v6656_v2 = vld [vmem:[%s14479_s3 + $0x1600] sm:$0xff] }
 0x323   : > { %3899 = vmatprep.subr.mxu0 %v6593_v41  ;;  %v3296_v41 = vld [vmem:[#allocation2 + $0x10] sm:$0xfe] }
 0x324   : > { %3900 = vmatpush1.msra.mxu0 %v6592_v42  ;;  %v3302_v42 = vld [vmem:[#allocation2 + $0x40] sm:$0x1] }
 0x325   : > { %3901 = vmatprep.subr.mxu0 %v6717_v54  ;;  %v6527_v54 = vld [vmem:[%s14479_s3 + $0x11f8] sm:$0xff] }
 0x326   : > { %3902 = vmatpush2.msra.mxu0 %v6716_v21 }
 0x327   : > { %3903 = vmatprep.subr.mxu0 %v6713_v40 }
 0x328   : > { %3904 = vmatpush2.msra.mxu0 %v6712_v45  ;;  %v3709_v45 = vrot.slane %v3296_v41, 1  ;;  %v6355_v41 = vld [vmem:[%s14479_s3 + $0xc98] sm:$0xff] }
 0x329   : > { %3905 = vmatprep.subr.mxu0 %v6709_v11  ;;  %v3710_v11 = vrot.slane %v3302_v42, 1  ;;  %v6486_v42 = vld [vmem:[%s14479_s3 + $0x10b0] sm:$0xff] }
 0x32a   : > { %3906 = vmatpush2.msra.mxu0 %v6708_v7 }
 0x32b   : > { %3907 = vmatprep.subr.mxu0 %v6705_v59 }
 0x32c   : > { %3908 = vmatpush2.msra.mxu0 %v6704_v53 }
 0x32d   : > { %3909 = vmatprep.subr.mxu0 %v6701_v19 }
 0x32e   : > { %3910 = vmatpush2.msra.mxu0 %v6700_v56  ;;  %v6398_v56 = vld [vmem:[%s14479_s3 + $0xdf0] sm:$0xff] }
 0x32f   : > { %3911 = vmatprep.subr.mxu0 %v6697_v47  ;;  %v2765_v22 = vpop.f32.mrf.mxu0 }
 0x330   : > { %v2836_v27 = vpop.f32.mrf.mxu1  ;;  %3912 = vmatpush2.msra.mxu0 %v6696_v48  ;;  %v2766_v32 = vadd.f32 %v2765_v22, %v2694_v10  ;;  %v6526_v22 = vld [vmem:[%s14479_s3 + $0x11f0] sm:$0xff] }
 0x331   : > { %3913 = vmatprep.subr.mxu0 %v6693_v6  ;;  %v2767_v9 = vpop.f32.mrf.mxu0  ;;  %v6395_v6 = vld [vmem:[%s14479_s3 + $0xdd8] sm:$0xff] }
 0x332   : > { %3914 = vmatpush2.msra.mxu0 %v6692_v24  ;;  %v2837_v60 = vadd.f32 %v2836_v27, %v2766_v32  ;;  %v2768_v62 = vadd.f32 %v2767_v9, %v2696_v50  ;;  %v2838_v14 = vpop.f32.mrf.mxu1  ;;  %v11472_v50 = vsel %vm1104_vm0, %v3709_v45, %v3710_v11  ;;  %v6394_v27 = vld [vmem:[%s14479_s3 + $0xdd0] sm:$0xff]  ;;  %v6391_v32 = vld [vmem:[%s14479_s3 + $0xdb8] sm:$0xff] }
 0x333   : > { %3915 = vmatprep.subr.mxu0 %v6689_v63  ;;  %v6523_v63 = vld [vmem:[%s14479_s3 + $0x11d8] sm:$0xff]  ;;  %v6390_v9 = vld [vmem:[%s14479_s3 + $0xdb0] sm:$0xff] }
 0x334   : > { %3916 = vmatpush2.msra.mxu0 %v6688_v49  ;;  %v2843_v16 = vadd.f32 %v2837_v60, %v10820_v4  ;;  %v2839_v17 = vadd.f32 %v2838_v14, %v2768_v62  ;;  %v6676_v4 = vld [vmem:[%s14479_s3 + $0x16a0] sm:$0xff]  ;;  %v6522_v49 = vld [vmem:[%s14479_s3 + $0x11d0] sm:$0xff]  ;;  %v6515_v62 = vld [vmem:[%s14479_s3 + $0x1198] sm:$0xff] }
 0x335   : > { %3917 = vmatprep.subr.mxu0 %v6685_v5  ;;  %v6519_v5 = vld [vmem:[%s14479_s3 + $0x11b8] sm:$0xff]  ;;  %v6518_v60 = vld [vmem:[%s14479_s3 + $0x11b0] sm:$0xff] }
 0x336   : > { %3918 = vmatpush2.msra.mxu0 %v6684_v13  ;;  %v2869_v29 = vadd.f32 %v2858_v12, %v2843_v16  ;;  %v2844_v30 = vadd.f32 %v2839_v17, %v10824_v43  ;;  %v6669_v43 = vld [vmem:[%s14479_s3 + $0x1668] sm:$0xff]  ;;  %v6386_v12 = vld [vmem:[%s14479_s3 + $0xd90] sm:$0xff]  ;;  %v6383_v13 = vld [vmem:[%s14479_s3 + $0xd78] sm:$0xff] }
 0x337   : > { %3919 = vmatprep.subr.mxu0 %v6681_v15  ;;  %v6514_v14 = vld [vmem:[%s14479_s3 + $0x1190] sm:$0xff]  ;;  %v6511_v16 = vld [vmem:[%s14479_s3 + $0x1178] sm:$0xff] }
 0x338   : > { %3920 = vmatpush2.msra.mxu0 %v6680_v20  ;;  %vm2873_vm5 = vcmp.gt.f32.partialorder %v2869_v29, 0.0  ;;  %v2878_v31 = vmul.f32 %v11247_v44, %v2869_v29  ;;  %v2870_v33 = vadd.f32 %v2862_v18, %v2844_v30  ;;  %v6382_v15 = vld [vmem:[%s14479_s3 + $0xd70] sm:$0xff]  ;;  %v6379_v17 = vld [vmem:[%s14479_s3 + $0xd58] sm:$0xff] }
 0x339   : > { %3921 = vmatprep.subr.mxu0 %v6677_v23  ;;  %v6510_v18 = vld [vmem:[%s14479_s3 + $0x1170] sm:$0xff]  ;;  %v6507_v23 = vld [vmem:[%s14479_s3 + $0x1158] sm:$0xff] }
 0x33a   : > { %3922 = vmatpush2.msra.mxu0 %v6676_v4  ;;  %v2882_v46 = vsel %vm2873_vm5, %v2869_v29, %v2878_v31  ;;  %vm2874_vm6 = vcmp.gt.f32.partialorder %v2870_v33, 0.0  ;;  %v2879_v52 = vmul.f32 %v11247_v44, %v2870_v33  ;;  %v6378_v20 = vld [vmem:[%s14479_s3 + $0xd50] sm:$0xff]  ;;  %v6375_v29 = vld [vmem:[%s14479_s3 + $0xd38] sm:$0xff] }
 0x33b   : > { %3923 = vmatprep.subr.mxu0 %v6673_v57  ;;  %v2890_v61 = vrot.slane %v2882_v46, 7  ;;  %v6506_v30 = vld [vmem:[%s14479_s3 + $0x1150] sm:$0xff]  ;;  %v6503_v57 = vld [vmem:[%s14479_s3 + $0x1138] sm:$0xff] }
 0x33c   : > { %3924 = vmatpush2.msra.mxu0 %v6672_v34  ;;  %v2883_v58 = vsel %vm2874_vm6, %v2870_v33, %v2879_v52  ;;  %v6374_v4 = vld [vmem:[%s14479_s3 + $0xd30] sm:$0xff]  ;;  %v6371_v31 = vld [vmem:[%s14479_s3 + $0xd18] sm:$0xff] }
 0x33d   : > { %3925 = vmatprep.subr.mxu0 %v6669_v43  ;;  %2898 = vst [vmem:[#allocation2 + $0x18] sm:$0xfe] %v2890_v61  ;;  %2902 = vst [vmem:[#allocation2 + $0x48] sm:$0x1] %v2890_v61  ;;  %v2891_v44 = vrot.slane %v2883_v58, 7  ;;  %v6502_v33 = vld [vmem:[%s14479_s3 + $0x1130] sm:$0xff] }
 0x33e   : > { %3926 = vmatpush2.msra.mxu0 %v6668_v39  ;;  %v6370_v34 = vld [vmem:[%s14479_s3 + $0xd10] sm:$0xff]  ;;  %v6499_v43 = vld [vmem:[%s14479_s3 + $0x1118] sm:$0xff] }
 0x33f   : > { %3927 = vmatprep.subr.mxu0 %v6665_v8  ;;  %2899 = vst [vmem:[#allocation2 + $0x20] sm:$0xfe] %v2891_v44  ;;  %2903 = vst [vmem:[#allocation2 + $0x50] sm:$0x1] %v2891_v44  ;;  %v6367_v46 = vld [vmem:[%s14479_s3 + $0xcf8] sm:$0xff]  ;;  %v6498_v52 = vld [vmem:[%s14479_s3 + $0x1110] sm:$0xff] }
 0x340   : > { %3928 = vmatpush2.msra.mxu0 %v6664_v1  ;;  %v6366_v39 = vld [vmem:[%s14479_s3 + $0xcf0] sm:$0xff]  ;;  %v6495_v61 = vld [vmem:[%s14479_s3 + $0x10f8] sm:$0xff] }
 0x341   : > { %3929 = vmatprep.subr.mxu0 %v6661_v36  ;;  %v6363_v8 = vld [vmem:[%s14479_s3 + $0xcd8] sm:$0xff]  ;;  %v6494_v58 = vld [vmem:[%s14479_s3 + $0x10f0] sm:$0xff] }
 0x342   : > { %3930 = vmatpush2.msra.mxu0 %v6660_v37  ;;  %v6362_v1 = vld [vmem:[%s14479_s3 + $0xcd0] sm:$0xff]  ;;  %v6491_v44 = vld [vmem:[%s14479_s3 + $0x10d8] sm:$0xff] }
 0x343   : > { %3931 = vmatprep.subr.mxu0 %v6657_v38  ;;  %v6359_v36 = vld [vmem:[%s14479_s3 + $0xcb8] sm:$0xff]  ;;  %v6490_v37 = vld [vmem:[%s14479_s3 + $0x10d0] sm:$0xff] }
 0x344   : > { %3932 = vmatpush2.msra.mxu0 %v6656_v2  ;;  %v3297_v21 = vld [vmem:[#allocation2 + $0x18] sm:$0xfe]  ;;  %v3303_v40 = vld [vmem:[#allocation2 + $0x48] sm:$0x1]  ;;  %v6358_v38 = vld [vmem:[%s14479_s3 + $0xcb0] sm:$0xff] }
 0x345   : > { %4011 = vmatprep.subr.mxu0 %v6527_v54  ;;  %v3712_v7 = vrot.slane %v3297_v21, 1  ;;  %v3713_v59 = vrot.slane %v3303_v40, 1  ;;  %v6487_v2 = vld [vmem:[%s14479_s3 + $0x10b8] sm:$0xff]  ;;  %v6354_v54 = vld [vmem:[%s14479_s3 + $0xc90] sm:$0xff] }
 0x346   : > { %v3298_v53 = vld [vmem:[#allocation2 + $0x20] sm:$0xfe]  ;;  %v3304_v10 = vld [vmem:[#allocation2 + $0x50] sm:$0x1]  ;;  %v6483_v21 = vld [vmem:[%s14479_s3 + $0x1098] sm:$0xff] }
 0x347   : > { %v3714_v19 = vsel %vm1104_vm0, %v3712_v7, %v3713_v59  ;;  %v3715_v47 = vrot.slane %v3298_v53, 1  ;;  %v3716_v48 = vrot.slane %v3304_v10, 1  ;;  %v6351_v40 = vld [vmem:[%s14479_s3 + $0xc78] sm:$0xff]  ;;  %v6482_v45 = vld [vmem:[%s14479_s3 + $0x1090] sm:$0xff] }
 0x348   : > { %3862 = vmatprep.mubr.f32.mxu1 %v3714_v19  ;;  %v6350_v11 = vld [vmem:[%s14479_s3 + $0xc70] sm:$0xff]  ;;  %v6479_v7 = vld [vmem:[%s14479_s3 + $0x1078] sm:$0xff] }
 0x349   : > { %3863 = vmatmul.mubr.f32.vlgmr.msra.gmra.mxu1 %v11472_v50  ;;  %v11479_v24 = vsel %vm1104_vm0, %v3715_v47, %v3716_v48  ;;  %v6347_v59 = vld [vmem:[%s14479_s3 + $0xc58] sm:$0xff]  ;;  %v6478_v53 = vld [vmem:[%s14479_s3 + $0x1070] sm:$0xff] }
 0x34a   : > { %3941 = vmatpush1.msra.mxu1 %v6398_v56  ;;  %3934 = vmatmul.mubr.f32.vlgmr.msra.gmra.mxu0 %v11479_v24  ;;  %v6346_v10 = vld [vmem:[%s14479_s3 + $0xc50] sm:$0xff]  ;;  %v6343_v56 = vld [vmem:[%s14479_s3 + $0xc38] sm:$0xff] }
 0x34b   : > { %3942 = vmatprep.subr.mxu1 %v6395_v6  ;;  %4004 = vmatprep.mubr.f32.mxu1 %v11255_v0  ;;  %v6387_v0 = vld [vmem:[%s14479_s3 + $0xd98] sm:$0xff]  ;;  %v6474_v47 = vld [vmem:[%s14479_s3 + $0x1050] sm:$0xff] }
 0x34c   : > { %4012 = vmatpush1.msra.mxu0 %v6526_v22  ;;  %3943 = vmatpush1.msra.mxu1 %v6394_v27  ;;  %v6342_v48 = vld [vmem:[%s14479_s3 + $0xc30] sm:$0xff]  ;;  %v6471_v6 = vld [vmem:[%s14479_s3 + $0x1038] sm:$0xff] }
 0x34d   : > { %4013 = vmatprep.subr.mxu0 %v6523_v63  ;;  %4075 = vmatprep.mubr.f32.mxu0 %v3714_v19  ;;  %v6475_v19 = vld [vmem:[%s14479_s3 + $0x1058] sm:$0xff]  ;;  %v6470_v27 = vld [vmem:[%s14479_s3 + $0x1030] sm:$0xff] }
 0x34e   : > { %3944 = vmatprep.subr.mxu1 %v6391_v32  ;;  %4014 = vmatpush1.msra.mxu0 %v6522_v49  ;;  %v6339_v22 = vld [vmem:[%s14479_s3 + $0xc18] sm:$0xff]  ;;  %v6338_v63 = vld [vmem:[%s14479_s3 + $0xc10] sm:$0xff] }
 0x34f   : > { %3945 = vmatpush1.msra.mxu1 %v6390_v9  ;;  %4015 = vmatprep.subr.mxu0 %v6519_v5  ;;  %v6467_v32 = vld [vmem:[%s14479_s3 + $0x1018] sm:$0xff]  ;;  %v6466_v9 = vld [vmem:[%s14479_s3 + $0x1010] sm:$0xff] }
 0x350   : > { %3946 = vmatprep.subr.mxu1 %v6387_v0  ;;  %4016 = vmatpush1.msra.mxu0 %v6518_v60  ;;  %v6463_v49 = vld [vmem:[%s14479_s3 + $0xff8] sm:$0xff]  ;;  %v6462_v5 = vld [vmem:[%s14479_s3 + $0xff0] sm:$0xff] }
 0x351   : > { %3947 = vmatpush1.msra.mxu1 %v6386_v12  ;;  %4017 = vmatprep.subr.mxu0 %v6515_v62  ;;  %v6591_v0 = vld [vmem:[%s14479_s3 + $0x13f8] sm:$0xff]  ;;  %v6590_v12 = vld [vmem:[%s14479_s3 + $0x13f0] sm:$0xff] }
 0x352   : > { %3948 = vmatprep.subr.mxu1 %v6383_v13  ;;  %4018 = vmatpush1.msra.mxu0 %v6514_v14  ;;  %v6459_v60 = vld [vmem:[%s14479_s3 + $0xfd8] sm:$0xff]  ;;  %v6458_v62 = vld [vmem:[%s14479_s3 + $0xfd0] sm:$0xff] }
 0x353   : > { %3949 = vmatpush1.msra.mxu1 %v6382_v15  ;;  %4019 = vmatprep.subr.mxu0 %v6511_v16  ;;  %v6587_v13 = vld [vmem:[%s14479_s3 + $0x13d8] sm:$0xff]  ;;  %v6586_v15 = vld [vmem:[%s14479_s3 + $0x13d0] sm:$0xff] }
 0x354   : > { %3950 = vmatprep.subr.mxu1 %v6379_v17  ;;  %4020 = vmatpush1.msra.mxu0 %v6510_v18  ;;  %v6455_v14 = vld [vmem:[%s14479_s3 + $0xfb8] sm:$0xff]  ;;  %v6454_v16 = vld [vmem:[%s14479_s3 + $0xfb0] sm:$0xff] }
 0x355   : > { %3951 = vmatpush1.msra.mxu1 %v6378_v20  ;;  %4021 = vmatprep.subr.mxu0 %v6507_v23  ;;  %v6583_v17 = vld [vmem:[%s14479_s3 + $0x13b8] sm:$0xff]  ;;  %v6582_v20 = vld [vmem:[%s14479_s3 + $0x13b0] sm:$0xff] }
 0x356   : > { %3952 = vmatprep.subr.mxu1 %v6375_v29  ;;  %4022 = vmatpush1.msra.mxu0 %v6506_v30  ;;  %v6451_v18 = vld [vmem:[%s14479_s3 + $0xf98] sm:$0xff]  ;;  %v6450_v23 = vld [vmem:[%s14479_s3 + $0xf90] sm:$0xff] }
 0x357   : > { %3953 = vmatpush1.msra.mxu1 %v6374_v4  ;;  %4023 = vmatprep.subr.mxu0 %v6503_v57  ;;  %v6579_v29 = vld [vmem:[%s14479_s3 + $0x1398] sm:$0xff]  ;;  %v6578_v4 = vld [vmem:[%s14479_s3 + $0x1390] sm:$0xff] }
 0x358   : > { %3954 = vmatprep.subr.mxu1 %v6371_v31  ;;  %4024 = vmatpush1.msra.mxu0 %v6502_v33  ;;  %v6447_v30 = vld [vmem:[%s14479_s3 + $0xf78] sm:$0xff]  ;;  %v6446_v57 = vld [vmem:[%s14479_s3 + $0xf70] sm:$0xff] }
 0x359   : > { %3955 = vmatpush1.msra.mxu1 %v6370_v34  ;;  %4025 = vmatprep.subr.mxu0 %v6499_v43  ;;  %v6575_v31 = vld [vmem:[%s14479_s3 + $0x1378] sm:$0xff]  ;;  %v6574_v34 = vld [vmem:[%s14479_s3 + $0x1370] sm:$0xff] }
 0x35a   : > { %3956 = vmatprep.subr.mxu1 %v6367_v46  ;;  %4026 = vmatpush1.msra.mxu0 %v6498_v52  ;;  %v6443_v33 = vld [vmem:[%s14479_s3 + $0xf58] sm:$0xff]  ;;  %v6442_v43 = vld [vmem:[%s14479_s3 + $0xf50] sm:$0xff] }
 0x35b   : > { %3957 = vmatpush1.msra.mxu1 %v6366_v39  ;;  %4027 = vmatprep.subr.mxu0 %v6495_v61  ;;  %v6571_v46 = vld [vmem:[%s14479_s3 + $0x1358] sm:$0xff]  ;;  %v6570_v39 = vld [vmem:[%s14479_s3 + $0x1350] sm:$0xff] }
 0x35c   : > { %3958 = vmatprep.subr.mxu1 %v6363_v8  ;;  %4028 = vmatpush1.msra.mxu0 %v6494_v58  ;;  %v6439_v52 = vld [vmem:[%s14479_s3 + $0xf38] sm:$0xff]  ;;  %v6438_v61 = vld [vmem:[%s14479_s3 + $0xf30] sm:$0xff] }
 0x35d   : > { %3959 = vmatpush1.msra.mxu1 %v6362_v1  ;;  %4029 = vmatprep.subr.mxu0 %v6491_v44  ;;  %v6567_v8 = vld [vmem:[%s14479_s3 + $0x1338] sm:$0xff]  ;;  %v6566_v1 = vld [vmem:[%s14479_s3 + $0x1330] sm:$0xff] }
 0x35e   : > { %3960 = vmatprep.subr.mxu1 %v6359_v36  ;;  %4030 = vmatpush1.msra.mxu0 %v6490_v37  ;;  %v6435_v58 = vld [vmem:[%s14479_s3 + $0xf18] sm:$0xff]  ;;  %v6434_v44 = vld [vmem:[%s14479_s3 + $0xf10] sm:$0xff] }
 0x35f   : > { %3961 = vmatpush1.msra.mxu1 %v6358_v38  ;;  %4031 = vmatprep.subr.mxu0 %v6487_v2  ;;  %v6563_v36 = vld [vmem:[%s14479_s3 + $0x1318] sm:$0xff]  ;;  %v6562_v38 = vld [vmem:[%s14479_s3 + $0x1310] sm:$0xff] }
 0x360   : > { %3962 = vmatprep.subr.mxu1 %v6355_v41  ;;  %4032 = vmatpush1.msra.mxu0 %v6486_v42  ;;  %v6431_v37 = vld [vmem:[%s14479_s3 + $0xef8] sm:$0xff]  ;;  %v6430_v2 = vld [vmem:[%s14479_s3 + $0xef0] sm:$0xff] }
 0x361   : > { %3963 = vmatpush1.msra.mxu1 %v6354_v54  ;;  %4033 = vmatprep.subr.mxu0 %v6483_v21  ;;  %v6559_v41 = vld [vmem:[%s14479_s3 + $0x12f8] sm:$0xff]  ;;  %v6558_v54 = vld [vmem:[%s14479_s3 + $0x12f0] sm:$0xff] }
 0x362   : > { %3964 = vmatprep.subr.mxu1 %v6351_v40  ;;  %4034 = vmatpush1.msra.mxu0 %v6482_v45  ;;  %v6427_v42 = vld [vmem:[%s14479_s3 + $0xed8] sm:$0xff]  ;;  %v6426_v21 = vld [vmem:[%s14479_s3 + $0xed0] sm:$0xff] }
 0x363   : > { %3965 = vmatpush1.msra.mxu1 %v6350_v11  ;;  %4035 = vmatprep.subr.mxu0 %v6479_v7  ;;  %v6555_v40 = vld [vmem:[%s14479_s3 + $0x12d8] sm:$0xff]  ;;  %v6554_v11 = vld [vmem:[%s14479_s3 + $0x12d0] sm:$0xff] }
 0x364   : > { %3966 = vmatprep.subr.mxu1 %v6347_v59  ;;  %4036 = vmatpush1.msra.mxu0 %v6478_v53  ;;  %v6423_v45 = vld [vmem:[%s14479_s3 + $0xeb8] sm:$0xff]  ;;  %v6422_v7 = vld [vmem:[%s14479_s3 + $0xeb0] sm:$0xff] }
 0x365   : > { %3967 = vmatpush1.msra.mxu1 %v6346_v10  ;;  %4037 = vmatprep.subr.mxu0 %v6475_v19  ;;  %v6551_v59 = vld [vmem:[%s14479_s3 + $0x12b8] sm:$0xff]  ;;  %v6550_v10 = vld [vmem:[%s14479_s3 + $0x12b0] sm:$0xff] }
 0x366   : > { %3968 = vmatprep.subr.mxu1 %v6343_v56  ;;  %4038 = vmatpush1.msra.mxu0 %v6474_v47  ;;  %v6419_v53 = vld [vmem:[%s14479_s3 + $0xe98] sm:$0xff]  ;;  %v6418_v19 = vld [vmem:[%s14479_s3 + $0xe90] sm:$0xff] }
 0x367   : > { %3969 = vmatpush1.msra.mxu1 %v6342_v48  ;;  %4039 = vmatprep.subr.mxu0 %v6471_v6  ;;  %v6547_v56 = vld [vmem:[%s14479_s3 + $0x1298] sm:$0xff]  ;;  %v6546_v48 = vld [vmem:[%s14479_s3 + $0x1290] sm:$0xff] }
 0x368   : > { %3970 = vmatprep.subr.mxu1 %v6339_v22  ;;  %4040 = vmatpush1.msra.mxu0 %v6470_v27  ;;  %v6415_v47 = vld [vmem:[%s14479_s3 + $0xe78] sm:$0xff]  ;;  %v6414_v6 = vld [vmem:[%s14479_s3 + $0xe70] sm:$0xff] }
 0x369   : > { %3971 = vmatpush1.msra.mxu1 %v6338_v63  ;;  %4041 = vmatprep.subr.mxu0 %v6467_v32  ;;  %v6543_v22 = vld [vmem:[%s14479_s3 + $0x1278] sm:$0xff]  ;;  %v6542_v63 = vld [vmem:[%s14479_s3 + $0x1270] sm:$0xff] }
 0x36a   : > { %3972 = vmatprep.subr.mxu1 %v6463_v49  ;;  %4042 = vmatpush1.msra.mxu0 %v6466_v9  ;;  %v6411_v27 = vld [vmem:[%s14479_s3 + $0xe58] sm:$0xff]  ;;  %v6410_v32 = vld [vmem:[%s14479_s3 + $0xe50] sm:$0xff] }
 0x36b   : > { %3973 = vmatpush2.msra.mxu1 %v6462_v5  ;;  %4043 = vmatprep.subr.mxu0 %v6591_v0  ;;  %v6539_v49 = vld [vmem:[%s14479_s3 + $0x1258] sm:$0xff]  ;;  %v6538_v5 = vld [vmem:[%s14479_s3 + $0x1250] sm:$0xff] }
 0x36c   : > { %3974 = vmatprep.subr.mxu1 %v6459_v60  ;;  %4044 = vmatpush2.msra.mxu0 %v6590_v12  ;;  %v6407_v9 = vld [vmem:[%s14479_s3 + $0xe38] sm:$0xff]  ;;  %v6406_v0 = vld [vmem:[%s14479_s3 + $0xe30] sm:$0xff] }
 0x36d   : > { %3975 = vmatpush2.msra.mxu1 %v6458_v62  ;;  %4045 = vmatprep.subr.mxu0 %v6587_v13  ;;  %v6535_v60 = vld [vmem:[%s14479_s3 + $0x1238] sm:$0xff]  ;;  %v6534_v62 = vld [vmem:[%s14479_s3 + $0x1230] sm:$0xff] }
 0x36e   : > { %3976 = vmatprep.subr.mxu1 %v6455_v14  ;;  %4046 = vmatpush2.msra.mxu0 %v6586_v15  ;;  %v6403_v12 = vld [vmem:[%s14479_s3 + $0xe18] sm:$0xff]  ;;  %v6402_v13 = vld [vmem:[%s14479_s3 + $0xe10] sm:$0xff] }
 0x36f   : > { %3977 = vmatpush2.msra.mxu1 %v6454_v16  ;;  %4047 = vmatprep.subr.mxu0 %v6583_v17  ;;  %v6531_v14 = vld [vmem:[%s14479_s3 + $0x1218] sm:$0xff]  ;;  %v6530_v15 = vld [vmem:[%s14479_s3 + $0x1210] sm:$0xff] }
 0x370   : > { %3978 = vmatprep.subr.mxu1 %v6451_v18  ;;  %4048 = vmatpush2.msra.mxu0 %v6582_v20  ;;  %v6655_v16 = vld [vmem:[%s14479_s3 + $0x15f8] sm:$0xff]  ;;  %v6654_v17 = vld [vmem:[%s14479_s3 + $0x15f0] sm:$0xff]  ;;  %v2971_v18 = vld [vmem:[%s14479_s3 + $0x1e8] sm:$0xff] }
 0x371   : > { %3979 = vmatpush2.msra.mxu1 %v6450_v23  ;;  %4049 = vmatprep.subr.mxu0 %v6579_v29  ;;  %v6651_v20 = vld [vmem:[%s14479_s3 + $0x15d8] sm:$0xff]  ;;  %v2970_v23 = vld [vmem:[%s14479_s3 + $0x1e0] sm:$0xff]  ;;  %v6650_v29 = vld [vmem:[%s14479_s3 + $0x15d0] sm:$0xff] }
 0x372   : > { %3980 = vmatprep.subr.mxu1 %v6447_v30  ;;  %4050 = vmatpush2.msra.mxu0 %v6578_v4  ;;  %v6647_v30 = vld [vmem:[%s14479_s3 + $0x15b8] sm:$0xff]  ;;  %v2905_v4 = vld [vmem:[#allocation2 + $0x8] sm:$0xff] }
 0x373   : > { %3981 = vmatpush2.msra.mxu1 %v6446_v57  ;;  %4051 = vmatprep.subr.mxu0 %v6575_v31  ;;  %v6646_v57 = vld [vmem:[%s14479_s3 + $0x15b0] sm:$0xff]  ;;  %v2963_v31 = vld [vmem:[%s14479_s3 + $0x1a8] sm:$0xff] }
 0x374   : > { %3982 = vmatprep.subr.mxu1 %v6443_v33  ;;  %4052 = vmatpush2.msra.mxu0 %v6574_v34  ;;  %v6643_v33 = vld [vmem:[%s14479_s3 + $0x1598] sm:$0xff]  ;;  %v2962_v34 = vld [vmem:[%s14479_s3 + $0x1a0] sm:$0xff] }
 0x375   : > { %3983 = vmatpush2.msra.mxu1 %v6442_v43  ;;  %4053 = vmatprep.subr.mxu0 %v6571_v46  ;;  %v6642_v43 = vld [vmem:[%s14479_s3 + $0x1590] sm:$0xff]  ;;  %v2959_v46 = vld [vmem:[%s14479_s3 + $0x188] sm:$0xff] }
 0x376   : > { %3984 = vmatprep.subr.mxu1 %v6439_v52  ;;  %4054 = vmatpush2.msra.mxu0 %v6570_v39  ;;  %v6639_v52 = vld [vmem:[%s14479_s3 + $0x1578] sm:$0xff]  ;;  %v2958_v39 = vld [vmem:[%s14479_s3 + $0x180] sm:$0xff] }
 0x377   : > { %3985 = vmatpush2.msra.mxu1 %v6438_v61  ;;  %4055 = vmatprep.subr.mxu0 %v6567_v8  ;;  %v6638_v61 = vld [vmem:[%s14479_s3 + $0x1570] sm:$0xff]  ;;  %v2955_v8 = vld [vmem:[%s14479_s3 + $0x168] sm:$0xff] }
 0x378   : > { %3986 = vmatprep.subr.mxu1 %v6435_v58  ;;  %4056 = vmatpush2.msra.mxu0 %v6566_v1  ;;  %v6635_v58 = vld [vmem:[%s14479_s3 + $0x1558] sm:$0xff]  ;;  %v2954_v1 = vld [vmem:[%s14479_s3 + $0x160] sm:$0xff] }
 0x379   : > { %3987 = vmatpush2.msra.mxu1 %v6434_v44  ;;  %4057 = vmatprep.subr.mxu0 %v6563_v36  ;;  %v6634_v44 = vld [vmem:[%s14479_s3 + $0x1550] sm:$0xff]  ;;  %v2951_v36 = vld [vmem:[%s14479_s3 + $0x148] sm:$0xff] }
 0x37a   : > { %3988 = vmatprep.subr.mxu1 %v6431_v37  ;;  %4058 = vmatpush2.msra.mxu0 %v6562_v38  ;;  %v6631_v37 = vld [vmem:[%s14479_s3 + $0x1538] sm:$0xff]  ;;  %v2950_v38 = vld [vmem:[%s14479_s3 + $0x140] sm:$0xff] }
 0x37b   : > { %3989 = vmatpush2.msra.mxu1 %v6430_v2  ;;  %4059 = vmatprep.subr.mxu0 %v6559_v41  ;;  %v6630_v2 = vld [vmem:[%s14479_s3 + $0x1530] sm:$0xff]  ;;  %v2947_v41 = vld [vmem:[%s14479_s3 + $0x128] sm:$0xff] }
 0x37c   : > { %3990 = vmatprep.subr.mxu1 %v6427_v42  ;;  %4060 = vmatpush2.msra.mxu0 %v6558_v54  ;;  %v6627_v42 = vld [vmem:[%s14479_s3 + $0x1518] sm:$0xff]  ;;  %v2946_v54 = vld [vmem:[%s14479_s3 + $0x120] sm:$0xff] }
 0x37d   : > { %3991 = vmatpush2.msra.mxu1 %v6426_v21  ;;  %4061 = vmatprep.subr.mxu0 %v6555_v40  ;;  %v6626_v21 = vld [vmem:[%s14479_s3 + $0x1510] sm:$0xff]  ;;  %v2943_v40 = vld [vmem:[%s14479_s3 + $0x108] sm:$0xff] }
 0x37e   : > { %3992 = vmatprep.subr.mxu1 %v6423_v45  ;;  %4062 = vmatpush2.msra.mxu0 %v6554_v11  ;;  %v6623_v45 = vld [vmem:[%s14479_s3 + $0x14f8] sm:$0xff]  ;;  %v2942_v11 = vld [vmem:[%s14479_s3 + $0x100] sm:$0xff] }
 0x37f   : > { %3993 = vmatpush2.msra.mxu1 %v6422_v7  ;;  %4063 = vmatprep.subr.mxu0 %v6551_v59  ;;  %v6622_v7 = vld [vmem:[%s14479_s3 + $0x14f0] sm:$0xff]  ;;  %v2939_v59 = vld [vmem:[%s14479_s3 + $0xe8] sm:$0xff] }
 0x380   : > { %3994 = vmatprep.subr.mxu1 %v6419_v53  ;;  %4064 = vmatpush2.msra.mxu0 %v6550_v10  ;;  %v6619_v53 = vld [vmem:[%s14479_s3 + $0x14d8] sm:$0xff]  ;;  %v2938_v10 = vld [vmem:[%s14479_s3 + $0xe0] sm:$0xff] }
 0x381   : > { %3995 = vmatpush2.msra.mxu1 %v6418_v19  ;;  %4065 = vmatprep.subr.mxu0 %v6547_v56  ;;  %v6618_v19 = vld [vmem:[%s14479_s3 + $0x14d0] sm:$0xff]  ;;  %v2935_v56 = vld [vmem:[%s14479_s3 + $0xc8] sm:$0xff] }
 0x382   : > { %3996 = vmatprep.subr.mxu1 %v6415_v47  ;;  %4066 = vmatpush2.msra.mxu0 %v6546_v48  ;;  %v6615_v47 = vld [vmem:[%s14479_s3 + $0x14b8] sm:$0xff]  ;;  %v2934_v48 = vld [vmem:[%s14479_s3 + $0xc0] sm:$0xff] }
 0x383   : > { %3997 = vmatpush2.msra.mxu1 %v6414_v6  ;;  %4067 = vmatprep.subr.mxu0 %v6543_v22  ;;  %v6614_v6 = vld [vmem:[%s14479_s3 + $0x14b0] sm:$0xff]  ;;  %v2931_v22 = vld [vmem:[%s14479_s3 + $0xa8] sm:$0xff] }
 0x384   : > { %3998 = vmatprep.subr.mxu1 %v6411_v27  ;;  %4068 = vmatpush2.msra.mxu0 %v6542_v63  ;;  %v6611_v27 = vld [vmem:[%s14479_s3 + $0x1498] sm:$0xff]  ;;  %v2930_v63 = vld [vmem:[%s14479_s3 + $0xa0] sm:$0xff] }
 0x385   : > { %3999 = vmatpush2.msra.mxu1 %v6410_v32  ;;  %4069 = vmatprep.subr.mxu0 %v6539_v49  ;;  %v6610_v32 = vld [vmem:[%s14479_s3 + $0x1490] sm:$0xff]  ;;  %v2927_v49 = vld [vmem:[%s14479_s3 + $0x88] sm:$0xff] }
 0x386   : > { %4000 = vmatprep.subr.mxu1 %v6407_v9  ;;  %4070 = vmatpush2.msra.mxu0 %v6538_v5  ;;  %v6607_v9 = vld [vmem:[%s14479_s3 + $0x1478] sm:$0xff]  ;;  %v2926_v5 = vld [vmem:[%s14479_s3 + $0x80] sm:$0xff] }
 0x387   : > { %4001 = vmatpush2.msra.mxu1 %v6406_v0  ;;  %4071 = vmatprep.subr.mxu0 %v6535_v60  ;;  %v6606_v0 = vld [vmem:[%s14479_s3 + $0x1470] sm:$0xff]  ;;  %v2923_v60 = vld [vmem:[%s14479_s3 + $0x68] sm:$0xff] }
 0x388   : > { %4002 = vmatprep.subr.mxu1 %v6403_v12  ;;  %4072 = vmatpush2.msra.mxu0 %v6534_v62  ;;  %v6603_v12 = vld [vmem:[%s14479_s3 + $0x1458] sm:$0xff]  ;;  %v2922_v62 = vld [vmem:[%s14479_s3 + $0x60] sm:$0xff] }
 0x389   : > { %4003 = vmatpush2.msra.mxu1 %v6402_v13  ;;  %4073 = vmatprep.subr.mxu0 %v6531_v14  ;;  %v6602_v13 = vld [vmem:[%s14479_s3 + $0x1450] sm:$0xff]  ;;  %v2919_v14 = vld [vmem:[%s14479_s3 + $0x48] sm:$0xff] }
 0x38a   : > { %4005 = vmatmul.mubr.f32.vlgmr.msra.gmra.mxu1 %v11252_v3  ;;  %4074 = vmatpush2.msra.mxu0 %v6530_v15  ;;  %v2967_v3 = vld [vmem:[%s14479_s3 + $0x1c8] sm:$0xff]  ;;  %v6599_v15 = vld [vmem:[%s14479_s3 + $0x1438] sm:$0xff] }
 0x38b   : > { %4082 = vmatprep.subr.mxu1 %v6655_v16  ;;  %4076 = vmatmul.mubr.f32.vlgmr.msra.gmra.mxu0 %v11472_v50  ;;  %v2966_v50 = vld [vmem:[%s14479_s3 + $0x1c0] sm:$0xff] }
 0x38c   : > { %4083 = vmatpush1.msra.mxu1 %v6654_v17  ;;  %4153 = vmatprep.subr.mxu0 %v2971_v18  ;;  %v2918_v16 = vld [vmem:[%s14479_s3 + $0x40] sm:$0xff]  ;;  %v6598_v17 = vld [vmem:[%s14479_s3 + $0x1430] sm:$0xff]  ;;  %v2915_v18 = vld [vmem:[%s14479_s3 + $0x28] sm:$0xff] }
 0x38d   : > { %4084 = vmatprep.subr.mxu1 %v6651_v20  ;;  %4154 = vmatpush1.msra.mxu0 %v2970_v23  ;;  %v6595_v20 = vld [vmem:[%s14479_s3 + $0x1418] sm:$0xff]  ;;  %v2914_v23 = vld [vmem:[%s14479_s3 + $0x20] sm:$0xff] }
 0x38e   : > { %4217 = vmatprep.mubr.f32.mxu0 %v2905_v4  ;;  %4085 = vmatpush1.msra.mxu1 %v6650_v29  ;;  %v6594_v29 = vld [vmem:[%s14479_s3 + $0x1410] sm:$0xff]  ;;  %v2910_v4 = vld [vmem:[%s14479_s3] sm:$0xff] }
 0x38f   : > { %4155 = vmatprep.subr.mxu0 %v2967_v3  ;;  %4086 = vmatprep.subr.mxu1 %v6647_v30  ;;  %v2911_v3 = vld [vmem:[%s14479_s3 + $0x8] sm:$0xff]  ;;  %v6719_v30 = vld [vmem:[%s14479_s3 + $0x17f8] sm:$0xff] }
 0x390   : > { %4156 = vmatpush1.msra.mxu0 %v2966_v50  ;;  %4087 = vmatpush1.msra.mxu1 %v6646_v57  ;;  %v6718_v50 = vld [vmem:[%s14479_s3 + $0x17f0] sm:$0xff]  ;;  %v3035_v57 = vld [vmem:[%s14479_s3 + $0x3e8] sm:$0xff] }
 0x391   : > { %4157 = vmatprep.subr.mxu0 %v2963_v31  ;;  %4088 = vmatprep.subr.mxu1 %v6643_v33  ;;  %v6715_v31 = vld [vmem:[%s14479_s3 + $0x17d8] sm:$0xff]  ;;  %v3034_v33 = vld [vmem:[%s14479_s3 + $0x3e0] sm:$0xff] }
 0x392   : > { %4158 = vmatpush1.msra.mxu0 %v2962_v34  ;;  %4089 = vmatpush1.msra.mxu1 %v6642_v43  ;;  %v6714_v34 = vld [vmem:[%s14479_s3 + $0x17d0] sm:$0xff]  ;;  %v3031_v43 = vld [vmem:[%s14479_s3 + $0x3c8] sm:$0xff] }
 0x393   : > { %4159 = vmatprep.subr.mxu0 %v2959_v46  ;;  %4090 = vmatprep.subr.mxu1 %v6639_v52  ;;  %v6711_v46 = vld [vmem:[%s14479_s3 + $0x17b8] sm:$0xff]  ;;  %v3030_v52 = vld [vmem:[%s14479_s3 + $0x3c0] sm:$0xff] }
 0x394   : > { %4160 = vmatpush1.msra.mxu0 %v2958_v39  ;;  %4091 = vmatpush1.msra.mxu1 %v6638_v61  ;;  %v6710_v39 = vld [vmem:[%s14479_s3 + $0x17b0] sm:$0xff]  ;;  %v3027_v61 = vld [vmem:[%s14479_s3 + $0x3a8] sm:$0xff] }
 0x395   : > { %4161 = vmatprep.subr.mxu0 %v2955_v8  ;;  %4092 = vmatprep.subr.mxu1 %v6635_v58  ;;  %v6707_v8 = vld [vmem:[%s14479_s3 + $0x1798] sm:$0xff]  ;;  %v3026_v58 = vld [vmem:[%s14479_s3 + $0x3a0] sm:$0xff] }
 0x396   : > { %4162 = vmatpush1.msra.mxu0 %v2954_v1  ;;  %4093 = vmatpush1.msra.mxu1 %v6634_v44  ;;  %v6706_v1 = vld [vmem:[%s14479_s3 + $0x1790] sm:$0xff]  ;;  %v3023_v44 = vld [vmem:[%s14479_s3 + $0x388] sm:$0xff] }
 0x397   : > { %4163 = vmatprep.subr.mxu0 %v2951_v36  ;;  %4094 = vmatprep.subr.mxu1 %v6631_v37  ;;  %v6703_v36 = vld [vmem:[%s14479_s3 + $0x1778] sm:$0xff]  ;;  %v3022_v37 = vld [vmem:[%s14479_s3 + $0x380] sm:$0xff] }
 0x398   : > { %4164 = vmatpush1.msra.mxu0 %v2950_v38  ;;  %4095 = vmatpush1.msra.mxu1 %v6630_v2  ;;  %v6702_v38 = vld [vmem:[%s14479_s3 + $0x1770] sm:$0xff]  ;;  %v3019_v2 = vld [vmem:[%s14479_s3 + $0x368] sm:$0xff] }
 0x399   : > { %4165 = vmatprep.subr.mxu0 %v2947_v41  ;;  %4096 = vmatprep.subr.mxu1 %v6627_v42  ;;  %v6699_v41 = vld [vmem:[%s14479_s3 + $0x1758] sm:$0xff]  ;;  %v3018_v42 = vld [vmem:[%s14479_s3 + $0x360] sm:$0xff] }
 0x39a   : > { %4166 = vmatpush1.msra.mxu0 %v2946_v54  ;;  %4097 = vmatpush1.msra.mxu1 %v6626_v21  ;;  %v6698_v54 = vld [vmem:[%s14479_s3 + $0x1750] sm:$0xff]  ;;  %v3015_v21 = vld [vmem:[%s14479_s3 + $0x348] sm:$0xff] }
 0x39b   : > { %4167 = vmatprep.subr.mxu0 %v2943_v40  ;;  %4098 = vmatprep.subr.mxu1 %v6623_v45  ;;  %v6695_v40 = vld [vmem:[%s14479_s3 + $0x1738] sm:$0xff]  ;;  %v3014_v45 = vld [vmem:[%s14479_s3 + $0x340] sm:$0xff] }
 0x39c   : > { %4168 = vmatpush1.msra.mxu0 %v2942_v11  ;;  %4099 = vmatpush1.msra.mxu1 %v6622_v7  ;;  %v6694_v11 = vld [vmem:[%s14479_s3 + $0x1730] sm:$0xff]  ;;  %v3011_v7 = vld [vmem:[%s14479_s3 + $0x328] sm:$0xff] }
 0x39d   : > { %4169 = vmatprep.subr.mxu0 %v2939_v59  ;;  %4100 = vmatprep.subr.mxu1 %v6619_v53  ;;  %v6691_v59 = vld [vmem:[%s14479_s3 + $0x1718] sm:$0xff]  ;;  %v3010_v53 = vld [vmem:[%s14479_s3 + $0x320] sm:$0xff] }
 0x39e   : > { %4170 = vmatpush1.msra.mxu0 %v2938_v10  ;;  %4101 = vmatpush1.msra.mxu1 %v6618_v19  ;;  %v6690_v10 = vld [vmem:[%s14479_s3 + $0x1710] sm:$0xff]  ;;  %v3007_v19 = vld [vmem:[%s14479_s3 + $0x308] sm:$0xff] }
 0x39f   : > { %4171 = vmatprep.subr.mxu0 %v2935_v56  ;;  %4102 = vmatprep.subr.mxu1 %v6615_v47  ;;  %v6687_v56 = vld [vmem:[%s14479_s3 + $0x16f8] sm:$0xff]  ;;  %v3006_v47 = vld [vmem:[%s14479_s3 + $0x300] sm:$0xff] }
 0x3a0   : > { %4172 = vmatpush1.msra.mxu0 %v2934_v48  ;;  %4103 = vmatpush1.msra.mxu1 %v6614_v6  ;;  %v6686_v48 = vld [vmem:[%s14479_s3 + $0x16f0] sm:$0xff]  ;;  %v3003_v6 = vld [vmem:[%s14479_s3 + $0x2e8] sm:$0xff] }
 0x3a1   : > { %4173 = vmatprep.subr.mxu0 %v2931_v22  ;;  %4104 = vmatprep.subr.mxu1 %v6611_v27  ;;  %v6683_v22 = vld [vmem:[%s14479_s3 + $0x16d8] sm:$0xff]  ;;  %v3002_v27 = vld [vmem:[%s14479_s3 + $0x2e0] sm:$0xff] }
 0x3a2   : > { %4174 = vmatpush1.msra.mxu0 %v2930_v63  ;;  %4105 = vmatpush1.msra.mxu1 %v6610_v32  ;;  %v6682_v63 = vld [vmem:[%s14479_s3 + $0x16d0] sm:$0xff]  ;;  %v2999_v32 = vld [vmem:[%s14479_s3 + $0x2c8] sm:$0xff] }
 0x3a3   : > { %4175 = vmatprep.subr.mxu0 %v2927_v49  ;;  %4106 = vmatprep.subr.mxu1 %v6607_v9  ;;  %v6679_v49 = vld [vmem:[%s14479_s3 + $0x16b8] sm:$0xff]  ;;  %v2998_v9 = vld [vmem:[%s14479_s3 + $0x2c0] sm:$0xff] }
 0x3a4   : > { %4176 = vmatpush1.msra.mxu0 %v2926_v5  ;;  %4107 = vmatpush1.msra.mxu1 %v6606_v0  ;;  %v6678_v5 = vld [vmem:[%s14479_s3 + $0x16b0] sm:$0xff]  ;;  %v2995_v0 = vld [vmem:[%s14479_s3 + $0x2a8] sm:$0xff] }
 0x3a5   : > { %4177 = vmatprep.subr.mxu0 %v2923_v60  ;;  %4108 = vmatprep.subr.mxu1 %v6603_v12  ;;  %v6675_v60 = vld [vmem:[%s14479_s3 + $0x1698] sm:$0xff]  ;;  %v2994_v12 = vld [vmem:[%s14479_s3 + $0x2a0] sm:$0xff] }
 0x3a6   : > { %4178 = vmatpush1.msra.mxu0 %v2922_v62  ;;  %4109 = vmatpush1.msra.mxu1 %v6602_v13  ;;  %v6674_v62 = vld [vmem:[%s14479_s3 + $0x1690] sm:$0xff]  ;;  %v2991_v13 = vld [vmem:[%s14479_s3 + $0x288] sm:$0xff] }
 0x3a7   : > { %4179 = vmatprep.subr.mxu0 %v2919_v14  ;;  %4110 = vmatprep.subr.mxu1 %v6599_v15  ;;  %v6671_v14 = vld [vmem:[%s14479_s3 + $0x1678] sm:$0xff]  ;;  %v2990_v15 = vld [vmem:[%s14479_s3 + $0x280] sm:$0xff] }
 0x3a8   : > { %4180 = vmatpush1.msra.mxu0 %v2918_v16  ;;  %4111 = vmatpush1.msra.mxu1 %v6598_v17  ;;  %v6670_v16 = vld [vmem:[%s14479_s3 + $0x1670] sm:$0xff]  ;;  %v2987_v17 = vld [vmem:[%s14479_s3 + $0x268] sm:$0xff] }
 0x3a9   : > { %4181 = vmatprep.subr.mxu0 %v2915_v18  ;;  %4112 = vmatprep.subr.mxu1 %v6595_v20  ;;  %v6667_v18 = vld [vmem:[%s14479_s3 + $0x1658] sm:$0xff]  ;;  %v2986_v20 = vld [vmem:[%s14479_s3 + $0x260] sm:$0xff] }
 0x3aa   : > { %4182 = vmatpush1.msra.mxu0 %v2914_v23  ;;  %4113 = vmatpush1.msra.mxu1 %v6594_v29  ;;  %v6666_v23 = vld [vmem:[%s14479_s3 + $0x1650] sm:$0xff]  ;;  %v2983_v29 = vld [vmem:[%s14479_s3 + $0x248] sm:$0xff] }
 0x3ab   : > { %4183 = vmatprep.subr.mxu0 %v2911_v3  ;;  %4114 = vmatprep.subr.mxu1 %v6719_v30  ;;  %v6663_v3 = vld [vmem:[%s14479_s3 + $0x1638] sm:$0xff]  ;;  %v2982_v30 = vld [vmem:[%s14479_s3 + $0x240] sm:$0xff] }
 0x3ac   : > { %4184 = vmatpush1.msra.mxu0 %v2910_v4  ;;  %4115 = vmatpush2.msra.mxu1 %v6718_v50  ;;  %v6662_v4 = vld [vmem:[%s14479_s3 + $0x1630] sm:$0xff]  ;;  %v2979_v50 = vld [vmem:[%s14479_s3 + $0x228] sm:$0xff] }
 0x3ad   : > { %4185 = vmatprep.subr.mxu0 %v3035_v57  ;;  %4116 = vmatprep.subr.mxu1 %v6715_v31  ;;  %v6659_v57 = vld [vmem:[%s14479_s3 + $0x1618] sm:$0xff]  ;;  %v2978_v31 = vld [vmem:[%s14479_s3 + $0x220] sm:$0xff] }
 0x3ae   : > { %4186 = vmatpush2.msra.mxu0 %v3034_v33  ;;  %4117 = vmatpush2.msra.mxu1 %v6714_v34  ;;  %v6658_v33 = vld [vmem:[%s14479_s3 + $0x1610] sm:$0xff]  ;;  %v2975_v34 = vld [vmem:[%s14479_s3 + $0x208] sm:$0xff] }
 0x3af   : > { %4187 = vmatprep.subr.mxu0 %v3031_v43  ;;  %4118 = vmatprep.subr.mxu1 %v6711_v46  ;;  %v2974_v43 = vld [vmem:[%s14479_s3 + $0x200] sm:$0xff]  ;;  %v3099_v46 = vld [vmem:[%s14479_s3 + $0x5e8] sm:$0xff] }
 0x3b0   : > { %4188 = vmatpush2.msra.mxu0 %v3030_v52  ;;  %4119 = vmatpush2.msra.mxu1 %v6710_v39  ;;  %v2904_v52 = vld [vmem:[#allocation2] sm:$0xff] }
 0x3b1   : > { %4189 = vmatprep.subr.mxu0 %v3027_v61  ;;  %4120 = vmatprep.subr.mxu1 %v6707_v8  ;;  %v3098_v39 = vld [vmem:[%s14479_s3 + $0x5e0] sm:$0xff]  ;;  %v3227_v61 = vld [vmem:[%s14479_s3 + $0x9e8] sm:$0xff] }
 0x3b2   : > { %4190 = vmatpush2.msra.mxu0 %v3026_v58  ;;  %4121 = vmatpush2.msra.mxu1 %v6706_v1  ;;  %v3095_v8 = vld [vmem:[%s14479_s3 + $0x5c8] sm:$0xff]  ;;  %v12255_v58 = vld [vmem:[#allocation2 + $0x18] sm:$0xff] }
 0x3b3   : > { %4191 = vmatprep.subr.mxu0 %v3023_v44  ;;  %4122 = vmatprep.subr.mxu1 %v6703_v36  ;;  %v3223_v1 = vld [vmem:[%s14479_s3 + $0x9c8] sm:$0xff]  ;;  %v3222_v36 = vld [vmem:[%s14479_s3 + $0x9c0] sm:$0xff] }
 0x3b4   : > { %4192 = vmatpush2.msra.mxu0 %v3022_v37  ;;  %4123 = vmatpush2.msra.mxu1 %v6702_v38  ;;  %v3091_v44 = vld [vmem:[%s14479_s3 + $0x5a8] sm:$0xff]  ;;  %v3090_v37 = vld [vmem:[%s14479_s3 + $0x5a0] sm:$0xff] }
 0x3b5   : > { %4193 = vmatprep.subr.mxu0 %v3019_v2  ;;  %4124 = vmatprep.subr.mxu1 %v6699_v41  ;;  %v3219_v38 = vld [vmem:[%s14479_s3 + $0x9a8] sm:$0xff]  ;;  %v3218_v41 = vld [vmem:[%s14479_s3 + $0x9a0] sm:$0xff] }
 0x3b6   : > { %4194 = vmatpush2.msra.mxu0 %v3018_v42  ;;  %4125 = vmatpush2.msra.mxu1 %v6698_v54  ;;  %v3087_v2 = vld [vmem:[%s14479_s3 + $0x588] sm:$0xff]  ;;  %v3086_v42 = vld [vmem:[%s14479_s3 + $0x580] sm:$0xff] }
 0x3b7   : > { %4195 = vmatprep.subr.mxu0 %v3015_v21  ;;  %4126 = vmatprep.subr.mxu1 %v6695_v40  ;;  %v3215_v54 = vld [vmem:[%s14479_s3 + $0x988] sm:$0xff]  ;;  %v3214_v40 = vld [vmem:[%s14479_s3 + $0x980] sm:$0xff] }
 0x3b8   : > { %4196 = vmatpush2.msra.mxu0 %v3014_v45  ;;  %4127 = vmatpush2.msra.mxu1 %v6694_v11  ;;  %v3083_v21 = vld [vmem:[%s14479_s3 + $0x568] sm:$0xff]  ;;  %v3082_v45 = vld [vmem:[%s14479_s3 + $0x560] sm:$0xff] }
 0x3b9   : > { %4197 = vmatprep.subr.mxu0 %v3011_v7  ;;  %4128 = vmatprep.subr.mxu1 %v6691_v59  ;;  %v3211_v11 = vld [vmem:[%s14479_s3 + $0x968] sm:$0xff]  ;;  %v3210_v59 = vld [vmem:[%s14479_s3 + $0x960] sm:$0xff] }
 0x3ba   : > { %4198 = vmatpush2.msra.mxu0 %v3010_v53  ;;  %4129 = vmatpush2.msra.mxu1 %v6690_v10  ;;  %v3079_v7 = vld [vmem:[%s14479_s3 + $0x548] sm:$0xff]  ;;  %v3078_v53 = vld [vmem:[%s14479_s3 + $0x540] sm:$0xff] }
 0x3bb   : > { %4199 = vmatprep.subr.mxu0 %v3007_v19  ;;  %4130 = vmatprep.subr.mxu1 %v6687_v56  ;;  %v3207_v10 = vld [vmem:[%s14479_s3 + $0x948] sm:$0xff]  ;;  %v3206_v56 = vld [vmem:[%s14479_s3 + $0x940] sm:$0xff] }
 0x3bc   : > { %4200 = vmatpush2.msra.mxu0 %v3006_v47  ;;  %4131 = vmatpush2.msra.mxu1 %v6686_v48  ;;  %v3075_v19 = vld [vmem:[%s14479_s3 + $0x528] sm:$0xff]  ;;  %v3074_v47 = vld [vmem:[%s14479_s3 + $0x520] sm:$0xff] }
 0x3bd   : > { %4201 = vmatprep.subr.mxu0 %v3003_v6  ;;  %4132 = vmatprep.subr.mxu1 %v6683_v22  ;;  %v3203_v48 = vld [vmem:[%s14479_s3 + $0x928] sm:$0xff]  ;;  %v3202_v22 = vld [vmem:[%s14479_s3 + $0x920] sm:$0xff] }
 0x3be   : > { %4202 = vmatpush2.msra.mxu0 %v3002_v27  ;;  %4133 = vmatpush2.msra.mxu1 %v6682_v63  ;;  %v3071_v6 = vld [vmem:[%s14479_s3 + $0x508] sm:$0xff]  ;;  %v3070_v27 = vld [vmem:[%s14479_s3 + $0x500] sm:$0xff] }
 0x3bf   : > { %4203 = vmatprep.subr.mxu0 %v2999_v32  ;;  %4134 = vmatprep.subr.mxu1 %v6679_v49  ;;  %v3199_v63 = vld [vmem:[%s14479_s3 + $0x908] sm:$0xff]  ;;  %v3198_v49 = vld [vmem:[%s14479_s3 + $0x900] sm:$0xff] }
 0x3c0   : > { %4204 = vmatpush2.msra.mxu0 %v2998_v9  ;;  %4135 = vmatpush2.msra.mxu1 %v6678_v5  ;;  %v3067_v32 = vld [vmem:[%s14479_s3 + $0x4e8] sm:$0xff]  ;;  %v3066_v9 = vld [vmem:[%s14479_s3 + $0x4e0] sm:$0xff] }
 0x3c1   : > { %4205 = vmatprep.subr.mxu0 %v2995_v0  ;;  %4136 = vmatprep.subr.mxu1 %v6675_v60  ;;  %v3195_v5 = vld [vmem:[%s14479_s3 + $0x8e8] sm:$0xff]  ;;  %v3194_v60 = vld [vmem:[%s14479_s3 + $0x8e0] sm:$0xff] }
 0x3c2   : > { %4206 = vmatpush2.msra.mxu0 %v2994_v12  ;;  %4137 = vmatpush2.msra.mxu1 %v6674_v62  ;;  %v3063_v0 = vld [vmem:[%s14479_s3 + $0x4c8] sm:$0xff]  ;;  %v3062_v12 = vld [vmem:[%s14479_s3 + $0x4c0] sm:$0xff] }
 0x3c3   : > { %4207 = vmatprep.subr.mxu0 %v2991_v13  ;;  %4138 = vmatprep.subr.mxu1 %v6671_v14  ;;  %v3191_v62 = vld [vmem:[%s14479_s3 + $0x8c8] sm:$0xff]  ;;  %v3190_v14 = vld [vmem:[%s14479_s3 + $0x8c0] sm:$0xff] }
 0x3c4   : > { %4208 = vmatpush2.msra.mxu0 %v2990_v15  ;;  %4139 = vmatpush2.msra.mxu1 %v6670_v16  ;;  %v3059_v13 = vld [vmem:[%s14479_s3 + $0x4a8] sm:$0xff]  ;;  %v3058_v15 = vld [vmem:[%s14479_s3 + $0x4a0] sm:$0xff] }
 0x3c5   : > { %4209 = vmatprep.subr.mxu0 %v2987_v17  ;;  %4140 = vmatprep.subr.mxu1 %v6667_v18  ;;  %v3187_v16 = vld [vmem:[%s14479_s3 + $0x8a8] sm:$0xff]  ;;  %v3186_v18 = vld [vmem:[%s14479_s3 + $0x8a0] sm:$0xff] }
 0x3c6   : > { %4210 = vmatpush2.msra.mxu0 %v2986_v20  ;;  %4141 = vmatpush2.msra.mxu1 %v6666_v23  ;;  %v3055_v17 = vld [vmem:[%s14479_s3 + $0x488] sm:$0xff]  ;;  %v3054_v20 = vld [vmem:[%s14479_s3 + $0x480] sm:$0xff] }
 0x3c7   : > { %4211 = vmatprep.subr.mxu0 %v2983_v29  ;;  %4142 = vmatprep.subr.mxu1 %v6663_v3  ;;  %v3183_v23 = vld [vmem:[%s14479_s3 + $0x888] sm:$0xff]  ;;  %v3182_v3 = vld [vmem:[%s14479_s3 + $0x880] sm:$0xff] }
 0x3c8   : > { %4212 = vmatpush2.msra.mxu0 %v2982_v30  ;;  %4143 = vmatpush2.msra.mxu1 %v6662_v4  ;;  %v3051_v29 = vld [vmem:[%s14479_s3 + $0x468] sm:$0xff]  ;;  %v3050_v30 = vld [vmem:[%s14479_s3 + $0x460] sm:$0xff] }
 0x3c9   : > { %4213 = vmatprep.subr.mxu0 %v2979_v50  ;;  %4144 = vmatprep.subr.mxu1 %v6659_v57  ;;  %v3179_v4 = vld [vmem:[%s14479_s3 + $0x868] sm:$0xff]  ;;  %v3178_v57 = vld [vmem:[%s14479_s3 + $0x860] sm:$0xff] }
 0x3ca   : > { %4214 = vmatpush2.msra.mxu0 %v2978_v31  ;;  %4145 = vmatpush2.msra.mxu1 %v6658_v33  ;;  %v3047_v50 = vld [vmem:[%s14479_s3 + $0x448] sm:$0xff]  ;;  %v3046_v31 = vld [vmem:[%s14479_s3 + $0x440] sm:$0xff] }
 0x3cb   : > { %4146 = vmatprep.mubr.f32.mxu1 %v11261_v51  ;;  %4215 = vmatprep.subr.mxu0 %v2975_v34  ;;  %v3226_v51 = vld [vmem:[%s14479_s3 + $0x9e0] sm:$0xff]  ;;  %v3175_v33 = vld [vmem:[%s14479_s3 + $0x848] sm:$0xff] }
 0x3cc   : > { %4147 = vmatmul.mubr.f32.vlgmr.msra.gmra.mxu1 %v11479_v24  ;;  %4216 = vmatpush2.msra.mxu0 %v2974_v43  ;;  %v3094_v24 = vld [vmem:[%s14479_s3 + $0x5c0] sm:$0xff]  ;;  %v3043_v34 = vld [vmem:[%s14479_s3 + $0x428] sm:$0xff] }
 0x3cd   : > { %4224 = vmatprep.subr.mxu1 %v3099_v46  ;;  %4218 = vmatmul.mubr.f32.vlgmr.msra.gmra.mxu0 %v2904_v52  ;;  %v3174_v43 = vld [vmem:[%s14479_s3 + $0x840] sm:$0xff]  ;;  %v3171_v52 = vld [vmem:[%s14479_s3 + $0x828] sm:$0xff] }
 0x3ce   : > { %4225 = vmatpush1.msra.mxu1 %v3098_v39  ;;  %4288 = vmatprep.mubr.f32.mxu1 %v12255_v58  ;;  %v3042_v46 = vld [vmem:[%s14479_s3 + $0x420] sm:$0xff]  ;;  %v3039_v39 = vld [vmem:[%s14479_s3 + $0x408] sm:$0xff] }
 0x3cf   : > { %4295 = vmatprep.subr.mxu0 %v3227_v61  ;;  %4226 = vmatprep.subr.mxu1 %v3095_v8  ;;  %v3170_v61 = vld [vmem:[%s14479_s3 + $0x820] sm:$0xff] }
 0x3d0   : > { %4296 = vmatpush1.msra.mxu0 %v3226_v51  ;;  %4227 = vmatpush1.msra.mxu1 %v3094_v24  ;;  %v3038_v8 = vld [vmem:[%s14479_s3 + $0x400] sm:$0xff]  ;;  %v3167_v51 = vld [vmem:[%s14479_s3 + $0x808] sm:$0xff] }
 0x3d1   : > { %4297 = vmatprep.subr.mxu0 %v3223_v1  ;;  %4228 = vmatprep.subr.mxu1 %v3091_v44  ;;  %v3163_v24 = vld [vmem:[%s14479_s3 + $0x7e8] sm:$0xff]  ;;  %v3166_v1 = vld [vmem:[%s14479_s3 + $0x800] sm:$0xff] }
 0x3d2   : > { %4298 = vmatpush1.msra.mxu0 %v3222_v36  ;;  %4229 = vmatpush1.msra.mxu1 %v3090_v37  ;;  %v3162_v44 = vld [vmem:[%s14479_s3 + $0x7e0] sm:$0xff]  ;;  %v3291_v36 = vld [vmem:[%s14479_s3 + $0xbe8] sm:$0xff] }
 0x3d3   : > { %4299 = vmatprep.subr.mxu0 %v3219_v38  ;;  %4230 = vmatprep.subr.mxu1 %v3087_v2  ;;  %v3159_v37 = vld [vmem:[%s14479_s3 + $0x7c8] sm:$0xff]  ;;  %v3290_v38 = vld [vmem:[%s14479_s3 + $0xbe0] sm:$0xff] }
 0x3d4   : > { %4300 = vmatpush1.msra.mxu0 %v3218_v41  ;;  %4231 = vmatpush1.msra.mxu1 %v3086_v42  ;;  %v3158_v2 = vld [vmem:[%s14479_s3 + $0x7c0] sm:$0xff]  ;;  %v3287_v41 = vld [vmem:[%s14479_s3 + $0xbc8] sm:$0xff] }
 0x3d5   : > { %4301 = vmatprep.subr.mxu0 %v3215_v54  ;;  %4232 = vmatprep.subr.mxu1 %v3083_v21  ;;  %v3155_v42 = vld [vmem:[%s14479_s3 + $0x7a8] sm:$0xff]  ;;  %v3286_v54 = vld [vmem:[%s14479_s3 + $0xbc0] sm:$0xff] }
 0x3d6   : > { %4302 = vmatpush1.msra.mxu0 %v3214_v40  ;;  %4233 = vmatpush1.msra.mxu1 %v3082_v45  ;;  %v3154_v21 = vld [vmem:[%s14479_s3 + $0x7a0] sm:$0xff]  ;;  %v3283_v40 = vld [vmem:[%s14479_s3 + $0xba8] sm:$0xff] }
 0x3d7   : > { %4303 = vmatprep.subr.mxu0 %v3211_v11  ;;  %4234 = vmatprep.subr.mxu1 %v3079_v7  ;;  %v3151_v45 = vld [vmem:[%s14479_s3 + $0x788] sm:$0xff]  ;;  %v3282_v11 = vld [vmem:[%s14479_s3 + $0xba0] sm:$0xff] }
 0x3d8   : > { %4304 = vmatpush1.msra.mxu0 %v3210_v59  ;;  %4235 = vmatpush1.msra.mxu1 %v3078_v53  ;;  %v3150_v7 = vld [vmem:[%s14479_s3 + $0x780] sm:$0xff]  ;;  %v3279_v59 = vld [vmem:[%s14479_s3 + $0xb88] sm:$0xff] }
 0x3d9   : > { %4305 = vmatprep.subr.mxu0 %v3207_v10  ;;  %4236 = vmatprep.subr.mxu1 %v3075_v19  ;;  %v3147_v53 = vld [vmem:[%s14479_s3 + $0x768] sm:$0xff]  ;;  %v3278_v10 = vld [vmem:[%s14479_s3 + $0xb80] sm:$0xff] }
 0x3da   : > { %4306 = vmatpush1.msra.mxu0 %v3206_v56  ;;  %4237 = vmatpush1.msra.mxu1 %v3074_v47  ;;  %v3146_v19 = vld [vmem:[%s14479_s3 + $0x760] sm:$0xff]  ;;  %v3275_v56 = vld [vmem:[%s14479_s3 + $0xb68] sm:$0xff] }
 0x3db   : > { %4307 = vmatprep.subr.mxu0 %v3203_v48  ;;  %4238 = vmatprep.subr.mxu1 %v3071_v6  ;;  %v3143_v47 = vld [vmem:[%s14479_s3 + $0x748] sm:$0xff]  ;;  %v3274_v48 = vld [vmem:[%s14479_s3 + $0xb60] sm:$0xff] }
 0x3dc   : > { %4308 = vmatpush1.msra.mxu0 %v3202_v22  ;;  %4239 = vmatpush1.msra.mxu1 %v3070_v27  ;;  %v3142_v6 = vld [vmem:[%s14479_s3 + $0x740] sm:$0xff]  ;;  %v3271_v22 = vld [vmem:[%s14479_s3 + $0xb48] sm:$0xff] }
 0x3dd   : > { %4309 = vmatprep.subr.mxu0 %v3199_v63  ;;  %4240 = vmatprep.subr.mxu1 %v3067_v32  ;;  %v3139_v27 = vld [vmem:[%s14479_s3 + $0x728] sm:$0xff]  ;;  %v3270_v63 = vld [vmem:[%s14479_s3 + $0xb40] sm:$0xff] }
 0x3de   : > { %4310 = vmatpush1.msra.mxu0 %v3198_v49  ;;  %4241 = vmatpush1.msra.mxu1 %v3066_v9  ;;  %v3138_v32 = vld [vmem:[%s14479_s3 + $0x720] sm:$0xff]  ;;  %v3267_v49 = vld [vmem:[%s14479_s3 + $0xb28] sm:$0xff] }
 0x3df   : > { %4311 = vmatprep.subr.mxu0 %v3195_v5  ;;  %4242 = vmatprep.subr.mxu1 %v3063_v0  ;;  %v3135_v9 = vld [vmem:[%s14479_s3 + $0x708] sm:$0xff]  ;;  %v3266_v5 = vld [vmem:[%s14479_s3 + $0xb20] sm:$0xff] }
 0x3e0   : > { %4312 = vmatpush1.msra.mxu0 %v3194_v60  ;;  %4243 = vmatpush1.msra.mxu1 %v3062_v12  ;;  %v3134_v0 = vld [vmem:[%s14479_s3 + $0x700] sm:$0xff]  ;;  %v3263_v60 = vld [vmem:[%s14479_s3 + $0xb08] sm:$0xff] }
 0x3e1   : > { %4313 = vmatprep.subr.mxu0 %v3191_v62  ;;  %4244 = vmatprep.subr.mxu1 %v3059_v13  ;;  %v3131_v12 = vld [vmem:[%s14479_s3 + $0x6e8] sm:$0xff]  ;;  %v3262_v62 = vld [vmem:[%s14479_s3 + $0xb00] sm:$0xff] }
 0x3e2   : > { %4314 = vmatpush1.msra.mxu0 %v3190_v14  ;;  %4245 = vmatpush1.msra.mxu1 %v3058_v15  ;;  %v3130_v13 = vld [vmem:[%s14479_s3 + $0x6e0] sm:$0xff]  ;;  %v3259_v14 = vld [vmem:[%s14479_s3 + $0xae8] sm:$0xff] }
 0x3e3   : > { %4315 = vmatprep.subr.mxu0 %v3187_v16  ;;  %4246 = vmatprep.subr.mxu1 %v3055_v17  ;;  %v3127_v15 = vld [vmem:[%s14479_s3 + $0x6c8] sm:$0xff]  ;;  %v3258_v16 = vld [vmem:[%s14479_s3 + $0xae0] sm:$0xff] }
 0x3e4   : > { %4316 = vmatpush1.msra.mxu0 %v3186_v18  ;;  %4247 = vmatpush1.msra.mxu1 %v3054_v20  ;;  %v3126_v17 = vld [vmem:[%s14479_s3 + $0x6c0] sm:$0xff]  ;;  %v3255_v18 = vld [vmem:[%s14479_s3 + $0xac8] sm:$0xff] }
 0x3e5   : > { %4317 = vmatprep.subr.mxu0 %v3183_v23  ;;  %4248 = vmatprep.subr.mxu1 %v3051_v29  ;;  %v3123_v20 = vld [vmem:[%s14479_s3 + $0x6a8] sm:$0xff]  ;;  %v3254_v23 = vld [vmem:[%s14479_s3 + $0xac0] sm:$0xff] }
 0x3e6   : > { %4318 = vmatpush1.msra.mxu0 %v3182_v3  ;;  %4249 = vmatpush1.msra.mxu1 %v3050_v30  ;;  %v3122_v29 = vld [vmem:[%s14479_s3 + $0x6a0] sm:$0xff]  ;;  %v3251_v3 = vld [vmem:[%s14479_s3 + $0xaa8] sm:$0xff] }
 0x3e7   : > { %4319 = vmatprep.subr.mxu0 %v3179_v4  ;;  %4250 = vmatprep.subr.mxu1 %v3047_v50  ;;  %v3119_v30 = vld [vmem:[%s14479_s3 + $0x688] sm:$0xff]  ;;  %v3250_v4 = vld [vmem:[%s14479_s3 + $0xaa0] sm:$0xff] }
 0x3e8   : > { %4320 = vmatpush1.msra.mxu0 %v3178_v57  ;;  %4251 = vmatpush1.msra.mxu1 %v3046_v31  ;;  %v3118_v50 = vld [vmem:[%s14479_s3 + $0x680] sm:$0xff]  ;;  %v3247_v57 = vld [vmem:[%s14479_s3 + $0xa88] sm:$0xff] }
 0x3e9   : > { %4321 = vmatprep.subr.mxu0 %v3175_v33  ;;  %4252 = vmatprep.subr.mxu1 %v3043_v34  ;;  %v3115_v31 = vld [vmem:[%s14479_s3 + $0x668] sm:$0xff]  ;;  %v3246_v33 = vld [vmem:[%s14479_s3 + $0xa80] sm:$0xff] }
 0x3ea   : > { %4322 = vmatpush1.msra.mxu0 %v3174_v43  ;;  %4253 = vmatpush1.msra.mxu1 %v3042_v46  ;;  %v3114_v34 = vld [vmem:[%s14479_s3 + $0x660] sm:$0xff]  ;;  %v3243_v43 = vld [vmem:[%s14479_s3 + $0xa68] sm:$0xff] }
 0x3eb   : > { %4323 = vmatprep.subr.mxu0 %v3171_v52  ;;  %4254 = vmatprep.subr.mxu1 %v3039_v39  ;;  %v3111_v46 = vld [vmem:[%s14479_s3 + $0x648] sm:$0xff]  ;;  %v3242_v52 = vld [vmem:[%s14479_s3 + $0xa60] sm:$0xff] }
 0x3ec   : > { %4324 = vmatpush1.msra.mxu0 %v3170_v61  ;;  %4255 = vmatpush1.msra.mxu1 %v3038_v8  ;;  %v3110_v39 = vld [vmem:[%s14479_s3 + $0x640] sm:$0xff]  ;;  %v3239_v61 = vld [vmem:[%s14479_s3 + $0xa48] sm:$0xff] }
 0x3ed   : > { %4325 = vmatprep.subr.mxu0 %v3167_v51  ;;  %4256 = vmatprep.subr.mxu1 %v3163_v24  ;;  %v3107_v8 = vld [vmem:[%s14479_s3 + $0x628] sm:$0xff]  ;;  %v3238_v51 = vld [vmem:[%s14479_s3 + $0xa40] sm:$0xff] }
 0x3ee   : > { %4326 = vmatpush1.msra.mxu0 %v3166_v1  ;;  %4257 = vmatpush2.msra.mxu1 %v3162_v44  ;;  %v3106_v24 = vld [vmem:[%s14479_s3 + $0x620] sm:$0xff]  ;;  %v3235_v1 = vld [vmem:[%s14479_s3 + $0xa28] sm:$0xff] }
 0x3ef   : > { %4327 = vmatprep.subr.mxu0 %v3291_v36  ;;  %4258 = vmatprep.subr.mxu1 %v3159_v37  ;;  %v3103_v44 = vld [vmem:[%s14479_s3 + $0x608] sm:$0xff]  ;;  %v3234_v36 = vld [vmem:[%s14479_s3 + $0xa20] sm:$0xff] }
 0x3f0   : > { %4328 = vmatpush2.msra.mxu0 %v3290_v38  ;;  %4259 = vmatpush2.msra.mxu1 %v3158_v2  ;;  %v3102_v37 = vld [vmem:[%s14479_s3 + $0x600] sm:$0xff]  ;;  %v3231_v38 = vld [vmem:[%s14479_s3 + $0xa08] sm:$0xff] }
 0x3f1   : > { %4329 = vmatprep.subr.mxu0 %v3287_v41  ;;  %4260 = vmatprep.subr.mxu1 %v3155_v42  ;;  %v3230_v2 = vld [vmem:[%s14479_s3 + $0xa00] sm:$0xff]  ;;  %v2909_v41 = vld [vmem:[#allocation2 + $0x28] sm:$0xff]  ;;  %v12630_v42 = vld [vmem:[#allocation2 + $0x10] sm:$0xff] }
 0x3f2   : > { %4330 = vmatpush2.msra.mxu0 %v3286_v54  ;;  %4261 = vmatpush2.msra.mxu1 %v3154_v21  ;;  %v2973_v54 = vld [vmem:[%s14479_s3 + $0x1f8] sm:$0xff]  ;;  %v2972_v21 = vld [vmem:[%s14479_s3 + $0x1f0] sm:$0xff] }
 0x3f3   : > { %4331 = vmatprep.subr.mxu0 %v3283_v40  ;;  %4262 = vmatprep.subr.mxu1 %v3151_v45  ;;  %v2908_v40 = vld [vmem:[#allocation2 + $0x20] sm:$0xff]  ;;  %v3101_v45 = vld [vmem:[%s14479_s3 + $0x5f8] sm:$0xff] }
 0x3f4   : > { %4332 = vmatpush2.msra.mxu0 %v3282_v11  ;;  %4263 = vmatpush2.msra.mxu1 %v3150_v7  ;;  %v2969_v11 = vld [vmem:[%s14479_s3 + $0x1d8] sm:$0xff]  ;;  %v3100_v7 = vld [vmem:[%s14479_s3 + $0x5f0] sm:$0xff] }
 0x3f5   : > { %4333 = vmatprep.subr.mxu0 %v3279_v59  ;;  %4264 = vmatprep.subr.mxu1 %v3147_v53  ;;  %v7130_v59 = vld [vmem:[#allocation2 + $0x8] sm:$0xff]  ;;  %v2968_v53 = vld [vmem:[%s14479_s3 + $0x1d0] sm:$0xff] }
 0x3f6   : > { %4334 = vmatpush2.msra.mxu0 %v3278_v10  ;;  %4265 = vmatpush2.msra.mxu1 %v3146_v19  ;;  %v3097_v10 = vld [vmem:[%s14479_s3 + $0x5d8] sm:$0xff] }
 0x3f7   : > { %4335 = vmatprep.subr.mxu0 %v3275_v56  ;;  %4266 = vmatprep.subr.mxu1 %v3143_v47  ;;  %v2965_v19 = vld [vmem:[%s14479_s3 + $0x1b8] sm:$0xff]  ;;  %v3096_v56 = vld [vmem:[%s14479_s3 + $0x5d0] sm:$0xff] }
 0x3f8   : > { %4336 = vmatpush2.msra.mxu0 %v3274_v48  ;;  %4267 = vmatpush2.msra.mxu1 %v3142_v6  ;;  %v2964_v47 = vld [vmem:[%s14479_s3 + $0x1b0] sm:$0xff]  ;;  %v3093_v48 = vld [vmem:[%s14479_s3 + $0x5b8] sm:$0xff] }
 0x3f9   : > { %4337 = vmatprep.subr.mxu0 %v3271_v22  ;;  %4268 = vmatprep.subr.mxu1 %v3139_v27  ;;  %v2961_v6 = vld [vmem:[%s14479_s3 + $0x198] sm:$0xff]  ;;  %v3092_v22 = vld [vmem:[%s14479_s3 + $0x5b0] sm:$0xff] }
 0x3fa   : > { %4338 = vmatpush2.msra.mxu0 %v3270_v63  ;;  %4269 = vmatpush2.msra.mxu1 %v3138_v32  ;;  %v3089_v27 = vld [vmem:[%s14479_s3 + $0x598] sm:$0xff]  ;;  %v3088_v32 = vld [vmem:[%s14479_s3 + $0x590] sm:$0xff] }
 0x3fb   : > { %4339 = vmatprep.subr.mxu0 %v3267_v49  ;;  %4270 = vmatprep.subr.mxu1 %v3135_v9  ;;  %v2957_v63 = vld [vmem:[%s14479_s3 + $0x178] sm:$0xff]  ;;  %v2956_v49 = vld [vmem:[%s14479_s3 + $0x170] sm:$0xff] }
 0x3fc   : > { %4340 = vmatpush2.msra.mxu0 %v3266_v5  ;;  %4271 = vmatpush2.msra.mxu1 %v3134_v0  ;;  %v3085_v9 = vld [vmem:[%s14479_s3 + $0x578] sm:$0xff]  ;;  %v3084_v0 = vld [vmem:[%s14479_s3 + $0x570] sm:$0xff] }
 0x3fd   : > { %4341 = vmatprep.subr.mxu0 %v3263_v60  ;;  %4272 = vmatprep.subr.mxu1 %v3131_v12  ;;  %v2953_v5 = vld [vmem:[%s14479_s3 + $0x158] sm:$0xff]  ;;  %v2952_v60 = vld [vmem:[%s14479_s3 + $0x150] sm:$0xff] }
 0x3fe   : > { %4342 = vmatpush2.msra.mxu0 %v3262_v62  ;;  %4273 = vmatpush2.msra.mxu1 %v3130_v13  ;;  %v3081_v12 = vld [vmem:[%s14479_s3 + $0x558] sm:$0xff]  ;;  %v3080_v13 = vld [vmem:[%s14479_s3 + $0x550] sm:$0xff] }
 0x3ff   : > { %4343 = vmatprep.subr.mxu0 %v3259_v14  ;;  %4274 = vmatprep.subr.mxu1 %v3127_v15  ;;  %v2949_v62 = vld [vmem:[%s14479_s3 + $0x138] sm:$0xff]  ;;  %v2948_v14 = vld [vmem:[%s14479_s3 + $0x130] sm:$0xff] }
 0x400   : > { %4344 = vmatpush2.msra.mxu0 %v3258_v16  ;;  %4275 = vmatpush2.msra.mxu1 %v3126_v17  ;;  %v3077_v15 = vld [vmem:[%s14479_s3 + $0x538] sm:$0xff]  ;;  %v3076_v17 = vld [vmem:[%s14479_s3 + $0x530] sm:$0xff] }
 0x401   : > { %4345 = vmatprep.subr.mxu0 %v3255_v18  ;;  %4276 = vmatprep.subr.mxu1 %v3123_v20  ;;  %v2945_v16 = vld [vmem:[%s14479_s3 + $0x118] sm:$0xff]  ;;  %v2944_v18 = vld [vmem:[%s14479_s3 + $0x110] sm:$0xff] }
 0x402   : > { %4346 = vmatpush2.msra.mxu0 %v3254_v23  ;;  %4277 = vmatpush2.msra.mxu1 %v3122_v29  ;;  %v3073_v20 = vld [vmem:[%s14479_s3 + $0x518] sm:$0xff]  ;;  %v3072_v29 = vld [vmem:[%s14479_s3 + $0x510] sm:$0xff] }
 0x403   : > { %4347 = vmatprep.subr.mxu0 %v3251_v3  ;;  %4278 = vmatprep.subr.mxu1 %v3119_v30  ;;  %v2941_v23 = vld [vmem:[%s14479_s3 + $0xf8] sm:$0xff]  ;;  %v2940_v3 = vld [vmem:[%s14479_s3 + $0xf0] sm:$0xff] }
 0x404   : > { %4348 = vmatpush2.msra.mxu0 %v3250_v4  ;;  %4279 = vmatpush2.msra.mxu1 %v3118_v50  ;;  %v3069_v30 = vld [vmem:[%s14479_s3 + $0x4f8] sm:$0xff]  ;;  %v3068_v50 = vld [vmem:[%s14479_s3 + $0x4f0] sm:$0xff] }
 0x405   : > { %4349 = vmatprep.subr.mxu0 %v3247_v57  ;;  %4280 = vmatprep.subr.mxu1 %v3115_v31  ;;  %v2937_v4 = vld [vmem:[%s14479_s3 + $0xd8] sm:$0xff]  ;;  %v2936_v57 = vld [vmem:[%s14479_s3 + $0xd0] sm:$0xff] }
 0x406   : > { %4350 = vmatpush2.msra.mxu0 %v3246_v33  ;;  %4281 = vmatpush2.msra.mxu1 %v3114_v34  ;;  %v3065_v31 = vld [vmem:[%s14479_s3 + $0x4d8] sm:$0xff]  ;;  %v3064_v34 = vld [vmem:[%s14479_s3 + $0x4d0] sm:$0xff] }
 0x407   : > { %4351 = vmatprep.subr.mxu0 %v3243_v43  ;;  %4282 = vmatprep.subr.mxu1 %v3111_v46  ;;  %v2933_v33 = vld [vmem:[%s14479_s3 + $0xb8] sm:$0xff]  ;;  %v2932_v43 = vld [vmem:[%s14479_s3 + $0xb0] sm:$0xff] }
 0x408   : > { %4352 = vmatpush2.msra.mxu0 %v3242_v52  ;;  %4283 = vmatpush2.msra.mxu1 %v3110_v39  ;;  %v3061_v46 = vld [vmem:[%s14479_s3 + $0x4b8] sm:$0xff]  ;;  %v3060_v39 = vld [vmem:[%s14479_s3 + $0x4b0] sm:$0xff] }
 0x409   : > { %4353 = vmatprep.subr.mxu0 %v3239_v61  ;;  %4284 = vmatprep.subr.mxu1 %v3107_v8  ;;  %v2929_v52 = vld [vmem:[%s14479_s3 + $0x98] sm:$0xff]  ;;  %v2928_v61 = vld [vmem:[%s14479_s3 + $0x90] sm:$0xff] }
 0x40a   : > { %4354 = vmatpush2.msra.mxu0 %v3238_v51  ;;  %4285 = vmatpush2.msra.mxu1 %v3106_v24  ;;  %v3057_v8 = vld [vmem:[%s14479_s3 + $0x498] sm:$0xff]  ;;  %v3056_v24 = vld [vmem:[%s14479_s3 + $0x490] sm:$0xff] }
 0x40b   : > { %4355 = vmatprep.subr.mxu0 %v3235_v1  ;;  %4286 = vmatprep.subr.mxu1 %v3103_v44  ;;  %v2925_v51 = vld [vmem:[%s14479_s3 + $0x78] sm:$0xff]  ;;  %v2924_v1 = vld [vmem:[%s14479_s3 + $0x70] sm:$0xff] }
 0x40c   : > { %4356 = vmatpush2.msra.mxu0 %v3234_v36  ;;  %4287 = vmatpush2.msra.mxu1 %v3102_v37  ;;  %v3053_v44 = vld [vmem:[%s14479_s3 + $0x478] sm:$0xff]  ;;  %v3052_v37 = vld [vmem:[%s14479_s3 + $0x470] sm:$0xff] }
 0x40d   : > { %4357 = vmatprep.subr.mxu0 %v3231_v38  ;;  %4289 = vmatmul.mubr.f32.vlgmr.msra.gmra.mxu1 %v12630_v42  ;;  %v2921_v36 = vld [vmem:[%s14479_s3 + $0x58] sm:$0xff]  ;;  %v2920_v38 = vld [vmem:[%s14479_s3 + $0x50] sm:$0xff] }
 0x40e   : > { %4358 = vmatpush2.msra.mxu0 %v3230_v2  ;;  %4359 = vmatprep.mubr.f32.mxu0 %v2909_v41  ;;  %v3049_v2 = vld [vmem:[%s14479_s3 + $0x458] sm:$0xff] }
 0x40f   : > { %4366 = vmatprep.subr.mxu1 %v2973_v54  ;;  %4360 = vmatmul.mubr.f32.vlgmr.msra.gmra.mxu0 %v2908_v40  ;;  %v2917_v41 = vld [vmem:[%s14479_s3 + $0x38] sm:$0xff]  ;;  %v3048_v54 = vld [vmem:[%s14479_s3 + $0x450] sm:$0xff] }
 0x410   : > { %4367 = vmatpush1.msra.mxu1 %v2972_v21  ;;  %4430 = vmatprep.mubr.f32.mxu1 %v7130_v59  ;;  %v2916_v21 = vld [vmem:[%s14479_s3 + $0x30] sm:$0xff]  ;;  %v3045_v40 = vld [vmem:[%s14479_s3 + $0x438] sm:$0xff] }
 0x411   : > { %4437 = vmatprep.subr.mxu0 %v3101_v45  ;;  %4368 = vmatprep.subr.mxu1 %v2969_v11  ;;  %v2913_v45 = vld [vmem:[%s14479_s3 + $0x18] sm:$0xff]  ;;  %v3044_v11 = vld [vmem:[%s14479_s3 + $0x430] sm:$0xff] }
 0x412   : > { %4438 = vmatpush1.msra.mxu0 %v3100_v7  ;;  %4501 = vmatprep.mubr.f32.mxu0 %v12255_v58  ;;  %v2960_v58 = vld [vmem:[%s14479_s3 + $0x190] sm:$0xff]  ;;  %v3041_v59 = vld [vmem:[%s14479_s3 + $0x418] sm:$0xff] }
 0x413   : > { %4369 = vmatpush1.msra.mxu1 %v2968_v53  ;;  %4439 = vmatprep.subr.mxu0 %v3097_v10  ;;  %v2912_v7 = vld [vmem:[%s14479_s3 + $0x10] sm:$0xff]  ;;  %v3037_v53 = vld [vmem:[%s14479_s3 + $0x3f8] sm:$0xff] }
 0x414   : > { %4370 = vmatprep.subr.mxu1 %v2965_v19  ;;  %4440 = vmatpush1.msra.mxu0 %v3096_v56  ;;  %v3040_v10 = vld [vmem:[%s14479_s3 + $0x410] sm:$0xff]  ;;  %v3165_v56 = vld [vmem:[%s14479_s3 + $0x7f8] sm:$0xff] }
 0x415   : > { %4371 = vmatpush1.msra.mxu1 %v2964_v47  ;;  %4441 = vmatprep.subr.mxu0 %v3093_v48  ;;  %v3036_v19 = vld [vmem:[%s14479_s3 + $0x3f0] sm:$0xff]  ;;  %v3033_v47 = vld [vmem:[%s14479_s3 + $0x3d8] sm:$0xff] }
 0x416   : > { %4372 = vmatprep.subr.mxu1 %v2961_v6  ;;  %4442 = vmatpush1.msra.mxu0 %v3092_v22  ;;  %v3164_v48 = vld [vmem:[%s14479_s3 + $0x7f0] sm:$0xff]  ;;  %v3161_v22 = vld [vmem:[%s14479_s3 + $0x7d8] sm:$0xff] }
 0x417   : > { %4373 = vmatpush1.msra.mxu1 %v2960_v58  ;;  %4443 = vmatprep.subr.mxu0 %v3089_v27  ;;  %v3032_v6 = vld [vmem:[%s14479_s3 + $0x3d0] sm:$0xff]  ;;  %v3029_v58 = vld [vmem:[%s14479_s3 + $0x3b8] sm:$0xff] }
 0x418   : > { %4374 = vmatprep.subr.mxu1 %v2957_v63  ;;  %4444 = vmatpush1.msra.mxu0 %v3088_v32  ;;  %v3160_v27 = vld [vmem:[%s14479_s3 + $0x7d0] sm:$0xff]  ;;  %v3157_v32 = vld [vmem:[%s14479_s3 + $0x7b8] sm:$0xff] }
 0x419   : > { %4375 = vmatpush1.msra.mxu1 %v2956_v49  ;;  %4445 = vmatprep.subr.mxu0 %v3085_v9  ;;  %v3028_v63 = vld [vmem:[%s14479_s3 + $0x3b0] sm:$0xff]  ;;  %v3025_v49 = vld [vmem:[%s14479_s3 + $0x398] sm:$0xff] }
 0x41a   : > { %4376 = vmatprep.subr.mxu1 %v2953_v5  ;;  %4446 = vmatpush1.msra.mxu0 %v3084_v0  ;;  %v3156_v9 = vld [vmem:[%s14479_s3 + $0x7b0] sm:$0xff]  ;;  %v3153_v0 = vld [vmem:[%s14479_s3 + $0x798] sm:$0xff] }
 0x41b   : > { %4377 = vmatpush1.msra.mxu1 %v2952_v60  ;;  %4447 = vmatprep.subr.mxu0 %v3081_v12  ;;  %v3024_v5 = vld [vmem:[%s14479_s3 + $0x390] sm:$0xff]  ;;  %v3021_v60 = vld [vmem:[%s14479_s3 + $0x378] sm:$0xff] }
 0x41c   : > { %4378 = vmatprep.subr.mxu1 %v2949_v62  ;;  %4448 = vmatpush1.msra.mxu0 %v3080_v13  ;;  %v3152_v12 = vld [vmem:[%s14479_s3 + $0x790] sm:$0xff]  ;;  %v3149_v13 = vld [vmem:[%s14479_s3 + $0x778] sm:$0xff] }
 0x41d   : > { %4379 = vmatpush1.msra.mxu1 %v2948_v14  ;;  %4449 = vmatprep.subr.mxu0 %v3077_v15  ;;  %v3020_v62 = vld [vmem:[%s14479_s3 + $0x370] sm:$0xff]  ;;  %v3017_v14 = vld [vmem:[%s14479_s3 + $0x358] sm:$0xff] }
 0x41e   : > { %4380 = vmatprep.subr.mxu1 %v2945_v16  ;;  %4450 = vmatpush1.msra.mxu0 %v3076_v17  ;;  %v3148_v15 = vld [vmem:[%s14479_s3 + $0x770] sm:$0xff]  ;;  %v3145_v17 = vld [vmem:[%s14479_s3 + $0x758] sm:$0xff] }
 0x41f   : > { %4381 = vmatpush1.msra.mxu1 %v2944_v18  ;;  %4451 = vmatprep.subr.mxu0 %v3073_v20  ;;  %v3016_v16 = vld [vmem:[%s14479_s3 + $0x350] sm:$0xff]  ;;  %v3013_v18 = vld [vmem:[%s14479_s3 + $0x338] sm:$0xff] }
 0x420   : > { %4382 = vmatprep.subr.mxu1 %v2941_v23  ;;  %4452 = vmatpush1.msra.mxu0 %v3072_v29  ;;  %v3144_v20 = vld [vmem:[%s14479_s3 + $0x750] sm:$0xff]  ;;  %v3141_v29 = vld [vmem:[%s14479_s3 + $0x738] sm:$0xff] }
 0x421   : > { %4383 = vmatpush1.msra.mxu1 %v2940_v3  ;;  %4453 = vmatprep.subr.mxu0 %v3069_v30  ;;  %v3012_v23 = vld [vmem:[%s14479_s3 + $0x330] sm:$0xff]  ;;  %v3009_v3 = vld [vmem:[%s14479_s3 + $0x318] sm:$0xff] }
 0x422   : > { %4384 = vmatprep.subr.mxu1 %v2937_v4  ;;  %4454 = vmatpush1.msra.mxu0 %v3068_v50  ;;  %v3140_v30 = vld [vmem:[%s14479_s3 + $0x730] sm:$0xff]  ;;  %v3137_v50 = vld [vmem:[%s14479_s3 + $0x718] sm:$0xff] }
 0x423   : > { %4385 = vmatpush1.msra.mxu1 %v2936_v57  ;;  %4455 = vmatprep.subr.mxu0 %v3065_v31  ;;  %v3008_v4 = vld [vmem:[%s14479_s3 + $0x310] sm:$0xff]  ;;  %v12919_v57 = vpop.f32.mrf.mxu0  ;;  %v3005_v31 = vld [vmem:[%s14479_s3 + $0x2f8] sm:$0xff] }
 0x424   : > { %4386 = vmatprep.subr.mxu1 %v2933_v33  ;;  %4456 = vmatpush1.msra.mxu0 %v3064_v34  ;;  %v3136_v33 = vld [vmem:[%s14479_s3 + $0x710] sm:$0xff] }
 0x425   : > { %4387 = vmatpush1.msra.mxu1 %v2932_v43  ;;  %4457 = vmatprep.subr.mxu0 %v3061_v46  ;;  %v3004_v34 = vld [vmem:[%s14479_s3 + $0x2f0] sm:$0xff]  ;;  %v3133_v43 = vld [vmem:[%s14479_s3 + $0x6f8] sm:$0xff] }
 0x426   : > { %4388 = vmatprep.subr.mxu1 %v2929_v52  ;;  %4458 = vmatpush1.msra.mxu0 %v3060_v39  ;;  %v3001_v46 = vld [vmem:[%s14479_s3 + $0x2d8] sm:$0xff]  ;;  %v3132_v52 = vld [vmem:[%s14479_s3 + $0x6f0] sm:$0xff] }
 0x427   : > { %4389 = vmatpush1.msra.mxu1 %v2928_v61  ;;  %4459 = vmatprep.subr.mxu0 %v3057_v8  ;;  %v3000_v39 = vld [vmem:[%s14479_s3 + $0x2d0] sm:$0xff]  ;;  %v3129_v61 = vld [vmem:[%s14479_s3 + $0x6d8] sm:$0xff]  ;;  %v12945_v8 = vpop.f32.mrf.mxu0 }
 0x428   : > { %4390 = vmatprep.subr.mxu1 %v2925_v51  ;;  %4460 = vmatpush1.msra.mxu0 %v3056_v24  ;;  %v2997_v51 = vld [vmem:[%s14479_s3 + $0x2b8] sm:$0xff]  ;;  %v3128_v24 = vld [vmem:[%s14479_s3 + $0x6d0] sm:$0xff] }
 0x429   : > { %4391 = vmatpush1.msra.mxu1 %v2924_v1  ;;  %4461 = vmatprep.subr.mxu0 %v3053_v44  ;;  %v2996_v1 = vld [vmem:[%s14479_s3 + $0x2b0] sm:$0xff]  ;;  %v3125_v44 = vld [vmem:[%s14479_s3 + $0x6b8] sm:$0xff] }
 0x42a   : > { %4392 = vmatprep.subr.mxu1 %v2921_v36  ;;  %4462 = vmatpush1.msra.mxu0 %v3052_v37  ;;  %v2993_v36 = vld [vmem:[%s14479_s3 + $0x298] sm:$0xff]  ;;  %v3124_v37 = vld [vmem:[%s14479_s3 + $0x6b0] sm:$0xff] }
 0x42b   : > { %4393 = vmatpush1.msra.mxu1 %v2920_v38  ;;  %4463 = vmatprep.subr.mxu0 %v3049_v2  ;;  %v12965_v38 = vpop.f32.mrf.mxu1  ;;  %v2992_v2 = vld [vmem:[%s14479_s3 + $0x290] sm:$0xff] }
 0x42c   : > { %4394 = vmatprep.subr.mxu1 %v2917_v41  ;;  %4464 = vmatpush1.msra.mxu0 %v3048_v54  ;;  %v3121_v41 = vld [vmem:[%s14479_s3 + $0x698] sm:$0xff]  ;;  %v12973_v54 = vpop.f32.mrf.mxu0 }
 0x42d   : > { %4395 = vmatpush1.msra.mxu1 %v2916_v21  ;;  %4465 = vmatprep.subr.mxu0 %v3045_v40  ;;  %v2989_v21 = vld [vmem:[%s14479_s3 + $0x278] sm:$0xff]  ;;  %v3120_v40 = vld [vmem:[%s14479_s3 + $0x690] sm:$0xff] }
 0x42e   : > { %4396 = vmatprep.subr.mxu1 %v2913_v45  ;;  %4466 = vmatpush1.msra.mxu0 %v3044_v11  ;;  %v2988_v45 = vld [vmem:[%s14479_s3 + $0x270] sm:$0xff]  ;;  %v3117_v11 = vld [vmem:[%s14479_s3 + $0x678] sm:$0xff] }
 0x42f   : > { %4397 = vmatpush1.msra.mxu1 %v2912_v7  ;;  %4467 = vmatprep.subr.mxu0 %v3041_v59  ;;  %v2985_v7 = vld [vmem:[%s14479_s3 + $0x258] sm:$0xff]  ;;  %v3116_v59 = vld [vmem:[%s14479_s3 + $0x670] sm:$0xff] }
 0x430   : > { %4398 = vmatprep.subr.mxu1 %v3037_v53  ;;  %4468 = vmatpush1.msra.mxu0 %v3040_v10  ;;  %v12993_v53 = vpop.f32.mrf.mxu1  ;;  %v2984_v10 = vld [vmem:[%s14479_s3 + $0x250] sm:$0xff] }
 0x431   : > { %4399 = vmatpush2.msra.mxu1 %v3036_v19  ;;  %4469 = vmatprep.subr.mxu0 %v3165_v56  ;;  %v3113_v19 = vld [vmem:[%s14479_s3 + $0x658] sm:$0xff]  ;;  %v13001_v56 = vpop.f32.mrf.mxu0 }
 0x432   : > { %4400 = vmatprep.subr.mxu1 %v3033_v47  ;;  %4470 = vmatpush2.msra.mxu0 %v3164_v48  ;;  %v2981_v47 = vld [vmem:[%s14479_s3 + $0x238] sm:$0xff]  ;;  %v3112_v48 = vld [vmem:[%s14479_s3 + $0x650] sm:$0xff] }
 0x433   : > { %4401 = vmatpush2.msra.mxu1 %v3032_v6  ;;  %4471 = vmatprep.subr.mxu0 %v3161_v22  ;;  %v2980_v6 = vld [vmem:[%s14479_s3 + $0x230] sm:$0xff]  ;;  %v3109_v22 = vld [vmem:[%s14479_s3 + $0x638] sm:$0xff] }
 0x434   : > { %4402 = vmatprep.subr.mxu1 %v3029_v58  ;;  %4472 = vmatpush2.msra.mxu0 %v3160_v27  ;;  %v2977_v27 = vld [vmem:[%s14479_s3 + $0x218] sm:$0xff] }
 0x435   : > { %4403 = vmatpush2.msra.mxu1 %v3028_v63  ;;  %4473 = vmatprep.subr.mxu0 %v3157_v32  ;;  %v3108_v63 = vld [vmem:[%s14479_s3 + $0x630] sm:$0xff] }
 0x436   : > { %4404 = vmatprep.subr.mxu1 %v3025_v49  ;;  %4474 = vmatpush2.msra.mxu0 %v3156_v9  ;;  %v4580_v49 = vld [vmem:[#allocation2 + $0x8] sm:$0xfc]  ;;  %v2976_v9 = vld [vmem:[%s14479_s3 + $0x210] sm:$0xff] }
 0x437   : > { %4405 = vmatpush2.msra.mxu1 %v3024_v5  ;;  %4475 = vmatprep.subr.mxu0 %v3153_v0  ;;  %v3105_v5 = vld [vmem:[%s14479_s3 + $0x618] sm:$0xff] }
 0x438   : > { %4406 = vmatprep.subr.mxu1 %v3021_v60  ;;  %4476 = vmatpush2.msra.mxu0 %v3152_v12  ;;  %v4586_v12 = vld [vmem:[#allocation2 + $0x38] sm:$0x3] }
 0x439   : > { %4407 = vmatpush2.msra.mxu1 %v3020_v62  ;;  %4477 = vmatprep.subr.mxu0 %v3149_v13  ;;  %v3104_v62 = vld [vmem:[%s14479_s3 + $0x610] sm:$0xff] }
 0x43a   : > { %4408 = vmatprep.subr.mxu1 %v3017_v14  ;;  %4478 = vmatpush2.msra.mxu0 %v3148_v15  ;;  %v3229_v14 = vld [vmem:[%s14479_s3 + $0x9f8] sm:$0xff] }
 0x43b   : > { %4409 = vmatpush2.msra.mxu1 %v3016_v16  ;;  %4479 = vmatprep.subr.mxu0 %v3145_v17  ;;  %v3228_v16 = vld [vmem:[%s14479_s3 + $0x9f0] sm:$0xff]  ;;  %v6781_v17 = vld [vmem:[%s14479_s3 + $0x19e8] sm:$0xff] }
 0x43c   : > { %4410 = vmatprep.subr.mxu1 %v3013_v18  ;;  %4480 = vmatpush2.msra.mxu0 %v3144_v20  ;;  %v4991_v18 = vrot.slane %v4580_v49, 2  ;;  %v4992_v20 = vrot.slane %v4586_v12, 2  ;;  %v6744_v49 = vld [vmem:[%s14479_s3 + $0x18c0] sm:$0xff] }
 0x43d   : > { %4411 = vmatpush2.msra.mxu1 %v3012_v23  ;;  %4481 = vmatprep.subr.mxu0 %v3141_v29  ;;  %v7131_v23 = vld [vmem:[#allocation2] sm:$0xff]  ;;  %v3225_v29 = vld [vmem:[%s14479_s3 + $0x9d8] sm:$0xff] }
 0x43e   : > { %4412 = vmatprep.subr.mxu1 %v3009_v3  ;;  %4482 = vmatpush2.msra.mxu0 %v3140_v30  ;;  %v6780_v3 = vld [vmem:[%s14479_s3 + $0x19e0] sm:$0xff]  ;;  %v3224_v30 = vld [vmem:[%s14479_s3 + $0x9d0] sm:$0xff] }
 0x43f   : > { %4413 = vmatpush2.msra.mxu1 %v3008_v4  ;;  %4483 = vmatprep.subr.mxu0 %v3137_v50  ;;  %v6777_v4 = vld [vmem:[%s14479_s3 + $0x19c8] sm:$0xff]  ;;  %v3221_v50 = vld [vmem:[%s14479_s3 + $0x9b8] sm:$0xff]  ;;  %v6740_v12 = vld [vmem:[%s14479_s3 + $0x18a0] sm:$0xff] }
 0x440   : > { %4414 = vmatprep.subr.mxu1 %v3005_v31  ;;  %4484 = vmatpush2.msra.mxu0 %v3136_v33  ;;  %v13060_v31 = vsel %vm2390_vm2, %v4991_v18, %v4992_v20  ;;  %v3220_v33 = vld [vmem:[%s14479_s3 + $0x9b0] sm:$0xff]  ;;  %v6733_v18 = vld [vmem:[%s14479_s3 + $0x1868] sm:$0xff]  ;;  %v3177_v20 = vld [vmem:[%s14479_s3 + $0x858] sm:$0xff] }
 0x441   : > { %4415 = vmatpush2.msra.mxu1 %v3004_v34  ;;  %4485 = vmatprep.subr.mxu0 %v3133_v43  ;;  %v6773_v34 = vld [vmem:[%s14479_s3 + $0x19a8] sm:$0xff]  ;;  %v3217_v43 = vld [vmem:[%s14479_s3 + $0x998] sm:$0xff] }
 0x442   : > { %4416 = vmatprep.subr.mxu1 %v3001_v46  ;;  %4486 = vmatpush2.msra.mxu0 %v3132_v52  ;;  %v6772_v46 = vld [vmem:[%s14479_s3 + $0x19a0] sm:$0xff]  ;;  %v3216_v52 = vld [vmem:[%s14479_s3 + $0x990] sm:$0xff] }
 0x443   : > { %4417 = vmatpush2.msra.mxu1 %v3000_v39  ;;  %4487 = vmatprep.subr.mxu0 %v3129_v61  ;;  %v6769_v39 = vld [vmem:[%s14479_s3 + $0x1988] sm:$0xff]  ;;  %v3213_v61 = vld [vmem:[%s14479_s3 + $0x978] sm:$0xff] }
 0x444   : > { %4418 = vmatprep.subr.mxu1 %v2997_v51  ;;  %4488 = vmatpush2.msra.mxu0 %v3128_v24  ;;  %v6768_v51 = vld [vmem:[%s14479_s3 + $0x1980] sm:$0xff]  ;;  %v3212_v24 = vld [vmem:[%s14479_s3 + $0x970] sm:$0xff] }
 0x445   : > { %4419 = vmatpush2.msra.mxu1 %v2996_v1  ;;  %4489 = vmatprep.subr.mxu0 %v3125_v44  ;;  %v6765_v1 = vld [vmem:[%s14479_s3 + $0x1968] sm:$0xff]  ;;  %v3209_v44 = vld [vmem:[%s14479_s3 + $0x958] sm:$0xff] }
 0x446   : > { %4420 = vmatprep.subr.mxu1 %v2993_v36  ;;  %4490 = vmatpush2.msra.mxu0 %v3124_v37  ;;  %v6764_v36 = vld [vmem:[%s14479_s3 + $0x1960] sm:$0xff]  ;;  %v3208_v37 = vld [vmem:[%s14479_s3 + $0x950] sm:$0xff] }
 0x447   : > { %4421 = vmatpush2.msra.mxu1 %v2992_v2  ;;  %4491 = vmatprep.subr.mxu0 %v3121_v41  ;;  %v6761_v2 = vld [vmem:[%s14479_s3 + $0x1948] sm:$0xff]  ;;  %v3205_v41 = vld [vmem:[%s14479_s3 + $0x938] sm:$0xff] }
 0x448   : > { %4422 = vmatprep.subr.mxu1 %v2989_v21  ;;  %4492 = vmatpush2.msra.mxu0 %v3120_v40  ;;  %v6760_v21 = vld [vmem:[%s14479_s3 + $0x1940] sm:$0xff]  ;;  %v3204_v40 = vld [vmem:[%s14479_s3 + $0x930] sm:$0xff] }
 0x449   : > { %4423 = vmatpush2.msra.mxu1 %v2988_v45  ;;  %4493 = vmatprep.subr.mxu0 %v3117_v11  ;;  %v6757_v45 = vld [vmem:[%s14479_s3 + $0x1928] sm:$0xff]  ;;  %v3201_v11 = vld [vmem:[%s14479_s3 + $0x918] sm:$0xff] }
 0x44a   : > { %4424 = vmatprep.subr.mxu1 %v2985_v7  ;;  %4494 = vmatpush2.msra.mxu0 %v3116_v59  ;;  %v4006_v58 = vpop.f32.mrf.mxu1  ;;  %v6756_v7 = vld [vmem:[%s14479_s3 + $0x1920] sm:$0xff]  ;;  %v3200_v59 = vld [vmem:[%s14479_s3 + $0x910] sm:$0xff] }
 0x44b   : > { %4425 = vmatpush2.msra.mxu1 %v2984_v10  ;;  %4495 = vmatprep.subr.mxu0 %v3113_v19  ;;  %v4077_v32 = vpop.f32.mrf.mxu0  ;;  %v6753_v10 = vld [vmem:[%s14479_s3 + $0x1908] sm:$0xff]  ;;  %v3197_v19 = vld [vmem:[%s14479_s3 + $0x8f8] sm:$0xff] }
 0x44c   : > { %4426 = vmatprep.subr.mxu1 %v2981_v47  ;;  %4496 = vmatpush2.msra.mxu0 %v3112_v48  ;;  %v13027_v0 = vadd.f32 %v4077_v32, %v4006_v58  ;;  %v4008_v60 = vpop.f32.mrf.mxu1  ;;  %v6752_v47 = vld [vmem:[%s14479_s3 + $0x1900] sm:$0xff]  ;;  %v3196_v48 = vld [vmem:[%s14479_s3 + $0x8f0] sm:$0xff]  ;;  %v3189_v32 = vld [vmem:[%s14479_s3 + $0x8b8] sm:$0xff] }
 0x44d   : > { %4427 = vmatpush2.msra.mxu1 %v2980_v6  ;;  %4497 = vmatprep.subr.mxu0 %v3109_v22  ;;  %v4079_v13 = vpop.f32.mrf.mxu0  ;;  %v6749_v6 = vld [vmem:[%s14479_s3 + $0x18e8] sm:$0xff]  ;;  %v3193_v22 = vld [vmem:[%s14479_s3 + $0x8d8] sm:$0xff]  ;;  %v6748_v58 = vld [vmem:[%s14479_s3 + $0x18e0] sm:$0xff] }
 0x44e   : > { %4428 = vmatprep.subr.mxu1 %v2977_v27  ;;  %4498 = vmatpush2.msra.mxu0 %v3108_v63  ;;  %v13035_v15 = vadd.f32 %v4079_v13, %v4008_v60  ;;  %v3192_v27 = vld [vmem:[%s14479_s3 + $0x8d0] sm:$0xff]  ;;  %v6745_v63 = vld [vmem:[%s14479_s3 + $0x18c8] sm:$0xff]  ;;  %v3185_v60 = vld [vmem:[%s14479_s3 + $0x898] sm:$0xff] }
 0x44f   : > { %4429 = vmatpush2.msra.mxu1 %v2976_v9  ;;  %4499 = vmatprep.subr.mxu0 %v3105_v5  ;;  %v3188_v9 = vld [vmem:[%s14479_s3 + $0x8b0] sm:$0xff]  ;;  %v6741_v5 = vld [vmem:[%s14479_s3 + $0x18a8] sm:$0xff] }
 0x450   : > { %4431 = vmatmul.mubr.f32.vlgmr.msra.gmra.mxu1 %v7131_v23  ;;  %4500 = vmatpush2.msra.mxu0 %v3104_v62  ;;  %v3184_v62 = vld [vmem:[%s14479_s3 + $0x890] sm:$0xff]  ;;  %v6737_v13 = vld [vmem:[%s14479_s3 + $0x1888] sm:$0xff]  ;;  %v6732_v23 = vld [vmem:[%s14479_s3 + $0x1860] sm:$0xff] }
 0x451   : > { %4508 = vmatprep.subr.mxu1 %v3229_v14  ;;  %4502 = vmatmul.mubr.f32.vlgmr.msra.gmra.mxu0 %v12630_v42  ;;  %v6776_v42 = vld [vmem:[%s14479_s3 + $0x19c0] sm:$0xff]  ;;  %v3181_v14 = vld [vmem:[%s14479_s3 + $0x878] sm:$0xff] }
 0x452   : > { %4509 = vmatpush1.msra.mxu1 %v3228_v16  ;;  %5012 = vmatprep.subr.mxu0 %v6781_v17  ;;  %v6736_v16 = vld [vmem:[%s14479_s3 + $0x1880] sm:$0xff]  ;;  %v3180_v17 = vld [vmem:[%s14479_s3 + $0x870] sm:$0xff] }
 0x453   : > { %4510 = vmatprep.subr.mxu1 %v3225_v29  ;;  %5013 = vmatpush1.msra.mxu0 %v6780_v3  ;;  %v3176_v29 = vld [vmem:[%s14479_s3 + $0x850] sm:$0xff]  ;;  %v6729_v3 = vld [vmem:[%s14479_s3 + $0x1848] sm:$0xff] }
 0x454   : > { %5076 = vmatprep.mubr.f32.mxu0 %v13060_v31  ;;  %4511 = vmatpush1.msra.mxu1 %v3224_v30  ;;  %v3173_v30 = vld [vmem:[%s14479_s3 + $0x838] sm:$0xff] }
 0x455   : > { %5014 = vmatprep.subr.mxu0 %v6777_v4  ;;  %4512 = vmatprep.subr.mxu1 %v3221_v50  ;;  %v6728_v4 = vld [vmem:[%s14479_s3 + $0x1840] sm:$0xff]  ;;  %v3172_v50 = vld [vmem:[%s14479_s3 + $0x830] sm:$0xff] }
 0x456   : > { %5015 = vmatpush1.msra.mxu0 %v6776_v42  ;;  %4513 = vmatpush1.msra.mxu1 %v3220_v33  ;;  %v6725_v42 = vld [vmem:[%s14479_s3 + $0x1828] sm:$0xff]  ;;  %v3169_v33 = vld [vmem:[%s14479_s3 + $0x818] sm:$0xff] }
 0x457   : > { %5016 = vmatprep.subr.mxu0 %v6773_v34  ;;  %4514 = vmatprep.subr.mxu1 %v3217_v43  ;;  %v6724_v34 = vld [vmem:[%s14479_s3 + $0x1820] sm:$0xff]  ;;  %v3168_v43 = vld [vmem:[%s14479_s3 + $0x810] sm:$0xff] }
 0x458   : > { %5017 = vmatpush1.msra.mxu0 %v6772_v46  ;;  %4515 = vmatpush1.msra.mxu1 %v3216_v52  ;;  %v6721_v46 = vld [vmem:[%s14479_s3 + $0x1808] sm:$0xff]  ;;  %v3293_v52 = vld [vmem:[%s14479_s3 + $0xbf8] sm:$0xff] }
 0x459   : > { %5018 = vmatprep.subr.mxu0 %v6769_v39  ;;  %4516 = vmatprep.subr.mxu1 %v3213_v61  ;;  %v6720_v39 = vld [vmem:[%s14479_s3 + $0x1800] sm:$0xff]  ;;  %v3292_v61 = vld [vmem:[%s14479_s3 + $0xbf0] sm:$0xff] }
 0x45a   : > { %5019 = vmatpush1.msra.mxu0 %v6768_v51  ;;  %4517 = vmatpush1.msra.mxu1 %v3212_v24  ;;  %v6845_v51 = vld [vmem:[%s14479_s3 + $0x1be8] sm:$0xff]  ;;  %v3289_v24 = vld [vmem:[%s14479_s3 + $0xbd8] sm:$0xff] }
 0x45b   : > { %5020 = vmatprep.subr.mxu0 %v6765_v1  ;;  %4518 = vmatprep.subr.mxu1 %v3209_v44  ;;  %v6844_v1 = vld [vmem:[%s14479_s3 + $0x1be0] sm:$0xff]  ;;  %v3288_v44 = vld [vmem:[%s14479_s3 + $0xbd0] sm:$0xff] }
 0x45c   : > { %5021 = vmatpush1.msra.mxu0 %v6764_v36  ;;  %4519 = vmatpush1.msra.mxu1 %v3208_v37  ;;  %v6841_v36 = vld [vmem:[%s14479_s3 + $0x1bc8] sm:$0xff]  ;;  %v3285_v37 = vld [vmem:[%s14479_s3 + $0xbb8] sm:$0xff] }
 0x45d   : > { %5022 = vmatprep.subr.mxu0 %v6761_v2  ;;  %4520 = vmatprep.subr.mxu1 %v3205_v41  ;;  %v6840_v2 = vld [vmem:[%s14479_s3 + $0x1bc0] sm:$0xff]  ;;  %v3284_v41 = vld [vmem:[%s14479_s3 + $0xbb0] sm:$0xff] }
 0x45e   : > { %5023 = vmatpush1.msra.mxu0 %v6760_v21  ;;  %4521 = vmatpush1.msra.mxu1 %v3204_v40  ;;  %v6837_v21 = vld [vmem:[%s14479_s3 + $0x1ba8] sm:$0xff]  ;;  %v3281_v40 = vld [vmem:[%s14479_s3 + $0xb98] sm:$0xff] }
 0x45f   : > { %5024 = vmatprep.subr.mxu0 %v6757_v45  ;;  %4522 = vmatprep.subr.mxu1 %v3201_v11  ;;  %v6836_v45 = vld [vmem:[%s14479_s3 + $0x1ba0] sm:$0xff]  ;;  %v3280_v11 = vld [vmem:[%s14479_s3 + $0xb90] sm:$0xff] }
 0x460   : > { %5025 = vmatpush1.msra.mxu0 %v6756_v7  ;;  %4523 = vmatpush1.msra.mxu1 %v3200_v59  ;;  %v6833_v7 = vld [vmem:[%s14479_s3 + $0x1b88] sm:$0xff]  ;;  %v3277_v59 = vld [vmem:[%s14479_s3 + $0xb78] sm:$0xff] }
 0x461   : > { %5026 = vmatprep.subr.mxu0 %v6753_v10  ;;  %4524 = vmatprep.subr.mxu1 %v3197_v19  ;;  %v6832_v10 = vld [vmem:[%s14479_s3 + $0x1b80] sm:$0xff]  ;;  %v3276_v19 = vld [vmem:[%s14479_s3 + $0xb70] sm:$0xff] }
 0x462   : > { %5027 = vmatpush1.msra.mxu0 %v6752_v47  ;;  %4525 = vmatpush1.msra.mxu1 %v3196_v48  ;;  %v6829_v47 = vld [vmem:[%s14479_s3 + $0x1b68] sm:$0xff]  ;;  %v3273_v48 = vld [vmem:[%s14479_s3 + $0xb58] sm:$0xff] }
 0x463   : > { %5028 = vmatprep.subr.mxu0 %v6749_v6  ;;  %4526 = vmatprep.subr.mxu1 %v3193_v22  ;;  %v6828_v6 = vld [vmem:[%s14479_s3 + $0x1b60] sm:$0xff]  ;;  %v3272_v22 = vld [vmem:[%s14479_s3 + $0xb50] sm:$0xff] }
 0x464   : > { %5029 = vmatpush1.msra.mxu0 %v6748_v58  ;;  %4527 = vmatpush1.msra.mxu1 %v3192_v27  ;;  %v6825_v58 = vld [vmem:[%s14479_s3 + $0x1b48] sm:$0xff]  ;;  %v3269_v27 = vld [vmem:[%s14479_s3 + $0xb38] sm:$0xff] }
 0x465   : > { %5030 = vmatprep.subr.mxu0 %v6745_v63  ;;  %4528 = vmatprep.subr.mxu1 %v3189_v32  ;;  %v6824_v63 = vld [vmem:[%s14479_s3 + $0x1b40] sm:$0xff]  ;;  %v3268_v32 = vld [vmem:[%s14479_s3 + $0xb30] sm:$0xff] }
 0x466   : > { %5031 = vmatpush1.msra.mxu0 %v6744_v49  ;;  %4529 = vmatpush1.msra.mxu1 %v3188_v9  ;;  %v6821_v49 = vld [vmem:[%s14479_s3 + $0x1b28] sm:$0xff]  ;;  %v3265_v9 = vld [vmem:[%s14479_s3 + $0xb18] sm:$0xff] }
 0x467   : > { %5032 = vmatprep.subr.mxu0 %v6741_v5  ;;  %4530 = vmatprep.subr.mxu1 %v3185_v60  ;;  %v6820_v5 = vld [vmem:[%s14479_s3 + $0x1b20] sm:$0xff]  ;;  %v3264_v60 = vld [vmem:[%s14479_s3 + $0xb10] sm:$0xff] }
 0x468   : > { %5033 = vmatpush1.msra.mxu0 %v6740_v12  ;;  %4531 = vmatpush1.msra.mxu1 %v3184_v62  ;;  %v6817_v12 = vld [vmem:[%s14479_s3 + $0x1b08] sm:$0xff]  ;;  %v3261_v62 = vld [vmem:[%s14479_s3 + $0xaf8] sm:$0xff] }
 0x469   : > { %5034 = vmatprep.subr.mxu0 %v6737_v13  ;;  %4532 = vmatprep.subr.mxu1 %v3181_v14  ;;  %v6816_v13 = vld [vmem:[%s14479_s3 + $0x1b00] sm:$0xff]  ;;  %v3260_v14 = vld [vmem:[%s14479_s3 + $0xaf0] sm:$0xff] }
 0x46a   : > { %5035 = vmatpush1.msra.mxu0 %v6736_v16  ;;  %4533 = vmatpush1.msra.mxu1 %v3180_v17  ;;  %v6813_v16 = vld [vmem:[%s14479_s3 + $0x1ae8] sm:$0xff]  ;;  %v3257_v17 = vld [vmem:[%s14479_s3 + $0xad8] sm:$0xff] }
 0x46b   : > { %5036 = vmatprep.subr.mxu0 %v6733_v18  ;;  %4534 = vmatprep.subr.mxu1 %v3177_v20  ;;  %v6812_v18 = vld [vmem:[%s14479_s3 + $0x1ae0] sm:$0xff]  ;;  %v3256_v20 = vld [vmem:[%s14479_s3 + $0xad0] sm:$0xff] }
 0x46c   : > { %5037 = vmatpush1.msra.mxu0 %v6732_v23  ;;  %4535 = vmatpush1.msra.mxu1 %v3176_v29  ;;  %v6809_v23 = vld [vmem:[%s14479_s3 + $0x1ac8] sm:$0xff]  ;;  %v3253_v29 = vld [vmem:[%s14479_s3 + $0xab8] sm:$0xff] }
 0x46d   : > { %5038 = vmatprep.subr.mxu0 %v6729_v3  ;;  %4536 = vmatprep.subr.mxu1 %v3173_v30  ;;  %v6808_v3 = vld [vmem:[%s14479_s3 + $0x1ac0] sm:$0xff]  ;;  %v3252_v30 = vld [vmem:[%s14479_s3 + $0xab0] sm:$0xff] }
 0x46e   : > { %5039 = vmatpush1.msra.mxu0 %v6728_v4  ;;  %4537 = vmatpush1.msra.mxu1 %v3172_v50  ;;  %v6805_v4 = vld [vmem:[%s14479_s3 + $0x1aa8] sm:$0xff]  ;;  %v3249_v50 = vld [vmem:[%s14479_s3 + $0xa98] sm:$0xff] }
 0x46f   : > { %5040 = vmatprep.subr.mxu0 %v6725_v42  ;;  %4538 = vmatprep.subr.mxu1 %v3169_v33  ;;  %v6804_v42 = vld [vmem:[%s14479_s3 + $0x1aa0] sm:$0xff]  ;;  %v3248_v33 = vld [vmem:[%s14479_s3 + $0xa90] sm:$0xff] }
 0x470   : > { %5041 = vmatpush1.msra.mxu0 %v6724_v34  ;;  %4539 = vmatpush1.msra.mxu1 %v3168_v43  ;;  %v6801_v34 = vld [vmem:[%s14479_s3 + $0x1a88] sm:$0xff]  ;;  %v3245_v43 = vld [vmem:[%s14479_s3 + $0xa78] sm:$0xff] }
 0x471   : > { %5042 = vmatprep.subr.mxu0 %v6721_v46  ;;  %4540 = vmatprep.subr.mxu1 %v3293_v52  ;;  %v6800_v46 = vld [vmem:[%s14479_s3 + $0x1a80] sm:$0xff]  ;;  %v3244_v52 = vld [vmem:[%s14479_s3 + $0xa70] sm:$0xff] }
 0x472   : > { %5043 = vmatpush1.msra.mxu0 %v6720_v39  ;;  %4541 = vmatpush2.msra.mxu1 %v3292_v61  ;;  %v6797_v39 = vld [vmem:[%s14479_s3 + $0x1a68] sm:$0xff]  ;;  %v3241_v61 = vld [vmem:[%s14479_s3 + $0xa58] sm:$0xff] }
 0x473   : > { %5044 = vmatprep.subr.mxu0 %v6845_v51  ;;  %4542 = vmatprep.subr.mxu1 %v3289_v24  ;;  %v6796_v51 = vld [vmem:[%s14479_s3 + $0x1a60] sm:$0xff]  ;;  %v3240_v24 = vld [vmem:[%s14479_s3 + $0xa50] sm:$0xff] }
 0x474   : > { %5045 = vmatpush2.msra.mxu0 %v6844_v1  ;;  %4543 = vmatpush2.msra.mxu1 %v3288_v44  ;;  %v4582_v1 = vld [vmem:[#allocation2 + $0x18] sm:$0xfc]  ;;  %v4588_v44 = vld [vmem:[#allocation2 + $0x48] sm:$0x3] }
 0x475   : > { %5046 = vmatprep.subr.mxu0 %v6841_v36  ;;  %4544 = vmatprep.subr.mxu1 %v3285_v37  ;;  %v6793_v36 = vld [vmem:[%s14479_s3 + $0x1a48] sm:$0xff]  ;;  %v3237_v37 = vld [vmem:[%s14479_s3 + $0xa38] sm:$0xff] }
 0x476   : > { %5047 = vmatpush2.msra.mxu0 %v6840_v2  ;;  %4545 = vmatpush2.msra.mxu1 %v3284_v41  ;;  %v6792_v2 = vld [vmem:[%s14479_s3 + $0x1a40] sm:$0xff]  ;;  %v3236_v41 = vld [vmem:[%s14479_s3 + $0xa30] sm:$0xff] }
 0x477   : > { %5048 = vmatprep.subr.mxu0 %v6837_v21  ;;  %4546 = vmatprep.subr.mxu1 %v3281_v40  ;;  %v4579_v21 = vld [vmem:[#allocation2] sm:$0xfc]  ;;  %v4585_v40 = vld [vmem:[#allocation2 + $0x30] sm:$0x3] }
 0x478   : > { %5049 = vmatpush2.msra.mxu0 %v6836_v45  ;;  %4547 = vmatpush2.msra.mxu1 %v3280_v11  ;;  %v6789_v45 = vld [vmem:[%s14479_s3 + $0x1a28] sm:$0xff]  ;;  %v3233_v11 = vld [vmem:[%s14479_s3 + $0xa18] sm:$0xff] }
 0x479   : > { %5050 = vmatprep.subr.mxu0 %v6833_v7  ;;  %4548 = vmatprep.subr.mxu1 %v3277_v59  ;;  %v6788_v59 = vld [vmem:[%s14479_s3 + $0x1a20] sm:$0xff] }
 0x47a   : > { %5051 = vmatpush2.msra.mxu0 %v6832_v10  ;;  %4549 = vmatpush2.msra.mxu1 %v3276_v19  ;;  %v3232_v10 = vld [vmem:[%s14479_s3 + $0xa10] sm:$0xff] }
 0x47b   : > { %5052 = vmatprep.subr.mxu0 %v6829_v47  ;;  %4550 = vmatprep.subr.mxu1 %v3273_v48  ;;  %v6785_v47 = vld [vmem:[%s14479_s3 + $0x1a08] sm:$0xff]  ;;  %v4997_v48 = vrot.slane %v4582_v1, 2 }
 0x47c   : > { %5053 = vmatpush2.msra.mxu0 %v6828_v6  ;;  %4551 = vmatpush2.msra.mxu1 %v3272_v22  ;;  %v4998_v6 = vrot.slane %v4588_v44, 2  ;;  %v7013_v1 = vld [vmem:[%s14479_s3 + $0x2128] sm:$0xff] }
 0x47d   : > { %5054 = vmatprep.subr.mxu0 %v6825_v58  ;;  %4552 = vmatprep.subr.mxu1 %v3269_v27  ;;  %v4988_v58 = vrot.slane %v4579_v21, 2  ;;  %v4989_v27 = vrot.slane %v4585_v40, 2  ;;  %v6881_v44 = vld [vmem:[%s14479_s3 + $0x1d08] sm:$0xff]  ;;  %v7008_v21 = vld [vmem:[%s14479_s3 + $0x2100] sm:$0xff] }
 0x47e   : > { %5055 = vmatpush2.msra.mxu0 %v6824_v63  ;;  %4553 = vmatpush2.msra.mxu1 %v3268_v32  ;;  %v6784_v63 = vld [vmem:[%s14479_s3 + $0x1a00] sm:$0xff]  ;;  %v6909_v32 = vld [vmem:[%s14479_s3 + $0x1de8] sm:$0xff] }
 0x47f   : > { %5056 = vmatprep.subr.mxu0 %v6821_v49  ;;  %4554 = vmatprep.subr.mxu1 %v3265_v9  ;;  %v7132_v49 = vld [vmem:[#allocation2 + $0x28] sm:$0xff]  ;;  %v6908_v9 = vld [vmem:[%s14479_s3 + $0x1de0] sm:$0xff] }
 0x480   : > { %5057 = vmatpush2.msra.mxu0 %v6820_v5  ;;  %4555 = vmatpush2.msra.mxu1 %v3264_v60  ;;  %v7037_v5 = vld [vmem:[%s14479_s3 + $0x21e8] sm:$0xff]  ;;  %v7133_v60 = vld [vmem:[#allocation2 + $0x20] sm:$0xff] }
 0x481   : > { %5058 = vmatprep.subr.mxu0 %v6817_v12  ;;  %4556 = vmatprep.subr.mxu1 %v3261_v62  ;;  %v13442_v12 = vsel %vm2390_vm2, %v4988_v58, %v4989_v27  ;;  %v6905_v62 = vld [vmem:[%s14479_s3 + $0x1dc8] sm:$0xff]  ;;  %v6876_v40 = vld [vmem:[%s14479_s3 + $0x1ce0] sm:$0xff] }
 0x482   : > { %5059 = vmatpush2.msra.mxu0 %v6816_v13  ;;  %4557 = vmatpush2.msra.mxu1 %v3260_v14  ;;  %v7036_v13 = vld [vmem:[%s14479_s3 + $0x21e0] sm:$0xff]  ;;  %v6865_v58 = vld [vmem:[%s14479_s3 + $0x1c88] sm:$0xff] }
 0x483   : > { %5060 = vmatprep.subr.mxu0 %v6813_v16  ;;  %4558 = vmatprep.subr.mxu1 %v3257_v17  ;;  %v6904_v14 = vld [vmem:[%s14479_s3 + $0x1dc0] sm:$0xff]  ;;  %v7033_v16 = vld [vmem:[%s14479_s3 + $0x21c8] sm:$0xff] }
 0x484   : > { %5061 = vmatpush2.msra.mxu0 %v6812_v18  ;;  %4559 = vmatpush2.msra.mxu1 %v3256_v20  ;;  %v6901_v17 = vld [vmem:[%s14479_s3 + $0x1da8] sm:$0xff]  ;;  %v7032_v18 = vld [vmem:[%s14479_s3 + $0x21c0] sm:$0xff] }
 0x485   : > { %5062 = vmatprep.subr.mxu0 %v6809_v23  ;;  %4560 = vmatprep.subr.mxu1 %v3253_v29  ;;  %v6900_v20 = vld [vmem:[%s14479_s3 + $0x1da0] sm:$0xff]  ;;  %v7029_v23 = vld [vmem:[%s14479_s3 + $0x21a8] sm:$0xff] }
 0x486   : > { %5063 = vmatpush2.msra.mxu0 %v6808_v3  ;;  %4561 = vmatpush2.msra.mxu1 %v3252_v30  ;;  %v6897_v29 = vld [vmem:[%s14479_s3 + $0x1d88] sm:$0xff]  ;;  %v7028_v3 = vld [vmem:[%s14479_s3 + $0x21a0] sm:$0xff] }
 0x487   : > { %5064 = vmatprep.subr.mxu0 %v6805_v4  ;;  %4562 = vmatprep.subr.mxu1 %v3249_v50  ;;  %v6896_v30 = vld [vmem:[%s14479_s3 + $0x1d80] sm:$0xff]  ;;  %v7025_v4 = vld [vmem:[%s14479_s3 + $0x2188] sm:$0xff] }
 0x488   : > { %5065 = vmatpush2.msra.mxu0 %v6804_v42  ;;  %4563 = vmatpush2.msra.mxu1 %v3248_v33  ;;  %v6893_v50 = vld [vmem:[%s14479_s3 + $0x1d68] sm:$0xff]  ;;  %v7024_v42 = vld [vmem:[%s14479_s3 + $0x2180] sm:$0xff] }
 0x489   : > { %5066 = vmatprep.subr.mxu0 %v6801_v34  ;;  %4564 = vmatprep.subr.mxu1 %v3245_v43  ;;  %v6892_v33 = vld [vmem:[%s14479_s3 + $0x1d60] sm:$0xff]  ;;  %v7021_v34 = vld [vmem:[%s14479_s3 + $0x2168] sm:$0xff] }
 0x48a   : > { %5067 = vmatpush2.msra.mxu0 %v6800_v46  ;;  %4565 = vmatpush2.msra.mxu1 %v3244_v52  ;;  %v6889_v43 = vld [vmem:[%s14479_s3 + $0x1d48] sm:$0xff]  ;;  %v7020_v46 = vld [vmem:[%s14479_s3 + $0x2160] sm:$0xff] }
 0x48b   : > { %5068 = vmatprep.subr.mxu0 %v6797_v39  ;;  %4566 = vmatprep.subr.mxu1 %v3241_v61  ;;  %v6888_v52 = vld [vmem:[%s14479_s3 + $0x1d40] sm:$0xff]  ;;  %v7017_v39 = vld [vmem:[%s14479_s3 + $0x2148] sm:$0xff] }
 0x48c   : > { %5069 = vmatpush2.msra.mxu0 %v6796_v51  ;;  %4567 = vmatpush2.msra.mxu1 %v3240_v24  ;;  %v4148_v7 = vpop.f32.mrf.mxu1  ;;  %v6885_v61 = vld [vmem:[%s14479_s3 + $0x1d28] sm:$0xff]  ;;  %v7016_v51 = vld [vmem:[%s14479_s3 + $0x2140] sm:$0xff] }
 0x48d   : > { %5070 = vmatprep.subr.mxu0 %v6793_v36  ;;  %4568 = vmatprep.subr.mxu1 %v3237_v37  ;;  %v13418_v19 = vadd.f32 %v4148_v7, %v13027_v0  ;;  %v6884_v24 = vld [vmem:[%s14479_s3 + $0x1d20] sm:$0xff] }
 0x48e   : > { %5071 = vmatpush2.msra.mxu0 %v6792_v2  ;;  %4569 = vmatpush2.msra.mxu1 %v3236_v41  ;;  %v4150_v22 = vpop.f32.mrf.mxu1  ;;  %v7012_v36 = vld [vmem:[%s14479_s3 + $0x2120] sm:$0xff]  ;;  %v7009_v2 = vld [vmem:[%s14479_s3 + $0x2108] sm:$0xff] }
 0x48f   : > { %5072 = vmatprep.subr.mxu0 %v6789_v45  ;;  %4570 = vmatprep.subr.mxu1 %v3233_v11  ;;  %v13427_v0 = vadd.f32 %v4150_v22, %v13035_v15  ;;  %v13439_v15 = vsel %vm2390_vm2, %v4997_v48, %v4998_v6  ;;  %v6880_v37 = vld [vmem:[%s14479_s3 + $0x1d00] sm:$0xff]  ;;  %v6877_v41 = vld [vmem:[%s14479_s3 + $0x1ce8] sm:$0xff] }
 0x490   : > { %5073 = vmatpush2.msra.mxu0 %v6788_v59  ;;  %4571 = vmatpush2.msra.mxu1 %v3232_v10  ;;  %v7005_v45 = vld [vmem:[%s14479_s3 + $0x20e8] sm:$0xff]  ;;  %v7004_v7 = vld [vmem:[%s14479_s3 + $0x20e0] sm:$0xff] }
 0x491   : > { %4572 = vmatprep.mubr.f32.mxu1 %v7132_v49  ;;  %5074 = vmatprep.subr.mxu0 %v6785_v47  ;;  %v6873_v11 = vld [vmem:[%s14479_s3 + $0x1cc8] sm:$0xff]  ;;  %v6872_v59 = vld [vmem:[%s14479_s3 + $0x1cc0] sm:$0xff] }
 0x492   : > { %4573 = vmatmul.mubr.f32.vlgmr.msra.gmra.mxu1 %v7133_v60  ;;  %5075 = vmatpush2.msra.mxu0 %v6784_v63  ;;  %v7001_v10 = vld [vmem:[%s14479_s3 + $0x20c8] sm:$0xff]  ;;  %v7000_v48 = vld [vmem:[%s14479_s3 + $0x20c0] sm:$0xff] }
 0x493   : > { %5083 = vmatprep.subr.mxu1 %v6909_v32  ;;  %5147 = vmatprep.mubr.f32.mxu1 %v13439_v15  ;;  %v6869_v47 = vld [vmem:[%s14479_s3 + $0x1ca8] sm:$0xff]  ;;  %v6868_v6 = vld [vmem:[%s14479_s3 + $0x1ca0] sm:$0xff] }
 0x494   : > { %5084 = vmatpush1.msra.mxu1 %v6908_v9  ;;  %5154 = vmatprep.subr.mxu0 %v7037_v5  ;;  %v6997_v22 = vld [vmem:[%s14479_s3 + $0x20a8] sm:$0xff]  ;;  %v6996_v27 = vld [vmem:[%s14479_s3 + $0x20a0] sm:$0xff] }
 0x495   : > { %5077 = vmatmul.mubr.f32.vlgmr.msra.gmra.mxu0 %v13442_v12  ;;  %5085 = vmatprep.subr.mxu1 %v6905_v62  ;;  %v6864_v63 = vld [vmem:[%s14479_s3 + $0x1c80] sm:$0xff]  ;;  %v6993_v32 = vld [vmem:[%s14479_s3 + $0x2088] sm:$0xff] }
 0x496   : > { %5155 = vmatpush1.msra.mxu0 %v7036_v13  ;;  %5086 = vmatpush1.msra.mxu1 %v6904_v14  ;;  %v6861_v49 = vld [vmem:[%s14479_s3 + $0x1c68] sm:$0xff]  ;;  %v6992_v9 = vld [vmem:[%s14479_s3 + $0x2080] sm:$0xff] }
 0x497   : > { %5156 = vmatprep.subr.mxu0 %v7033_v16  ;;  %5087 = vmatprep.subr.mxu1 %v6901_v17  ;;  %v6860_v5 = vld [vmem:[%s14479_s3 + $0x1c60] sm:$0xff]  ;;  %v6989_v60 = vld [vmem:[%s14479_s3 + $0x2068] sm:$0xff] }
 0x498   : > { %5157 = vmatpush1.msra.mxu0 %v7032_v18  ;;  %5088 = vmatpush1.msra.mxu1 %v6900_v20  ;;  %v6857_v62 = vld [vmem:[%s14479_s3 + $0x1c48] sm:$0xff]  ;;  %v6988_v13 = vld [vmem:[%s14479_s3 + $0x2060] sm:$0xff] }
 0x499   : > { %5158 = vmatprep.subr.mxu0 %v7029_v23  ;;  %5089 = vmatprep.subr.mxu1 %v6897_v29  ;;  %v6856_v14 = vld [vmem:[%s14479_s3 + $0x1c40] sm:$0xff]  ;;  %v6985_v16 = vld [vmem:[%s14479_s3 + $0x2048] sm:$0xff] }
 0x49a   : > { %5159 = vmatpush1.msra.mxu0 %v7028_v3  ;;  %5090 = vmatpush1.msra.mxu1 %v6896_v30  ;;  %v6853_v17 = vld [vmem:[%s14479_s3 + $0x1c28] sm:$0xff]  ;;  %v6984_v18 = vld [vmem:[%s14479_s3 + $0x2040] sm:$0xff] }
 0x49b   : > { %5160 = vmatprep.subr.mxu0 %v7025_v4  ;;  %5091 = vmatprep.subr.mxu1 %v6893_v50  ;;  %v6852_v20 = vld [vmem:[%s14479_s3 + $0x1c20] sm:$0xff]  ;;  %v6981_v23 = vld [vmem:[%s14479_s3 + $0x2028] sm:$0xff] }
 0x49c   : > { %5161 = vmatpush1.msra.mxu0 %v7024_v42  ;;  %5092 = vmatpush1.msra.mxu1 %v6892_v33  ;;  %v6849_v29 = vld [vmem:[%s14479_s3 + $0x1c08] sm:$0xff]  ;;  %v6980_v3 = vld [vmem:[%s14479_s3 + $0x2020] sm:$0xff] }
 0x49d   : > { %5162 = vmatprep.subr.mxu0 %v7021_v34  ;;  %5093 = vmatprep.subr.mxu1 %v6889_v43  ;;  %v6848_v30 = vld [vmem:[%s14479_s3 + $0x1c00] sm:$0xff]  ;;  %v6977_v4 = vld [vmem:[%s14479_s3 + $0x2008] sm:$0xff] }
 0x49e   : > { %5163 = vmatpush1.msra.mxu0 %v7020_v46  ;;  %5094 = vmatpush1.msra.mxu1 %v6888_v52  ;;  %v6973_v50 = vld [vmem:[%s14479_s3 + $0x1fe8] sm:$0xff]  ;;  %v6976_v42 = vld [vmem:[%s14479_s3 + $0x2000] sm:$0xff] }
 0x49f   : > { %5164 = vmatprep.subr.mxu0 %v7017_v39  ;;  %5095 = vmatprep.subr.mxu1 %v6885_v61  ;;  %v6972_v33 = vld [vmem:[%s14479_s3 + $0x1fe0] sm:$0xff]  ;;  %v7101_v34 = vld [vmem:[%s14479_s3 + $0x23e8] sm:$0xff] }
 0x4a0   : > { %5165 = vmatpush1.msra.mxu0 %v7016_v51  ;;  %5096 = vmatpush1.msra.mxu1 %v6884_v24  ;;  %v6969_v43 = vld [vmem:[%s14479_s3 + $0x1fc8] sm:$0xff]  ;;  %v7100_v46 = vld [vmem:[%s14479_s3 + $0x23e0] sm:$0xff] }
 0x4a1   : > { %5166 = vmatprep.subr.mxu0 %v7013_v1  ;;  %5097 = vmatprep.subr.mxu1 %v6881_v44  ;;  %v6968_v52 = vld [vmem:[%s14479_s3 + $0x1fc0] sm:$0xff]  ;;  %v7097_v39 = vld [vmem:[%s14479_s3 + $0x23c8] sm:$0xff] }
 0x4a2   : > { %5167 = vmatpush1.msra.mxu0 %v7012_v36  ;;  %5098 = vmatpush1.msra.mxu1 %v6880_v37  ;;  %v6965_v61 = vld [vmem:[%s14479_s3 + $0x1fa8] sm:$0xff]  ;;  %v7096_v51 = vld [vmem:[%s14479_s3 + $0x23c0] sm:$0xff] }
 0x4a3   : > { %5168 = vmatprep.subr.mxu0 %v7009_v2  ;;  %5099 = vmatprep.subr.mxu1 %v6877_v41  ;;  %v6964_v24 = vld [vmem:[%s14479_s3 + $0x1fa0] sm:$0xff]  ;;  %v7093_v1 = vld [vmem:[%s14479_s3 + $0x23a8] sm:$0xff] }
 0x4a4   : > { %5169 = vmatpush1.msra.mxu0 %v7008_v21  ;;  %5100 = vmatpush1.msra.mxu1 %v6876_v40  ;;  %v6961_v44 = vld [vmem:[%s14479_s3 + $0x1f88] sm:$0xff]  ;;  %v7092_v36 = vld [vmem:[%s14479_s3 + $0x23a0] sm:$0xff] }
 0x4a5   : > { %5170 = vmatprep.subr.mxu0 %v7005_v45  ;;  %5101 = vmatprep.subr.mxu1 %v6873_v11  ;;  %v6960_v37 = vld [vmem:[%s14479_s3 + $0x1f80] sm:$0xff]  ;;  %v7089_v2 = vld [vmem:[%s14479_s3 + $0x2388] sm:$0xff] }
 0x4a6   : > { %5171 = vmatpush1.msra.mxu0 %v7004_v7  ;;  %5102 = vmatpush1.msra.mxu1 %v6872_v59  ;;  %v6957_v41 = vld [vmem:[%s14479_s3 + $0x1f68] sm:$0xff]  ;;  %v7088_v21 = vld [vmem:[%s14479_s3 + $0x2380] sm:$0xff] }
 0x4a7   : > { %5172 = vmatprep.subr.mxu0 %v7001_v10  ;;  %5103 = vmatprep.subr.mxu1 %v6869_v47  ;;  %v6956_v40 = vld [vmem:[%s14479_s3 + $0x1f60] sm:$0xff]  ;;  %v7085_v45 = vld [vmem:[%s14479_s3 + $0x2368] sm:$0xff] }
 0x4a8   : > { %5173 = vmatpush1.msra.mxu0 %v7000_v48  ;;  %5104 = vmatpush1.msra.mxu1 %v6868_v6  ;;  %v6953_v11 = vld [vmem:[%s14479_s3 + $0x1f48] sm:$0xff]  ;;  %v7084_v7 = vld [vmem:[%s14479_s3 + $0x2360] sm:$0xff] }
 0x4a9   : > { %5174 = vmatprep.subr.mxu0 %v6997_v22  ;;  %5105 = vmatprep.subr.mxu1 %v6865_v58  ;;  %v6952_v59 = vld [vmem:[%s14479_s3 + $0x1f40] sm:$0xff]  ;;  %v7081_v10 = vld [vmem:[%s14479_s3 + $0x2348] sm:$0xff] }
 0x4aa   : > { %5175 = vmatpush1.msra.mxu0 %v6996_v27  ;;  %5106 = vmatpush1.msra.mxu1 %v6864_v63  ;;  %v6949_v47 = vld [vmem:[%s14479_s3 + $0x1f28] sm:$0xff]  ;;  %v7080_v48 = vld [vmem:[%s14479_s3 + $0x2340] sm:$0xff] }
 0x4ab   : > { %5176 = vmatprep.subr.mxu0 %v6993_v32  ;;  %5107 = vmatprep.subr.mxu1 %v6861_v49  ;;  %v6948_v6 = vld [vmem:[%s14479_s3 + $0x1f20] sm:$0xff]  ;;  %v7077_v22 = vld [vmem:[%s14479_s3 + $0x2328] sm:$0xff] }
 0x4ac   : > { %5177 = vmatpush1.msra.mxu0 %v6992_v9  ;;  %5108 = vmatpush1.msra.mxu1 %v6860_v5  ;;  %v6945_v58 = vld [vmem:[%s14479_s3 + $0x1f08] sm:$0xff]  ;;  %v7076_v27 = vld [vmem:[%s14479_s3 + $0x2320] sm:$0xff] }
 0x4ad   : > { %5178 = vmatprep.subr.mxu0 %v6989_v60  ;;  %5109 = vmatprep.subr.mxu1 %v6857_v62  ;;  %v6944_v63 = vld [vmem:[%s14479_s3 + $0x1f00] sm:$0xff]  ;;  %v7073_v32 = vld [vmem:[%s14479_s3 + $0x2308] sm:$0xff] }
 0x4ae   : > { %5179 = vmatpush1.msra.mxu0 %v6988_v13  ;;  %5110 = vmatpush1.msra.mxu1 %v6856_v14  ;;  %v6941_v49 = vld [vmem:[%s14479_s3 + $0x1ee8] sm:$0xff]  ;;  %v7072_v9 = vld [vmem:[%s14479_s3 + $0x2300] sm:$0xff] }
 0x4af   : > { %5180 = vmatprep.subr.mxu0 %v6985_v16  ;;  %5111 = vmatprep.subr.mxu1 %v6853_v17  ;;  %v6940_v5 = vld [vmem:[%s14479_s3 + $0x1ee0] sm:$0xff]  ;;  %v7069_v60 = vld [vmem:[%s14479_s3 + $0x22e8] sm:$0xff] }
 0x4b0   : > { %5181 = vmatpush1.msra.mxu0 %v6984_v18  ;;  %5112 = vmatpush1.msra.mxu1 %v6852_v20  ;;  %v6937_v62 = vld [vmem:[%s14479_s3 + $0x1ec8] sm:$0xff]  ;;  %v7068_v13 = vld [vmem:[%s14479_s3 + $0x22e0] sm:$0xff] }
 0x4b1   : > { %5182 = vmatprep.subr.mxu0 %v6981_v23  ;;  %5113 = vmatprep.subr.mxu1 %v6849_v29  ;;  %v6936_v14 = vld [vmem:[%s14479_s3 + $0x1ec0] sm:$0xff]  ;;  %v7065_v16 = vld [vmem:[%s14479_s3 + $0x22c8] sm:$0xff] }
 0x4b2   : > { %5183 = vmatpush1.msra.mxu0 %v6980_v3  ;;  %5114 = vmatpush1.msra.mxu1 %v6848_v30  ;;  %v6933_v17 = vld [vmem:[%s14479_s3 + $0x1ea8] sm:$0xff]  ;;  %v7064_v18 = vld [vmem:[%s14479_s3 + $0x22c0] sm:$0xff] }
 0x4b3   : > { %5184 = vmatprep.subr.mxu0 %v6977_v4  ;;  %5115 = vmatprep.subr.mxu1 %v6973_v50  ;;  %v6932_v20 = vld [vmem:[%s14479_s3 + $0x1ea0] sm:$0xff]  ;;  %v7061_v23 = vld [vmem:[%s14479_s3 + $0x22a8] sm:$0xff] }
 0x4b4   : > { %5185 = vmatpush1.msra.mxu0 %v6976_v42  ;;  %5116 = vmatpush2.msra.mxu1 %v6972_v33  ;;  %v6929_v29 = vld [vmem:[%s14479_s3 + $0x1e88] sm:$0xff]  ;;  %v7060_v3 = vld [vmem:[%s14479_s3 + $0x22a0] sm:$0xff] }
 0x4b5   : > { %5186 = vmatprep.subr.mxu0 %v7101_v34  ;;  %5117 = vmatprep.subr.mxu1 %v6969_v43  ;;  %v6928_v30 = vld [vmem:[%s14479_s3 + $0x1e80] sm:$0xff]  ;;  %v7057_v4 = vld [vmem:[%s14479_s3 + $0x2288] sm:$0xff]  ;;  %v4581_v43 = vld [vmem:[#allocation2 + $0x10] sm:$0xfc] }
 0x4b6   : > { %5187 = vmatpush2.msra.mxu0 %v7100_v46  ;;  %5118 = vmatpush2.msra.mxu1 %v6968_v52  ;;  %v6925_v50 = vld [vmem:[%s14479_s3 + $0x1e68] sm:$0xff]  ;;  %v7056_v42 = vld [vmem:[%s14479_s3 + $0x2280] sm:$0xff] }
 0x4b7   : > { %5188 = vmatprep.subr.mxu0 %v7097_v39  ;;  %5119 = vmatprep.subr.mxu1 %v6965_v61  ;;  %v6924_v33 = vld [vmem:[%s14479_s3 + $0x1e60] sm:$0xff]  ;;  %v7053_v34 = vld [vmem:[%s14479_s3 + $0x2268] sm:$0xff]  ;;  %v4590_v39 = vld [vmem:[#allocation2 + $0x58] sm:$0x3] }
 0x4b8   : > { %5189 = vmatpush2.msra.mxu0 %v7096_v51  ;;  %5120 = vmatpush2.msra.mxu1 %v6964_v24  ;;  %v6921_v46 = vld [vmem:[%s14479_s3 + $0x1e48] sm:$0xff]  ;;  %v7052_v61 = vld [vmem:[%s14479_s3 + $0x2260] sm:$0xff] }
 0x4b9   : > { %5190 = vmatprep.subr.mxu0 %v7093_v1  ;;  %5121 = vmatprep.subr.mxu1 %v6961_v44  ;;  %v4584_v52 = vld [vmem:[#allocation2 + $0x28] sm:$0xfc]  ;;  %v6920_v51 = vld [vmem:[%s14479_s3 + $0x1e40] sm:$0xff] }
 0x4ba   : > { %5191 = vmatpush2.msra.mxu0 %v7092_v36  ;;  %5122 = vmatpush2.msra.mxu1 %v6960_v37  ;;  %v4587_v24 = vld [vmem:[#allocation2 + $0x40] sm:$0x3]  ;;  %v7049_v1 = vld [vmem:[%s14479_s3 + $0x2248] sm:$0xff]  ;;  %v4583_v36 = vld [vmem:[#allocation2 + $0x20] sm:$0xfc] }
 0x4bb   : > { %5192 = vmatprep.subr.mxu0 %v7089_v2  ;;  %5123 = vmatprep.subr.mxu1 %v6957_v41  ;;  %v6917_v44 = vld [vmem:[%s14479_s3 + $0x1e28] sm:$0xff]  ;;  %v7048_v37 = vld [vmem:[%s14479_s3 + $0x2240] sm:$0xff]  ;;  %v5003_v41 = vrot.slane %v4584_v52, 2  ;;  %v6890_v52 = vld [vmem:[%s14479_s3 + $0x1d50] sm:$0xff] }
 0x4bc   : > { %5193 = vmatpush2.msra.mxu0 %v7088_v21  ;;  %5124 = vmatpush2.msra.mxu1 %v6956_v40  ;;  %v6916_v2 = vld [vmem:[%s14479_s3 + $0x1e20] sm:$0xff]  ;;  %v5004_v21 = vrot.slane %v4590_v39, 2  ;;  %v4589_v40 = vld [vmem:[#allocation2 + $0x50] sm:$0x3] }
 0x4bd   : > { %5194 = vmatprep.subr.mxu0 %v7085_v45  ;;  %5125 = vmatprep.subr.mxu1 %v6953_v11  ;;  %v7045_v45 = vld [vmem:[%s14479_s3 + $0x2228] sm:$0xff]  ;;  %v6758_v39 = vld [vmem:[%s14479_s3 + $0x1930] sm:$0xff] }
 0x4be   : > { %5195 = vmatpush2.msra.mxu0 %v7084_v7  ;;  %5126 = vmatpush2.msra.mxu1 %v6952_v59  ;;  %v6913_v11 = vld [vmem:[%s14479_s3 + $0x1e08] sm:$0xff]  ;;  %v4994_v7 = vrot.slane %v4581_v43, 2  ;;  %v4995_v59 = vrot.slane %v4587_v24, 2  ;;  %v6891_v43 = vld [vmem:[%s14479_s3 + $0x1d58] sm:$0xff]  ;;  %v6886_v24 = vld [vmem:[%s14479_s3 + $0x1d30] sm:$0xff] }
 0x4bf   : > { %5196 = vmatprep.subr.mxu0 %v7081_v10  ;;  %5127 = vmatprep.subr.mxu1 %v6949_v47  ;;  %v7044_v10 = vld [vmem:[%s14479_s3 + $0x2220] sm:$0xff] }
 0x4c0   : > { %5197 = vmatpush2.msra.mxu0 %v7080_v48  ;;  %5128 = vmatpush2.msra.mxu1 %v6948_v6  ;;  %v6912_v47 = vld [vmem:[%s14479_s3 + $0x1e00] sm:$0xff]  ;;  %v7041_v48 = vld [vmem:[%s14479_s3 + $0x2208] sm:$0xff]  ;;  %v5000_v6 = vrot.slane %v4583_v36, 2  ;;  %v6751_v36 = vld [vmem:[%s14479_s3 + $0x18f8] sm:$0xff] }
 0x4c1   : > { %5198 = vmatprep.subr.mxu0 %v7077_v22  ;;  %5129 = vmatprep.subr.mxu1 %v6945_v58  ;;  %v5001_v22 = vrot.slane %v4589_v40, 2  ;;  %v7040_v58 = vld [vmem:[%s14479_s3 + $0x2200] sm:$0xff]  ;;  %v6878_v40 = vld [vmem:[%s14479_s3 + $0x1cf0] sm:$0xff] }
 0x4c2   : > { %5199 = vmatpush2.msra.mxu0 %v7076_v27  ;;  %5130 = vmatpush2.msra.mxu1 %v6944_v63  ;;  %v13822_v27 = vsel %vm2390_vm2, %v5003_v41, %v5004_v21  ;;  %v13825_v63 = vsel %vm2390_vm2, %v4994_v7, %v4995_v59  ;;  %v6879_v41 = vld [vmem:[%s14479_s3 + $0x1cf8] sm:$0xff]  ;;  %v6874_v59 = vld [vmem:[%s14479_s3 + $0x1cd0] sm:$0xff] }
 0x4c3   : > { %5200 = vmatprep.subr.mxu0 %v7073_v32  ;;  %5131 = vmatprep.subr.mxu1 %v6941_v49  ;;  %v6783_v32 = vld [vmem:[%s14479_s3 + $0x19f8] sm:$0xff]  ;;  %v6782_v49 = vld [vmem:[%s14479_s3 + $0x19f0] sm:$0xff] }
 0x4c4   : > { %5201 = vmatpush2.msra.mxu0 %v7072_v9  ;;  %5132 = vmatpush2.msra.mxu1 %v6940_v5  ;;  %v13836_v9 = vsel %vm2390_vm2, %v5000_v6, %v5001_v22  ;;  %v6911_v5 = vld [vmem:[%s14479_s3 + $0x1df8] sm:$0xff]  ;;  %v6870_v6 = vld [vmem:[%s14479_s3 + $0x1cb0] sm:$0xff] }
 0x4c5   : > { %5202 = vmatprep.subr.mxu0 %v7069_v60  ;;  %5133 = vmatprep.subr.mxu1 %v6937_v62  ;;  %v6779_v60 = vld [vmem:[%s14479_s3 + $0x19d8] sm:$0xff]  ;;  %v6910_v62 = vld [vmem:[%s14479_s3 + $0x1df0] sm:$0xff] }
 0x4c6   : > { %5203 = vmatpush2.msra.mxu0 %v7068_v13  ;;  %5134 = vmatpush2.msra.mxu1 %v6936_v14  ;;  %v6778_v13 = vld [vmem:[%s14479_s3 + $0x19d0] sm:$0xff]  ;;  %v6907_v14 = vld [vmem:[%s14479_s3 + $0x1dd8] sm:$0xff] }
 0x4c7   : > { %5204 = vmatprep.subr.mxu0 %v7065_v16  ;;  %5135 = vmatprep.subr.mxu1 %v6933_v17  ;;  %v6775_v16 = vld [vmem:[%s14479_s3 + $0x19b8] sm:$0xff]  ;;  %v6906_v17 = vld [vmem:[%s14479_s3 + $0x1dd0] sm:$0xff] }
 0x4c8   : > { %5205 = vmatpush2.msra.mxu0 %v7064_v18  ;;  %5136 = vmatpush2.msra.mxu1 %v6932_v20  ;;  %v6903_v18 = vld [vmem:[%s14479_s3 + $0x1db8] sm:$0xff]  ;;  %v6738_v22 = vld [vmem:[%s14479_s3 + $0x1890] sm:$0xff] }
 0x4c9   : > { %5206 = vmatprep.subr.mxu0 %v7061_v23  ;;  %5137 = vmatprep.subr.mxu1 %v6929_v29  ;;  %v6771_v20 = vld [vmem:[%s14479_s3 + $0x1998] sm:$0xff]  ;;  %v6902_v23 = vld [vmem:[%s14479_s3 + $0x1db0] sm:$0xff] }
 0x4ca   : > { %5207 = vmatpush2.msra.mxu0 %v7060_v3  ;;  %5138 = vmatpush2.msra.mxu1 %v6928_v30  ;;  %v6899_v29 = vld [vmem:[%s14479_s3 + $0x1d98] sm:$0xff]  ;;  %v6898_v30 = vld [vmem:[%s14479_s3 + $0x1d90] sm:$0xff] }
 0x4cb   : > { %5208 = vmatprep.subr.mxu0 %v7057_v4  ;;  %5139 = vmatprep.subr.mxu1 %v6925_v50  ;;  %v6767_v3 = vld [vmem:[%s14479_s3 + $0x1978] sm:$0xff]  ;;  %v6766_v4 = vld [vmem:[%s14479_s3 + $0x1970] sm:$0xff] }
 0x4cc   : > { %5209 = vmatpush2.msra.mxu0 %v7056_v42  ;;  %5140 = vmatpush2.msra.mxu1 %v6924_v33  ;;  %v6895_v50 = vld [vmem:[%s14479_s3 + $0x1d78] sm:$0xff]  ;;  %v6894_v33 = vld [vmem:[%s14479_s3 + $0x1d70] sm:$0xff] }
 0x4cd   : > { %5210 = vmatprep.subr.mxu0 %v7053_v34  ;;  %5141 = vmatprep.subr.mxu1 %v6921_v46  ;;  %v6763_v42 = vld [vmem:[%s14479_s3 + $0x1958] sm:$0xff]  ;;  %v6762_v34 = vld [vmem:[%s14479_s3 + $0x1950] sm:$0xff] }
 0x4ce   : > { %5211 = vmatpush2.msra.mxu0 %v7052_v61  ;;  %5142 = vmatpush2.msra.mxu1 %v6920_v51  ;;  %v6759_v46 = vld [vmem:[%s14479_s3 + $0x1938] sm:$0xff] }
 0x4cf   : > { %5212 = vmatprep.subr.mxu0 %v7049_v1  ;;  %5143 = vmatprep.subr.mxu1 %v6917_v44  ;;  %v6887_v61 = vld [vmem:[%s14479_s3 + $0x1d38] sm:$0xff]  ;;  %v6754_v1 = vld [vmem:[%s14479_s3 + $0x1910] sm:$0xff] }
 0x4d0   : > { %5213 = vmatpush2.msra.mxu0 %v7048_v37  ;;  %5144 = vmatpush2.msra.mxu1 %v6916_v2  ;;  %v6755_v51 = vld [vmem:[%s14479_s3 + $0x1918] sm:$0xff]  ;;  %v6882_v37 = vld [vmem:[%s14479_s3 + $0x1d10] sm:$0xff] }
 0x4d1   : > { %5214 = vmatprep.subr.mxu0 %v7045_v45  ;;  %5145 = vmatprep.subr.mxu1 %v6913_v11  ;;  %v6883_v44 = vld [vmem:[%s14479_s3 + $0x1d18] sm:$0xff]  ;;  %v6750_v2 = vld [vmem:[%s14479_s3 + $0x18f0] sm:$0xff] }
 0x4d2   : > { %5215 = vmatpush2.msra.mxu0 %v7044_v10  ;;  %5146 = vmatpush2.msra.mxu1 %v6912_v47  ;;  %v6747_v21 = vld [vmem:[%s14479_s3 + $0x18d8] sm:$0xff]  ;;  %v6746_v45 = vld [vmem:[%s14479_s3 + $0x18d0] sm:$0xff] }
 0x4d3   : > { %5216 = vmatprep.subr.mxu0 %v7041_v48  ;;  %5148 = vmatmul.mubr.f32.vlgmr.msra.gmra.mxu1 %v13825_v63  ;;  %v6875_v11 = vld [vmem:[%s14479_s3 + $0x1cd8] sm:$0xff]  ;;  %v6742_v10 = vld [vmem:[%s14479_s3 + $0x18b0] sm:$0xff] }
 0x4d4   : > { %5217 = vmatpush2.msra.mxu0 %v7040_v58  ;;  %5218 = vmatprep.mubr.f32.mxu0 %v13822_v27  ;;  %v6743_v7 = vld [vmem:[%s14479_s3 + $0x18b8] sm:$0xff] }
 0x4d5   : > { %5225 = vmatprep.subr.mxu1 %v6783_v32  ;;  %5219 = vmatmul.mubr.f32.vlgmr.msra.gmra.mxu0 %v13836_v9  ;;  %v6871_v47 = vld [vmem:[%s14479_s3 + $0x1cb8] sm:$0xff] }
 0x4d6   : > { %5226 = vmatpush1.msra.mxu1 %v6782_v49  ;;  %5289 = vmatprep.mubr.f32.mxu1 %v13060_v31  ;;  %v6774_v31 = vld [vmem:[%s14479_s3 + $0x19b0] sm:$0xff]  ;;  %v6739_v48 = vld [vmem:[%s14479_s3 + $0x1898] sm:$0xff] }
 0x4d7   : > { %5296 = vmatprep.subr.mxu0 %v6911_v5  ;;  %5227 = vmatprep.subr.mxu1 %v6779_v60  ;;  %v6867_v58 = vld [vmem:[%s14479_s3 + $0x1c98] sm:$0xff]  ;;  %v6866_v49 = vld [vmem:[%s14479_s3 + $0x1c90] sm:$0xff] }
 0x4d8   : > { %5297 = vmatpush1.msra.mxu0 %v6910_v62  ;;  %5360 = vmatprep.mubr.f32.mxu0 %v13439_v15  ;;  %v6770_v15 = vld [vmem:[%s14479_s3 + $0x1990] sm:$0xff]  ;;  %v6735_v32 = vld [vmem:[%s14479_s3 + $0x1878] sm:$0xff] }
 0x4d9   : > { %5228 = vmatpush1.msra.mxu1 %v6778_v13  ;;  %5298 = vmatprep.subr.mxu0 %v6907_v14  ;;  %v6734_v5 = vld [vmem:[%s14479_s3 + $0x1870] sm:$0xff]  ;;  %v6863_v60 = vld [vmem:[%s14479_s3 + $0x1c78] sm:$0xff] }
 0x4da   : > { %5229 = vmatprep.subr.mxu1 %v6775_v16  ;;  %5299 = vmatpush1.msra.mxu0 %v6906_v17  ;;  %v6731_v62 = vld [vmem:[%s14479_s3 + $0x1858] sm:$0xff]  ;;  %v6862_v13 = vld [vmem:[%s14479_s3 + $0x1c70] sm:$0xff] }
 0x4db   : > { %5230 = vmatpush1.msra.mxu1 %v6774_v31  ;;  %5300 = vmatprep.subr.mxu0 %v6903_v18  ;;  %v6730_v14 = vld [vmem:[%s14479_s3 + $0x1850] sm:$0xff]  ;;  %v6859_v16 = vld [vmem:[%s14479_s3 + $0x1c58] sm:$0xff] }
 0x4dc   : > { %5231 = vmatprep.subr.mxu1 %v6771_v20  ;;  %5301 = vmatpush1.msra.mxu0 %v6902_v23  ;;  %v6727_v17 = vld [vmem:[%s14479_s3 + $0x1838] sm:$0xff]  ;;  %v6858_v31 = vld [vmem:[%s14479_s3 + $0x1c50] sm:$0xff] }
 0x4dd   : > { %5232 = vmatpush1.msra.mxu1 %v6770_v15  ;;  %5302 = vmatprep.subr.mxu0 %v6899_v29  ;;  %v6726_v18 = vld [vmem:[%s14479_s3 + $0x1830] sm:$0xff]  ;;  %v6855_v20 = vld [vmem:[%s14479_s3 + $0x1c38] sm:$0xff] }
 0x4de   : > { %5233 = vmatprep.subr.mxu1 %v6767_v3  ;;  %5303 = vmatpush1.msra.mxu0 %v6898_v30  ;;  %v6723_v23 = vld [vmem:[%s14479_s3 + $0x1818] sm:$0xff]  ;;  %v6854_v15 = vld [vmem:[%s14479_s3 + $0x1c30] sm:$0xff] }
 0x4df   : > { %5234 = vmatpush1.msra.mxu1 %v6766_v4  ;;  %5304 = vmatprep.subr.mxu0 %v6895_v50  ;;  %v6722_v29 = vld [vmem:[%s14479_s3 + $0x1810] sm:$0xff]  ;;  %v6851_v3 = vld [vmem:[%s14479_s3 + $0x1c18] sm:$0xff] }
 0x4e0   : > { %5235 = vmatprep.subr.mxu1 %v6763_v42  ;;  %5305 = vmatpush1.msra.mxu0 %v6894_v33  ;;  %v6847_v30 = vld [vmem:[%s14479_s3 + $0x1bf8] sm:$0xff]  ;;  %v6850_v4 = vld [vmem:[%s14479_s3 + $0x1c10] sm:$0xff] }
 0x4e1   : > { %5236 = vmatpush1.msra.mxu1 %v6762_v34  ;;  %5306 = vmatprep.subr.mxu0 %v6891_v43  ;;  %v6846_v50 = vld [vmem:[%s14479_s3 + $0x1bf0] sm:$0xff]  ;;  %v6975_v42 = vld [vmem:[%s14479_s3 + $0x1ff8] sm:$0xff] }
 0x4e2   : > { %5237 = vmatprep.subr.mxu1 %v6759_v46  ;;  %5307 = vmatpush1.msra.mxu0 %v6890_v52  ;;  %v6843_v33 = vld [vmem:[%s14479_s3 + $0x1bd8] sm:$0xff]  ;;  %v6974_v34 = vld [vmem:[%s14479_s3 + $0x1ff0] sm:$0xff] }
 0x4e3   : > { %5238 = vmatpush1.msra.mxu1 %v6758_v39  ;;  %5308 = vmatprep.subr.mxu0 %v6887_v61  ;;  %v6842_v43 = vld [vmem:[%s14479_s3 + $0x1bd0] sm:$0xff]  ;;  %v6971_v46 = vld [vmem:[%s14479_s3 + $0x1fd8] sm:$0xff] }
 0x4e4   : > { %5239 = vmatprep.subr.mxu1 %v6755_v51  ;;  %5309 = vmatpush1.msra.mxu0 %v6886_v24  ;;  %v6839_v52 = vld [vmem:[%s14479_s3 + $0x1bb8] sm:$0xff]  ;;  %v6970_v39 = vld [vmem:[%s14479_s3 + $0x1fd0] sm:$0xff] }
 0x4e5   : > { %5240 = vmatpush1.msra.mxu1 %v6754_v1  ;;  %5310 = vmatprep.subr.mxu0 %v6883_v44  ;;  %v6838_v61 = vld [vmem:[%s14479_s3 + $0x1bb0] sm:$0xff]  ;;  %v6967_v51 = vld [vmem:[%s14479_s3 + $0x1fb8] sm:$0xff] }
 0x4e6   : > { %5241 = vmatprep.subr.mxu1 %v6751_v36  ;;  %5311 = vmatpush1.msra.mxu0 %v6882_v37  ;;  %v6835_v24 = vld [vmem:[%s14479_s3 + $0x1b98] sm:$0xff]  ;;  %v6966_v1 = vld [vmem:[%s14479_s3 + $0x1fb0] sm:$0xff] }
 0x4e7   : > { %5242 = vmatpush1.msra.mxu1 %v6750_v2  ;;  %5312 = vmatprep.subr.mxu0 %v6879_v41  ;;  %v6834_v44 = vld [vmem:[%s14479_s3 + $0x1b90] sm:$0xff]  ;;  %v6963_v36 = vld [vmem:[%s14479_s3 + $0x1f98] sm:$0xff] }
 0x4e8   : > { %5243 = vmatprep.subr.mxu1 %v6747_v21  ;;  %5313 = vmatpush1.msra.mxu0 %v6878_v40  ;;  %v6831_v37 = vld [vmem:[%s14479_s3 + $0x1b78] sm:$0xff]  ;;  %v6962_v2 = vld [vmem:[%s14479_s3 + $0x1f90] sm:$0xff] }
 0x4e9   : > { %5244 = vmatpush1.msra.mxu1 %v6746_v45  ;;  %5314 = vmatprep.subr.mxu0 %v6875_v11  ;;  %v6830_v41 = vld [vmem:[%s14479_s3 + $0x1b70] sm:$0xff]  ;;  %v6959_v21 = vld [vmem:[%s14479_s3 + $0x1f78] sm:$0xff] }
 0x4ea   : > { %5245 = vmatprep.subr.mxu1 %v6743_v7  ;;  %5315 = vmatpush1.msra.mxu0 %v6874_v59  ;;  %v6827_v40 = vld [vmem:[%s14479_s3 + $0x1b58] sm:$0xff]  ;;  %v6958_v45 = vld [vmem:[%s14479_s3 + $0x1f70] sm:$0xff] }
 0x4eb   : > { %5246 = vmatpush1.msra.mxu1 %v6742_v10  ;;  %5316 = vmatprep.subr.mxu0 %v6871_v47  ;;  %v6826_v11 = vld [vmem:[%s14479_s3 + $0x1b50] sm:$0xff]  ;;  %v6955_v7 = vld [vmem:[%s14479_s3 + $0x1f58] sm:$0xff] }
 0x4ec   : > { %5247 = vmatprep.subr.mxu1 %v6739_v48  ;;  %5317 = vmatpush1.msra.mxu0 %v6870_v6  ;;  %v6823_v59 = vld [vmem:[%s14479_s3 + $0x1b38] sm:$0xff]  ;;  %v6954_v10 = vld [vmem:[%s14479_s3 + $0x1f50] sm:$0xff] }
 0x4ed   : > { %5248 = vmatpush1.msra.mxu1 %v6738_v22  ;;  %5318 = vmatprep.subr.mxu0 %v6867_v58  ;;  %v6822_v47 = vld [vmem:[%s14479_s3 + $0x1b30] sm:$0xff]  ;;  %v6951_v48 = vld [vmem:[%s14479_s3 + $0x1f38] sm:$0xff] }
 0x4ee   : > { %5249 = vmatprep.subr.mxu1 %v6735_v32  ;;  %5319 = vmatpush1.msra.mxu0 %v6866_v49  ;;  %v6819_v6 = vld [vmem:[%s14479_s3 + $0x1b18] sm:$0xff]  ;;  %v6950_v22 = vld [vmem:[%s14479_s3 + $0x1f30] sm:$0xff] }
 0x4ef   : > { %5250 = vmatpush1.msra.mxu1 %v6734_v5  ;;  %5320 = vmatprep.subr.mxu0 %v6863_v60  ;;  %v6818_v58 = vld [vmem:[%s14479_s3 + $0x1b10] sm:$0xff]  ;;  %v6947_v32 = vld [vmem:[%s14479_s3 + $0x1f18] sm:$0xff] }
 0x4f0   : > { %5251 = vmatprep.subr.mxu1 %v6731_v62  ;;  %5321 = vmatpush1.msra.mxu0 %v6862_v13  ;;  %v6815_v49 = vld [vmem:[%s14479_s3 + $0x1af8] sm:$0xff]  ;;  %v6946_v5 = vld [vmem:[%s14479_s3 + $0x1f10] sm:$0xff]  ;;  %v14132_v13 = vpop.f32.mrf.mxu0 }
 0x4f1   : > { %5252 = vmatpush1.msra.mxu1 %v6730_v14  ;;  %5322 = vmatprep.subr.mxu0 %v6859_v16  ;;  %v6814_v60 = vld [vmem:[%s14479_s3 + $0x1af0] sm:$0xff]  ;;  %v6943_v62 = vld [vmem:[%s14479_s3 + $0x1ef8] sm:$0xff] }
 0x4f2   : > { %5253 = vmatprep.subr.mxu1 %v6727_v17  ;;  %5323 = vmatpush1.msra.mxu0 %v6858_v31  ;;  %v6811_v14 = vld [vmem:[%s14479_s3 + $0x1ad8] sm:$0xff]  ;;  %v6942_v16 = vld [vmem:[%s14479_s3 + $0x1ef0] sm:$0xff] }
 0x4f3   : > { %5254 = vmatpush1.msra.mxu1 %v6726_v18  ;;  %5324 = vmatprep.subr.mxu0 %v6855_v20  ;;  %v6810_v17 = vld [vmem:[%s14479_s3 + $0x1ad0] sm:$0xff]  ;;  %v6939_v31 = vld [vmem:[%s14479_s3 + $0x1ed8] sm:$0xff] }
 0x4f4   : > { %5255 = vmatprep.subr.mxu1 %v6723_v23  ;;  %5325 = vmatpush1.msra.mxu0 %v6854_v15  ;;  %v6807_v18 = vld [vmem:[%s14479_s3 + $0x1ab8] sm:$0xff]  ;;  %v6938_v20 = vld [vmem:[%s14479_s3 + $0x1ed0] sm:$0xff] }
 0x4f5   : > { %5256 = vmatpush1.msra.mxu1 %v6722_v29  ;;  %5326 = vmatprep.subr.mxu0 %v6851_v3  ;;  %v6806_v23 = vld [vmem:[%s14479_s3 + $0x1ab0] sm:$0xff]  ;;  %v6935_v15 = vld [vmem:[%s14479_s3 + $0x1eb8] sm:$0xff]  ;;  %v14158_v29 = vpop.f32.mrf.mxu0 }
 0x4f6   : > { %5257 = vmatprep.subr.mxu1 %v6847_v30  ;;  %5327 = vmatpush1.msra.mxu0 %v6850_v4  ;;  %v6803_v3 = vld [vmem:[%s14479_s3 + $0x1a98] sm:$0xff]  ;;  %v6934_v30 = vld [vmem:[%s14479_s3 + $0x1eb0] sm:$0xff]  ;;  %v14166_v4 = vpop.f32.mrf.mxu1 }
 0x4f7   : > { %5258 = vmatpush2.msra.mxu1 %v6846_v50  ;;  %5328 = vmatprep.subr.mxu0 %v6975_v42  ;;  %v6802_v50 = vld [vmem:[%s14479_s3 + $0x1a90] sm:$0xff]  ;;  %v6931_v42 = vld [vmem:[%s14479_s3 + $0x1e98] sm:$0xff] }
 0x4f8   : > { %5259 = vmatprep.subr.mxu1 %v6843_v33  ;;  %5329 = vmatpush2.msra.mxu0 %v6974_v34  ;;  %v14174_v33 = vpop.f32.mrf.mxu0  ;;  %v6799_v34 = vld [vmem:[%s14479_s3 + $0x1a78] sm:$0xff] }
 0x4f9   : > { %5260 = vmatpush2.msra.mxu1 %v6842_v43  ;;  %5330 = vmatprep.subr.mxu0 %v6971_v46  ;;  %v6930_v43 = vld [vmem:[%s14479_s3 + $0x1e90] sm:$0xff] }
 0x4fa   : > { %5261 = vmatprep.subr.mxu1 %v6839_v52  ;;  %5331 = vmatpush2.msra.mxu0 %v6970_v39  ;;  %v6798_v46 = vld [vmem:[%s14479_s3 + $0x1a70] sm:$0xff]  ;;  %v6927_v52 = vld [vmem:[%s14479_s3 + $0x1e78] sm:$0xff] }
 0x4fb   : > { %5262 = vmatpush2.msra.mxu1 %v6838_v61  ;;  %5332 = vmatprep.subr.mxu0 %v6967_v51  ;;  %v6795_v39 = vld [vmem:[%s14479_s3 + $0x1a58] sm:$0xff]  ;;  %v6926_v61 = vld [vmem:[%s14479_s3 + $0x1e70] sm:$0xff]  ;;  %v14194_v51 = vpop.f32.mrf.mxu1 }
 0x4fc   : > { %5263 = vmatprep.subr.mxu1 %v6835_v24  ;;  %5333 = vmatpush2.msra.mxu0 %v6966_v1  ;;  %v6794_v24 = vld [vmem:[%s14479_s3 + $0x1a50] sm:$0xff]  ;;  %v6923_v1 = vld [vmem:[%s14479_s3 + $0x1e58] sm:$0xff] }
 0x4fd   : > { %5264 = vmatpush2.msra.mxu1 %v6834_v44  ;;  %5334 = vmatprep.subr.mxu0 %v6963_v36  ;;  %v14202_v44 = vpop.f32.mrf.mxu0  ;;  %v6791_v36 = vld [vmem:[%s14479_s3 + $0x1a38] sm:$0xff] }
 0x4fe   : > { %5265 = vmatprep.subr.mxu1 %v6831_v37  ;;  %5335 = vmatpush2.msra.mxu0 %v6962_v2  ;;  %v6922_v37 = vld [vmem:[%s14479_s3 + $0x1e50] sm:$0xff] }
 0x4ff   : > { %5266 = vmatpush2.msra.mxu1 %v6830_v41  ;;  %5336 = vmatprep.subr.mxu0 %v6959_v21  ;;  %v6790_v2 = vld [vmem:[%s14479_s3 + $0x1a30] sm:$0xff]  ;;  %v6919_v41 = vld [vmem:[%s14479_s3 + $0x1e38] sm:$0xff] }
 0x500   : > { %5267 = vmatprep.subr.mxu1 %v6827_v40  ;;  %5337 = vmatpush2.msra.mxu0 %v6958_v45  ;;  %v6787_v40 = vld [vmem:[%s14479_s3 + $0x1a18] sm:$0xff]  ;;  %v6918_v45 = vld [vmem:[%s14479_s3 + $0x1e30] sm:$0xff] }
 0x501   : > { %5268 = vmatpush2.msra.mxu1 %v6826_v11  ;;  %5338 = vmatprep.subr.mxu0 %v6955_v7 }
 0x502   : > { %5269 = vmatprep.subr.mxu1 %v6823_v59  ;;  %5339 = vmatpush2.msra.mxu0 %v6954_v10  ;;  %v6786_v59 = vld [vmem:[%s14479_s3 + $0x1a10] sm:$0xff]  ;;  %v6915_v10 = vld [vmem:[%s14479_s3 + $0x1e18] sm:$0xff] }
 0x503   : > { %5270 = vmatpush2.msra.mxu1 %v6822_v47  ;;  %5340 = vmatprep.subr.mxu0 %v6951_v48  ;;  %v6914_v48 = vld [vmem:[%s14479_s3 + $0x1e10] sm:$0xff] }
 0x504   : > { %5271 = vmatprep.subr.mxu1 %v6819_v6  ;;  %5341 = vmatpush2.msra.mxu0 %v6950_v22 }
 0x505   : > { %5272 = vmatpush2.msra.mxu1 %v6818_v58  ;;  %5342 = vmatprep.subr.mxu0 %v6947_v32  ;;  %v7039_v58 = vld [vmem:[%s14479_s3 + $0x21f8] sm:$0xff]  ;;  %v7038_v32 = vld [vmem:[%s14479_s3 + $0x21f0] sm:$0xff] }
 0x506   : > { %5273 = vmatprep.subr.mxu1 %v6815_v49  ;;  %5343 = vmatpush2.msra.mxu0 %v6946_v5  ;;  %v7034_v5 = vld [vmem:[%s14479_s3 + $0x21d0] sm:$0xff] }
 0x507   : > { %5274 = vmatpush2.msra.mxu1 %v6814_v60  ;;  %5344 = vmatprep.subr.mxu0 %v6943_v62  ;;  %v7031_v60 = vld [vmem:[%s14479_s3 + $0x21b8] sm:$0xff]  ;;  %v7026_v62 = vld [vmem:[%s14479_s3 + $0x2190] sm:$0xff] }
 0x508   : > { %5275 = vmatprep.subr.mxu1 %v6811_v14  ;;  %5345 = vmatpush2.msra.mxu0 %v6942_v16  ;;  %v7022_v14 = vld [vmem:[%s14479_s3 + $0x2170] sm:$0xff]  ;;  %v7019_v16 = vld [vmem:[%s14479_s3 + $0x2158] sm:$0xff] }
 0x509   : > { %5276 = vmatpush2.msra.mxu1 %v6810_v17  ;;  %5346 = vmatprep.subr.mxu0 %v6939_v31  ;;  %v7018_v17 = vld [vmem:[%s14479_s3 + $0x2150] sm:$0xff]  ;;  %v7015_v31 = vld [vmem:[%s14479_s3 + $0x2138] sm:$0xff] }
 0x50a   : > { %5277 = vmatprep.subr.mxu1 %v6807_v18  ;;  %5347 = vmatpush2.msra.mxu0 %v6938_v20  ;;  %v7014_v18 = vld [vmem:[%s14479_s3 + $0x2130] sm:$0xff]  ;;  %v7011_v20 = vld [vmem:[%s14479_s3 + $0x2118] sm:$0xff] }
 0x50b   : > { %5278 = vmatpush2.msra.mxu1 %v6806_v23  ;;  %5348 = vmatprep.subr.mxu0 %v6935_v15  ;;  %v7010_v23 = vld [vmem:[%s14479_s3 + $0x2110] sm:$0xff]  ;;  %v7007_v15 = vld [vmem:[%s14479_s3 + $0x20f8] sm:$0xff] }
 0x50c   : > { %5279 = vmatprep.subr.mxu1 %v6803_v3  ;;  %5349 = vmatpush2.msra.mxu0 %v6934_v30  ;;  %v7006_v3 = vld [vmem:[%s14479_s3 + $0x20f0] sm:$0xff]  ;;  %v7003_v30 = vld [vmem:[%s14479_s3 + $0x20d8] sm:$0xff] }
 0x50d   : > { %5280 = vmatpush2.msra.mxu1 %v6802_v50  ;;  %5350 = vmatprep.subr.mxu0 %v6931_v42  ;;  %v7002_v50 = vld [vmem:[%s14479_s3 + $0x20d0] sm:$0xff]  ;;  %v6999_v42 = vld [vmem:[%s14479_s3 + $0x20b8] sm:$0xff] }
 0x50e   : > { %5281 = vmatprep.subr.mxu1 %v6799_v34  ;;  %5351 = vmatpush2.msra.mxu0 %v6930_v43  ;;  %v6998_v34 = vld [vmem:[%s14479_s3 + $0x20b0] sm:$0xff]  ;;  %v6995_v43 = vld [vmem:[%s14479_s3 + $0x2098] sm:$0xff] }
 0x50f   : > { %5282 = vmatpush2.msra.mxu1 %v6798_v46  ;;  %5352 = vmatprep.subr.mxu0 %v6927_v52  ;;  %v6994_v46 = vld [vmem:[%s14479_s3 + $0x2090] sm:$0xff]  ;;  %v6991_v52 = vld [vmem:[%s14479_s3 + $0x2078] sm:$0xff] }
 0x510   : > { %5283 = vmatprep.subr.mxu1 %v6795_v39  ;;  %5353 = vmatpush2.msra.mxu0 %v6926_v61  ;;  %v4432_v21 = vpop.f32.mrf.mxu1  ;;  %v6990_v39 = vld [vmem:[%s14479_s3 + $0x2070] sm:$0xff]  ;;  %v6987_v61 = vld [vmem:[%s14479_s3 + $0x2058] sm:$0xff] }
 0x511   : > { %5284 = vmatpush2.msra.mxu1 %v6794_v24  ;;  %5354 = vmatprep.subr.mxu0 %v6923_v1  ;;  %v4433_v11 = vadd.f32 %v4432_v21, %v13418_v19  ;;  %v4503_v7 = vpop.f32.mrf.mxu0  ;;  %v6986_v24 = vld [vmem:[%s14479_s3 + $0x2050] sm:$0xff]  ;;  %v6983_v1 = vld [vmem:[%s14479_s3 + $0x2038] sm:$0xff] }
 0x512   : > { %5285 = vmatprep.subr.mxu1 %v6791_v36  ;;  %5355 = vmatpush2.msra.mxu0 %v6922_v37  ;;  %v4434_v47 = vpop.f32.mrf.mxu1  ;;  %v6982_v36 = vld [vmem:[%s14479_s3 + $0x2030] sm:$0xff]  ;;  %v6979_v37 = vld [vmem:[%s14479_s3 + $0x2018] sm:$0xff] }
 0x513   : > { %5286 = vmatpush2.msra.mxu1 %v6790_v2  ;;  %5356 = vmatprep.subr.mxu0 %v6919_v41  ;;  %v14232_v6 = vadd.f32 %v4503_v7, %v4433_v11  ;;  %v4435_v19 = vadd.f32 %v4434_v47, %v13427_v0  ;;  %v4505_v22 = vpop.f32.mrf.mxu0  ;;  %v7035_v0 = vld [vmem:[%s14479_s3 + $0x21d8] sm:$0xff]  ;;  %v6978_v2 = vld [vmem:[%s14479_s3 + $0x2010] sm:$0xff] }
 0x514   : > { %5287 = vmatprep.subr.mxu1 %v6787_v40  ;;  %5357 = vmatpush2.msra.mxu0 %v6918_v45  ;;  %v7103_v41 = vld [vmem:[%s14479_s3 + $0x23f8] sm:$0xff]  ;;  %v7102_v21 = vld [vmem:[%s14479_s3 + $0x23f0] sm:$0xff] }
 0x515   : > { %5288 = vmatpush2.msra.mxu1 %v6786_v59  ;;  %5358 = vmatprep.subr.mxu0 %v6915_v10  ;;  %v14241_v49 = vadd.f32 %v4505_v22, %v4435_v19  ;;  %v7099_v40 = vld [vmem:[%s14479_s3 + $0x23d8] sm:$0xff]  ;;  %v7098_v45 = vld [vmem:[%s14479_s3 + $0x23d0] sm:$0xff] }
 0x516   : > { %5290 = vmatmul.mubr.f32.vlgmr.msra.gmra.mxu1 %v13442_v12  ;;  %5359 = vmatpush2.msra.mxu0 %v6914_v48  ;;  %v7030_v12 = vld [vmem:[%s14479_s3 + $0x21b0] sm:$0xff]  ;;  %v7095_v11 = vld [vmem:[%s14479_s3 + $0x23b8] sm:$0xff] }
 0x517   : > { %5367 = vmatprep.subr.mxu1 %v7039_v58  ;;  %5361 = vmatmul.mubr.f32.vlgmr.msra.gmra.mxu0 %v13825_v63  ;;  %v7027_v63 = vld [vmem:[%s14479_s3 + $0x2198] sm:$0xff]  ;;  %v7094_v7 = vld [vmem:[%s14479_s3 + $0x23b0] sm:$0xff] }
 0x518   : > { %5368 = vmatpush1.msra.mxu1 %v7038_v32  ;;  %5431 = vmatprep.mubr.f32.mxu1 %v13822_v27  ;;  %v7023_v27 = vld [vmem:[%s14479_s3 + $0x2178] sm:$0xff]  ;;  %v7090_v10 = vld [vmem:[%s14479_s3 + $0x2390] sm:$0xff] }
 0x519   : > { %5369 = vmatprep.subr.mxu1 %v7035_v0  ;;  %v7091_v59 = vld [vmem:[%s14479_s3 + $0x2398] sm:$0xff]  ;;  %v7086_v48 = vld [vmem:[%s14479_s3 + $0x2370] sm:$0xff] }
 0x51a   : > { %5370 = vmatpush1.msra.mxu1 %v7034_v5  ;;  %v7087_v47 = vld [vmem:[%s14479_s3 + $0x2378] sm:$0xff]  ;;  %v7082_v22 = vld [vmem:[%s14479_s3 + $0x2350] sm:$0xff] }
 0x51b   : > { %5371 = vmatprep.subr.mxu1 %v7031_v60  ;;  %v7083_v19 = vld [vmem:[%s14479_s3 + $0x2358] sm:$0xff]  ;;  %v7078_v32 = vld [vmem:[%s14479_s3 + $0x2330] sm:$0xff] }
 0x51c   : > { %5372 = vmatpush1.msra.mxu1 %v7030_v12  ;;  %v7079_v58 = vld [vmem:[%s14479_s3 + $0x2338] sm:$0xff]  ;;  %v7074_v5 = vld [vmem:[%s14479_s3 + $0x2310] sm:$0xff] }
 0x51d   : > { %5373 = vmatprep.subr.mxu1 %v7027_v63  ;;  %v7075_v0 = vld [vmem:[%s14479_s3 + $0x2318] sm:$0xff]  ;;  %v7070_v12 = vld [vmem:[%s14479_s3 + $0x22f0] sm:$0xff] }
 0x51e   : > { %5374 = vmatpush1.msra.mxu1 %v7026_v62  ;;  %v7071_v60 = vld [vmem:[%s14479_s3 + $0x22f8] sm:$0xff]  ;;  %v7066_v62 = vld [vmem:[%s14479_s3 + $0x22d0] sm:$0xff] }
 0x51f   : > { %5375 = vmatprep.subr.mxu1 %v7023_v27  ;;  %v7067_v63 = vld [vmem:[%s14479_s3 + $0x22d8] sm:$0xff] }
 0x520   : > { %5376 = vmatpush1.msra.mxu1 %v7022_v14  ;;  %v7063_v27 = vld [vmem:[%s14479_s3 + $0x22b8] sm:$0xff]  ;;  %v7062_v14 = vld [vmem:[%s14479_s3 + $0x22b0] sm:$0xff] }
 0x521   : > { %5377 = vmatprep.subr.mxu1 %v7019_v16  ;;  %v7059_v16 = vld [vmem:[%s14479_s3 + $0x2298] sm:$0xff] }
 0x522   : > { %5378 = vmatpush1.msra.mxu1 %v7018_v17  ;;  %v7058_v17 = vld [vmem:[%s14479_s3 + $0x2290] sm:$0xff] }
 0x523   : > { %5379 = vmatprep.subr.mxu1 %v7015_v31  ;;  %v7055_v31 = vld [vmem:[%s14479_s3 + $0x2278] sm:$0xff] }
 0x524   : > { %5380 = vmatpush1.msra.mxu1 %v7014_v18  ;;  %v7054_v18 = vld [vmem:[%s14479_s3 + $0x2270] sm:$0xff] }
 0x525   : > { %5381 = vmatprep.subr.mxu1 %v7011_v20  ;;  %v7051_v20 = vld [vmem:[%s14479_s3 + $0x2258] sm:$0xff] }
 0x526   : > { %5382 = vmatpush1.msra.mxu1 %v7010_v23  ;;  %v7050_v23 = vld [vmem:[%s14479_s3 + $0x2250] sm:$0xff] }
 0x527   : > { %5383 = vmatprep.subr.mxu1 %v7007_v15  ;;  %v7047_v15 = vld [vmem:[%s14479_s3 + $0x2238] sm:$0xff] }
 0x528   : > { %5384 = vmatpush1.msra.mxu1 %v7006_v3  ;;  %v7046_v3 = vld [vmem:[%s14479_s3 + $0x2230] sm:$0xff] }
 0x529   : > { %5385 = vmatprep.subr.mxu1 %v7003_v30  ;;  %v7043_v30 = vld [vmem:[%s14479_s3 + $0x2218] sm:$0xff] }
 0x52a   : > { %5386 = vmatpush1.msra.mxu1 %v7002_v50 }
 0x52b   : > { %5387 = vmatprep.subr.mxu1 %v6999_v42  ;;  %v7042_v42 = vld [vmem:[%s14479_s3 + $0x2210] sm:$0xff] }
 0x52c   : > { %5388 = vmatpush1.msra.mxu1 %v6998_v34 }
 0x52d   : > { %5389 = vmatprep.subr.mxu1 %v6995_v43 }
 0x52e   : > { %5390 = vmatpush1.msra.mxu1 %v6994_v46 }
 0x52f   : > { %5391 = vmatprep.subr.mxu1 %v6991_v52  ;;  %v3865_v52 = vadd.f32 %v12965_v38, %v12919_v57  ;;  %v5442_v57 = vld [vmem:[%s14480_s4] sm:$0xf] }
 0x530   : > { %5392 = vmatpush1.msra.mxu1 %v6990_v39  ;;  %v3867_v39 = vadd.f32 %v12993_v53, %v12945_v8 }
 0x531   : > { %5393 = vmatprep.subr.mxu1 %v6987_v61 }
 0x532   : > { %5394 = vmatpush1.msra.mxu1 %v6986_v24  ;;  %v3936_v24 = vadd.f32 %v12973_v54, %v3865_v52 }
 0x533   : > { %5395 = vmatprep.subr.mxu1 %v6983_v1  ;;  %v3938_v1 = vadd.f32 %v13001_v56, %v3867_v39 }
 0x534   : > { %5396 = vmatpush1.msra.mxu1 %v6982_v36 }
 0x535   : > { %5397 = vmatprep.subr.mxu1 %v6979_v37  ;;  %v4222_v37 = vadd.f32 %v14158_v29, %v3938_v1 }
 0x536   : > { %5398 = vmatpush1.msra.mxu1 %v6978_v2 }
 0x537   : > { %5399 = vmatprep.subr.mxu1 %v7103_v41  ;;  %v4293_v8 = vadd.f32 %v14194_v51, %v4222_v37  ;;  %v5451_v51 = vrot.slane %v5442_v57, %v2853_v26 }
 0x538   : > { %5400 = vmatpush2.msra.mxu1 %v7102_v21 }
 0x539   : > { %5401 = vmatprep.subr.mxu1 %v7099_v40  ;;  %v4364_v41 = vadd.f32 %v14202_v44, %v4293_v8  ;;  %v7135_v44 = vld [vmem:[%s7498_s24 + $0x8] sm:$0xff] }
 0x53a   : > { %5402 = vmatpush2.msra.mxu1 %v7098_v45 }
 0x53b   : > { %5403 = vmatprep.subr.mxu1 %v7095_v11 }
 0x53c   : > { %5404 = vmatpush2.msra.mxu1 %v7094_v7  ;;  %v5476_v7 = vstv %s5567_s28 }
 0x53d   : > { %5405 = vmatprep.subr.mxu1 %v7091_v59  ;;  %v7134_v59 = vld [vmem:[%s7498_s24] sm:$0xff] }
 0x53e   : > { %5406 = vmatpush2.msra.mxu1 %v7090_v10 }
 0x53f   : > { %5407 = vmatprep.subr.mxu1 %v7087_v47 }
 0x540   : > { %5408 = vmatpush2.msra.mxu1 %v7086_v48 }
 0x541   : > { %5409 = vmatprep.subr.mxu1 %v7083_v19 }
 0x542   : > { %5410 = vmatpush2.msra.mxu1 %v7082_v22 }
 0x543   : > { %5411 = vmatprep.subr.mxu1 %v7079_v58 }
 0x544   : > { %5412 = vmatpush2.msra.mxu1 %v7078_v32 }
 0x545   : > { %5413 = vmatprep.subr.mxu1 %v7075_v0 }
 0x546   : > { %5414 = vmatpush2.msra.mxu1 %v7074_v5 }
 0x547   : > { %5415 = vmatprep.subr.mxu1 %v7071_v60 }
 0x548   : > { %5416 = vmatpush2.msra.mxu1 %v7070_v12 }
 0x549   : > { %5417 = vmatprep.subr.mxu1 %v7067_v63 }
 0x54a   : > { %5418 = vmatpush2.msra.mxu1 %v7066_v62  ;;  %v5455_v62 = vrot.slane %v5442_v57, %v2857_v55 }
 0x54b   : > { %5419 = vmatprep.subr.mxu1 %v7063_v27 }
 0x54c   : > { %5420 = vmatpush2.msra.mxu1 %v7062_v14 }
 0x54d   : > { %5421 = vmatprep.subr.mxu1 %v7059_v16 }
 0x54e   : > { %5422 = vmatpush2.msra.mxu1 %v7058_v17  ;;  %v5459_v17 = vrot.slane %v5442_v57, %v2861_v28 }
 0x54f   : > { %5423 = vmatprep.subr.mxu1 %v7055_v31 }
 0x550   : > { %5424 = vmatpush2.msra.mxu1 %v7054_v18 }
 0x551   : > { %5425 = vmatprep.subr.mxu1 %v7051_v20  ;;  %v7136_v20 = vld [vmem:[%s7498_s24 + $0x10] sm:$0xff] }
 0x552   : > { %5426 = vmatpush2.msra.mxu1 %v7050_v23  ;;  %v4574_v50 = vpop.f32.mrf.mxu1 }
 0x553   : > { %5427 = vmatprep.subr.mxu1 %v7047_v15  ;;  %v4575_v34 = vadd.f32 %v4574_v50, %v14232_v6  ;;  %v4220_v6 = vadd.f32 %v14132_v13, %v3936_v24  ;;  %v5447_v13 = vrot.slane %v5442_v57, %v2849_v35 }
 0x554   : > { %5428 = vmatpush2.msra.mxu1 %v7046_v3  ;;  %v4576_v43 = vpop.f32.mrf.mxu1 }
 0x555   : > { %5429 = vmatprep.subr.mxu1 %v7043_v30  ;;  %v4577_v46 = vadd.f32 %v4576_v43, %v14241_v49  ;;  %v5078_v61 = vpop.f32.mrf.mxu0  ;;  %v4291_v49 = vadd.f32 %v14166_v4, %v4220_v6  ;;  %v7137_v30 = vld [vmem:[%s7498_s24 + $0x18] sm:$0xff] }
 0x556   : > { %5430 = vmatpush2.msra.mxu1 %v7042_v42 }
 0x557   : > { %5432 = vmatmul.mubr.f32.vlgmr.msra.gmra.mxu1 %v13836_v9  ;;  %v5080_v36 = vpop.f32.mrf.mxu0  ;;  %v4362_v56 = vadd.f32 %v14174_v33, %v4291_v49 }
 0x593   : > { %v5149_v2 = vpop.f32.mrf.mxu1 }
 0x594   : > { %v5150_v38 = vadd.f32 %v5149_v2, %v5078_v61 }
 0x595   : > { %v5220_v54 = vpop.f32.mrf.mxu0  ;;  %v5151_v53 = vpop.f32.mrf.mxu1 }
 0x596   : > { %v5221_v9 = vadd.f32 %v5220_v54, %v5150_v38  ;;  %v5152_v29 = vadd.f32 %v5151_v53, %v5080_v36 }
 0x597   : > { %v5222_v4 = vpop.f32.mrf.mxu0 }
 0x598   : > { %v5438_v21 = vadd.f32 %v5221_v9, %v4362_v56  ;;  %v5223_v40 = vadd.f32 %v5222_v4, %v5152_v29 }
 0x59a   : > { %v5464_v45 = vadd.f32 %v5447_v13, %v5438_v21  ;;  %v5439_v11 = vadd.f32 %v5223_v40, %v4364_v41 }
 0x59c   : > { %v5468_v10 = vadd.f32 %v7134_v59, %v5464_v45  ;;  %v5465_v33 = vadd.f32 %v5451_v51, %v5439_v11 }
 0x59e   : > { %vm5472_vm7 = vcmp.gt.f32.partialorder %v5468_v10, 0.0  ;;  %v5477_v35 = vmul.f32 %v5476_v7, %v5468_v10  ;;  %v5469_v47 = vadd.f32 %v7135_v44, %v5465_v33 }
 0x5a0   : > { %v5481_v48 = vsel %vm5472_vm7, %v5468_v10, %v5477_v35  ;;  %vm5473_vm8 = vcmp.gt.f32.partialorder %v5469_v47, 0.0  ;;  %v5478_v26 = vmul.f32 %v5476_v7, %v5469_v47 }
 0x5a1   : > { %5485 = vst [vmem:[%s14460_s10] sm:$0xff] %v5481_v48 }
 0x5a2   : > { %v5482_v19 = vsel %vm5473_vm8, %v5469_v47, %v5478_v26 }
 0x5a3   : > { %5486 = vst [vmem:[%s14460_s10 + $0x8] sm:$0xff] %v5482_v19 }
 0x5d6   : > { %v5291_v22 = vpop.f32.mrf.mxu1 }
 0x5d7   : > { %v5362_v58 = vpop.f32.mrf.mxu0 }
 0x5d8   : > { %v5293_v32 = vpop.f32.mrf.mxu1  ;;  %v5363_v5 = vadd.f32 %v5362_v58, %v5291_v22 }
 0x5d9   : > { %v5364_v0 = vpop.f32.mrf.mxu0 }
 0x5da   : > { %v5365_v12 = vadd.f32 %v5364_v0, %v5293_v32 }
 0x617   : > { %v5433_v60 = vpop.f32.mrf.mxu1 }
 0x618   : > { %v5434_v63 = vadd.f32 %v5433_v60, %v5363_v5 }
 0x619   : > { %v5435_v27 = vpop.f32.mrf.mxu1 }
 0x61a   : > { %v5440_v14 = vadd.f32 %v5434_v63, %v4575_v34  ;;  %v5436_v16 = vadd.f32 %v5435_v27, %v5365_v12 }
 0x61c   : > { %v5466_v31 = vadd.f32 %v5455_v62, %v5440_v14  ;;  %v5441_v18 = vadd.f32 %v5436_v16, %v4577_v46 }
 0x61e   : > { %v5470_v23 = vadd.f32 %v7136_v20, %v5466_v31  ;;  %v5467_v15 = vadd.f32 %v5459_v17, %v5441_v18 }
 0x620   : > { %vm5474_vm9 = vcmp.gt.f32.partialorder %v5470_v23, 0.0  ;;  %v5479_v3 = vmul.f32 %v5476_v7, %v5470_v23  ;;  %v5471_v50 = vadd.f32 %v7137_v30, %v5467_v15 }
 0x622   : > { %v5483_v42 = vsel %vm5474_vm9, %v5470_v23, %v5479_v3  ;;  %vm5475_vm10 = vcmp.gt.f32.partialorder %v5471_v50, 0.0  ;;  %v5480_v55 = vmul.f32 %v5476_v7, %v5471_v50 }
 0x623   : > { %5487 = vst [vmem:[%s14460_s10 + $0x10] sm:$0xff] %v5483_v42 }
 0x624   : > { %v5484_v43 = vsel %vm5475_vm10, %v5471_v50, %v5480_v55 }
 0x625   : > { %5488 = vst [vmem:[%s14460_s10 + $0x18] sm:$0xff] %v5484_v43 }
 0x626 PF: > { %s17_s21 = sadd.s32 1, %s7163_s21  }
 0x627   : > { %p14_p1 = scmp.ge.s32.totalorder %s17_s21, 4  }
 0x629   :  { %16 = sbr.rel (!%p14_p1) target bundleno = 1 (0x1), region = 84 }
 0x62e   :  { %5510 = vsyncpa [#allocation4], 1 }
 0x62f   :  { %5512 = vsyncpa [#allocation4 + $0x1], 1 }

</bundles_post_ra>
